<compile_context>
chip_gen: v7x
topology: tpu7x:2x2x1
jax: 0.10.0
libtpu: 0.0.40
codegen_flags: <defaults>
</compile_context>

<pallas_src>
import functools

import numpy as np
import jax
import jax.numpy as jnp
from jax.experimental import pallas as pl
from jax.experimental.pallas import tpu as pltpu

_EPS = 1e-5                      # GroupNorm eps (PyTorch default)
_SQRT2 = 1.4142135623730951
_GELU_C = 0.7978845608028654     # sqrt(2/pi)


# ----------------------------- in-kernel math ------------------------------
def _gelu(x):
    # tanh-approximation GELU (EUP tanh); error << test tolerance.
    return 0.5 * x * (1.0 + jnp.tanh(_GELU_C * (x + 0.044715 * x * x * x)))


# ----------------------------- host-side helpers ----------------------------
def _round_up(x, m):
    return (x + m - 1) // m * m


def _tap_info(Dp, Hp, Wp, s_pad):
    """Flat-lane offsets, mask-needed flags and h/w validity masks for a 3x3x3
    'same' conv over a (d,h,w) row-major flattened volume.  The d-direction
    boundary needs no mask: out-of-range d lands in the zero halo / zeroed
    lane padding of the activation scratch."""
    S = Dp * Hp * Wp
    s = np.arange(S)
    h = (s // Wp) % Hp
    w = s % Wp
    offs, needs, masks = [], [], []
    for kd in range(3):
        for kh in range(3):
            for kw in range(3):
                dd, hh, ww = kd - 1, kh - 1, kw - 1
                offs.append(dd * Hp * Wp + hh * Wp + ww)
                needs.append(not (hh == 0 and ww == 0))   # pure-d taps: no mask
                ok = ((h + hh >= 0) & (h + hh < Hp) &
                      (w + ww >= 0) & (w + ww < Wp))
                m = np.zeros(s_pad, np.float32)
                m[:S] = ok
                masks.append(m)
    return tuple(offs), tuple(needs), np.stack(masks)[:, None, :]  # (27,1,s_pad)


def _flat_w(w, kp):
    """(Cout,Cin,3,3,3) -> (Cout,kp); column t*Cin+i = w[o,i,t]; zero-padded."""
    co, ci = w.shape[0], w.shape[1]
    wf = jnp.transpose(w.reshape(co, ci, 27), (0, 2, 1)).reshape(co, 27 * ci)
    return jnp.pad(wf, ((0, 0), (0, kp - 27 * ci)))


# -------------------------------- fused kernel ------------------------------
def _down_fused_kernel(x_ref, m_ref,
                       w1a_ref, g1a_ref, b1a_ref,
                       w1b_ref, g1b_ref, b1b_ref,
                       w2a_ref, g2a_ref, b2a_ref,
                       w2b_ref, g2b_ref, b2b_ref,
                       emb_ref, o_ref,
                       xpad_ref, patch_ref,
                       *, cin, cout, s_true, s_pad, pad, k1, k2,
                       offsets, needs_mask):
    cmax = xpad_ref.shape[0]
    bf = jnp.bfloat16

    # Re-zero the halo columns and the stale K-padding rows of the patch every
    # grid step (cheap; must run on EVERY core when the batch axis is
    # megacore-partitioned, so no pl.when(b == 0) gating).
    halo = jnp.zeros((cmax, pad), bf)
    xpad_ref[:, 0:pad] = halo
    xpad_ref[:, pad + s_pad:pad + s_pad + pad] = halo
    if k1 > 27 * cin:
        patch_ref[27 * cin:k1, :] = jnp.zeros((k1 - 27 * cin, s_pad), bf)
    if k2 > 27 * cout:
        patch_ref[27 * cout:k2, :] = jnp.zeros((k2 - 27 * cout, s_pad), bf)

    # Lane mask over the padded spatial axis (None when S is already 128-dense).
    if s_true != s_pad:
        lane_mask = (jax.lax.broadcasted_iota(jnp.int32, (1, s_pad), 1)
                     < s_true).astype(jnp.float32)
    else:
        lane_mask = None

    def mask_cast(a):
        # Zero padded lanes (they double as conv zero-padding) + ONE bf16 cast.
        if lane_mask is not None:
            a = a * lane_mask
        return a.astype(bf)

    # ---- MaxPool3d(2): elementwise max over the 8 window taps (bf16, VPU) ---
    pooled_bf = x_ref[0, 0]
    for tap in range(1, 8):
        pooled_bf = jnp.maximum(pooled_bf, x_ref[0, tap])        # (cin, s_pad)
    pooled_f32 = pooled_bf.astype(jnp.float32)

    def conv(act_bf, c_in, kp, w_ref):
        """3x3x3 'same' conv, channels on sublanes: (c_in,S) bf16 -> (c_out,S) f32."""
        xpad_ref[0:c_in, pad:pad + s_pad] = act_bf
        for t in range(27):                  # in-kernel im2col, all bf16, VMEM only
            off = offsets[t]
            tap = xpad_ref[0:c_in, pad + off:pad + off + s_pad]
            if needs_mask[t]:
                tap = tap * m_ref[t]
            patch_ref[t * c_in:(t + 1) * c_in, :] = tap
        return jnp.dot(w_ref[...], patch_ref[0:kp, :],
                       preferred_element_type=jnp.float32)

    def gnorm(y, c_out, g_ref, b_ref):
        # GroupNorm(num_groups=1): one-pass stats over the valid lanes only.
        # TODO(synk): two-pass / Welford stats if |mean| >> std at prod scale.
        ym = y if lane_mask is None else y * lane_mask
        n = c_out * s_true
        s1 = jnp.sum(jnp.sum(ym, axis=1, keepdims=True), axis=0, keepdims=True)
        s2 = jnp.sum(jnp.sum(ym * ym, axis=1, keepdims=True), axis=0,
                     keepdims=True)
        mean = s1 / n
        var = jnp.maximum(s2 / n - mean * mean, 0.0)
        inv = jax.lax.rsqrt(var + _EPS)
        return (y - mean) * inv * g_ref[...] + b_ref[...]

    # ---- DoubleConv(cin, cin, residual=True) -------------------------------
    h = _gelu(gnorm(conv(pooled_bf, cin, k1, w1a_ref), cin, g1a_ref, b1a_ref))
    h = gnorm(conv(mask_cast(h), cin, k1, w1b_ref), cin, g1b_ref, b1b_ref)
    h = _gelu(pooled_f32 + h)

    # ---- DoubleConv(cin, cout) ----------------------------------------------
    h = _gelu(gnorm(conv(mask_cast(h), cin, k1, w2a_ref), cout, g2a_ref, b2a_ref))
    h = gnorm(conv(mask_cast(h), cout, k2, w2b_ref), cout, g2b_ref, b2b_ref)

    # ---- + SiLU/Linear time embedding, broadcast over the spatial lanes -----
    o_ref[0] = (h + emb_ref[0]).astype(o_ref.dtype)


# ------------------------------ public wrapper -------------------------------
def down_forward(x, t, P):
    """x: (N, Cin, D, H, W) f32, t: (N, emb_dim) f32 -> (N, Cout, D/2, H/2, W/2)."""
    N, Cin, D, H, W = x.shape
    Dp, Hp, Wp = D // 2, H // 2, W // 2
    S = Dp * Hp * Wp
    S_pad = _round_up(S, 128)                  # lane-dense spatial axis
    Cout = P["w2a"].shape[0]
    PAD = _round_up(Hp * Wp + Wp + 1, 128)     # halo >= max |tap offset|, aligned
    K1 = _round_up(27 * Cin, 128)
    K2 = _round_up(27 * Cout, 128)
    Cmax = max(Cin, Cout)
    bf = jnp.bfloat16

    offs, needs, masks_np = _tap_info(Dp, Hp, Wp, S_pad)
    masks = jnp.asarray(masks_np).astype(bf)

    # Pool-window taps -> leading axis, channels -> sublanes, flattened (d,h,w)
    # -> lanes; bf16 cast folded into the same copy; lane axis zero-padded.
    # TODO(synk): feed x in NCDHW and do the stride-2 window max in-kernel to
    # drop this standalone HBM transpose round-trip (biggest win on v5e).
    xw = x.reshape(N, Cin, Dp, 2, Hp, 2, Wp, 2)
    x_taps = (xw.transpose(0, 3, 5, 7, 1, 2, 4, 6)
                .reshape(N, 8, Cin, S).astype(bf))
    if S_pad != S:
        x_taps = jnp.pad(x_taps, ((0, 0), (0, 0), (0, 0), (0, S_pad - S)))

    # Time embedding (SiLU + Linear): a tiny (N,E)@(E,Cout) matmul -> plain XLA,
    # fused into the surrounding graph (no extra pallas_call launch / HBM trip).
    emb = (jax.nn.silu(t) @ P["wl"].T + P["bl"]).reshape(N, Cout, 1)

    w1a = _flat_w(P["w1a"], K1).astype(bf)
    w1b = _flat_w(P["w1b"], K1).astype(bf)
    w2a = _flat_w(P["w2a"], K1).astype(bf)
    w2b = _flat_w(P["w2b"], K2).astype(bf)
    cvec = lambda v: v.reshape(-1, 1)          # (1, C) -> (C, 1) on sublanes

    kernel = functools.partial(
        _down_fused_kernel, cin=Cin, cout=Cout, s_true=S, s_pad=S_pad, pad=PAD,
        k1=K1, k2=K2, offsets=offs, needs_mask=needs)

    def full(shape):
        return pl.BlockSpec(shape, lambda b: (0,) * len(shape))

    # VMEM budget computed from actual scratch + 2x (double-buffered) I/O blocks.
    scratch_bytes = (Cmax * (S_pad + 2 * PAD) + max(K1, K2) * S_pad) * 2
    io_bytes = (8 * Cin * S_pad * 2 + 27 * S_pad * 2
                + (2 * Cin * K1 + Cout * K1 + Cout * K2) * 2
                + (4 * Cin + 4 * Cout) * 4 + Cout * 4
                + Cout * S_pad * 4)
    vmem_limit = int(max(scratch_bytes + 2 * io_bytes + (4 << 20), 16 << 20))
    # TODO(synk): once tiles approach v7x's 64 MiB VMEM, use the S-tiling /
    # per-tap-accumulation formulation instead of raising this limit further.

    out = pl.pallas_call(
        kernel,
        out_shape=jax.ShapeDtypeStruct((N, Cout, S_pad), jnp.float32),
        grid=(N,),
        in_specs=[
            pl.BlockSpec((1, 8, Cin, S_pad), lambda b: (b, 0, 0, 0)),  # pool taps
            full((27, 1, S_pad)),                                      # tap masks
            full((Cin, K1)), full((Cin, 1)), full((Cin, 1)),           # conv1a
            full((Cin, K1)), full((Cin, 1)), full((Cin, 1)),           # conv1b
            full((Cout, K1)), full((Cout, 1)), full((Cout, 1)),        # conv2a
            full((Cout, K2)), full((Cout, 1)), full((Cout, 1)),        # conv2b
            pl.BlockSpec((1, Cout, 1), lambda b: (b, 0, 0)),           # embedding
        ],
        out_specs=pl.BlockSpec((1, Cout, S_pad), lambda b: (b, 0, 0)),
        scratch_shapes=[
            pltpu.VMEM((Cmax, S_pad + 2 * PAD), bf),   # haloed activation (bf16)
            pltpu.VMEM((max(K1, K2), S_pad), bf),      # shared im2col patch
        ],
        compiler_params=pltpu.CompilerParams(
            # TODO(synk): add a second parallel axis (S or Cout tiles) so both
            # v7x TensorCores stay busy when N < 2.
            dimension_semantics=("parallel",),
            vmem_limit_bytes=vmem_limit),
    )(x_taps, masks,
      w1a, cvec(P["g1a"]), cvec(P["b1a"]),
      w1b, cvec(P["g1b"]), cvec(P["b1b"]),
      w2a, cvec(P["g2a"]), cvec(P["b2a"]),
      w2b, cvec(P["g2b"]), cvec(P["b2b"]),
      emb)

    if S_pad != S:
        out = out[..., :S]                     # drop the lane padding
    # channels already lead and S flattens (d,h,w) row-major -> plain reshape
    return out.reshape(N, Cout, Dp, Hp, Wp)


# ----------------------------- params / reference ---------------------------
def init_params(key, cin, cout, emb_dim):
    ks = jax.random.split(key, 14)

    def conv_w(k, co, ci):
        return 0.1 * jax.random.normal(k, (co, ci, 3, 3, 3), jnp.float32)

    def vec(k, c, base=0.0):
        return base + 0.1 * jax.random.normal(k, (1, c), jnp.float32)

    return {
        "w1a": conv_w(ks[0], cin, cin), "g1a": vec(ks[1], cin, 1.0), "b1a": vec(ks[2], cin),
        "w1b": conv_w(ks[3], cin, cin), "g1b": vec(ks[4], cin, 1.0), "b1b": vec(ks[5], cin),
        "w2a": conv_w(ks[6], cout, cin), "g2a": vec(ks[7], cout, 1.0), "b2a": vec(ks[8], cout),
        "w2b": conv_w(ks[9], cout, cout), "g2b": vec(ks[10], cout, 1.0), "b2b": vec(ks[11], cout),
        "wl": 0.1 * jax.random.normal(ks[12], (cout, emb_dim), jnp.float32),
        "bl": 0.1 * jax.random.normal(ks[13], (1, cout), jnp.float32),
    }


def ref_forward(x, t, P):
    def conv3(z, w):
        return jax.lax.conv_general_dilated(
            z, w, window_strides=(1, 1, 1),
            padding=((1, 1), (1, 1), (1, 1)),
            dimension_numbers=("NCDHW", "OIDHW", "NCDHW"),
            precision="highest")

    def gn(z, g, b):
        m = jnp.mean(z, axis=(1, 2, 3, 4), keepdims=True)
        v = jnp.mean((z - m) ** 2, axis=(1, 2, 3, 4), keepdims=True)
        zn = (z - m) / jnp.sqrt(v + _EPS)
        return zn * g[0][None, :, None, None, None] + b[0][None, :, None, None, None]

    def gelu(z):
        return 0.5 * z * (1.0 + jax.scipy.special.erf(z / jnp.float32(_SQRT2)))

    N, C, D, H, W = x.shape
    xp = x.reshape(N, C, D // 2, 2, H // 2, 2, W // 2, 2).max(axis=(3, 5, 7))

    def dconv(z, w1, g1, b1, w2, g2, b2, residual):
        h = gelu(gn(conv3(z, w1), g1, b1))
        h = gn(conv3(h, w2), g2, b2)
        return gelu(z + h) if residual else h

    h = dconv(xp, P["w1a"], P["g1a"], P["b1a"], P["w1b"], P["g1b"], P["b1b"], True)
    h = dconv(h, P["w2a"], P["g2a"], P["b2a"], P["w2b"], P["g2b"], P["b2b"], False)
    emb = jax.nn.silu(t) @ P["wl"].T + P["bl"][0]
    return h + emb[:, :, None, None, None]


if __name__ == "__main__":
    key = jax.random.PRNGKey(0)
    kx, kt, kp = jax.random.split(key, 3)
    N, Cin, Cout, D, E = 2, 4, 8, 8, 32
    x = jax.random.normal(kx, (N, Cin, D, D, D), jnp.float32)
    t = jax.random.normal(kt, (N, E), jnp.float32)
    P = init_params(kp, Cin, Cout, E)

    out = jax.jit(down_forward)(x, t, P)
    out = jax.block_until_ready(out)

    ref = ref_forward(x, t, P)
    assert out.shape == (N, Cout, D // 2, D // 2, D // 2)
    # Intentional accuracy tradeoffs: bf16 pool input, bf16 im2col/MXU operands
    # and tanh-GELU vs. the f32/erf reference -> slightly loosened tolerance.
    np.testing.assert_allclose(np.asarray(out), np.asarray(ref),
                               rtol=5e-2, atol=1e-1)
    print("KERNEL_OK")
</pallas_src>

<mosaic_0001>
module attributes {stable_mosaic.version = 11 : i64} {
  func.func @_down_fused_kernel(%arg0: i32, %arg1: memref<1x8x4x128xbf16, #tpu.memory_space<vmem>>, %arg2: memref<27x1x128xbf16, #tpu.memory_space<vmem>>, %arg3: memref<4x128xbf16, #tpu.memory_space<vmem>>, %arg4: memref<4x1xf32, #tpu.memory_space<vmem>>, %arg5: memref<4x1xf32, #tpu.memory_space<vmem>>, %arg6: memref<4x128xbf16, #tpu.memory_space<vmem>>, %arg7: memref<4x1xf32, #tpu.memory_space<vmem>>, %arg8: memref<4x1xf32, #tpu.memory_space<vmem>>, %arg9: memref<8x128xbf16, #tpu.memory_space<vmem>>, %arg10: memref<8x1xf32, #tpu.memory_space<vmem>>, %arg11: memref<8x1xf32, #tpu.memory_space<vmem>>, %arg12: memref<8x256xbf16, #tpu.memory_space<vmem>>, %arg13: memref<8x1xf32, #tpu.memory_space<vmem>>, %arg14: memref<8x1xf32, #tpu.memory_space<vmem>>, %arg15: memref<1x8x1xf32, #tpu.memory_space<vmem>>, %arg16: memref<1x8x128xf32, #tpu.memory_space<vmem>>, %arg17: memref<8x384xbf16, #tpu.memory_space<vmem>>, %arg18: memref<256x128xbf16, #tpu.memory_space<vmem>>) attributes {dimension_semantics = [#tpu.dimension_semantics<parallel>], iteration_bounds = array<i64: 2>, scalar_prefetch = 0 : i64, scratch_operands = 2 : i64, tpu.core_type = #tpu.core_type<tc>, window_params = [{transform_indices = @transform_0, window_bounds = array<i64: 1, 8, 4, 128>}, {pipeline_mode = #tpu.pipeline_mode<synchronous>, transform_indices = @transform_1, window_bounds = array<i64: 27, 1, 128>}, {pipeline_mode = #tpu.pipeline_mode<synchronous>, transform_indices = @transform_2, window_bounds = array<i64: 4, 128>}, {pipeline_mode = #tpu.pipeline_mode<synchronous>, transform_indices = @transform_3, window_bounds = array<i64: 4, 1>}, {pipeline_mode = #tpu.pipeline_mode<synchronous>, transform_indices = @transform_4, window_bounds = array<i64: 4, 1>}, {pipeline_mode = #tpu.pipeline_mode<synchronous>, transform_indices = @transform_5, window_bounds = array<i64: 4, 128>}, {pipeline_mode = #tpu.pipeline_mode<synchronous>, transform_indices = @transform_6, window_bounds = array<i64: 4, 1>}, {pipeline_mode = #tpu.pipeline_mode<synchronous>, transform_indices = @transform_7, window_bounds = array<i64: 4, 1>}, {pipeline_mode = #tpu.pipeline_mode<synchronous>, transform_indices = @transform_8, window_bounds = array<i64: 8, 128>}, {pipeline_mode = #tpu.pipeline_mode<synchronous>, transform_indices = @transform_9, window_bounds = array<i64: 8, 1>}, {pipeline_mode = #tpu.pipeline_mode<synchronous>, transform_indices = @transform_10, window_bounds = array<i64: 8, 1>}, {pipeline_mode = #tpu.pipeline_mode<synchronous>, transform_indices = @transform_11, window_bounds = array<i64: 8, 256>}, {pipeline_mode = #tpu.pipeline_mode<synchronous>, transform_indices = @transform_12, window_bounds = array<i64: 8, 1>}, {pipeline_mode = #tpu.pipeline_mode<synchronous>, transform_indices = @transform_13, window_bounds = array<i64: 8, 1>}, {transform_indices = @transform_14, window_bounds = array<i64: 1, 8, 1>}, {transform_indices = @transform_15, window_bounds = array<i64: 1, 8, 128>}]} {
    %cst = arith.constant 0.000000e+00 : bf16
    %0 = vector.broadcast %cst : bf16 to vector<8x128xbf16>
    %c0 = arith.constant 0 : index
    %c0_0 = arith.constant 0 : index
    %1 = vector.load %arg17[%c0, %c0_0] : memref<8x384xbf16, #tpu.memory_space<vmem>>, vector<8x128xbf16>
    tpu.vector_store %arg17[%c0, %c0_0], %0 {strides = array<i32>} : memref<8x384xbf16, #tpu.memory_space<vmem>>, vector<8x128xbf16>,
    %c0_1 = arith.constant 0 : index
    %c256 = arith.constant 256 : index
    %2 = vector.load %arg17[%c0_1, %c256] : memref<8x384xbf16, #tpu.memory_space<vmem>>, vector<8x128xbf16>
    tpu.vector_store %arg17[%c0_1, %c256], %0 {strides = array<i32>} : memref<8x384xbf16, #tpu.memory_space<vmem>>, vector<8x128xbf16>,
    %cst_2 = arith.constant 0.000000e+00 : bf16
    %3 = vector.broadcast %cst_2 : bf16 to vector<20x128xbf16>
    %c108 = arith.constant 108 : index
    %c0_3 = arith.constant 0 : index
    %4 = vector.load %arg18[%c108, %c0_3] : memref<256x128xbf16, #tpu.memory_space<vmem>>, vector<20x128xbf16>
    tpu.vector_store %arg18[%c108, %c0_3], %3 {strides = array<i32>} : memref<256x128xbf16, #tpu.memory_space<vmem>>, vector<20x128xbf16>,
    %cst_4 = arith.constant 0.000000e+00 : bf16
    %5 = vector.broadcast %cst_4 : bf16 to vector<40x128xbf16>
    %c216 = arith.constant 216 : index
    %c0_5 = arith.constant 0 : index
    %6 = vector.load %arg18[%c216, %c0_5] : memref<256x128xbf16, #tpu.memory_space<vmem>>, vector<40x128xbf16>
    tpu.vector_store %arg18[%c216, %c0_5], %5 {strides = array<i32>} : memref<256x128xbf16, #tpu.memory_space<vmem>>, vector<40x128xbf16>,
    %7 = tpu.iota {dimensions = array<i32: 1>} : vector<1x128xi32>
    %c64_i32 = arith.constant 64 : i32
    %8 = vector.broadcast %c64_i32 : i32 to vector<1x128xi32>
    %9 = arith.cmpi slt, %7, %8 : vector<1x128xi32>
    %10 = arith.extui %9 : vector<1x128xi1> to vector<1x128xi32>
    %11 = arith.sitofp %10 : vector<1x128xi32> to vector<1x128xf32>
    %c0_6 = arith.constant 0 : index
    %c0_7 = arith.constant 0 : index
    %c0_8 = arith.constant 0 : index
    %c0_9 = arith.constant 0 : index
    %12 = vector.load %arg1[%c0_6, %c0_7, %c0_8, %c0_9] : memref<1x8x4x128xbf16, #tpu.memory_space<vmem>>, vector<1x1x4x128xbf16>
    %13 = vector.shape_cast %12 : vector<1x1x4x128xbf16> to vector<4x128xbf16>
    %c0_10 = arith.constant 0 : index
    %c1 = arith.constant 1 : index
    %c0_11 = arith.constant 0 : index
    %c0_12 = arith.constant 0 : index
    %14 = vector.load %arg1[%c0_10, %c1, %c0_11, %c0_12] : memref<1x8x4x128xbf16, #tpu.memory_space<vmem>>, vector<1x1x4x128xbf16>
    %15 = vector.shape_cast %14 : vector<1x1x4x128xbf16> to vector<4x128xbf16>
    %16 = arith.maximumf %13, %15 : vector<4x128xbf16>
    %c0_13 = arith.constant 0 : index
    %c2 = arith.constant 2 : index
    %c0_14 = arith.constant 0 : index
    %c0_15 = arith.constant 0 : index
    %17 = vector.load %arg1[%c0_13, %c2, %c0_14, %c0_15] : memref<1x8x4x128xbf16, #tpu.memory_space<vmem>>, vector<1x1x4x128xbf16>
    %18 = vector.shape_cast %17 : vector<1x1x4x128xbf16> to vector<4x128xbf16>
    %19 = arith.maximumf %16, %18 : vector<4x128xbf16>
    %c0_16 = arith.constant 0 : index
    %c3 = arith.constant 3 : index
    %c0_17 = arith.constant 0 : index
    %c0_18 = arith.constant 0 : index
    %20 = vector.load %arg1[%c0_16, %c3, %c0_17, %c0_18] : memref<1x8x4x128xbf16, #tpu.memory_space<vmem>>, vector<1x1x4x128xbf16>
    %21 = vector.shape_cast %20 : vector<1x1x4x128xbf16> to vector<4x128xbf16>
    %22 = arith.maximumf %19, %21 : vector<4x128xbf16>
    %c0_19 = arith.constant 0 : index
    %c4 = arith.constant 4 : index
    %c0_20 = arith.constant 0 : index
    %c0_21 = arith.constant 0 : index
    %23 = vector.load %arg1[%c0_19, %c4, %c0_20, %c0_21] : memref<1x8x4x128xbf16, #tpu.memory_space<vmem>>, vector<1x1x4x128xbf16>
    %24 = vector.shape_cast %23 : vector<1x1x4x128xbf16> to vector<4x128xbf16>
    %25 = arith.maximumf %22, %24 : vector<4x128xbf16>
    %c0_22 = arith.constant 0 : index
    %c5 = arith.constant 5 : index
    %c0_23 = arith.constant 0 : index
    %c0_24 = arith.constant 0 : index
    %26 = vector.load %arg1[%c0_22, %c5, %c0_23, %c0_24] : memref<1x8x4x128xbf16, #tpu.memory_space<vmem>>, vector<1x1x4x128xbf16>
    %27 = vector.shape_cast %26 : vector<1x1x4x128xbf16> to vector<4x128xbf16>
    %28 = arith.maximumf %25, %27 : vector<4x128xbf16>
    %c0_25 = arith.constant 0 : index
    %c6 = arith.constant 6 : index
    %c0_26 = arith.constant 0 : index
    %c0_27 = arith.constant 0 : index
    %29 = vector.load %arg1[%c0_25, %c6, %c0_26, %c0_27] : memref<1x8x4x128xbf16, #tpu.memory_space<vmem>>, vector<1x1x4x128xbf16>
    %30 = vector.shape_cast %29 : vector<1x1x4x128xbf16> to vector<4x128xbf16>
    %31 = arith.maximumf %28, %30 : vector<4x128xbf16>
    %c0_28 = arith.constant 0 : index
    %c7 = arith.constant 7 : index
    %c0_29 = arith.constant 0 : index
    %c0_30 = arith.constant 0 : index
    %32 = vector.load %arg1[%c0_28, %c7, %c0_29, %c0_30] : memref<1x8x4x128xbf16, #tpu.memory_space<vmem>>, vector<1x1x4x128xbf16>
    %33 = vector.shape_cast %32 : vector<1x1x4x128xbf16> to vector<4x128xbf16>
    %34 = arith.maximumf %31, %33 : vector<4x128xbf16>
    %35 = arith.extf %34 : vector<4x128xbf16> to vector<4x128xf32>
    %c0_31 = arith.constant 0 : index
    %c128 = arith.constant 128 : index
    %36 = vector.load %arg17[%c0_31, %c128] : memref<8x384xbf16, #tpu.memory_space<vmem>>, vector<4x128xbf16>
    tpu.vector_store %arg17[%c0_31, %c128], %34 {strides = array<i32>} : memref<8x384xbf16, #tpu.memory_space<vmem>>, vector<4x128xbf16>,
    %c0_32 = arith.constant 0 : index
    %c107 = arith.constant 107 : index
    %37 = vector.load %arg17[%c0_32, %c107] : memref<8x384xbf16, #tpu.memory_space<vmem>>, vector<4x128xbf16>
    %c0_33 = arith.constant 0 : index
    %c0_34 = arith.constant 0 : index
    %c0_35 = arith.constant 0 : index
    %38 = vector.load %arg2[%c0_33, %c0_34, %c0_35] : memref<27x1x128xbf16, #tpu.memory_space<vmem>>, vector<1x1x128xbf16>
    %39 = vector.shape_cast %38 : vector<1x1x128xbf16> to vector<1x128xbf16>
    %40 = vector.broadcast %39 : vector<1x128xbf16> to vector<4x128xbf16>
    %41 = arith.mulf %37, %40 : vector<4x128xbf16>
    %c0_36 = arith.constant 0 : index
    %c0_37 = arith.constant 0 : index
    %42 = vector.load %arg18[%c0_36, %c0_37] : memref<256x128xbf16, #tpu.memory_space<vmem>>, vector<4x128xbf16>
    tpu.vector_store %arg18[%c0_36, %c0_37], %41 {strides = array<i32>} : memref<256x128xbf16, #tpu.memory_space<vmem>>, vector<4x128xbf16>,
    %c0_38 = arith.constant 0 : index
    %c108_39 = arith.constant 108 : index
    %43 = vector.load %arg17[%c0_38, %c108_39] : memref<8x384xbf16, #tpu.memory_space<vmem>>, vector<4x128xbf16>
    %c1_40 = arith.constant 1 : index
    %c0_41 = arith.constant 0 : index
    %c0_42 = arith.constant 0 : index
    %44 = vector.load %arg2[%c1_40, %c0_41, %c0_42] : memref<27x1x128xbf16, #tpu.memory_space<vmem>>, vector<1x1x128xbf16>
    %45 = vector.shape_cast %44 : vector<1x1x128xbf16> to vector<1x128xbf16>
    %46 = vector.broadcast %45 : vector<1x128xbf16> to vector<4x128xbf16>
    %47 = arith.mulf %43, %46 : vector<4x128xbf16>
    %c4_43 = arith.constant 4 : index
    %c0_44 = arith.constant 0 : index
    %48 = vector.load %arg18[%c4_43, %c0_44] : memref<256x128xbf16, #tpu.memory_space<vmem>>, vector<4x128xbf16>
    tpu.vector_store %arg18[%c4_43, %c0_44], %47 {strides = array<i32>} : memref<256x128xbf16, #tpu.memory_space<vmem>>, vector<4x128xbf16>,
    %c0_45 = arith.constant 0 : index
    %c109 = arith.constant 109 : index
    %49 = vector.load %arg17[%c0_45, %c109] : memref<8x384xbf16, #tpu.memory_space<vmem>>, vector<4x128xbf16>
    %c2_46 = arith.constant 2 : index
    %c0_47 = arith.constant 0 : index
    %c0_48 = arith.constant 0 : index
    %50 = vector.load %arg2[%c2_46, %c0_47, %c0_48] : memref<27x1x128xbf16, #tpu.memory_space<vmem>>, vector<1x1x128xbf16>
    %51 = vector.shape_cast %50 : vector<1x1x128xbf16> to vector<1x128xbf16>
    %52 = vector.broadcast %51 : vector<1x128xbf16> to vector<4x128xbf16>
    %53 = arith.mulf %49, %52 : vector<4x128xbf16>
    %c8 = arith.constant 8 : index
    %c0_49 = arith.constant 0 : index
    %54 = vector.load %arg18[%c8, %c0_49] : memref<256x128xbf16, #tpu.memory_space<vmem>>, vector<4x128xbf16>
    tpu.vector_store %arg18[%c8, %c0_49], %53 {strides = array<i32>} : memref<256x128xbf16, #tpu.memory_space<vmem>>, vector<4x128xbf16>,
    %c0_50 = arith.constant 0 : index
    %c111 = arith.constant 111 : index
    %55 = vector.load %arg17[%c0_50, %c111] : memref<8x384xbf16, #tpu.memory_space<vmem>>, vector<4x128xbf16>
    %c3_51 = arith.constant 3 : index
    %c0_52 = arith.constant 0 : index
    %c0_53 = arith.constant 0 : index
    %56 = vector.load %arg2[%c3_51, %c0_52, %c0_53] : memref<27x1x128xbf16, #tpu.memory_space<vmem>>, vector<1x1x128xbf16>
    %57 = vector.shape_cast %56 : vector<1x1x128xbf16> to vector<1x128xbf16>
    %58 = vector.broadcast %57 : vector<1x128xbf16> to vector<4x128xbf16>
    %59 = arith.mulf %55, %58 : vector<4x128xbf16>
    %c12 = arith.constant 12 : index
    %c0_54 = arith.constant 0 : index
    %60 = vector.load %arg18[%c12, %c0_54] : memref<256x128xbf16, #tpu.memory_space<vmem>>, vector<4x128xbf16>
    tpu.vector_store %arg18[%c12, %c0_54], %59 {strides = array<i32>} : memref<256x128xbf16, #tpu.memory_space<vmem>>, vector<4x128xbf16>,
    %c0_55 = arith.constant 0 : index
    %c112 = arith.constant 112 : index
    %61 = vector.load %arg17[%c0_55, %c112] : memref<8x384xbf16, #tpu.memory_space<vmem>>, vector<4x128xbf16>
    %c16 = arith.constant 16 : index
    %c0_56 = arith.constant 0 : index
    %62 = vector.load %arg18[%c16, %c0_56] : memref<256x128xbf16, #tpu.memory_space<vmem>>, vector<4x128xbf16>
    tpu.vector_store %arg18[%c16, %c0_56], %61 {strides = array<i32>} : memref<256x128xbf16, #tpu.memory_space<vmem>>, vector<4x128xbf16>,
    %c0_57 = arith.constant 0 : index
    %c113 = arith.constant 113 : index
    %63 = vector.load %arg17[%c0_57, %c113] : memref<8x384xbf16, #tpu.memory_space<vmem>>, vector<4x128xbf16>
    %c5_58 = arith.constant 5 : index
    %c0_59 = arith.constant 0 : index
    %c0_60 = arith.constant 0 : index
    %64 = vector.load %arg2[%c5_58, %c0_59, %c0_60] : memref<27x1x128xbf16, #tpu.memory_space<vmem>>, vector<1x1x128xbf16>
    %65 = vector.shape_cast %64 : vector<1x1x128xbf16> to vector<1x128xbf16>
    %66 = vector.broadcast %65 : vector<1x128xbf16> to vector<4x128xbf16>
    %67 = arith.mulf %63, %66 : vector<4x128xbf16>
    %c20 = arith.constant 20 : index
    %c0_61 = arith.constant 0 : index
    %68 = vector.load %arg18[%c20, %c0_61] : memref<256x128xbf16, #tpu.memory_space<vmem>>, vector<4x128xbf16>
    tpu.vector_store %arg18[%c20, %c0_61], %67 {strides = array<i32>} : memref<256x128xbf16, #tpu.memory_space<vmem>>, vector<4x128xbf16>,
    %c0_62 = arith.constant 0 : index
    %c115 = arith.constant 115 : index
    %69 = vector.load %arg17[%c0_62, %c115] : memref<8x384xbf16, #tpu.memory_space<vmem>>, vector<4x128xbf16>
    %c6_63 = arith.constant 6 : index
    %c0_64 = arith.constant 0 : index
    %c0_65 = arith.constant 0 : index
    %70 = vector.load %arg2[%c6_63, %c0_64, %c0_65] : memref<27x1x128xbf16, #tpu.memory_space<vmem>>, vector<1x1x128xbf16>
    %71 = vector.shape_cast %70 : vector<1x1x128xbf16> to vector<1x128xbf16>
    %72 = vector.broadcast %71 : vector<1x128xbf16> to vector<4x128xbf16>
    %73 = arith.mulf %69, %72 : vector<4x128xbf16>
    %c24 = arith.constant 24 : index
    %c0_66 = arith.constant 0 : index
    %74 = vector.load %arg18[%c24, %c0_66] : memref<256x128xbf16, #tpu.memory_space<vmem>>, vector<4x128xbf16>
    tpu.vector_store %arg18[%c24, %c0_66], %73 {strides = array<i32>} : memref<256x128xbf16, #tpu.memory_space<vmem>>, vector<4x128xbf16>,
    %c0_67 = arith.constant 0 : index
    %c116 = arith.constant 116 : index
    %75 = vector.load %arg17[%c0_67, %c116] : memref<8x384xbf16, #tpu.memory_space<vmem>>, vector<4x128xbf16>
    %c7_68 = arith.constant 7 : index
    %c0_69 = arith.constant 0 : index
    %c0_70 = arith.constant 0 : index
    %76 = vector.load %arg2[%c7_68, %c0_69, %c0_70] : memref<27x1x128xbf16, #tpu.memory_space<vmem>>, vector<1x1x128xbf16>
    %77 = vector.shape_cast %76 : vector<1x1x128xbf16> to vector<1x128xbf16>
    %78 = vector.broadcast %77 : vector<1x128xbf16> to vector<4x128xbf16>
    %79 = arith.mulf %75, %78 : vector<4x128xbf16>
    %c28 = arith.constant 28 : index
    %c0_71 = arith.constant 0 : index
    %80 = vector.load %arg18[%c28, %c0_71] : memref<256x128xbf16, #tpu.memory_space<vmem>>, vector<4x128xbf16>
    tpu.vector_store %arg18[%c28, %c0_71], %79 {strides = array<i32>} : memref<256x128xbf16, #tpu.memory_space<vmem>>, vector<4x128xbf16>,
    %c0_72 = arith.constant 0 : index
    %c117 = arith.constant 117 : index
    %81 = vector.load %arg17[%c0_72, %c117] : memref<8x384xbf16, #tpu.memory_space<vmem>>, vector<4x128xbf16>
    %c8_73 = arith.constant 8 : index
    %c0_74 = arith.constant 0 : index
    %c0_75 = arith.constant 0 : index
    %82 = vector.load %arg2[%c8_73, %c0_74, %c0_75] : memref<27x1x128xbf16, #tpu.memory_space<vmem>>, vector<1x1x128xbf16>
    %83 = vector.shape_cast %82 : vector<1x1x128xbf16> to vector<1x128xbf16>
    %84 = vector.broadcast %83 : vector<1x128xbf16> to vector<4x128xbf16>
    %85 = arith.mulf %81, %84 : vector<4x128xbf16>
    %c32 = arith.constant 32 : index
    %c0_76 = arith.constant 0 : index
    %86 = vector.load %arg18[%c32, %c0_76] : memref<256x128xbf16, #tpu.memory_space<vmem>>, vector<4x128xbf16>
    tpu.vector_store %arg18[%c32, %c0_76], %85 {strides = array<i32>} : memref<256x128xbf16, #tpu.memory_space<vmem>>, vector<4x128xbf16>,
    %c0_77 = arith.constant 0 : index
    %c123 = arith.constant 123 : index
    %87 = vector.load %arg17[%c0_77, %c123] : memref<8x384xbf16, #tpu.memory_space<vmem>>, vector<4x128xbf16>
    %c9 = arith.constant 9 : index
    %c0_78 = arith.constant 0 : index
    %c0_79 = arith.constant 0 : index
    %88 = vector.load %arg2[%c9, %c0_78, %c0_79] : memref<27x1x128xbf16, #tpu.memory_space<vmem>>, vector<1x1x128xbf16>
    %89 = vector.shape_cast %88 : vector<1x1x128xbf16> to vector<1x128xbf16>
    %90 = vector.broadcast %89 : vector<1x128xbf16> to vector<4x128xbf16>
    %91 = arith.mulf %87, %90 : vector<4x128xbf16>
    %c36 = arith.constant 36 : index
    %c0_80 = arith.constant 0 : index
    %92 = vector.load %arg18[%c36, %c0_80] : memref<256x128xbf16, #tpu.memory_space<vmem>>, vector<4x128xbf16>
    tpu.vector_store %arg18[%c36, %c0_80], %91 {strides = array<i32>} : memref<256x128xbf16, #tpu.memory_space<vmem>>, vector<4x128xbf16>,
    %c0_81 = arith.constant 0 : index
    %c124 = arith.constant 124 : index
    %93 = vector.load %arg17[%c0_81, %c124] : memref<8x384xbf16, #tpu.memory_space<vmem>>, vector<4x128xbf16>
    %c10 = arith.constant 10 : index
    %c0_82 = arith.constant 0 : index
    %c0_83 = arith.constant 0 : index
    %94 = vector.load %arg2[%c10, %c0_82, %c0_83] : memref<27x1x128xbf16, #tpu.memory_space<vmem>>, vector<1x1x128xbf16>
    %95 = vector.shape_cast %94 : vector<1x1x128xbf16> to vector<1x128xbf16>
    %96 = vector.broadcast %95 : vector<1x128xbf16> to vector<4x128xbf16>
    %97 = arith.mulf %93, %96 : vector<4x128xbf16>
    %c40 = arith.constant 40 : index
    %c0_84 = arith.constant 0 : index
    %98 = vector.load %arg18[%c40, %c0_84] : memref<256x128xbf16, #tpu.memory_space<vmem>>, vector<4x128xbf16>
    tpu.vector_store %arg18[%c40, %c0_84], %97 {strides = array<i32>} : memref<256x128xbf16, #tpu.memory_space<vmem>>, vector<4x128xbf16>,
    %c0_85 = arith.constant 0 : index
    %c125 = arith.constant 125 : index
    %99 = vector.load %arg17[%c0_85, %c125] : memref<8x384xbf16, #tpu.memory_space<vmem>>, vector<4x128xbf16>
    %c11 = arith.constant 11 : index
    %c0_86 = arith.constant 0 : index
    %c0_87 = arith.constant 0 : index
    %100 = vector.load %arg2[%c11, %c0_86, %c0_87] : memref<27x1x128xbf16, #tpu.memory_space<vmem>>, vector<1x1x128xbf16>
    %101 = vector.shape_cast %100 : vector<1x1x128xbf16> to vector<1x128xbf16>
    %102 = vector.broadcast %101 : vector<1x128xbf16> to vector<4x128xbf16>
    %103 = arith.mulf %99, %102 : vector<4x128xbf16>
    %c44 = arith.constant 44 : index
    %c0_88 = arith.constant 0 : index
    %104 = vector.load %arg18[%c44, %c0_88] : memref<256x128xbf16, #tpu.memory_space<vmem>>, vector<4x128xbf16>
    tpu.vector_store %arg18[%c44, %c0_88], %103 {strides = array<i32>} : memref<256x128xbf16, #tpu.memory_space<vmem>>, vector<4x128xbf16>,
    %c0_89 = arith.constant 0 : index
    %c127 = arith.constant 127 : index
    %105 = vector.load %arg17[%c0_89, %c127] : memref<8x384xbf16, #tpu.memory_space<vmem>>, vector<4x128xbf16>
    %c12_90 = arith.constant 12 : index
    %c0_91 = arith.constant 0 : index
    %c0_92 = arith.constant 0 : index
    %106 = vector.load %arg2[%c12_90, %c0_91, %c0_92] : memref<27x1x128xbf16, #tpu.memory_space<vmem>>, vector<1x1x128xbf16>
    %107 = vector.shape_cast %106 : vector<1x1x128xbf16> to vector<1x128xbf16>
    %108 = vector.broadcast %107 : vector<1x128xbf16> to vector<4x128xbf16>
    %109 = arith.mulf %105, %108 : vector<4x128xbf16>
    %c48 = arith.constant 48 : index
    %c0_93 = arith.constant 0 : index
    %110 = vector.load %arg18[%c48, %c0_93] : memref<256x128xbf16, #tpu.memory_space<vmem>>, vector<4x128xbf16>
    tpu.vector_store %arg18[%c48, %c0_93], %109 {strides = array<i32>} : memref<256x128xbf16, #tpu.memory_space<vmem>>, vector<4x128xbf16>,
    %c0_94 = arith.constant 0 : index
    %c128_95 = arith.constant 128 : index
    %111 = vector.load %arg17[%c0_94, %c128_95] : memref<8x384xbf16, #tpu.memory_space<vmem>>, vector<4x128xbf16>
    %c52 = arith.constant 52 : index
    %c0_96 = arith.constant 0 : index
    %112 = vector.load %arg18[%c52, %c0_96] : memref<256x128xbf16, #tpu.memory_space<vmem>>, vector<4x128xbf16>
    tpu.vector_store %arg18[%c52, %c0_96], %111 {strides = array<i32>} : memref<256x128xbf16, #tpu.memory_space<vmem>>, vector<4x128xbf16>,
    %c0_97 = arith.constant 0 : index
    %c129 = arith.constant 129 : index
    %113 = vector.load %arg17[%c0_97, %c129] : memref<8x384xbf16, #tpu.memory_space<vmem>>, vector<4x128xbf16>
    %c14 = arith.constant 14 : index
    %c0_98 = arith.constant 0 : index
    %c0_99 = arith.constant 0 : index
    %114 = vector.load %arg2[%c14, %c0_98, %c0_99] : memref<27x1x128xbf16, #tpu.memory_space<vmem>>, vector<1x1x128xbf16>
    %115 = vector.shape_cast %114 : vector<1x1x128xbf16> to vector<1x128xbf16>
    %116 = vector.broadcast %115 : vector<1x128xbf16> to vector<4x128xbf16>
    %117 = arith.mulf %113, %116 : vector<4x128xbf16>
    %c56 = arith.constant 56 : index
    %c0_100 = arith.constant 0 : index
    %118 = vector.load %arg18[%c56, %c0_100] : memref<256x128xbf16, #tpu.memory_space<vmem>>, vector<4x128xbf16>
    tpu.vector_store %arg18[%c56, %c0_100], %117 {strides = array<i32>} : memref<256x128xbf16, #tpu.memory_space<vmem>>, vector<4x128xbf16>,
    %c0_101 = arith.constant 0 : index
    %c131 = arith.constant 131 : index
    %119 = vector.load %arg17[%c0_101, %c131] : memref<8x384xbf16, #tpu.memory_space<vmem>>, vector<4x128xbf16>
    %c15 = arith.constant 15 : index
    %c0_102 = arith.constant 0 : index
    %c0_103 = arith.constant 0 : index
    %120 = vector.load %arg2[%c15, %c0_102, %c0_103] : memref<27x1x128xbf16, #tpu.memory_space<vmem>>, vector<1x1x128xbf16>
    %121 = vector.shape_cast %120 : vector<1x1x128xbf16> to vector<1x128xbf16>
    %122 = vector.broadcast %121 : vector<1x128xbf16> to vector<4x128xbf16>
    %123 = arith.mulf %119, %122 : vector<4x128xbf16>
    %c60 = arith.constant 60 : index
    %c0_104 = arith.constant 0 : index
    %124 = vector.load %arg18[%c60, %c0_104] : memref<256x128xbf16, #tpu.memory_space<vmem>>, vector<4x128xbf16>
    tpu.vector_store %arg18[%c60, %c0_104], %123 {strides = array<i32>} : memref<256x128xbf16, #tpu.memory_space<vmem>>, vector<4x128xbf16>,
    %c0_105 = arith.constant 0 : index
    %c132 = arith.constant 132 : index
    %125 = vector.load %arg17[%c0_105, %c132] : memref<8x384xbf16, #tpu.memory_space<vmem>>, vector<4x128xbf16>
    %c16_106 = arith.constant 16 : index
    %c0_107 = arith.constant 0 : index
    %c0_108 = arith.constant 0 : index
    %126 = vector.load %arg2[%c16_106, %c0_107, %c0_108] : memref<27x1x128xbf16, #tpu.memory_space<vmem>>, vector<1x1x128xbf16>
    %127 = vector.shape_cast %126 : vector<1x1x128xbf16> to vector<1x128xbf16>
    %128 = vector.broadcast %127 : vector<1x128xbf16> to vector<4x128xbf16>
    %129 = arith.mulf %125, %128 : vector<4x128xbf16>
    %c64 = arith.constant 64 : index
    %c0_109 = arith.constant 0 : index
    %130 = vector.load %arg18[%c64, %c0_109] : memref<256x128xbf16, #tpu.memory_space<vmem>>, vector<4x128xbf16>
    tpu.vector_store %arg18[%c64, %c0_109], %129 {strides = array<i32>} : memref<256x128xbf16, #tpu.memory_space<vmem>>, vector<4x128xbf16>,
    %c0_110 = arith.constant 0 : index
    %c133 = arith.constant 133 : index
    %131 = vector.load %arg17[%c0_110, %c133] : memref<8x384xbf16, #tpu.memory_space<vmem>>, vector<4x128xbf16>
    %c17 = arith.constant 17 : index
    %c0_111 = arith.constant 0 : index
    %c0_112 = arith.constant 0 : index
    %132 = vector.load %arg2[%c17, %c0_111, %c0_112] : memref<27x1x128xbf16, #tpu.memory_space<vmem>>, vector<1x1x128xbf16>
    %133 = vector.shape_cast %132 : vector<1x1x128xbf16> to vector<1x128xbf16>
    %134 = vector.broadcast %133 : vector<1x128xbf16> to vector<4x128xbf16>
    %135 = arith.mulf %131, %134 : vector<4x128xbf16>
    %c68 = arith.constant 68 : index
    %c0_113 = arith.constant 0 : index
    %136 = vector.load %arg18[%c68, %c0_113] : memref<256x128xbf16, #tpu.memory_space<vmem>>, vector<4x128xbf16>
    tpu.vector_store %arg18[%c68, %c0_113], %135 {strides = array<i32>} : memref<256x128xbf16, #tpu.memory_space<vmem>>, vector<4x128xbf16>,
    %c0_114 = arith.constant 0 : index
    %c139 = arith.constant 139 : index
    %137 = vector.load %arg17[%c0_114, %c139] : memref<8x384xbf16, #tpu.memory_space<vmem>>, vector<4x128xbf16>
    %c18 = arith.constant 18 : index
    %c0_115 = arith.constant 0 : index
    %c0_116 = arith.constant 0 : index
    %138 = vector.load %arg2[%c18, %c0_115, %c0_116] : memref<27x1x128xbf16, #tpu.memory_space<vmem>>, vector<1x1x128xbf16>
    %139 = vector.shape_cast %138 : vector<1x1x128xbf16> to vector<1x128xbf16>
    %140 = vector.broadcast %139 : vector<1x128xbf16> to vector<4x128xbf16>
    %141 = arith.mulf %137, %140 : vector<4x128xbf16>
    %c72 = arith.constant 72 : index
    %c0_117 = arith.constant 0 : index
    %142 = vector.load %arg18[%c72, %c0_117] : memref<256x128xbf16, #tpu.memory_space<vmem>>, vector<4x128xbf16>
    tpu.vector_store %arg18[%c72, %c0_117], %141 {strides = array<i32>} : memref<256x128xbf16, #tpu.memory_space<vmem>>, vector<4x128xbf16>,
    %c0_118 = arith.constant 0 : index
    %c140 = arith.constant 140 : index
    %143 = vector.load %arg17[%c0_118, %c140] : memref<8x384xbf16, #tpu.memory_space<vmem>>, vector<4x128xbf16>
    %c19 = arith.constant 19 : index
    %c0_119 = arith.constant 0 : index
    %c0_120 = arith.constant 0 : index
    %144 = vector.load %arg2[%c19, %c0_119, %c0_120] : memref<27x1x128xbf16, #tpu.memory_space<vmem>>, vector<1x1x128xbf16>
    %145 = vector.shape_cast %144 : vector<1x1x128xbf16> to vector<1x128xbf16>
    %146 = vector.broadcast %145 : vector<1x128xbf16> to vector<4x128xbf16>
    %147 = arith.mulf %143, %146 : vector<4x128xbf16>
    %c76 = arith.constant 76 : index
    %c0_121 = arith.constant 0 : index
    %148 = vector.load %arg18[%c76, %c0_121] : memref<256x128xbf16, #tpu.memory_space<vmem>>, vector<4x128xbf16>
    tpu.vector_store %arg18[%c76, %c0_121], %147 {strides = array<i32>} : memref<256x128xbf16, #tpu.memory_space<vmem>>, vector<4x128xbf16>,
    %c0_122 = arith.constant 0 : index
    %c141 = arith.constant 141 : index
    %149 = vector.load %arg17[%c0_122, %c141] : memref<8x384xbf16, #tpu.memory_space<vmem>>, vector<4x128xbf16>
    %c20_123 = arith.constant 20 : index
    %c0_124 = arith.constant 0 : index
    %c0_125 = arith.constant 0 : index
    %150 = vector.load %arg2[%c20_123, %c0_124, %c0_125] : memref<27x1x128xbf16, #tpu.memory_space<vmem>>, vector<1x1x128xbf16>
    %151 = vector.shape_cast %150 : vector<1x1x128xbf16> to vector<1x128xbf16>
    %152 = vector.broadcast %151 : vector<1x128xbf16> to vector<4x128xbf16>
    %153 = arith.mulf %149, %152 : vector<4x128xbf16>
    %c80 = arith.constant 80 : index
    %c0_126 = arith.constant 0 : index
    %154 = vector.load %arg18[%c80, %c0_126] : memref<256x128xbf16, #tpu.memory_space<vmem>>, vector<4x128xbf16>
    tpu.vector_store %arg18[%c80, %c0_126], %153 {strides = array<i32>} : memref<256x128xbf16, #tpu.memory_space<vmem>>, vector<4x128xbf16>,
    %c0_127 = arith.constant 0 : index
    %c143 = arith.constant 143 : index
    %155 = vector.load %arg17[%c0_127, %c143] : memref<8x384xbf16, #tpu.memory_space<vmem>>, vector<4x128xbf16>
    %c21 = arith.constant 21 : index
    %c0_128 = arith.constant 0 : index
    %c0_129 = arith.constant 0 : index
    %156 = vector.load %arg2[%c21, %c0_128, %c0_129] : memref<27x1x128xbf16, #tpu.memory_space<vmem>>, vector<1x1x128xbf16>
    %157 = vector.shape_cast %156 : vector<1x1x128xbf16> to vector<1x128xbf16>
    %158 = vector.broadcast %157 : vector<1x128xbf16> to vector<4x128xbf16>
    %159 = arith.mulf %155, %158 : vector<4x128xbf16>
    %c84 = arith.constant 84 : index
    %c0_130 = arith.constant 0 : index
    %160 = vector.load %arg18[%c84, %c0_130] : memref<256x128xbf16, #tpu.memory_space<vmem>>, vector<4x128xbf16>
    tpu.vector_store %arg18[%c84, %c0_130], %159 {strides = array<i32>} : memref<256x128xbf16, #tpu.memory_space<vmem>>, vector<4x128xbf16>,
    %c0_131 = arith.constant 0 : index
    %c144 = arith.constant 144 : index
    %161 = vector.load %arg17[%c0_131, %c144] : memref<8x384xbf16, #tpu.memory_space<vmem>>, vector<4x128xbf16>
    %c88 = arith.constant 88 : index
    %c0_132 = arith.constant 0 : index
    %162 = vector.load %arg18[%c88, %c0_132] : memref<256x128xbf16, #tpu.memory_space<vmem>>, vector<4x128xbf16>
    tpu.vector_store %arg18[%c88, %c0_132], %161 {strides = array<i32>} : memref<256x128xbf16, #tpu.memory_space<vmem>>, vector<4x128xbf16>,
    %c0_133 = arith.constant 0 : index
    %c145 = arith.constant 145 : index
    %163 = vector.load %arg17[%c0_133, %c145] : memref<8x384xbf16, #tpu.memory_space<vmem>>, vector<4x128xbf16>
    %c23 = arith.constant 23 : index
    %c0_134 = arith.constant 0 : index
    %c0_135 = arith.constant 0 : index
    %164 = vector.load %arg2[%c23, %c0_134, %c0_135] : memref<27x1x128xbf16, #tpu.memory_space<vmem>>, vector<1x1x128xbf16>
    %165 = vector.shape_cast %164 : vector<1x1x128xbf16> to vector<1x128xbf16>
    %166 = vector.broadcast %165 : vector<1x128xbf16> to vector<4x128xbf16>
    %167 = arith.mulf %163, %166 : vector<4x128xbf16>
    %c92 = arith.constant 92 : index
    %c0_136 = arith.constant 0 : index
    %168 = vector.load %arg18[%c92, %c0_136] : memref<256x128xbf16, #tpu.memory_space<vmem>>, vector<4x128xbf16>
    tpu.vector_store %arg18[%c92, %c0_136], %167 {strides = array<i32>} : memref<256x128xbf16, #tpu.memory_space<vmem>>, vector<4x128xbf16>,
    %c0_137 = arith.constant 0 : index
    %c147 = arith.constant 147 : index
    %169 = vector.load %arg17[%c0_137, %c147] : memref<8x384xbf16, #tpu.memory_space<vmem>>, vector<4x128xbf16>
    %c24_138 = arith.constant 24 : index
    %c0_139 = arith.constant 0 : index
    %c0_140 = arith.constant 0 : index
    %170 = vector.load %arg2[%c24_138, %c0_139, %c0_140] : memref<27x1x128xbf16, #tpu.memory_space<vmem>>, vector<1x1x128xbf16>
    %171 = vector.shape_cast %170 : vector<1x1x128xbf16> to vector<1x128xbf16>
    %172 = vector.broadcast %171 : vector<1x128xbf16> to vector<4x128xbf16>
    %173 = arith.mulf %169, %172 : vector<4x128xbf16>
    %c96 = arith.constant 96 : index
    %c0_141 = arith.constant 0 : index
    %174 = vector.load %arg18[%c96, %c0_141] : memref<256x128xbf16, #tpu.memory_space<vmem>>, vector<4x128xbf16>
    tpu.vector_store %arg18[%c96, %c0_141], %173 {strides = array<i32>} : memref<256x128xbf16, #tpu.memory_space<vmem>>, vector<4x128xbf16>,
    %c0_142 = arith.constant 0 : index
    %c148 = arith.constant 148 : index
    %175 = vector.load %arg17[%c0_142, %c148] : memref<8x384xbf16, #tpu.memory_space<vmem>>, vector<4x128xbf16>
    %c25 = arith.constant 25 : index
    %c0_143 = arith.constant 0 : index
    %c0_144 = arith.constant 0 : index
    %176 = vector.load %arg2[%c25, %c0_143, %c0_144] : memref<27x1x128xbf16, #tpu.memory_space<vmem>>, vector<1x1x128xbf16>
    %177 = vector.shape_cast %176 : vector<1x1x128xbf16> to vector<1x128xbf16>
    %178 = vector.broadcast %177 : vector<1x128xbf16> to vector<4x128xbf16>
    %179 = arith.mulf %175, %178 : vector<4x128xbf16>
    %c100 = arith.constant 100 : index
    %c0_145 = arith.constant 0 : index
    %180 = vector.load %arg18[%c100, %c0_145] : memref<256x128xbf16, #tpu.memory_space<vmem>>, vector<4x128xbf16>
    tpu.vector_store %arg18[%c100, %c0_145], %179 {strides = array<i32>} : memref<256x128xbf16, #tpu.memory_space<vmem>>, vector<4x128xbf16>,
    %c0_146 = arith.constant 0 : index
    %c149 = arith.constant 149 : index
    %181 = vector.load %arg17[%c0_146, %c149] : memref<8x384xbf16, #tpu.memory_space<vmem>>, vector<4x128xbf16>
    %c26 = arith.constant 26 : index
    %c0_147 = arith.constant 0 : index
    %c0_148 = arith.constant 0 : index
    %182 = vector.load %arg2[%c26, %c0_147, %c0_148] : memref<27x1x128xbf16, #tpu.memory_space<vmem>>, vector<1x1x128xbf16>
    %183 = vector.shape_cast %182 : vector<1x1x128xbf16> to vector<1x128xbf16>
    %184 = vector.broadcast %183 : vector<1x128xbf16> to vector<4x128xbf16>
    %185 = arith.mulf %181, %184 : vector<4x128xbf16>
    %c104 = arith.constant 104 : index
    %c0_149 = arith.constant 0 : index
    %186 = vector.load %arg18[%c104, %c0_149] : memref<256x128xbf16, #tpu.memory_space<vmem>>, vector<4x128xbf16>
    tpu.vector_store %arg18[%c104, %c0_149], %185 {strides = array<i32>} : memref<256x128xbf16, #tpu.memory_space<vmem>>, vector<4x128xbf16>,
    %c0_150 = arith.constant 0 : index
    %c0_151 = arith.constant 0 : index
    %187 = vector.load %arg3[%c0_150, %c0_151] : memref<4x128xbf16, #tpu.memory_space<vmem>>, vector<4x128xbf16>
    %c0_152 = arith.constant 0 : index
    %c0_153 = arith.constant 0 : index
    %188 = vector.load %arg18[%c0_152, %c0_153] : memref<256x128xbf16, #tpu.memory_space<vmem>>, vector<128x128xbf16>
    %cst_154 = arith.constant dense<0.000000e+00> : vector<4x128xf32>
    %189 = tpu.matmul %187, %188, %cst_154 {dimension_numbers = #tpu.dot_dimension_numbers<[1], [0], [0], [1], [0, 0, 1, 1], [], []>} : vector<4x128xbf16>, vector<128x128xbf16>, vector<4x128xf32> -> vector<4x128xf32>
    %190 = vector.broadcast %11 : vector<1x128xf32> to vector<4x128xf32>
    %191 = arith.mulf %189, %190 : vector<4x128xf32>
    %cst_155 = arith.constant dense<0.000000e+00> : vector<4xf32>
    %192 = vector.multi_reduction <add>, %191, %cst_155 [1] : vector<4x128xf32> to vector<4xf32>
    %193 = vector.shape_cast %192 : vector<4xf32> to vector<4x1xf32>
    %cst_156 = arith.constant dense<0.000000e+00> : vector<1xf32>
    %194 = vector.multi_reduction <add>, %193, %cst_156 [0] : vector<4x1xf32> to vector<1xf32>
    %195 = vector.shape_cast %194 : vector<1xf32> to vector<1x1xf32>
    %196 = arith.mulf %191, %191 : vector<4x128xf32>
    %cst_157 = arith.constant dense<0.000000e+00> : vector<4xf32>
    %197 = vector.multi_reduction <add>, %196, %cst_157 [1] : vector<4x128xf32> to vector<4xf32>
    %198 = vector.shape_cast %197 : vector<4xf32> to vector<4x1xf32>
    %cst_158 = arith.constant dense<0.000000e+00> : vector<1xf32>
    %199 = vector.multi_reduction <add>, %198, %cst_158 [0] : vector<4x1xf32> to vector<1xf32>
    %200 = vector.shape_cast %199 : vector<1xf32> to vector<1x1xf32>
    %cst_159 = arith.constant 2.560000e+02 : f32
    %201 = vector.broadcast %cst_159 : f32 to vector<1x1xf32>
    %202 = arith.divf %195, %201 : vector<1x1xf32>
    %cst_160 = arith.constant 2.560000e+02 : f32
    %203 = vector.broadcast %cst_160 : f32 to vector<1x1xf32>
    %204 = arith.divf %200, %203 : vector<1x1xf32>
    %205 = arith.mulf %202, %202 : vector<1x1xf32>
    %206 = arith.subf %204, %205 : vector<1x1xf32>
    %cst_161 = arith.constant 0.000000e+00 : f32
    %207 = vector.broadcast %cst_161 : f32 to vector<1x1xf32>
    %208 = arith.maximumf %206, %207 : vector<1x1xf32>
    %cst_162 = arith.constant 9.99999974E-6 : f32
    %209 = vector.broadcast %cst_162 : f32 to vector<1x1xf32>
    %210 = arith.addf %208, %209 : vector<1x1xf32>
    %211 = math.rsqrt %210 : vector<1x1xf32>
    %212 = vector.broadcast %202 : vector<1x1xf32> to vector<4x128xf32>
    %213 = arith.subf %189, %212 : vector<4x128xf32>
    %214 = vector.broadcast %211 : vector<1x1xf32> to vector<4x128xf32>
    %215 = arith.mulf %213, %214 : vector<4x128xf32>
    %c0_163 = arith.constant 0 : index
    %c0_164 = arith.constant 0 : index
    %216 = vector.load %arg4[%c0_163, %c0_164] : memref<4x1xf32, #tpu.memory_space<vmem>>, vector<4x1xf32>
    %217 = vector.broadcast %216 : vector<4x1xf32> to vector<4x128xf32>
    %218 = arith.mulf %215, %217 : vector<4x128xf32>
    %c0_165 = arith.constant 0 : index
    %c0_166 = arith.constant 0 : index
    %219 = vector.load %arg5[%c0_165, %c0_166] : memref<4x1xf32, #tpu.memory_space<vmem>>, vector<4x1xf32>
    %220 = vector.broadcast %219 : vector<4x1xf32> to vector<4x128xf32>
    %221 = arith.addf %218, %220 : vector<4x128xf32>
    %cst_167 = arith.constant 5.000000e-01 : f32
    %222 = vector.broadcast %cst_167 : f32 to vector<4x128xf32>
    %223 = arith.mulf %222, %221 : vector<4x128xf32>
    %cst_168 = arith.constant 4.471500e-02 : f32
    %224 = vector.broadcast %cst_168 : f32 to vector<4x128xf32>
    %225 = arith.mulf %224, %221 : vector<4x128xf32>
    %226 = arith.mulf %225, %221 : vector<4x128xf32>
    %227 = arith.mulf %226, %221 : vector<4x128xf32>
    %228 = arith.addf %221, %227 : vector<4x128xf32>
    %cst_169 = arith.constant 0.797884583 : f32
    %229 = vector.broadcast %cst_169 : f32 to vector<4x128xf32>
    %230 = arith.mulf %229, %228 : vector<4x128xf32>
    %231 = math.tanh %230 : vector<4x128xf32>
    %cst_170 = arith.constant 1.000000e+00 : f32
    %232 = vector.broadcast %cst_170 : f32 to vector<4x128xf32>
    %233 = arith.addf %232, %231 : vector<4x128xf32>
    %234 = arith.mulf %223, %233 : vector<4x128xf32>
    %235 = vector.broadcast %11 : vector<1x128xf32> to vector<4x128xf32>
    %236 = arith.mulf %234, %235 : vector<4x128xf32>
    %237 = arith.truncf %236 : vector<4x128xf32> to vector<4x128xbf16>
    %c0_171 = arith.constant 0 : index
    %c128_172 = arith.constant 128 : index
    %238 = vector.load %arg17[%c0_171, %c128_172] : memref<8x384xbf16, #tpu.memory_space<vmem>>, vector<4x128xbf16>
    tpu.vector_store %arg17[%c0_171, %c128_172], %237 {strides = array<i32>} : memref<8x384xbf16, #tpu.memory_space<vmem>>, vector<4x128xbf16>,
    %c0_173 = arith.constant 0 : index
    %c107_174 = arith.constant 107 : index
    %239 = vector.load %arg17[%c0_173, %c107_174] : memref<8x384xbf16, #tpu.memory_space<vmem>>, vector<4x128xbf16>
    %c0_175 = arith.constant 0 : index
    %c0_176 = arith.constant 0 : index
    %c0_177 = arith.constant 0 : index
    %240 = vector.load %arg2[%c0_175, %c0_176, %c0_177] : memref<27x1x128xbf16, #tpu.memory_space<vmem>>, vector<1x1x128xbf16>
    %241 = vector.shape_cast %240 : vector<1x1x128xbf16> to vector<1x128xbf16>
    %242 = vector.broadcast %241 : vector<1x128xbf16> to vector<4x128xbf16>
    %243 = arith.mulf %239, %242 : vector<4x128xbf16>
    %c0_178 = arith.constant 0 : index
    %c0_179 = arith.constant 0 : index
    %244 = vector.load %arg18[%c0_178, %c0_179] : memref<256x128xbf16, #tpu.memory_space<vmem>>, vector<4x128xbf16>
    tpu.vector_store %arg18[%c0_178, %c0_179], %243 {strides = array<i32>} : memref<256x128xbf16, #tpu.memory_space<vmem>>, vector<4x128xbf16>,
    %c0_180 = arith.constant 0 : index
    %c108_181 = arith.constant 108 : index
    %245 = vector.load %arg17[%c0_180, %c108_181] : memref<8x384xbf16, #tpu.memory_space<vmem>>, vector<4x128xbf16>
    %c1_182 = arith.constant 1 : index
    %c0_183 = arith.constant 0 : index
    %c0_184 = arith.constant 0 : index
    %246 = vector.load %arg2[%c1_182, %c0_183, %c0_184] : memref<27x1x128xbf16, #tpu.memory_space<vmem>>, vector<1x1x128xbf16>
    %247 = vector.shape_cast %246 : vector<1x1x128xbf16> to vector<1x128xbf16>
    %248 = vector.broadcast %247 : vector<1x128xbf16> to vector<4x128xbf16>
    %249 = arith.mulf %245, %248 : vector<4x128xbf16>
    %c4_185 = arith.constant 4 : index
    %c0_186 = arith.constant 0 : index
    %250 = vector.load %arg18[%c4_185, %c0_186] : memref<256x128xbf16, #tpu.memory_space<vmem>>, vector<4x128xbf16>
    tpu.vector_store %arg18[%c4_185, %c0_186], %249 {strides = array<i32>} : memref<256x128xbf16, #tpu.memory_space<vmem>>, vector<4x128xbf16>,
    %c0_187 = arith.constant 0 : index
    %c109_188 = arith.constant 109 : index
    %251 = vector.load %arg17[%c0_187, %c109_188] : memref<8x384xbf16, #tpu.memory_space<vmem>>, vector<4x128xbf16>
    %c2_189 = arith.constant 2 : index
    %c0_190 = arith.constant 0 : index
    %c0_191 = arith.constant 0 : index
    %252 = vector.load %arg2[%c2_189, %c0_190, %c0_191] : memref<27x1x128xbf16, #tpu.memory_space<vmem>>, vector<1x1x128xbf16>
    %253 = vector.shape_cast %252 : vector<1x1x128xbf16> to vector<1x128xbf16>
    %254 = vector.broadcast %253 : vector<1x128xbf16> to vector<4x128xbf16>
    %255 = arith.mulf %251, %254 : vector<4x128xbf16>
    %c8_192 = arith.constant 8 : index
    %c0_193 = arith.constant 0 : index
    %256 = vector.load %arg18[%c8_192, %c0_193] : memref<256x128xbf16, #tpu.memory_space<vmem>>, vector<4x128xbf16>
    tpu.vector_store %arg18[%c8_192, %c0_193], %255 {strides = array<i32>} : memref<256x128xbf16, #tpu.memory_space<vmem>>, vector<4x128xbf16>,
    %c0_194 = arith.constant 0 : index
    %c111_195 = arith.constant 111 : index
    %257 = vector.load %arg17[%c0_194, %c111_195] : memref<8x384xbf16, #tpu.memory_space<vmem>>, vector<4x128xbf16>
    %c3_196 = arith.constant 3 : index
    %c0_197 = arith.constant 0 : index
    %c0_198 = arith.constant 0 : index
    %258 = vector.load %arg2[%c3_196, %c0_197, %c0_198] : memref<27x1x128xbf16, #tpu.memory_space<vmem>>, vector<1x1x128xbf16>
    %259 = vector.shape_cast %258 : vector<1x1x128xbf16> to vector<1x128xbf16>
    %260 = vector.broadcast %259 : vector<1x128xbf16> to vector<4x128xbf16>
    %261 = arith.mulf %257, %260 : vector<4x128xbf16>
    %c12_199 = arith.constant 12 : index
    %c0_200 = arith.constant 0 : index
    %262 = vector.load %arg18[%c12_199, %c0_200] : memref<256x128xbf16, #tpu.memory_space<vmem>>, vector<4x128xbf16>
    tpu.vector_store %arg18[%c12_199, %c0_200], %261 {strides = array<i32>} : memref<256x128xbf16, #tpu.memory_space<vmem>>, vector<4x128xbf16>,
    %c0_201 = arith.constant 0 : index
    %c112_202 = arith.constant 112 : index
    %263 = vector.load %arg17[%c0_201, %c112_202] : memref<8x384xbf16, #tpu.memory_space<vmem>>, vector<4x128xbf16>
    %c16_203 = arith.constant 16 : index
    %c0_204 = arith.constant 0 : index
    %264 = vector.load %arg18[%c16_203, %c0_204] : memref<256x128xbf16, #tpu.memory_space<vmem>>, vector<4x128xbf16>
    tpu.vector_store %arg18[%c16_203, %c0_204], %263 {strides = array<i32>} : memref<256x128xbf16, #tpu.memory_space<vmem>>, vector<4x128xbf16>,
    %c0_205 = arith.constant 0 : index
    %c113_206 = arith.constant 113 : index
    %265 = vector.load %arg17[%c0_205, %c113_206] : memref<8x384xbf16, #tpu.memory_space<vmem>>, vector<4x128xbf16>
    %c5_207 = arith.constant 5 : index
    %c0_208 = arith.constant 0 : index
    %c0_209 = arith.constant 0 : index
    %266 = vector.load %arg2[%c5_207, %c0_208, %c0_209] : memref<27x1x128xbf16, #tpu.memory_space<vmem>>, vector<1x1x128xbf16>
    %267 = vector.shape_cast %266 : vector<1x1x128xbf16> to vector<1x128xbf16>
    %268 = vector.broadcast %267 : vector<1x128xbf16> to vector<4x128xbf16>
    %269 = arith.mulf %265, %268 : vector<4x128xbf16>
    %c20_210 = arith.constant 20 : index
    %c0_211 = arith.constant 0 : index
    %270 = vector.load %arg18[%c20_210, %c0_211] : memref<256x128xbf16, #tpu.memory_space<vmem>>, vector<4x128xbf16>
    tpu.vector_store %arg18[%c20_210, %c0_211], %269 {strides = array<i32>} : memref<256x128xbf16, #tpu.memory_space<vmem>>, vector<4x128xbf16>,
    %c0_212 = arith.constant 0 : index
    %c115_213 = arith.constant 115 : index
    %271 = vector.load %arg17[%c0_212, %c115_213] : memref<8x384xbf16, #tpu.memory_space<vmem>>, vector<4x128xbf16>
    %c6_214 = arith.constant 6 : index
    %c0_215 = arith.constant 0 : index
    %c0_216 = arith.constant 0 : index
    %272 = vector.load %arg2[%c6_214, %c0_215, %c0_216] : memref<27x1x128xbf16, #tpu.memory_space<vmem>>, vector<1x1x128xbf16>
    %273 = vector.shape_cast %272 : vector<1x1x128xbf16> to vector<1x128xbf16>
    %274 = vector.broadcast %273 : vector<1x128xbf16> to vector<4x128xbf16>
    %275 = arith.mulf %271, %274 : vector<4x128xbf16>
    %c24_217 = arith.constant 24 : index
    %c0_218 = arith.constant 0 : index
    %276 = vector.load %arg18[%c24_217, %c0_218] : memref<256x128xbf16, #tpu.memory_space<vmem>>, vector<4x128xbf16>
    tpu.vector_store %arg18[%c24_217, %c0_218], %275 {strides = array<i32>} : memref<256x128xbf16, #tpu.memory_space<vmem>>, vector<4x128xbf16>,
    %c0_219 = arith.constant 0 : index
    %c116_220 = arith.constant 116 : index
    %277 = vector.load %arg17[%c0_219, %c116_220] : memref<8x384xbf16, #tpu.memory_space<vmem>>, vector<4x128xbf16>
    %c7_221 = arith.constant 7 : index
    %c0_222 = arith.constant 0 : index
    %c0_223 = arith.constant 0 : index
    %278 = vector.load %arg2[%c7_221, %c0_222, %c0_223] : memref<27x1x128xbf16, #tpu.memory_space<vmem>>, vector<1x1x128xbf16>
    %279 = vector.shape_cast %278 : vector<1x1x128xbf16> to vector<1x128xbf16>
    %280 = vector.broadcast %279 : vector<1x128xbf16> to vector<4x128xbf16>
    %281 = arith.mulf %277, %280 : vector<4x128xbf16>
    %c28_224 = arith.constant 28 : index
    %c0_225 = arith.constant 0 : index
    %282 = vector.load %arg18[%c28_224, %c0_225] : memref<256x128xbf16, #tpu.memory_space<vmem>>, vector<4x128xbf16>
    tpu.vector_store %arg18[%c28_224, %c0_225], %281 {strides = array<i32>} : memref<256x128xbf16, #tpu.memory_space<vmem>>, vector<4x128xbf16>,
    %c0_226 = arith.constant 0 : index
    %c117_227 = arith.constant 117 : index
    %283 = vector.load %arg17[%c0_226, %c117_227] : memref<8x384xbf16, #tpu.memory_space<vmem>>, vector<4x128xbf16>
    %c8_228 = arith.constant 8 : index
    %c0_229 = arith.constant 0 : index
    %c0_230 = arith.constant 0 : index
    %284 = vector.load %arg2[%c8_228, %c0_229, %c0_230] : memref<27x1x128xbf16, #tpu.memory_space<vmem>>, vector<1x1x128xbf16>
    %285 = vector.shape_cast %284 : vector<1x1x128xbf16> to vector<1x128xbf16>
    %286 = vector.broadcast %285 : vector<1x128xbf16> to vector<4x128xbf16>
    %287 = arith.mulf %283, %286 : vector<4x128xbf16>
    %c32_231 = arith.constant 32 : index
    %c0_232 = arith.constant 0 : index
    %288 = vector.load %arg18[%c32_231, %c0_232] : memref<256x128xbf16, #tpu.memory_space<vmem>>, vector<4x128xbf16>
    tpu.vector_store %arg18[%c32_231, %c0_232], %287 {strides = array<i32>} : memref<256x128xbf16, #tpu.memory_space<vmem>>, vector<4x128xbf16>,
    %c0_233 = arith.constant 0 : index
    %c123_234 = arith.constant 123 : index
    %289 = vector.load %arg17[%c0_233, %c123_234] : memref<8x384xbf16, #tpu.memory_space<vmem>>, vector<4x128xbf16>
    %c9_235 = arith.constant 9 : index
    %c0_236 = arith.constant 0 : index
    %c0_237 = arith.constant 0 : index
    %290 = vector.load %arg2[%c9_235, %c0_236, %c0_237] : memref<27x1x128xbf16, #tpu.memory_space<vmem>>, vector<1x1x128xbf16>
    %291 = vector.shape_cast %290 : vector<1x1x128xbf16> to vector<1x128xbf16>
    %292 = vector.broadcast %291 : vector<1x128xbf16> to vector<4x128xbf16>
    %293 = arith.mulf %289, %292 : vector<4x128xbf16>
    %c36_238 = arith.constant 36 : index
    %c0_239 = arith.constant 0 : index
    %294 = vector.load %arg18[%c36_238, %c0_239] : memref<256x128xbf16, #tpu.memory_space<vmem>>, vector<4x128xbf16>
    tpu.vector_store %arg18[%c36_238, %c0_239], %293 {strides = array<i32>} : memref<256x128xbf16, #tpu.memory_space<vmem>>, vector<4x128xbf16>,
    %c0_240 = arith.constant 0 : index
    %c124_241 = arith.constant 124 : index
    %295 = vector.load %arg17[%c0_240, %c124_241] : memref<8x384xbf16, #tpu.memory_space<vmem>>, vector<4x128xbf16>
    %c10_242 = arith.constant 10 : index
    %c0_243 = arith.constant 0 : index
    %c0_244 = arith.constant 0 : index
    %296 = vector.load %arg2[%c10_242, %c0_243, %c0_244] : memref<27x1x128xbf16, #tpu.memory_space<vmem>>, vector<1x1x128xbf16>
    %297 = vector.shape_cast %296 : vector<1x1x128xbf16> to vector<1x128xbf16>
    %298 = vector.broadcast %297 : vector<1x128xbf16> to vector<4x128xbf16>
    %299 = arith.mulf %295, %298 : vector<4x128xbf16>
    %c40_245 = arith.constant 40 : index
    %c0_246 = arith.constant 0 : index
    %300 = vector.load %arg18[%c40_245, %c0_246] : memref<256x128xbf16, #tpu.memory_space<vmem>>, vector<4x128xbf16>
    tpu.vector_store %arg18[%c40_245, %c0_246], %299 {strides = array<i32>} : memref<256x128xbf16, #tpu.memory_space<vmem>>, vector<4x128xbf16>,
    %c0_247 = arith.constant 0 : index
    %c125_248 = arith.constant 125 : index
    %301 = vector.load %arg17[%c0_247, %c125_248] : memref<8x384xbf16, #tpu.memory_space<vmem>>, vector<4x128xbf16>
    %c11_249 = arith.constant 11 : index
    %c0_250 = arith.constant 0 : index
    %c0_251 = arith.constant 0 : index
    %302 = vector.load %arg2[%c11_249, %c0_250, %c0_251] : memref<27x1x128xbf16, #tpu.memory_space<vmem>>, vector<1x1x128xbf16>
    %303 = vector.shape_cast %302 : vector<1x1x128xbf16> to vector<1x128xbf16>
    %304 = vector.broadcast %303 : vector<1x128xbf16> to vector<4x128xbf16>
    %305 = arith.mulf %301, %304 : vector<4x128xbf16>
    %c44_252 = arith.constant 44 : index
    %c0_253 = arith.constant 0 : index
    %306 = vector.load %arg18[%c44_252, %c0_253] : memref<256x128xbf16, #tpu.memory_space<vmem>>, vector<4x128xbf16>
    tpu.vector_store %arg18[%c44_252, %c0_253], %305 {strides = array<i32>} : memref<256x128xbf16, #tpu.memory_space<vmem>>, vector<4x128xbf16>,
    %c0_254 = arith.constant 0 : index
    %c127_255 = arith.constant 127 : index
    %307 = vector.load %arg17[%c0_254, %c127_255] : memref<8x384xbf16, #tpu.memory_space<vmem>>, vector<4x128xbf16>
    %c12_256 = arith.constant 12 : index
    %c0_257 = arith.constant 0 : index
    %c0_258 = arith.constant 0 : index
    %308 = vector.load %arg2[%c12_256, %c0_257, %c0_258] : memref<27x1x128xbf16, #tpu.memory_space<vmem>>, vector<1x1x128xbf16>
    %309 = vector.shape_cast %308 : vector<1x1x128xbf16> to vector<1x128xbf16>
    %310 = vector.broadcast %309 : vector<1x128xbf16> to vector<4x128xbf16>
    %311 = arith.mulf %307, %310 : vector<4x128xbf16>
    %c48_259 = arith.constant 48 : index
    %c0_260 = arith.constant 0 : index
    %312 = vector.load %arg18[%c48_259, %c0_260] : memref<256x128xbf16, #tpu.memory_space<vmem>>, vector<4x128xbf16>
    tpu.vector_store %arg18[%c48_259, %c0_260], %311 {strides = array<i32>} : memref<256x128xbf16, #tpu.memory_space<vmem>>, vector<4x128xbf16>,
    %c0_261 = arith.constant 0 : index
    %c128_262 = arith.constant 128 : index
    %313 = vector.load %arg17[%c0_261, %c128_262] : memref<8x384xbf16, #tpu.memory_space<vmem>>, vector<4x128xbf16>
    %c52_263 = arith.constant 52 : index
    %c0_264 = arith.constant 0 : index
    %314 = vector.load %arg18[%c52_263, %c0_264] : memref<256x128xbf16, #tpu.memory_space<vmem>>, vector<4x128xbf16>
    tpu.vector_store %arg18[%c52_263, %c0_264], %313 {strides = array<i32>} : memref<256x128xbf16, #tpu.memory_space<vmem>>, vector<4x128xbf16>,
    %c0_265 = arith.constant 0 : index
    %c129_266 = arith.constant 129 : index
    %315 = vector.load %arg17[%c0_265, %c129_266] : memref<8x384xbf16, #tpu.memory_space<vmem>>, vector<4x128xbf16>
    %c14_267 = arith.constant 14 : index
    %c0_268 = arith.constant 0 : index
    %c0_269 = arith.constant 0 : index
    %316 = vector.load %arg2[%c14_267, %c0_268, %c0_269] : memref<27x1x128xbf16, #tpu.memory_space<vmem>>, vector<1x1x128xbf16>
    %317 = vector.shape_cast %316 : vector<1x1x128xbf16> to vector<1x128xbf16>
    %318 = vector.broadcast %317 : vector<1x128xbf16> to vector<4x128xbf16>
    %319 = arith.mulf %315, %318 : vector<4x128xbf16>
    %c56_270 = arith.constant 56 : index
    %c0_271 = arith.constant 0 : index
    %320 = vector.load %arg18[%c56_270, %c0_271] : memref<256x128xbf16, #tpu.memory_space<vmem>>, vector<4x128xbf16>
    tpu.vector_store %arg18[%c56_270, %c0_271], %319 {strides = array<i32>} : memref<256x128xbf16, #tpu.memory_space<vmem>>, vector<4x128xbf16>,
    %c0_272 = arith.constant 0 : index
    %c131_273 = arith.constant 131 : index
    %321 = vector.load %arg17[%c0_272, %c131_273] : memref<8x384xbf16, #tpu.memory_space<vmem>>, vector<4x128xbf16>
    %c15_274 = arith.constant 15 : index
    %c0_275 = arith.constant 0 : index
    %c0_276 = arith.constant 0 : index
    %322 = vector.load %arg2[%c15_274, %c0_275, %c0_276] : memref<27x1x128xbf16, #tpu.memory_space<vmem>>, vector<1x1x128xbf16>
    %323 = vector.shape_cast %322 : vector<1x1x128xbf16> to vector<1x128xbf16>
    %324 = vector.broadcast %323 : vector<1x128xbf16> to vector<4x128xbf16>
    %325 = arith.mulf %321, %324 : vector<4x128xbf16>
    %c60_277 = arith.constant 60 : index
    %c0_278 = arith.constant 0 : index
    %326 = vector.load %arg18[%c60_277, %c0_278] : memref<256x128xbf16, #tpu.memory_space<vmem>>, vector<4x128xbf16>
    tpu.vector_store %arg18[%c60_277, %c0_278], %325 {strides = array<i32>} : memref<256x128xbf16, #tpu.memory_space<vmem>>, vector<4x128xbf16>,
    %c0_279 = arith.constant 0 : index
    %c132_280 = arith.constant 132 : index
    %327 = vector.load %arg17[%c0_279, %c132_280] : memref<8x384xbf16, #tpu.memory_space<vmem>>, vector<4x128xbf16>
    %c16_281 = arith.constant 16 : index
    %c0_282 = arith.constant 0 : index
    %c0_283 = arith.constant 0 : index
    %328 = vector.load %arg2[%c16_281, %c0_282, %c0_283] : memref<27x1x128xbf16, #tpu.memory_space<vmem>>, vector<1x1x128xbf16>
    %329 = vector.shape_cast %328 : vector<1x1x128xbf16> to vector<1x128xbf16>
    %330 = vector.broadcast %329 : vector<1x128xbf16> to vector<4x128xbf16>
    %331 = arith.mulf %327, %330 : vector<4x128xbf16>
    %c64_284 = arith.constant 64 : index
    %c0_285 = arith.constant 0 : index
    %332 = vector.load %arg18[%c64_284, %c0_285] : memref<256x128xbf16, #tpu.memory_space<vmem>>, vector<4x128xbf16>
    tpu.vector_store %arg18[%c64_284, %c0_285], %331 {strides = array<i32>} : memref<256x128xbf16, #tpu.memory_space<vmem>>, vector<4x128xbf16>,
    %c0_286 = arith.constant 0 : index
    %c133_287 = arith.constant 133 : index
    %333 = vector.load %arg17[%c0_286, %c133_287] : memref<8x384xbf16, #tpu.memory_space<vmem>>, vector<4x128xbf16>
    %c17_288 = arith.constant 17 : index
    %c0_289 = arith.constant 0 : index
    %c0_290 = arith.constant 0 : index
    %334 = vector.load %arg2[%c17_288, %c0_289, %c0_290] : memref<27x1x128xbf16, #tpu.memory_space<vmem>>, vector<1x1x128xbf16>
    %335 = vector.shape_cast %334 : vector<1x1x128xbf16> to vector<1x128xbf16>
    %336 = vector.broadcast %335 : vector<1x128xbf16> to vector<4x128xbf16>
    %337 = arith.mulf %333, %336 : vector<4x128xbf16>
    %c68_291 = arith.constant 68 : index
    %c0_292 = arith.constant 0 : index
    %338 = vector.load %arg18[%c68_291, %c0_292] : memref<256x128xbf16, #tpu.memory_space<vmem>>, vector<4x128xbf16>
    tpu.vector_store %arg18[%c68_291, %c0_292], %337 {strides = array<i32>} : memref<256x128xbf16, #tpu.memory_space<vmem>>, vector<4x128xbf16>,
    %c0_293 = arith.constant 0 : index
    %c139_294 = arith.constant 139 : index
    %339 = vector.load %arg17[%c0_293, %c139_294] : memref<8x384xbf16, #tpu.memory_space<vmem>>, vector<4x128xbf16>
    %c18_295 = arith.constant 18 : index
    %c0_296 = arith.constant 0 : index
    %c0_297 = arith.constant 0 : index
    %340 = vector.load %arg2[%c18_295, %c0_296, %c0_297] : memref<27x1x128xbf16, #tpu.memory_space<vmem>>, vector<1x1x128xbf16>
    %341 = vector.shape_cast %340 : vector<1x1x128xbf16> to vector<1x128xbf16>
    %342 = vector.broadcast %341 : vector<1x128xbf16> to vector<4x128xbf16>
    %343 = arith.mulf %339, %342 : vector<4x128xbf16>
    %c72_298 = arith.constant 72 : index
    %c0_299 = arith.constant 0 : index
    %344 = vector.load %arg18[%c72_298, %c0_299] : memref<256x128xbf16, #tpu.memory_space<vmem>>, vector<4x128xbf16>
    tpu.vector_store %arg18[%c72_298, %c0_299], %343 {strides = array<i32>} : memref<256x128xbf16, #tpu.memory_space<vmem>>, vector<4x128xbf16>,
    %c0_300 = arith.constant 0 : index
    %c140_301 = arith.constant 140 : index
    %345 = vector.load %arg17[%c0_300, %c140_301] : memref<8x384xbf16, #tpu.memory_space<vmem>>, vector<4x128xbf16>
    %c19_302 = arith.constant 19 : index
    %c0_303 = arith.constant 0 : index
    %c0_304 = arith.constant 0 : index
    %346 = vector.load %arg2[%c19_302, %c0_303, %c0_304] : memref<27x1x128xbf16, #tpu.memory_space<vmem>>, vector<1x1x128xbf16>
    %347 = vector.shape_cast %346 : vector<1x1x128xbf16> to vector<1x128xbf16>
    %348 = vector.broadcast %347 : vector<1x128xbf16> to vector<4x128xbf16>
    %349 = arith.mulf %345, %348 : vector<4x128xbf16>
    %c76_305 = arith.constant 76 : index
    %c0_306 = arith.constant 0 : index
    %350 = vector.load %arg18[%c76_305, %c0_306] : memref<256x128xbf16, #tpu.memory_space<vmem>>, vector<4x128xbf16>
    tpu.vector_store %arg18[%c76_305, %c0_306], %349 {strides = array<i32>} : memref<256x128xbf16, #tpu.memory_space<vmem>>, vector<4x128xbf16>,
    %c0_307 = arith.constant 0 : index
    %c141_308 = arith.constant 141 : index
    %351 = vector.load %arg17[%c0_307, %c141_308] : memref<8x384xbf16, #tpu.memory_space<vmem>>, vector<4x128xbf16>
    %c20_309 = arith.constant 20 : index
    %c0_310 = arith.constant 0 : index
    %c0_311 = arith.constant 0 : index
    %352 = vector.load %arg2[%c20_309, %c0_310, %c0_311] : memref<27x1x128xbf16, #tpu.memory_space<vmem>>, vector<1x1x128xbf16>
    %353 = vector.shape_cast %352 : vector<1x1x128xbf16> to vector<1x128xbf16>
    %354 = vector.broadcast %353 : vector<1x128xbf16> to vector<4x128xbf16>
    %355 = arith.mulf %351, %354 : vector<4x128xbf16>
    %c80_312 = arith.constant 80 : index
    %c0_313 = arith.constant 0 : index
    %356 = vector.load %arg18[%c80_312, %c0_313] : memref<256x128xbf16, #tpu.memory_space<vmem>>, vector<4x128xbf16>
    tpu.vector_store %arg18[%c80_312, %c0_313], %355 {strides = array<i32>} : memref<256x128xbf16, #tpu.memory_space<vmem>>, vector<4x128xbf16>,
    %c0_314 = arith.constant 0 : index
    %c143_315 = arith.constant 143 : index
    %357 = vector.load %arg17[%c0_314, %c143_315] : memref<8x384xbf16, #tpu.memory_space<vmem>>, vector<4x128xbf16>
    %c21_316 = arith.constant 21 : index
    %c0_317 = arith.constant 0 : index
    %c0_318 = arith.constant 0 : index
    %358 = vector.load %arg2[%c21_316, %c0_317, %c0_318] : memref<27x1x128xbf16, #tpu.memory_space<vmem>>, vector<1x1x128xbf16>
    %359 = vector.shape_cast %358 : vector<1x1x128xbf16> to vector<1x128xbf16>
    %360 = vector.broadcast %359 : vector<1x128xbf16> to vector<4x128xbf16>
    %361 = arith.mulf %357, %360 : vector<4x128xbf16>
    %c84_319 = arith.constant 84 : index
    %c0_320 = arith.constant 0 : index
    %362 = vector.load %arg18[%c84_319, %c0_320] : memref<256x128xbf16, #tpu.memory_space<vmem>>, vector<4x128xbf16>
    tpu.vector_store %arg18[%c84_319, %c0_320], %361 {strides = array<i32>} : memref<256x128xbf16, #tpu.memory_space<vmem>>, vector<4x128xbf16>,
    %c0_321 = arith.constant 0 : index
    %c144_322 = arith.constant 144 : index
    %363 = vector.load %arg17[%c0_321, %c144_322] : memref<8x384xbf16, #tpu.memory_space<vmem>>, vector<4x128xbf16>
    %c88_323 = arith.constant 88 : index
    %c0_324 = arith.constant 0 : index
    %364 = vector.load %arg18[%c88_323, %c0_324] : memref<256x128xbf16, #tpu.memory_space<vmem>>, vector<4x128xbf16>
    tpu.vector_store %arg18[%c88_323, %c0_324], %363 {strides = array<i32>} : memref<256x128xbf16, #tpu.memory_space<vmem>>, vector<4x128xbf16>,
    %c0_325 = arith.constant 0 : index
    %c145_326 = arith.constant 145 : index
    %365 = vector.load %arg17[%c0_325, %c145_326] : memref<8x384xbf16, #tpu.memory_space<vmem>>, vector<4x128xbf16>
    %c23_327 = arith.constant 23 : index
    %c0_328 = arith.constant 0 : index
    %c0_329 = arith.constant 0 : index
    %366 = vector.load %arg2[%c23_327, %c0_328, %c0_329] : memref<27x1x128xbf16, #tpu.memory_space<vmem>>, vector<1x1x128xbf16>
    %367 = vector.shape_cast %366 : vector<1x1x128xbf16> to vector<1x128xbf16>
    %368 = vector.broadcast %367 : vector<1x128xbf16> to vector<4x128xbf16>
    %369 = arith.mulf %365, %368 : vector<4x128xbf16>
    %c92_330 = arith.constant 92 : index
    %c0_331 = arith.constant 0 : index
    %370 = vector.load %arg18[%c92_330, %c0_331] : memref<256x128xbf16, #tpu.memory_space<vmem>>, vector<4x128xbf16>
    tpu.vector_store %arg18[%c92_330, %c0_331], %369 {strides = array<i32>} : memref<256x128xbf16, #tpu.memory_space<vmem>>, vector<4x128xbf16>,
    %c0_332 = arith.constant 0 : index
    %c147_333 = arith.constant 147 : index
    %371 = vector.load %arg17[%c0_332, %c147_333] : memref<8x384xbf16, #tpu.memory_space<vmem>>, vector<4x128xbf16>
    %c24_334 = arith.constant 24 : index
    %c0_335 = arith.constant 0 : index
    %c0_336 = arith.constant 0 : index
    %372 = vector.load %arg2[%c24_334, %c0_335, %c0_336] : memref<27x1x128xbf16, #tpu.memory_space<vmem>>, vector<1x1x128xbf16>
    %373 = vector.shape_cast %372 : vector<1x1x128xbf16> to vector<1x128xbf16>
    %374 = vector.broadcast %373 : vector<1x128xbf16> to vector<4x128xbf16>
    %375 = arith.mulf %371, %374 : vector<4x128xbf16>
    %c96_337 = arith.constant 96 : index
    %c0_338 = arith.constant 0 : index
    %376 = vector.load %arg18[%c96_337, %c0_338] : memref<256x128xbf16, #tpu.memory_space<vmem>>, vector<4x128xbf16>
    tpu.vector_store %arg18[%c96_337, %c0_338], %375 {strides = array<i32>} : memref<256x128xbf16, #tpu.memory_space<vmem>>, vector<4x128xbf16>,
    %c0_339 = arith.constant 0 : index
    %c148_340 = arith.constant 148 : index
    %377 = vector.load %arg17[%c0_339, %c148_340] : memref<8x384xbf16, #tpu.memory_space<vmem>>, vector<4x128xbf16>
    %c25_341 = arith.constant 25 : index
    %c0_342 = arith.constant 0 : index
    %c0_343 = arith.constant 0 : index
    %378 = vector.load %arg2[%c25_341, %c0_342, %c0_343] : memref<27x1x128xbf16, #tpu.memory_space<vmem>>, vector<1x1x128xbf16>
    %379 = vector.shape_cast %378 : vector<1x1x128xbf16> to vector<1x128xbf16>
    %380 = vector.broadcast %379 : vector<1x128xbf16> to vector<4x128xbf16>
    %381 = arith.mulf %377, %380 : vector<4x128xbf16>
    %c100_344 = arith.constant 100 : index
    %c0_345 = arith.constant 0 : index
    %382 = vector.load %arg18[%c100_344, %c0_345] : memref<256x128xbf16, #tpu.memory_space<vmem>>, vector<4x128xbf16>
    tpu.vector_store %arg18[%c100_344, %c0_345], %381 {strides = array<i32>} : memref<256x128xbf16, #tpu.memory_space<vmem>>, vector<4x128xbf16>,
    %c0_346 = arith.constant 0 : index
    %c149_347 = arith.constant 149 : index
    %383 = vector.load %arg17[%c0_346, %c149_347] : memref<8x384xbf16, #tpu.memory_space<vmem>>, vector<4x128xbf16>
    %c26_348 = arith.constant 26 : index
    %c0_349 = arith.constant 0 : index
    %c0_350 = arith.constant 0 : index
    %384 = vector.load %arg2[%c26_348, %c0_349, %c0_350] : memref<27x1x128xbf16, #tpu.memory_space<vmem>>, vector<1x1x128xbf16>
    %385 = vector.shape_cast %384 : vector<1x1x128xbf16> to vector<1x128xbf16>
    %386 = vector.broadcast %385 : vector<1x128xbf16> to vector<4x128xbf16>
    %387 = arith.mulf %383, %386 : vector<4x128xbf16>
    %c104_351 = arith.constant 104 : index
    %c0_352 = arith.constant 0 : index
    %388 = vector.load %arg18[%c104_351, %c0_352] : memref<256x128xbf16, #tpu.memory_space<vmem>>, vector<4x128xbf16>
    tpu.vector_store %arg18[%c104_351, %c0_352], %387 {strides = array<i32>} : memref<256x128xbf16, #tpu.memory_space<vmem>>, vector<4x128xbf16>,
    %c0_353 = arith.constant 0 : index
    %c0_354 = arith.constant 0 : index
    %389 = vector.load %arg6[%c0_353, %c0_354] : memref<4x128xbf16, #tpu.memory_space<vmem>>, vector<4x128xbf16>
    %c0_355 = arith.constant 0 : index
    %c0_356 = arith.constant 0 : index
    %390 = vector.load %arg18[%c0_355, %c0_356] : memref<256x128xbf16, #tpu.memory_space<vmem>>, vector<128x128xbf16>
    %cst_357 = arith.constant dense<0.000000e+00> : vector<4x128xf32>
    %391 = tpu.matmul %389, %390, %cst_357 {dimension_numbers = #tpu.dot_dimension_numbers<[1], [0], [0], [1], [0, 0, 1, 1], [], []>} : vector<4x128xbf16>, vector<128x128xbf16>, vector<4x128xf32> -> vector<4x128xf32>
    %392 = vector.broadcast %11 : vector<1x128xf32> to vector<4x128xf32>
    %393 = arith.mulf %391, %392 : vector<4x128xf32>
    %cst_358 = arith.constant dense<0.000000e+00> : vector<4xf32>
    %394 = vector.multi_reduction <add>, %393, %cst_358 [1] : vector<4x128xf32> to vector<4xf32>
    %395 = vector.shape_cast %394 : vector<4xf32> to vector<4x1xf32>
    %cst_359 = arith.constant dense<0.000000e+00> : vector<1xf32>
    %396 = vector.multi_reduction <add>, %395, %cst_359 [0] : vector<4x1xf32> to vector<1xf32>
    %397 = vector.shape_cast %396 : vector<1xf32> to vector<1x1xf32>
    %398 = arith.mulf %393, %393 : vector<4x128xf32>
    %cst_360 = arith.constant dense<0.000000e+00> : vector<4xf32>
    %399 = vector.multi_reduction <add>, %398, %cst_360 [1] : vector<4x128xf32> to vector<4xf32>
    %400 = vector.shape_cast %399 : vector<4xf32> to vector<4x1xf32>
    %cst_361 = arith.constant dense<0.000000e+00> : vector<1xf32>
    %401 = vector.multi_reduction <add>, %400, %cst_361 [0] : vector<4x1xf32> to vector<1xf32>
    %402 = vector.shape_cast %401 : vector<1xf32> to vector<1x1xf32>
    %cst_362 = arith.constant 2.560000e+02 : f32
    %403 = vector.broadcast %cst_362 : f32 to vector<1x1xf32>
    %404 = arith.divf %397, %403 : vector<1x1xf32>
    %cst_363 = arith.constant 2.560000e+02 : f32
    %405 = vector.broadcast %cst_363 : f32 to vector<1x1xf32>
    %406 = arith.divf %402, %405 : vector<1x1xf32>
    %407 = arith.mulf %404, %404 : vector<1x1xf32>
    %408 = arith.subf %406, %407 : vector<1x1xf32>
    %cst_364 = arith.constant 0.000000e+00 : f32
    %409 = vector.broadcast %cst_364 : f32 to vector<1x1xf32>
    %410 = arith.maximumf %408, %409 : vector<1x1xf32>
    %cst_365 = arith.constant 9.99999974E-6 : f32
    %411 = vector.broadcast %cst_365 : f32 to vector<1x1xf32>
    %412 = arith.addf %410, %411 : vector<1x1xf32>
    %413 = math.rsqrt %412 : vector<1x1xf32>
    %414 = vector.broadcast %404 : vector<1x1xf32> to vector<4x128xf32>
    %415 = arith.subf %391, %414 : vector<4x128xf32>
    %416 = vector.broadcast %413 : vector<1x1xf32> to vector<4x128xf32>
    %417 = arith.mulf %415, %416 : vector<4x128xf32>
    %c0_366 = arith.constant 0 : index
    %c0_367 = arith.constant 0 : index
    %418 = vector.load %arg7[%c0_366, %c0_367] : memref<4x1xf32, #tpu.memory_space<vmem>>, vector<4x1xf32>
    %419 = vector.broadcast %418 : vector<4x1xf32> to vector<4x128xf32>
    %420 = arith.mulf %417, %419 : vector<4x128xf32>
    %c0_368 = arith.constant 0 : index
    %c0_369 = arith.constant 0 : index
    %421 = vector.load %arg8[%c0_368, %c0_369] : memref<4x1xf32, #tpu.memory_space<vmem>>, vector<4x1xf32>
    %422 = vector.broadcast %421 : vector<4x1xf32> to vector<4x128xf32>
    %423 = arith.addf %420, %422 : vector<4x128xf32>
    %424 = arith.addf %35, %423 : vector<4x128xf32>
    %cst_370 = arith.constant 5.000000e-01 : f32
    %425 = vector.broadcast %cst_370 : f32 to vector<4x128xf32>
    %426 = arith.mulf %425, %424 : vector<4x128xf32>
    %cst_371 = arith.constant 4.471500e-02 : f32
    %427 = vector.broadcast %cst_371 : f32 to vector<4x128xf32>
    %428 = arith.mulf %427, %424 : vector<4x128xf32>
    %429 = arith.mulf %428, %424 : vector<4x128xf32>
    %430 = arith.mulf %429, %424 : vector<4x128xf32>
    %431 = arith.addf %424, %430 : vector<4x128xf32>
    %cst_372 = arith.constant 0.797884583 : f32
    %432 = vector.broadcast %cst_372 : f32 to vector<4x128xf32>
    %433 = arith.mulf %432, %431 : vector<4x128xf32>
    %434 = math.tanh %433 : vector<4x128xf32>
    %cst_373 = arith.constant 1.000000e+00 : f32
    %435 = vector.broadcast %cst_373 : f32 to vector<4x128xf32>
    %436 = arith.addf %435, %434 : vector<4x128xf32>
    %437 = arith.mulf %426, %436 : vector<4x128xf32>
    %438 = vector.broadcast %11 : vector<1x128xf32> to vector<4x128xf32>
    %439 = arith.mulf %437, %438 : vector<4x128xf32>
    %440 = arith.truncf %439 : vector<4x128xf32> to vector<4x128xbf16>
    %c0_374 = arith.constant 0 : index
    %c128_375 = arith.constant 128 : index
    %441 = vector.load %arg17[%c0_374, %c128_375] : memref<8x384xbf16, #tpu.memory_space<vmem>>, vector<4x128xbf16>
    tpu.vector_store %arg17[%c0_374, %c128_375], %440 {strides = array<i32>} : memref<8x384xbf16, #tpu.memory_space<vmem>>, vector<4x128xbf16>,
    %c0_376 = arith.constant 0 : index
    %c107_377 = arith.constant 107 : index
    %442 = vector.load %arg17[%c0_376, %c107_377] : memref<8x384xbf16, #tpu.memory_space<vmem>>, vector<4x128xbf16>
    %c0_378 = arith.constant 0 : index
    %c0_379 = arith.constant 0 : index
    %c0_380 = arith.constant 0 : index
    %443 = vector.load %arg2[%c0_378, %c0_379, %c0_380] : memref<27x1x128xbf16, #tpu.memory_space<vmem>>, vector<1x1x128xbf16>
    %444 = vector.shape_cast %443 : vector<1x1x128xbf16> to vector<1x128xbf16>
    %445 = vector.broadcast %444 : vector<1x128xbf16> to vector<4x128xbf16>
    %446 = arith.mulf %442, %445 : vector<4x128xbf16>
    %c0_381 = arith.constant 0 : index
    %c0_382 = arith.constant 0 : index
    %447 = vector.load %arg18[%c0_381, %c0_382] : memref<256x128xbf16, #tpu.memory_space<vmem>>, vector<4x128xbf16>
    tpu.vector_store %arg18[%c0_381, %c0_382], %446 {strides = array<i32>} : memref<256x128xbf16, #tpu.memory_space<vmem>>, vector<4x128xbf16>,
    %c0_383 = arith.constant 0 : index
    %c108_384 = arith.constant 108 : index
    %448 = vector.load %arg17[%c0_383, %c108_384] : memref<8x384xbf16, #tpu.memory_space<vmem>>, vector<4x128xbf16>
    %c1_385 = arith.constant 1 : index
    %c0_386 = arith.constant 0 : index
    %c0_387 = arith.constant 0 : index
    %449 = vector.load %arg2[%c1_385, %c0_386, %c0_387] : memref<27x1x128xbf16, #tpu.memory_space<vmem>>, vector<1x1x128xbf16>
    %450 = vector.shape_cast %449 : vector<1x1x128xbf16> to vector<1x128xbf16>
    %451 = vector.broadcast %450 : vector<1x128xbf16> to vector<4x128xbf16>
    %452 = arith.mulf %448, %451 : vector<4x128xbf16>
    %c4_388 = arith.constant 4 : index
    %c0_389 = arith.constant 0 : index
    %453 = vector.load %arg18[%c4_388, %c0_389] : memref<256x128xbf16, #tpu.memory_space<vmem>>, vector<4x128xbf16>
    tpu.vector_store %arg18[%c4_388, %c0_389], %452 {strides = array<i32>} : memref<256x128xbf16, #tpu.memory_space<vmem>>, vector<4x128xbf16>,
    %c0_390 = arith.constant 0 : index
    %c109_391 = arith.constant 109 : index
    %454 = vector.load %arg17[%c0_390, %c109_391] : memref<8x384xbf16, #tpu.memory_space<vmem>>, vector<4x128xbf16>
    %c2_392 = arith.constant 2 : index
    %c0_393 = arith.constant 0 : index
    %c0_394 = arith.constant 0 : index
    %455 = vector.load %arg2[%c2_392, %c0_393, %c0_394] : memref<27x1x128xbf16, #tpu.memory_space<vmem>>, vector<1x1x128xbf16>
    %456 = vector.shape_cast %455 : vector<1x1x128xbf16> to vector<1x128xbf16>
    %457 = vector.broadcast %456 : vector<1x128xbf16> to vector<4x128xbf16>
    %458 = arith.mulf %454, %457 : vector<4x128xbf16>
    %c8_395 = arith.constant 8 : index
    %c0_396 = arith.constant 0 : index
    %459 = vector.load %arg18[%c8_395, %c0_396] : memref<256x128xbf16, #tpu.memory_space<vmem>>, vector<4x128xbf16>
    tpu.vector_store %arg18[%c8_395, %c0_396], %458 {strides = array<i32>} : memref<256x128xbf16, #tpu.memory_space<vmem>>, vector<4x128xbf16>,
    %c0_397 = arith.constant 0 : index
    %c111_398 = arith.constant 111 : index
    %460 = vector.load %arg17[%c0_397, %c111_398] : memref<8x384xbf16, #tpu.memory_space<vmem>>, vector<4x128xbf16>
    %c3_399 = arith.constant 3 : index
    %c0_400 = arith.constant 0 : index
    %c0_401 = arith.constant 0 : index
    %461 = vector.load %arg2[%c3_399, %c0_400, %c0_401] : memref<27x1x128xbf16, #tpu.memory_space<vmem>>, vector<1x1x128xbf16>
    %462 = vector.shape_cast %461 : vector<1x1x128xbf16> to vector<1x128xbf16>
    %463 = vector.broadcast %462 : vector<1x128xbf16> to vector<4x128xbf16>
    %464 = arith.mulf %460, %463 : vector<4x128xbf16>
    %c12_402 = arith.constant 12 : index
    %c0_403 = arith.constant 0 : index
    %465 = vector.load %arg18[%c12_402, %c0_403] : memref<256x128xbf16, #tpu.memory_space<vmem>>, vector<4x128xbf16>
    tpu.vector_store %arg18[%c12_402, %c0_403], %464 {strides = array<i32>} : memref<256x128xbf16, #tpu.memory_space<vmem>>, vector<4x128xbf16>,
    %c0_404 = arith.constant 0 : index
    %c112_405 = arith.constant 112 : index
    %466 = vector.load %arg17[%c0_404, %c112_405] : memref<8x384xbf16, #tpu.memory_space<vmem>>, vector<4x128xbf16>
    %c16_406 = arith.constant 16 : index
    %c0_407 = arith.constant 0 : index
    %467 = vector.load %arg18[%c16_406, %c0_407] : memref<256x128xbf16, #tpu.memory_space<vmem>>, vector<4x128xbf16>
    tpu.vector_store %arg18[%c16_406, %c0_407], %466 {strides = array<i32>} : memref<256x128xbf16, #tpu.memory_space<vmem>>, vector<4x128xbf16>,
    %c0_408 = arith.constant 0 : index
    %c113_409 = arith.constant 113 : index
    %468 = vector.load %arg17[%c0_408, %c113_409] : memref<8x384xbf16, #tpu.memory_space<vmem>>, vector<4x128xbf16>
    %c5_410 = arith.constant 5 : index
    %c0_411 = arith.constant 0 : index
    %c0_412 = arith.constant 0 : index
    %469 = vector.load %arg2[%c5_410, %c0_411, %c0_412] : memref<27x1x128xbf16, #tpu.memory_space<vmem>>, vector<1x1x128xbf16>
    %470 = vector.shape_cast %469 : vector<1x1x128xbf16> to vector<1x128xbf16>
    %471 = vector.broadcast %470 : vector<1x128xbf16> to vector<4x128xbf16>
    %472 = arith.mulf %468, %471 : vector<4x128xbf16>
    %c20_413 = arith.constant 20 : index
    %c0_414 = arith.constant 0 : index
    %473 = vector.load %arg18[%c20_413, %c0_414] : memref<256x128xbf16, #tpu.memory_space<vmem>>, vector<4x128xbf16>
    tpu.vector_store %arg18[%c20_413, %c0_414], %472 {strides = array<i32>} : memref<256x128xbf16, #tpu.memory_space<vmem>>, vector<4x128xbf16>,
    %c0_415 = arith.constant 0 : index
    %c115_416 = arith.constant 115 : index
    %474 = vector.load %arg17[%c0_415, %c115_416] : memref<8x384xbf16, #tpu.memory_space<vmem>>, vector<4x128xbf16>
    %c6_417 = arith.constant 6 : index
    %c0_418 = arith.constant 0 : index
    %c0_419 = arith.constant 0 : index
    %475 = vector.load %arg2[%c6_417, %c0_418, %c0_419] : memref<27x1x128xbf16, #tpu.memory_space<vmem>>, vector<1x1x128xbf16>
    %476 = vector.shape_cast %475 : vector<1x1x128xbf16> to vector<1x128xbf16>
    %477 = vector.broadcast %476 : vector<1x128xbf16> to vector<4x128xbf16>
    %478 = arith.mulf %474, %477 : vector<4x128xbf16>
    %c24_420 = arith.constant 24 : index
    %c0_421 = arith.constant 0 : index
    %479 = vector.load %arg18[%c24_420, %c0_421] : memref<256x128xbf16, #tpu.memory_space<vmem>>, vector<4x128xbf16>
    tpu.vector_store %arg18[%c24_420, %c0_421], %478 {strides = array<i32>} : memref<256x128xbf16, #tpu.memory_space<vmem>>, vector<4x128xbf16>,
    %c0_422 = arith.constant 0 : index
    %c116_423 = arith.constant 116 : index
    %480 = vector.load %arg17[%c0_422, %c116_423] : memref<8x384xbf16, #tpu.memory_space<vmem>>, vector<4x128xbf16>
    %c7_424 = arith.constant 7 : index
    %c0_425 = arith.constant 0 : index
    %c0_426 = arith.constant 0 : index
    %481 = vector.load %arg2[%c7_424, %c0_425, %c0_426] : memref<27x1x128xbf16, #tpu.memory_space<vmem>>, vector<1x1x128xbf16>
    %482 = vector.shape_cast %481 : vector<1x1x128xbf16> to vector<1x128xbf16>
    %483 = vector.broadcast %482 : vector<1x128xbf16> to vector<4x128xbf16>
    %484 = arith.mulf %480, %483 : vector<4x128xbf16>
    %c28_427 = arith.constant 28 : index
    %c0_428 = arith.constant 0 : index
    %485 = vector.load %arg18[%c28_427, %c0_428] : memref<256x128xbf16, #tpu.memory_space<vmem>>, vector<4x128xbf16>
    tpu.vector_store %arg18[%c28_427, %c0_428], %484 {strides = array<i32>} : memref<256x128xbf16, #tpu.memory_space<vmem>>, vector<4x128xbf16>,
    %c0_429 = arith.constant 0 : index
    %c117_430 = arith.constant 117 : index
    %486 = vector.load %arg17[%c0_429, %c117_430] : memref<8x384xbf16, #tpu.memory_space<vmem>>, vector<4x128xbf16>
    %c8_431 = arith.constant 8 : index
    %c0_432 = arith.constant 0 : index
    %c0_433 = arith.constant 0 : index
    %487 = vector.load %arg2[%c8_431, %c0_432, %c0_433] : memref<27x1x128xbf16, #tpu.memory_space<vmem>>, vector<1x1x128xbf16>
    %488 = vector.shape_cast %487 : vector<1x1x128xbf16> to vector<1x128xbf16>
    %489 = vector.broadcast %488 : vector<1x128xbf16> to vector<4x128xbf16>
    %490 = arith.mulf %486, %489 : vector<4x128xbf16>
    %c32_434 = arith.constant 32 : index
    %c0_435 = arith.constant 0 : index
    %491 = vector.load %arg18[%c32_434, %c0_435] : memref<256x128xbf16, #tpu.memory_space<vmem>>, vector<4x128xbf16>
    tpu.vector_store %arg18[%c32_434, %c0_435], %490 {strides = array<i32>} : memref<256x128xbf16, #tpu.memory_space<vmem>>, vector<4x128xbf16>,
    %c0_436 = arith.constant 0 : index
    %c123_437 = arith.constant 123 : index
    %492 = vector.load %arg17[%c0_436, %c123_437] : memref<8x384xbf16, #tpu.memory_space<vmem>>, vector<4x128xbf16>
    %c9_438 = arith.constant 9 : index
    %c0_439 = arith.constant 0 : index
    %c0_440 = arith.constant 0 : index
    %493 = vector.load %arg2[%c9_438, %c0_439, %c0_440] : memref<27x1x128xbf16, #tpu.memory_space<vmem>>, vector<1x1x128xbf16>
    %494 = vector.shape_cast %493 : vector<1x1x128xbf16> to vector<1x128xbf16>
    %495 = vector.broadcast %494 : vector<1x128xbf16> to vector<4x128xbf16>
    %496 = arith.mulf %492, %495 : vector<4x128xbf16>
    %c36_441 = arith.constant 36 : index
    %c0_442 = arith.constant 0 : index
    %497 = vector.load %arg18[%c36_441, %c0_442] : memref<256x128xbf16, #tpu.memory_space<vmem>>, vector<4x128xbf16>
    tpu.vector_store %arg18[%c36_441, %c0_442], %496 {strides = array<i32>} : memref<256x128xbf16, #tpu.memory_space<vmem>>, vector<4x128xbf16>,
    %c0_443 = arith.constant 0 : index
    %c124_444 = arith.constant 124 : index
    %498 = vector.load %arg17[%c0_443, %c124_444] : memref<8x384xbf16, #tpu.memory_space<vmem>>, vector<4x128xbf16>
    %c10_445 = arith.constant 10 : index
    %c0_446 = arith.constant 0 : index
    %c0_447 = arith.constant 0 : index
    %499 = vector.load %arg2[%c10_445, %c0_446, %c0_447] : memref<27x1x128xbf16, #tpu.memory_space<vmem>>, vector<1x1x128xbf16>
    %500 = vector.shape_cast %499 : vector<1x1x128xbf16> to vector<1x128xbf16>
    %501 = vector.broadcast %500 : vector<1x128xbf16> to vector<4x128xbf16>
    %502 = arith.mulf %498, %501 : vector<4x128xbf16>
    %c40_448 = arith.constant 40 : index
    %c0_449 = arith.constant 0 : index
    %503 = vector.load %arg18[%c40_448, %c0_449] : memref<256x128xbf16, #tpu.memory_space<vmem>>, vector<4x128xbf16>
    tpu.vector_store %arg18[%c40_448, %c0_449], %502 {strides = array<i32>} : memref<256x128xbf16, #tpu.memory_space<vmem>>, vector<4x128xbf16>,
    %c0_450 = arith.constant 0 : index
    %c125_451 = arith.constant 125 : index
    %504 = vector.load %arg17[%c0_450, %c125_451] : memref<8x384xbf16, #tpu.memory_space<vmem>>, vector<4x128xbf16>
    %c11_452 = arith.constant 11 : index
    %c0_453 = arith.constant 0 : index
    %c0_454 = arith.constant 0 : index
    %505 = vector.load %arg2[%c11_452, %c0_453, %c0_454] : memref<27x1x128xbf16, #tpu.memory_space<vmem>>, vector<1x1x128xbf16>
    %506 = vector.shape_cast %505 : vector<1x1x128xbf16> to vector<1x128xbf16>
    %507 = vector.broadcast %506 : vector<1x128xbf16> to vector<4x128xbf16>
    %508 = arith.mulf %504, %507 : vector<4x128xbf16>
    %c44_455 = arith.constant 44 : index
    %c0_456 = arith.constant 0 : index
    %509 = vector.load %arg18[%c44_455, %c0_456] : memref<256x128xbf16, #tpu.memory_space<vmem>>, vector<4x128xbf16>
    tpu.vector_store %arg18[%c44_455, %c0_456], %508 {strides = array<i32>} : memref<256x128xbf16, #tpu.memory_space<vmem>>, vector<4x128xbf16>,
    %c0_457 = arith.constant 0 : index
    %c127_458 = arith.constant 127 : index
    %510 = vector.load %arg17[%c0_457, %c127_458] : memref<8x384xbf16, #tpu.memory_space<vmem>>, vector<4x128xbf16>
    %c12_459 = arith.constant 12 : index
    %c0_460 = arith.constant 0 : index
    %c0_461 = arith.constant 0 : index
    %511 = vector.load %arg2[%c12_459, %c0_460, %c0_461] : memref<27x1x128xbf16, #tpu.memory_space<vmem>>, vector<1x1x128xbf16>
    %512 = vector.shape_cast %511 : vector<1x1x128xbf16> to vector<1x128xbf16>
    %513 = vector.broadcast %512 : vector<1x128xbf16> to vector<4x128xbf16>
    %514 = arith.mulf %510, %513 : vector<4x128xbf16>
    %c48_462 = arith.constant 48 : index
    %c0_463 = arith.constant 0 : index
    %515 = vector.load %arg18[%c48_462, %c0_463] : memref<256x128xbf16, #tpu.memory_space<vmem>>, vector<4x128xbf16>
    tpu.vector_store %arg18[%c48_462, %c0_463], %514 {strides = array<i32>} : memref<256x128xbf16, #tpu.memory_space<vmem>>, vector<4x128xbf16>,
    %c0_464 = arith.constant 0 : index
    %c128_465 = arith.constant 128 : index
    %516 = vector.load %arg17[%c0_464, %c128_465] : memref<8x384xbf16, #tpu.memory_space<vmem>>, vector<4x128xbf16>
    %c52_466 = arith.constant 52 : index
    %c0_467 = arith.constant 0 : index
    %517 = vector.load %arg18[%c52_466, %c0_467] : memref<256x128xbf16, #tpu.memory_space<vmem>>, vector<4x128xbf16>
    tpu.vector_store %arg18[%c52_466, %c0_467], %516 {strides = array<i32>} : memref<256x128xbf16, #tpu.memory_space<vmem>>, vector<4x128xbf16>,
    %c0_468 = arith.constant 0 : index
    %c129_469 = arith.constant 129 : index
    %518 = vector.load %arg17[%c0_468, %c129_469] : memref<8x384xbf16, #tpu.memory_space<vmem>>, vector<4x128xbf16>
    %c14_470 = arith.constant 14 : index
    %c0_471 = arith.constant 0 : index
    %c0_472 = arith.constant 0 : index
    %519 = vector.load %arg2[%c14_470, %c0_471, %c0_472] : memref<27x1x128xbf16, #tpu.memory_space<vmem>>, vector<1x1x128xbf16>
    %520 = vector.shape_cast %519 : vector<1x1x128xbf16> to vector<1x128xbf16>
    %521 = vector.broadcast %520 : vector<1x128xbf16> to vector<4x128xbf16>
    %522 = arith.mulf %518, %521 : vector<4x128xbf16>
    %c56_473 = arith.constant 56 : index
    %c0_474 = arith.constant 0 : index
    %523 = vector.load %arg18[%c56_473, %c0_474] : memref<256x128xbf16, #tpu.memory_space<vmem>>, vector<4x128xbf16>
    tpu.vector_store %arg18[%c56_473, %c0_474], %522 {strides = array<i32>} : memref<256x128xbf16, #tpu.memory_space<vmem>>, vector<4x128xbf16>,
    %c0_475 = arith.constant 0 : index
    %c131_476 = arith.constant 131 : index
    %524 = vector.load %arg17[%c0_475, %c131_476] : memref<8x384xbf16, #tpu.memory_space<vmem>>, vector<4x128xbf16>
    %c15_477 = arith.constant 15 : index
    %c0_478 = arith.constant 0 : index
    %c0_479 = arith.constant 0 : index
    %525 = vector.load %arg2[%c15_477, %c0_478, %c0_479] : memref<27x1x128xbf16, #tpu.memory_space<vmem>>, vector<1x1x128xbf16>
    %526 = vector.shape_cast %525 : vector<1x1x128xbf16> to vector<1x128xbf16>
    %527 = vector.broadcast %526 : vector<1x128xbf16> to vector<4x128xbf16>
    %528 = arith.mulf %524, %527 : vector<4x128xbf16>
    %c60_480 = arith.constant 60 : index
    %c0_481 = arith.constant 0 : index
    %529 = vector.load %arg18[%c60_480, %c0_481] : memref<256x128xbf16, #tpu.memory_space<vmem>>, vector<4x128xbf16>
    tpu.vector_store %arg18[%c60_480, %c0_481], %528 {strides = array<i32>} : memref<256x128xbf16, #tpu.memory_space<vmem>>, vector<4x128xbf16>,
    %c0_482 = arith.constant 0 : index
    %c132_483 = arith.constant 132 : index
    %530 = vector.load %arg17[%c0_482, %c132_483] : memref<8x384xbf16, #tpu.memory_space<vmem>>, vector<4x128xbf16>
    %c16_484 = arith.constant 16 : index
    %c0_485 = arith.constant 0 : index
    %c0_486 = arith.constant 0 : index
    %531 = vector.load %arg2[%c16_484, %c0_485, %c0_486] : memref<27x1x128xbf16, #tpu.memory_space<vmem>>, vector<1x1x128xbf16>
    %532 = vector.shape_cast %531 : vector<1x1x128xbf16> to vector<1x128xbf16>
    %533 = vector.broadcast %532 : vector<1x128xbf16> to vector<4x128xbf16>
    %534 = arith.mulf %530, %533 : vector<4x128xbf16>
    %c64_487 = arith.constant 64 : index
    %c0_488 = arith.constant 0 : index
    %535 = vector.load %arg18[%c64_487, %c0_488] : memref<256x128xbf16, #tpu.memory_space<vmem>>, vector<4x128xbf16>
    tpu.vector_store %arg18[%c64_487, %c0_488], %534 {strides = array<i32>} : memref<256x128xbf16, #tpu.memory_space<vmem>>, vector<4x128xbf16>,
    %c0_489 = arith.constant 0 : index
    %c133_490 = arith.constant 133 : index
    %536 = vector.load %arg17[%c0_489, %c133_490] : memref<8x384xbf16, #tpu.memory_space<vmem>>, vector<4x128xbf16>
    %c17_491 = arith.constant 17 : index
    %c0_492 = arith.constant 0 : index
    %c0_493 = arith.constant 0 : index
    %537 = vector.load %arg2[%c17_491, %c0_492, %c0_493] : memref<27x1x128xbf16, #tpu.memory_space<vmem>>, vector<1x1x128xbf16>
    %538 = vector.shape_cast %537 : vector<1x1x128xbf16> to vector<1x128xbf16>
    %539 = vector.broadcast %538 : vector<1x128xbf16> to vector<4x128xbf16>
    %540 = arith.mulf %536, %539 : vector<4x128xbf16>
    %c68_494 = arith.constant 68 : index
    %c0_495 = arith.constant 0 : index
    %541 = vector.load %arg18[%c68_494, %c0_495] : memref<256x128xbf16, #tpu.memory_space<vmem>>, vector<4x128xbf16>
    tpu.vector_store %arg18[%c68_494, %c0_495], %540 {strides = array<i32>} : memref<256x128xbf16, #tpu.memory_space<vmem>>, vector<4x128xbf16>,
    %c0_496 = arith.constant 0 : index
    %c139_497 = arith.constant 139 : index
    %542 = vector.load %arg17[%c0_496, %c139_497] : memref<8x384xbf16, #tpu.memory_space<vmem>>, vector<4x128xbf16>
    %c18_498 = arith.constant 18 : index
    %c0_499 = arith.constant 0 : index
    %c0_500 = arith.constant 0 : index
    %543 = vector.load %arg2[%c18_498, %c0_499, %c0_500] : memref<27x1x128xbf16, #tpu.memory_space<vmem>>, vector<1x1x128xbf16>
    %544 = vector.shape_cast %543 : vector<1x1x128xbf16> to vector<1x128xbf16>
    %545 = vector.broadcast %544 : vector<1x128xbf16> to vector<4x128xbf16>
    %546 = arith.mulf %542, %545 : vector<4x128xbf16>
    %c72_501 = arith.constant 72 : index
    %c0_502 = arith.constant 0 : index
    %547 = vector.load %arg18[%c72_501, %c0_502] : memref<256x128xbf16, #tpu.memory_space<vmem>>, vector<4x128xbf16>
    tpu.vector_store %arg18[%c72_501, %c0_502], %546 {strides = array<i32>} : memref<256x128xbf16, #tpu.memory_space<vmem>>, vector<4x128xbf16>,
    %c0_503 = arith.constant 0 : index
    %c140_504 = arith.constant 140 : index
    %548 = vector.load %arg17[%c0_503, %c140_504] : memref<8x384xbf16, #tpu.memory_space<vmem>>, vector<4x128xbf16>
    %c19_505 = arith.constant 19 : index
    %c0_506 = arith.constant 0 : index
    %c0_507 = arith.constant 0 : index
    %549 = vector.load %arg2[%c19_505, %c0_506, %c0_507] : memref<27x1x128xbf16, #tpu.memory_space<vmem>>, vector<1x1x128xbf16>
    %550 = vector.shape_cast %549 : vector<1x1x128xbf16> to vector<1x128xbf16>
    %551 = vector.broadcast %550 : vector<1x128xbf16> to vector<4x128xbf16>
    %552 = arith.mulf %548, %551 : vector<4x128xbf16>
    %c76_508 = arith.constant 76 : index
    %c0_509 = arith.constant 0 : index
    %553 = vector.load %arg18[%c76_508, %c0_509] : memref<256x128xbf16, #tpu.memory_space<vmem>>, vector<4x128xbf16>
    tpu.vector_store %arg18[%c76_508, %c0_509], %552 {strides = array<i32>} : memref<256x128xbf16, #tpu.memory_space<vmem>>, vector<4x128xbf16>,
    %c0_510 = arith.constant 0 : index
    %c141_511 = arith.constant 141 : index
    %554 = vector.load %arg17[%c0_510, %c141_511] : memref<8x384xbf16, #tpu.memory_space<vmem>>, vector<4x128xbf16>
    %c20_512 = arith.constant 20 : index
    %c0_513 = arith.constant 0 : index
    %c0_514 = arith.constant 0 : index
    %555 = vector.load %arg2[%c20_512, %c0_513, %c0_514] : memref<27x1x128xbf16, #tpu.memory_space<vmem>>, vector<1x1x128xbf16>
    %556 = vector.shape_cast %555 : vector<1x1x128xbf16> to vector<1x128xbf16>
    %557 = vector.broadcast %556 : vector<1x128xbf16> to vector<4x128xbf16>
    %558 = arith.mulf %554, %557 : vector<4x128xbf16>
    %c80_515 = arith.constant 80 : index
    %c0_516 = arith.constant 0 : index
    %559 = vector.load %arg18[%c80_515, %c0_516] : memref<256x128xbf16, #tpu.memory_space<vmem>>, vector<4x128xbf16>
    tpu.vector_store %arg18[%c80_515, %c0_516], %558 {strides = array<i32>} : memref<256x128xbf16, #tpu.memory_space<vmem>>, vector<4x128xbf16>,
    %c0_517 = arith.constant 0 : index
    %c143_518 = arith.constant 143 : index
    %560 = vector.load %arg17[%c0_517, %c143_518] : memref<8x384xbf16, #tpu.memory_space<vmem>>, vector<4x128xbf16>
    %c21_519 = arith.constant 21 : index
    %c0_520 = arith.constant 0 : index
    %c0_521 = arith.constant 0 : index
    %561 = vector.load %arg2[%c21_519, %c0_520, %c0_521] : memref<27x1x128xbf16, #tpu.memory_space<vmem>>, vector<1x1x128xbf16>
    %562 = vector.shape_cast %561 : vector<1x1x128xbf16> to vector<1x128xbf16>
    %563 = vector.broadcast %562 : vector<1x128xbf16> to vector<4x128xbf16>
    %564 = arith.mulf %560, %563 : vector<4x128xbf16>
    %c84_522 = arith.constant 84 : index
    %c0_523 = arith.constant 0 : index
    %565 = vector.load %arg18[%c84_522, %c0_523] : memref<256x128xbf16, #tpu.memory_space<vmem>>, vector<4x128xbf16>
    tpu.vector_store %arg18[%c84_522, %c0_523], %564 {strides = array<i32>} : memref<256x128xbf16, #tpu.memory_space<vmem>>, vector<4x128xbf16>,
    %c0_524 = arith.constant 0 : index
    %c144_525 = arith.constant 144 : index
    %566 = vector.load %arg17[%c0_524, %c144_525] : memref<8x384xbf16, #tpu.memory_space<vmem>>, vector<4x128xbf16>
    %c88_526 = arith.constant 88 : index
    %c0_527 = arith.constant 0 : index
    %567 = vector.load %arg18[%c88_526, %c0_527] : memref<256x128xbf16, #tpu.memory_space<vmem>>, vector<4x128xbf16>
    tpu.vector_store %arg18[%c88_526, %c0_527], %566 {strides = array<i32>} : memref<256x128xbf16, #tpu.memory_space<vmem>>, vector<4x128xbf16>,
    %c0_528 = arith.constant 0 : index
    %c145_529 = arith.constant 145 : index
    %568 = vector.load %arg17[%c0_528, %c145_529] : memref<8x384xbf16, #tpu.memory_space<vmem>>, vector<4x128xbf16>
    %c23_530 = arith.constant 23 : index
    %c0_531 = arith.constant 0 : index
    %c0_532 = arith.constant 0 : index
    %569 = vector.load %arg2[%c23_530, %c0_531, %c0_532] : memref<27x1x128xbf16, #tpu.memory_space<vmem>>, vector<1x1x128xbf16>
    %570 = vector.shape_cast %569 : vector<1x1x128xbf16> to vector<1x128xbf16>
    %571 = vector.broadcast %570 : vector<1x128xbf16> to vector<4x128xbf16>
    %572 = arith.mulf %568, %571 : vector<4x128xbf16>
    %c92_533 = arith.constant 92 : index
    %c0_534 = arith.constant 0 : index
    %573 = vector.load %arg18[%c92_533, %c0_534] : memref<256x128xbf16, #tpu.memory_space<vmem>>, vector<4x128xbf16>
    tpu.vector_store %arg18[%c92_533, %c0_534], %572 {strides = array<i32>} : memref<256x128xbf16, #tpu.memory_space<vmem>>, vector<4x128xbf16>,
    %c0_535 = arith.constant 0 : index
    %c147_536 = arith.constant 147 : index
    %574 = vector.load %arg17[%c0_535, %c147_536] : memref<8x384xbf16, #tpu.memory_space<vmem>>, vector<4x128xbf16>
    %c24_537 = arith.constant 24 : index
    %c0_538 = arith.constant 0 : index
    %c0_539 = arith.constant 0 : index
    %575 = vector.load %arg2[%c24_537, %c0_538, %c0_539] : memref<27x1x128xbf16, #tpu.memory_space<vmem>>, vector<1x1x128xbf16>
    %576 = vector.shape_cast %575 : vector<1x1x128xbf16> to vector<1x128xbf16>
    %577 = vector.broadcast %576 : vector<1x128xbf16> to vector<4x128xbf16>
    %578 = arith.mulf %574, %577 : vector<4x128xbf16>
    %c96_540 = arith.constant 96 : index
    %c0_541 = arith.constant 0 : index
    %579 = vector.load %arg18[%c96_540, %c0_541] : memref<256x128xbf16, #tpu.memory_space<vmem>>, vector<4x128xbf16>
    tpu.vector_store %arg18[%c96_540, %c0_541], %578 {strides = array<i32>} : memref<256x128xbf16, #tpu.memory_space<vmem>>, vector<4x128xbf16>,
    %c0_542 = arith.constant 0 : index
    %c148_543 = arith.constant 148 : index
    %580 = vector.load %arg17[%c0_542, %c148_543] : memref<8x384xbf16, #tpu.memory_space<vmem>>, vector<4x128xbf16>
    %c25_544 = arith.constant 25 : index
    %c0_545 = arith.constant 0 : index
    %c0_546 = arith.constant 0 : index
    %581 = vector.load %arg2[%c25_544, %c0_545, %c0_546] : memref<27x1x128xbf16, #tpu.memory_space<vmem>>, vector<1x1x128xbf16>
    %582 = vector.shape_cast %581 : vector<1x1x128xbf16> to vector<1x128xbf16>
    %583 = vector.broadcast %582 : vector<1x128xbf16> to vector<4x128xbf16>
    %584 = arith.mulf %580, %583 : vector<4x128xbf16>
    %c100_547 = arith.constant 100 : index
    %c0_548 = arith.constant 0 : index
    %585 = vector.load %arg18[%c100_547, %c0_548] : memref<256x128xbf16, #tpu.memory_space<vmem>>, vector<4x128xbf16>
    tpu.vector_store %arg18[%c100_547, %c0_548], %584 {strides = array<i32>} : memref<256x128xbf16, #tpu.memory_space<vmem>>, vector<4x128xbf16>,
    %c0_549 = arith.constant 0 : index
    %c149_550 = arith.constant 149 : index
    %586 = vector.load %arg17[%c0_549, %c149_550] : memref<8x384xbf16, #tpu.memory_space<vmem>>, vector<4x128xbf16>
    %c26_551 = arith.constant 26 : index
    %c0_552 = arith.constant 0 : index
    %c0_553 = arith.constant 0 : index
    %587 = vector.load %arg2[%c26_551, %c0_552, %c0_553] : memref<27x1x128xbf16, #tpu.memory_space<vmem>>, vector<1x1x128xbf16>
    %588 = vector.shape_cast %587 : vector<1x1x128xbf16> to vector<1x128xbf16>
    %589 = vector.broadcast %588 : vector<1x128xbf16> to vector<4x128xbf16>
    %590 = arith.mulf %586, %589 : vector<4x128xbf16>
    %c104_554 = arith.constant 104 : index
    %c0_555 = arith.constant 0 : index
    %591 = vector.load %arg18[%c104_554, %c0_555] : memref<256x128xbf16, #tpu.memory_space<vmem>>, vector<4x128xbf16>
    tpu.vector_store %arg18[%c104_554, %c0_555], %590 {strides = array<i32>} : memref<256x128xbf16, #tpu.memory_space<vmem>>, vector<4x128xbf16>,
    %c0_556 = arith.constant 0 : index
    %c0_557 = arith.constant 0 : index
    %592 = vector.load %arg9[%c0_556, %c0_557] : memref<8x128xbf16, #tpu.memory_space<vmem>>, vector<8x128xbf16>
    %c0_558 = arith.constant 0 : index
    %c0_559 = arith.constant 0 : index
    %593 = vector.load %arg18[%c0_558, %c0_559] : memref<256x128xbf16, #tpu.memory_space<vmem>>, vector<128x128xbf16>
    %cst_560 = arith.constant dense<0.000000e+00> : vector<8x128xf32>
    %594 = tpu.matmul %592, %593, %cst_560 {dimension_numbers = #tpu.dot_dimension_numbers<[1], [0], [0], [1], [0, 0, 1, 1], [], []>} : vector<8x128xbf16>, vector<128x128xbf16>, vector<8x128xf32> -> vector<8x128xf32>
    %595 = vector.broadcast %11 : vector<1x128xf32> to vector<8x128xf32>
    %596 = arith.mulf %594, %595 : vector<8x128xf32>
    %cst_561 = arith.constant dense<0.000000e+00> : vector<8xf32>
    %597 = vector.multi_reduction <add>, %596, %cst_561 [1] : vector<8x128xf32> to vector<8xf32>
    %598 = vector.shape_cast %597 : vector<8xf32> to vector<8x1xf32>
    %cst_562 = arith.constant dense<0.000000e+00> : vector<1xf32>
    %599 = vector.multi_reduction <add>, %598, %cst_562 [0] : vector<8x1xf32> to vector<1xf32>
    %600 = vector.shape_cast %599 : vector<1xf32> to vector<1x1xf32>
    %601 = arith.mulf %596, %596 : vector<8x128xf32>
    %cst_563 = arith.constant dense<0.000000e+00> : vector<8xf32>
    %602 = vector.multi_reduction <add>, %601, %cst_563 [1] : vector<8x128xf32> to vector<8xf32>
    %603 = vector.shape_cast %602 : vector<8xf32> to vector<8x1xf32>
    %cst_564 = arith.constant dense<0.000000e+00> : vector<1xf32>
    %604 = vector.multi_reduction <add>, %603, %cst_564 [0] : vector<8x1xf32> to vector<1xf32>
    %605 = vector.shape_cast %604 : vector<1xf32> to vector<1x1xf32>
    %cst_565 = arith.constant 5.120000e+02 : f32
    %606 = vector.broadcast %cst_565 : f32 to vector<1x1xf32>
    %607 = arith.divf %600, %606 : vector<1x1xf32>
    %cst_566 = arith.constant 5.120000e+02 : f32
    %608 = vector.broadcast %cst_566 : f32 to vector<1x1xf32>
    %609 = arith.divf %605, %608 : vector<1x1xf32>
    %610 = arith.mulf %607, %607 : vector<1x1xf32>
    %611 = arith.subf %609, %610 : vector<1x1xf32>
    %cst_567 = arith.constant 0.000000e+00 : f32
    %612 = vector.broadcast %cst_567 : f32 to vector<1x1xf32>
    %613 = arith.maximumf %611, %612 : vector<1x1xf32>
    %cst_568 = arith.constant 9.99999974E-6 : f32
    %614 = vector.broadcast %cst_568 : f32 to vector<1x1xf32>
    %615 = arith.addf %613, %614 : vector<1x1xf32>
    %616 = math.rsqrt %615 : vector<1x1xf32>
    %617 = vector.broadcast %607 : vector<1x1xf32> to vector<8x128xf32>
    %618 = arith.subf %594, %617 : vector<8x128xf32>
    %619 = vector.broadcast %616 : vector<1x1xf32> to vector<8x128xf32>
    %620 = arith.mulf %618, %619 : vector<8x128xf32>
    %c0_569 = arith.constant 0 : index
    %c0_570 = arith.constant 0 : index
    %621 = vector.load %arg10[%c0_569, %c0_570] : memref<8x1xf32, #tpu.memory_space<vmem>>, vector<8x1xf32>
    %622 = vector.broadcast %621 : vector<8x1xf32> to vector<8x128xf32>
    %623 = arith.mulf %620, %622 : vector<8x128xf32>
    %c0_571 = arith.constant 0 : index
    %c0_572 = arith.constant 0 : index
    %624 = vector.load %arg11[%c0_571, %c0_572] : memref<8x1xf32, #tpu.memory_space<vmem>>, vector<8x1xf32>
    %625 = vector.broadcast %624 : vector<8x1xf32> to vector<8x128xf32>
    %626 = arith.addf %623, %625 : vector<8x128xf32>
    %cst_573 = arith.constant 5.000000e-01 : f32
    %627 = vector.broadcast %cst_573 : f32 to vector<8x128xf32>
    %628 = arith.mulf %627, %626 : vector<8x128xf32>
    %cst_574 = arith.constant 4.471500e-02 : f32
    %629 = vector.broadcast %cst_574 : f32 to vector<8x128xf32>
    %630 = arith.mulf %629, %626 : vector<8x128xf32>
    %631 = arith.mulf %630, %626 : vector<8x128xf32>
    %632 = arith.mulf %631, %626 : vector<8x128xf32>
    %633 = arith.addf %626, %632 : vector<8x128xf32>
    %cst_575 = arith.constant 0.797884583 : f32
    %634 = vector.broadcast %cst_575 : f32 to vector<8x128xf32>
    %635 = arith.mulf %634, %633 : vector<8x128xf32>
    %636 = math.tanh %635 : vector<8x128xf32>
    %cst_576 = arith.constant 1.000000e+00 : f32
    %637 = vector.broadcast %cst_576 : f32 to vector<8x128xf32>
    %638 = arith.addf %637, %636 : vector<8x128xf32>
    %639 = arith.mulf %628, %638 : vector<8x128xf32>
    %640 = vector.broadcast %11 : vector<1x128xf32> to vector<8x128xf32>
    %641 = arith.mulf %639, %640 : vector<8x128xf32>
    %642 = arith.truncf %641 : vector<8x128xf32> to vector<8x128xbf16>
    %c0_577 = arith.constant 0 : index
    %c128_578 = arith.constant 128 : index
    %643 = vector.load %arg17[%c0_577, %c128_578] : memref<8x384xbf16, #tpu.memory_space<vmem>>, vector<8x128xbf16>
    tpu.vector_store %arg17[%c0_577, %c128_578], %642 {strides = array<i32>} : memref<8x384xbf16, #tpu.memory_space<vmem>>, vector<8x128xbf16>,
    %c0_579 = arith.constant 0 : index
    %c107_580 = arith.constant 107 : index
    %644 = vector.load %arg17[%c0_579, %c107_580] : memref<8x384xbf16, #tpu.memory_space<vmem>>, vector<8x128xbf16>
    %c0_581 = arith.constant 0 : index
    %c0_582 = arith.constant 0 : index
    %c0_583 = arith.constant 0 : index
    %645 = vector.load %arg2[%c0_581, %c0_582, %c0_583] : memref<27x1x128xbf16, #tpu.memory_space<vmem>>, vector<1x1x128xbf16>
    %646 = vector.shape_cast %645 : vector<1x1x128xbf16> to vector<1x128xbf16>
    %647 = vector.broadcast %646 : vector<1x128xbf16> to vector<8x128xbf16>
    %648 = arith.mulf %644, %647 : vector<8x128xbf16>
    %c0_584 = arith.constant 0 : index
    %c0_585 = arith.constant 0 : index
    %649 = vector.load %arg18[%c0_584, %c0_585] : memref<256x128xbf16, #tpu.memory_space<vmem>>, vector<8x128xbf16>
    tpu.vector_store %arg18[%c0_584, %c0_585], %648 {strides = array<i32>} : memref<256x128xbf16, #tpu.memory_space<vmem>>, vector<8x128xbf16>,
    %c0_586 = arith.constant 0 : index
    %c108_587 = arith.constant 108 : index
    %650 = vector.load %arg17[%c0_586, %c108_587] : memref<8x384xbf16, #tpu.memory_space<vmem>>, vector<8x128xbf16>
    %c1_588 = arith.constant 1 : index
    %c0_589 = arith.constant 0 : index
    %c0_590 = arith.constant 0 : index
    %651 = vector.load %arg2[%c1_588, %c0_589, %c0_590] : memref<27x1x128xbf16, #tpu.memory_space<vmem>>, vector<1x1x128xbf16>
    %652 = vector.shape_cast %651 : vector<1x1x128xbf16> to vector<1x128xbf16>
    %653 = vector.broadcast %652 : vector<1x128xbf16> to vector<8x128xbf16>
    %654 = arith.mulf %650, %653 : vector<8x128xbf16>
    %c8_591 = arith.constant 8 : index
    %c0_592 = arith.constant 0 : index
    %655 = vector.load %arg18[%c8_591, %c0_592] : memref<256x128xbf16, #tpu.memory_space<vmem>>, vector<8x128xbf16>
    tpu.vector_store %arg18[%c8_591, %c0_592], %654 {strides = array<i32>} : memref<256x128xbf16, #tpu.memory_space<vmem>>, vector<8x128xbf16>,
    %c0_593 = arith.constant 0 : index
    %c109_594 = arith.constant 109 : index
    %656 = vector.load %arg17[%c0_593, %c109_594] : memref<8x384xbf16, #tpu.memory_space<vmem>>, vector<8x128xbf16>
    %c2_595 = arith.constant 2 : index
    %c0_596 = arith.constant 0 : index
    %c0_597 = arith.constant 0 : index
    %657 = vector.load %arg2[%c2_595, %c0_596, %c0_597] : memref<27x1x128xbf16, #tpu.memory_space<vmem>>, vector<1x1x128xbf16>
    %658 = vector.shape_cast %657 : vector<1x1x128xbf16> to vector<1x128xbf16>
    %659 = vector.broadcast %658 : vector<1x128xbf16> to vector<8x128xbf16>
    %660 = arith.mulf %656, %659 : vector<8x128xbf16>
    %c16_598 = arith.constant 16 : index
    %c0_599 = arith.constant 0 : index
    %661 = vector.load %arg18[%c16_598, %c0_599] : memref<256x128xbf16, #tpu.memory_space<vmem>>, vector<8x128xbf16>
    tpu.vector_store %arg18[%c16_598, %c0_599], %660 {strides = array<i32>} : memref<256x128xbf16, #tpu.memory_space<vmem>>, vector<8x128xbf16>,
    %c0_600 = arith.constant 0 : index
    %c111_601 = arith.constant 111 : index
    %662 = vector.load %arg17[%c0_600, %c111_601] : memref<8x384xbf16, #tpu.memory_space<vmem>>, vector<8x128xbf16>
    %c3_602 = arith.constant 3 : index
    %c0_603 = arith.constant 0 : index
    %c0_604 = arith.constant 0 : index
    %663 = vector.load %arg2[%c3_602, %c0_603, %c0_604] : memref<27x1x128xbf16, #tpu.memory_space<vmem>>, vector<1x1x128xbf16>
    %664 = vector.shape_cast %663 : vector<1x1x128xbf16> to vector<1x128xbf16>
    %665 = vector.broadcast %664 : vector<1x128xbf16> to vector<8x128xbf16>
    %666 = arith.mulf %662, %665 : vector<8x128xbf16>
    %c24_605 = arith.constant 24 : index
    %c0_606 = arith.constant 0 : index
    %667 = vector.load %arg18[%c24_605, %c0_606] : memref<256x128xbf16, #tpu.memory_space<vmem>>, vector<8x128xbf16>
    tpu.vector_store %arg18[%c24_605, %c0_606], %666 {strides = array<i32>} : memref<256x128xbf16, #tpu.memory_space<vmem>>, vector<8x128xbf16>,
    %c0_607 = arith.constant 0 : index
    %c112_608 = arith.constant 112 : index
    %668 = vector.load %arg17[%c0_607, %c112_608] : memref<8x384xbf16, #tpu.memory_space<vmem>>, vector<8x128xbf16>
    %c32_609 = arith.constant 32 : index
    %c0_610 = arith.constant 0 : index
    %669 = vector.load %arg18[%c32_609, %c0_610] : memref<256x128xbf16, #tpu.memory_space<vmem>>, vector<8x128xbf16>
    tpu.vector_store %arg18[%c32_609, %c0_610], %668 {strides = array<i32>} : memref<256x128xbf16, #tpu.memory_space<vmem>>, vector<8x128xbf16>,
    %c0_611 = arith.constant 0 : index
    %c113_612 = arith.constant 113 : index
    %670 = vector.load %arg17[%c0_611, %c113_612] : memref<8x384xbf16, #tpu.memory_space<vmem>>, vector<8x128xbf16>
    %c5_613 = arith.constant 5 : index
    %c0_614 = arith.constant 0 : index
    %c0_615 = arith.constant 0 : index
    %671 = vector.load %arg2[%c5_613, %c0_614, %c0_615] : memref<27x1x128xbf16, #tpu.memory_space<vmem>>, vector<1x1x128xbf16>
    %672 = vector.shape_cast %671 : vector<1x1x128xbf16> to vector<1x128xbf16>
    %673 = vector.broadcast %672 : vector<1x128xbf16> to vector<8x128xbf16>
    %674 = arith.mulf %670, %673 : vector<8x128xbf16>
    %c40_616 = arith.constant 40 : index
    %c0_617 = arith.constant 0 : index
    %675 = vector.load %arg18[%c40_616, %c0_617] : memref<256x128xbf16, #tpu.memory_space<vmem>>, vector<8x128xbf16>
    tpu.vector_store %arg18[%c40_616, %c0_617], %674 {strides = array<i32>} : memref<256x128xbf16, #tpu.memory_space<vmem>>, vector<8x128xbf16>,
    %c0_618 = arith.constant 0 : index
    %c115_619 = arith.constant 115 : index
    %676 = vector.load %arg17[%c0_618, %c115_619] : memref<8x384xbf16, #tpu.memory_space<vmem>>, vector<8x128xbf16>
    %c6_620 = arith.constant 6 : index
    %c0_621 = arith.constant 0 : index
    %c0_622 = arith.constant 0 : index
    %677 = vector.load %arg2[%c6_620, %c0_621, %c0_622] : memref<27x1x128xbf16, #tpu.memory_space<vmem>>, vector<1x1x128xbf16>
    %678 = vector.shape_cast %677 : vector<1x1x128xbf16> to vector<1x128xbf16>
    %679 = vector.broadcast %678 : vector<1x128xbf16> to vector<8x128xbf16>
    %680 = arith.mulf %676, %679 : vector<8x128xbf16>
    %c48_623 = arith.constant 48 : index
    %c0_624 = arith.constant 0 : index
    %681 = vector.load %arg18[%c48_623, %c0_624] : memref<256x128xbf16, #tpu.memory_space<vmem>>, vector<8x128xbf16>
    tpu.vector_store %arg18[%c48_623, %c0_624], %680 {strides = array<i32>} : memref<256x128xbf16, #tpu.memory_space<vmem>>, vector<8x128xbf16>,
    %c0_625 = arith.constant 0 : index
    %c116_626 = arith.constant 116 : index
    %682 = vector.load %arg17[%c0_625, %c116_626] : memref<8x384xbf16, #tpu.memory_space<vmem>>, vector<8x128xbf16>
    %c7_627 = arith.constant 7 : index
    %c0_628 = arith.constant 0 : index
    %c0_629 = arith.constant 0 : index
    %683 = vector.load %arg2[%c7_627, %c0_628, %c0_629] : memref<27x1x128xbf16, #tpu.memory_space<vmem>>, vector<1x1x128xbf16>
    %684 = vector.shape_cast %683 : vector<1x1x128xbf16> to vector<1x128xbf16>
    %685 = vector.broadcast %684 : vector<1x128xbf16> to vector<8x128xbf16>
    %686 = arith.mulf %682, %685 : vector<8x128xbf16>
    %c56_630 = arith.constant 56 : index
    %c0_631 = arith.constant 0 : index
    %687 = vector.load %arg18[%c56_630, %c0_631] : memref<256x128xbf16, #tpu.memory_space<vmem>>, vector<8x128xbf16>
    tpu.vector_store %arg18[%c56_630, %c0_631], %686 {strides = array<i32>} : memref<256x128xbf16, #tpu.memory_space<vmem>>, vector<8x128xbf16>,
    %c0_632 = arith.constant 0 : index
    %c117_633 = arith.constant 117 : index
    %688 = vector.load %arg17[%c0_632, %c117_633] : memref<8x384xbf16, #tpu.memory_space<vmem>>, vector<8x128xbf16>
    %c8_634 = arith.constant 8 : index
    %c0_635 = arith.constant 0 : index
    %c0_636 = arith.constant 0 : index
    %689 = vector.load %arg2[%c8_634, %c0_635, %c0_636] : memref<27x1x128xbf16, #tpu.memory_space<vmem>>, vector<1x1x128xbf16>
    %690 = vector.shape_cast %689 : vector<1x1x128xbf16> to vector<1x128xbf16>
    %691 = vector.broadcast %690 : vector<1x128xbf16> to vector<8x128xbf16>
    %692 = arith.mulf %688, %691 : vector<8x128xbf16>
    %c64_637 = arith.constant 64 : index
    %c0_638 = arith.constant 0 : index
    %693 = vector.load %arg18[%c64_637, %c0_638] : memref<256x128xbf16, #tpu.memory_space<vmem>>, vector<8x128xbf16>
    tpu.vector_store %arg18[%c64_637, %c0_638], %692 {strides = array<i32>} : memref<256x128xbf16, #tpu.memory_space<vmem>>, vector<8x128xbf16>,
    %c0_639 = arith.constant 0 : index
    %c123_640 = arith.constant 123 : index
    %694 = vector.load %arg17[%c0_639, %c123_640] : memref<8x384xbf16, #tpu.memory_space<vmem>>, vector<8x128xbf16>
    %c9_641 = arith.constant 9 : index
    %c0_642 = arith.constant 0 : index
    %c0_643 = arith.constant 0 : index
    %695 = vector.load %arg2[%c9_641, %c0_642, %c0_643] : memref<27x1x128xbf16, #tpu.memory_space<vmem>>, vector<1x1x128xbf16>
    %696 = vector.shape_cast %695 : vector<1x1x128xbf16> to vector<1x128xbf16>
    %697 = vector.broadcast %696 : vector<1x128xbf16> to vector<8x128xbf16>
    %698 = arith.mulf %694, %697 : vector<8x128xbf16>
    %c72_644 = arith.constant 72 : index
    %c0_645 = arith.constant 0 : index
    %699 = vector.load %arg18[%c72_644, %c0_645] : memref<256x128xbf16, #tpu.memory_space<vmem>>, vector<8x128xbf16>
    tpu.vector_store %arg18[%c72_644, %c0_645], %698 {strides = array<i32>} : memref<256x128xbf16, #tpu.memory_space<vmem>>, vector<8x128xbf16>,
    %c0_646 = arith.constant 0 : index
    %c124_647 = arith.constant 124 : index
    %700 = vector.load %arg17[%c0_646, %c124_647] : memref<8x384xbf16, #tpu.memory_space<vmem>>, vector<8x128xbf16>
    %c10_648 = arith.constant 10 : index
    %c0_649 = arith.constant 0 : index
    %c0_650 = arith.constant 0 : index
    %701 = vector.load %arg2[%c10_648, %c0_649, %c0_650] : memref<27x1x128xbf16, #tpu.memory_space<vmem>>, vector<1x1x128xbf16>
    %702 = vector.shape_cast %701 : vector<1x1x128xbf16> to vector<1x128xbf16>
    %703 = vector.broadcast %702 : vector<1x128xbf16> to vector<8x128xbf16>
    %704 = arith.mulf %700, %703 : vector<8x128xbf16>
    %c80_651 = arith.constant 80 : index
    %c0_652 = arith.constant 0 : index
    %705 = vector.load %arg18[%c80_651, %c0_652] : memref<256x128xbf16, #tpu.memory_space<vmem>>, vector<8x128xbf16>
    tpu.vector_store %arg18[%c80_651, %c0_652], %704 {strides = array<i32>} : memref<256x128xbf16, #tpu.memory_space<vmem>>, vector<8x128xbf16>,
    %c0_653 = arith.constant 0 : index
    %c125_654 = arith.constant 125 : index
    %706 = vector.load %arg17[%c0_653, %c125_654] : memref<8x384xbf16, #tpu.memory_space<vmem>>, vector<8x128xbf16>
    %c11_655 = arith.constant 11 : index
    %c0_656 = arith.constant 0 : index
    %c0_657 = arith.constant 0 : index
    %707 = vector.load %arg2[%c11_655, %c0_656, %c0_657] : memref<27x1x128xbf16, #tpu.memory_space<vmem>>, vector<1x1x128xbf16>
    %708 = vector.shape_cast %707 : vector<1x1x128xbf16> to vector<1x128xbf16>
    %709 = vector.broadcast %708 : vector<1x128xbf16> to vector<8x128xbf16>
    %710 = arith.mulf %706, %709 : vector<8x128xbf16>
    %c88_658 = arith.constant 88 : index
    %c0_659 = arith.constant 0 : index
    %711 = vector.load %arg18[%c88_658, %c0_659] : memref<256x128xbf16, #tpu.memory_space<vmem>>, vector<8x128xbf16>
    tpu.vector_store %arg18[%c88_658, %c0_659], %710 {strides = array<i32>} : memref<256x128xbf16, #tpu.memory_space<vmem>>, vector<8x128xbf16>,
    %c0_660 = arith.constant 0 : index
    %c127_661 = arith.constant 127 : index
    %712 = vector.load %arg17[%c0_660, %c127_661] : memref<8x384xbf16, #tpu.memory_space<vmem>>, vector<8x128xbf16>
    %c12_662 = arith.constant 12 : index
    %c0_663 = arith.constant 0 : index
    %c0_664 = arith.constant 0 : index
    %713 = vector.load %arg2[%c12_662, %c0_663, %c0_664] : memref<27x1x128xbf16, #tpu.memory_space<vmem>>, vector<1x1x128xbf16>
    %714 = vector.shape_cast %713 : vector<1x1x128xbf16> to vector<1x128xbf16>
    %715 = vector.broadcast %714 : vector<1x128xbf16> to vector<8x128xbf16>
    %716 = arith.mulf %712, %715 : vector<8x128xbf16>
    %c96_665 = arith.constant 96 : index
    %c0_666 = arith.constant 0 : index
    %717 = vector.load %arg18[%c96_665, %c0_666] : memref<256x128xbf16, #tpu.memory_space<vmem>>, vector<8x128xbf16>
    tpu.vector_store %arg18[%c96_665, %c0_666], %716 {strides = array<i32>} : memref<256x128xbf16, #tpu.memory_space<vmem>>, vector<8x128xbf16>,
    %c0_667 = arith.constant 0 : index
    %c128_668 = arith.constant 128 : index
    %718 = vector.load %arg17[%c0_667, %c128_668] : memref<8x384xbf16, #tpu.memory_space<vmem>>, vector<8x128xbf16>
    %c104_669 = arith.constant 104 : index
    %c0_670 = arith.constant 0 : index
    %719 = vector.load %arg18[%c104_669, %c0_670] : memref<256x128xbf16, #tpu.memory_space<vmem>>, vector<8x128xbf16>
    tpu.vector_store %arg18[%c104_669, %c0_670], %718 {strides = array<i32>} : memref<256x128xbf16, #tpu.memory_space<vmem>>, vector<8x128xbf16>,
    %c0_671 = arith.constant 0 : index
    %c129_672 = arith.constant 129 : index
    %720 = vector.load %arg17[%c0_671, %c129_672] : memref<8x384xbf16, #tpu.memory_space<vmem>>, vector<8x128xbf16>
    %c14_673 = arith.constant 14 : index
    %c0_674 = arith.constant 0 : index
    %c0_675 = arith.constant 0 : index
    %721 = vector.load %arg2[%c14_673, %c0_674, %c0_675] : memref<27x1x128xbf16, #tpu.memory_space<vmem>>, vector<1x1x128xbf16>
    %722 = vector.shape_cast %721 : vector<1x1x128xbf16> to vector<1x128xbf16>
    %723 = vector.broadcast %722 : vector<1x128xbf16> to vector<8x128xbf16>
    %724 = arith.mulf %720, %723 : vector<8x128xbf16>
    %c112_676 = arith.constant 112 : index
    %c0_677 = arith.constant 0 : index
    %725 = vector.load %arg18[%c112_676, %c0_677] : memref<256x128xbf16, #tpu.memory_space<vmem>>, vector<8x128xbf16>
    tpu.vector_store %arg18[%c112_676, %c0_677], %724 {strides = array<i32>} : memref<256x128xbf16, #tpu.memory_space<vmem>>, vector<8x128xbf16>,
    %c0_678 = arith.constant 0 : index
    %c131_679 = arith.constant 131 : index
    %726 = vector.load %arg17[%c0_678, %c131_679] : memref<8x384xbf16, #tpu.memory_space<vmem>>, vector<8x128xbf16>
    %c15_680 = arith.constant 15 : index
    %c0_681 = arith.constant 0 : index
    %c0_682 = arith.constant 0 : index
    %727 = vector.load %arg2[%c15_680, %c0_681, %c0_682] : memref<27x1x128xbf16, #tpu.memory_space<vmem>>, vector<1x1x128xbf16>
    %728 = vector.shape_cast %727 : vector<1x1x128xbf16> to vector<1x128xbf16>
    %729 = vector.broadcast %728 : vector<1x128xbf16> to vector<8x128xbf16>
    %730 = arith.mulf %726, %729 : vector<8x128xbf16>
    %c120 = arith.constant 120 : index
    %c0_683 = arith.constant 0 : index
    %731 = vector.load %arg18[%c120, %c0_683] : memref<256x128xbf16, #tpu.memory_space<vmem>>, vector<8x128xbf16>
    tpu.vector_store %arg18[%c120, %c0_683], %730 {strides = array<i32>} : memref<256x128xbf16, #tpu.memory_space<vmem>>, vector<8x128xbf16>,
    %c0_684 = arith.constant 0 : index
    %c132_685 = arith.constant 132 : index
    %732 = vector.load %arg17[%c0_684, %c132_685] : memref<8x384xbf16, #tpu.memory_space<vmem>>, vector<8x128xbf16>
    %c16_686 = arith.constant 16 : index
    %c0_687 = arith.constant 0 : index
    %c0_688 = arith.constant 0 : index
    %733 = vector.load %arg2[%c16_686, %c0_687, %c0_688] : memref<27x1x128xbf16, #tpu.memory_space<vmem>>, vector<1x1x128xbf16>
    %734 = vector.shape_cast %733 : vector<1x1x128xbf16> to vector<1x128xbf16>
    %735 = vector.broadcast %734 : vector<1x128xbf16> to vector<8x128xbf16>
    %736 = arith.mulf %732, %735 : vector<8x128xbf16>
    %c128_689 = arith.constant 128 : index
    %c0_690 = arith.constant 0 : index
    %737 = vector.load %arg18[%c128_689, %c0_690] : memref<256x128xbf16, #tpu.memory_space<vmem>>, vector<8x128xbf16>
    tpu.vector_store %arg18[%c128_689, %c0_690], %736 {strides = array<i32>} : memref<256x128xbf16, #tpu.memory_space<vmem>>, vector<8x128xbf16>,
    %c0_691 = arith.constant 0 : index
    %c133_692 = arith.constant 133 : index
    %738 = vector.load %arg17[%c0_691, %c133_692] : memref<8x384xbf16, #tpu.memory_space<vmem>>, vector<8x128xbf16>
    %c17_693 = arith.constant 17 : index
    %c0_694 = arith.constant 0 : index
    %c0_695 = arith.constant 0 : index
    %739 = vector.load %arg2[%c17_693, %c0_694, %c0_695] : memref<27x1x128xbf16, #tpu.memory_space<vmem>>, vector<1x1x128xbf16>
    %740 = vector.shape_cast %739 : vector<1x1x128xbf16> to vector<1x128xbf16>
    %741 = vector.broadcast %740 : vector<1x128xbf16> to vector<8x128xbf16>
    %742 = arith.mulf %738, %741 : vector<8x128xbf16>
    %c136 = arith.constant 136 : index
    %c0_696 = arith.constant 0 : index
    %743 = vector.load %arg18[%c136, %c0_696] : memref<256x128xbf16, #tpu.memory_space<vmem>>, vector<8x128xbf16>
    tpu.vector_store %arg18[%c136, %c0_696], %742 {strides = array<i32>} : memref<256x128xbf16, #tpu.memory_space<vmem>>, vector<8x128xbf16>,
    %c0_697 = arith.constant 0 : index
    %c139_698 = arith.constant 139 : index
    %744 = vector.load %arg17[%c0_697, %c139_698] : memref<8x384xbf16, #tpu.memory_space<vmem>>, vector<8x128xbf16>
    %c18_699 = arith.constant 18 : index
    %c0_700 = arith.constant 0 : index
    %c0_701 = arith.constant 0 : index
    %745 = vector.load %arg2[%c18_699, %c0_700, %c0_701] : memref<27x1x128xbf16, #tpu.memory_space<vmem>>, vector<1x1x128xbf16>
    %746 = vector.shape_cast %745 : vector<1x1x128xbf16> to vector<1x128xbf16>
    %747 = vector.broadcast %746 : vector<1x128xbf16> to vector<8x128xbf16>
    %748 = arith.mulf %744, %747 : vector<8x128xbf16>
    %c144_702 = arith.constant 144 : index
    %c0_703 = arith.constant 0 : index
    %749 = vector.load %arg18[%c144_702, %c0_703] : memref<256x128xbf16, #tpu.memory_space<vmem>>, vector<8x128xbf16>
    tpu.vector_store %arg18[%c144_702, %c0_703], %748 {strides = array<i32>} : memref<256x128xbf16, #tpu.memory_space<vmem>>, vector<8x128xbf16>,
    %c0_704 = arith.constant 0 : index
    %c140_705 = arith.constant 140 : index
    %750 = vector.load %arg17[%c0_704, %c140_705] : memref<8x384xbf16, #tpu.memory_space<vmem>>, vector<8x128xbf16>
    %c19_706 = arith.constant 19 : index
    %c0_707 = arith.constant 0 : index
    %c0_708 = arith.constant 0 : index
    %751 = vector.load %arg2[%c19_706, %c0_707, %c0_708] : memref<27x1x128xbf16, #tpu.memory_space<vmem>>, vector<1x1x128xbf16>
    %752 = vector.shape_cast %751 : vector<1x1x128xbf16> to vector<1x128xbf16>
    %753 = vector.broadcast %752 : vector<1x128xbf16> to vector<8x128xbf16>
    %754 = arith.mulf %750, %753 : vector<8x128xbf16>
    %c152 = arith.constant 152 : index
    %c0_709 = arith.constant 0 : index
    %755 = vector.load %arg18[%c152, %c0_709] : memref<256x128xbf16, #tpu.memory_space<vmem>>, vector<8x128xbf16>
    tpu.vector_store %arg18[%c152, %c0_709], %754 {strides = array<i32>} : memref<256x128xbf16, #tpu.memory_space<vmem>>, vector<8x128xbf16>,
    %c0_710 = arith.constant 0 : index
    %c141_711 = arith.constant 141 : index
    %756 = vector.load %arg17[%c0_710, %c141_711] : memref<8x384xbf16, #tpu.memory_space<vmem>>, vector<8x128xbf16>
    %c20_712 = arith.constant 20 : index
    %c0_713 = arith.constant 0 : index
    %c0_714 = arith.constant 0 : index
    %757 = vector.load %arg2[%c20_712, %c0_713, %c0_714] : memref<27x1x128xbf16, #tpu.memory_space<vmem>>, vector<1x1x128xbf16>
    %758 = vector.shape_cast %757 : vector<1x1x128xbf16> to vector<1x128xbf16>
    %759 = vector.broadcast %758 : vector<1x128xbf16> to vector<8x128xbf16>
    %760 = arith.mulf %756, %759 : vector<8x128xbf16>
    %c160 = arith.constant 160 : index
    %c0_715 = arith.constant 0 : index
    %761 = vector.load %arg18[%c160, %c0_715] : memref<256x128xbf16, #tpu.memory_space<vmem>>, vector<8x128xbf16>
    tpu.vector_store %arg18[%c160, %c0_715], %760 {strides = array<i32>} : memref<256x128xbf16, #tpu.memory_space<vmem>>, vector<8x128xbf16>,
    %c0_716 = arith.constant 0 : index
    %c143_717 = arith.constant 143 : index
    %762 = vector.load %arg17[%c0_716, %c143_717] : memref<8x384xbf16, #tpu.memory_space<vmem>>, vector<8x128xbf16>
    %c21_718 = arith.constant 21 : index
    %c0_719 = arith.constant 0 : index
    %c0_720 = arith.constant 0 : index
    %763 = vector.load %arg2[%c21_718, %c0_719, %c0_720] : memref<27x1x128xbf16, #tpu.memory_space<vmem>>, vector<1x1x128xbf16>
    %764 = vector.shape_cast %763 : vector<1x1x128xbf16> to vector<1x128xbf16>
    %765 = vector.broadcast %764 : vector<1x128xbf16> to vector<8x128xbf16>
    %766 = arith.mulf %762, %765 : vector<8x128xbf16>
    %c168 = arith.constant 168 : index
    %c0_721 = arith.constant 0 : index
    %767 = vector.load %arg18[%c168, %c0_721] : memref<256x128xbf16, #tpu.memory_space<vmem>>, vector<8x128xbf16>
    tpu.vector_store %arg18[%c168, %c0_721], %766 {strides = array<i32>} : memref<256x128xbf16, #tpu.memory_space<vmem>>, vector<8x128xbf16>,
    %c0_722 = arith.constant 0 : index
    %c144_723 = arith.constant 144 : index
    %768 = vector.load %arg17[%c0_722, %c144_723] : memref<8x384xbf16, #tpu.memory_space<vmem>>, vector<8x128xbf16>
    %c176 = arith.constant 176 : index
    %c0_724 = arith.constant 0 : index
    %769 = vector.load %arg18[%c176, %c0_724] : memref<256x128xbf16, #tpu.memory_space<vmem>>, vector<8x128xbf16>
    tpu.vector_store %arg18[%c176, %c0_724], %768 {strides = array<i32>} : memref<256x128xbf16, #tpu.memory_space<vmem>>, vector<8x128xbf16>,
    %c0_725 = arith.constant 0 : index
    %c145_726 = arith.constant 145 : index
    %770 = vector.load %arg17[%c0_725, %c145_726] : memref<8x384xbf16, #tpu.memory_space<vmem>>, vector<8x128xbf16>
    %c23_727 = arith.constant 23 : index
    %c0_728 = arith.constant 0 : index
    %c0_729 = arith.constant 0 : index
    %771 = vector.load %arg2[%c23_727, %c0_728, %c0_729] : memref<27x1x128xbf16, #tpu.memory_space<vmem>>, vector<1x1x128xbf16>
    %772 = vector.shape_cast %771 : vector<1x1x128xbf16> to vector<1x128xbf16>
    %773 = vector.broadcast %772 : vector<1x128xbf16> to vector<8x128xbf16>
    %774 = arith.mulf %770, %773 : vector<8x128xbf16>
    %c184 = arith.constant 184 : index
    %c0_730 = arith.constant 0 : index
    %775 = vector.load %arg18[%c184, %c0_730] : memref<256x128xbf16, #tpu.memory_space<vmem>>, vector<8x128xbf16>
    tpu.vector_store %arg18[%c184, %c0_730], %774 {strides = array<i32>} : memref<256x128xbf16, #tpu.memory_space<vmem>>, vector<8x128xbf16>,
    %c0_731 = arith.constant 0 : index
    %c147_732 = arith.constant 147 : index
    %776 = vector.load %arg17[%c0_731, %c147_732] : memref<8x384xbf16, #tpu.memory_space<vmem>>, vector<8x128xbf16>
    %c24_733 = arith.constant 24 : index
    %c0_734 = arith.constant 0 : index
    %c0_735 = arith.constant 0 : index
    %777 = vector.load %arg2[%c24_733, %c0_734, %c0_735] : memref<27x1x128xbf16, #tpu.memory_space<vmem>>, vector<1x1x128xbf16>
    %778 = vector.shape_cast %777 : vector<1x1x128xbf16> to vector<1x128xbf16>
    %779 = vector.broadcast %778 : vector<1x128xbf16> to vector<8x128xbf16>
    %780 = arith.mulf %776, %779 : vector<8x128xbf16>
    %c192 = arith.constant 192 : index
    %c0_736 = arith.constant 0 : index
    %781 = vector.load %arg18[%c192, %c0_736] : memref<256x128xbf16, #tpu.memory_space<vmem>>, vector<8x128xbf16>
    tpu.vector_store %arg18[%c192, %c0_736], %780 {strides = array<i32>} : memref<256x128xbf16, #tpu.memory_space<vmem>>, vector<8x128xbf16>,
    %c0_737 = arith.constant 0 : index
    %c148_738 = arith.constant 148 : index
    %782 = vector.load %arg17[%c0_737, %c148_738] : memref<8x384xbf16, #tpu.memory_space<vmem>>, vector<8x128xbf16>
    %c25_739 = arith.constant 25 : index
    %c0_740 = arith.constant 0 : index
    %c0_741 = arith.constant 0 : index
    %783 = vector.load %arg2[%c25_739, %c0_740, %c0_741] : memref<27x1x128xbf16, #tpu.memory_space<vmem>>, vector<1x1x128xbf16>
    %784 = vector.shape_cast %783 : vector<1x1x128xbf16> to vector<1x128xbf16>
    %785 = vector.broadcast %784 : vector<1x128xbf16> to vector<8x128xbf16>
    %786 = arith.mulf %782, %785 : vector<8x128xbf16>
    %c200 = arith.constant 200 : index
    %c0_742 = arith.constant 0 : index
    %787 = vector.load %arg18[%c200, %c0_742] : memref<256x128xbf16, #tpu.memory_space<vmem>>, vector<8x128xbf16>
    tpu.vector_store %arg18[%c200, %c0_742], %786 {strides = array<i32>} : memref<256x128xbf16, #tpu.memory_space<vmem>>, vector<8x128xbf16>,
    %c0_743 = arith.constant 0 : index
    %c149_744 = arith.constant 149 : index
    %788 = vector.load %arg17[%c0_743, %c149_744] : memref<8x384xbf16, #tpu.memory_space<vmem>>, vector<8x128xbf16>
    %c26_745 = arith.constant 26 : index
    %c0_746 = arith.constant 0 : index
    %c0_747 = arith.constant 0 : index
    %789 = vector.load %arg2[%c26_745, %c0_746, %c0_747] : memref<27x1x128xbf16, #tpu.memory_space<vmem>>, vector<1x1x128xbf16>
    %790 = vector.shape_cast %789 : vector<1x1x128xbf16> to vector<1x128xbf16>
    %791 = vector.broadcast %790 : vector<1x128xbf16> to vector<8x128xbf16>
    %792 = arith.mulf %788, %791 : vector<8x128xbf16>
    %c208 = arith.constant 208 : index
    %c0_748 = arith.constant 0 : index
    %793 = vector.load %arg18[%c208, %c0_748] : memref<256x128xbf16, #tpu.memory_space<vmem>>, vector<8x128xbf16>
    tpu.vector_store %arg18[%c208, %c0_748], %792 {strides = array<i32>} : memref<256x128xbf16, #tpu.memory_space<vmem>>, vector<8x128xbf16>,
    %c0_749 = arith.constant 0 : index
    %c0_750 = arith.constant 0 : index
    %794 = vector.load %arg12[%c0_749, %c0_750] : memref<8x256xbf16, #tpu.memory_space<vmem>>, vector<8x256xbf16>
    %c0_751 = arith.constant 0 : index
    %c0_752 = arith.constant 0 : index
    %795 = vector.load %arg18[%c0_751, %c0_752] : memref<256x128xbf16, #tpu.memory_space<vmem>>, vector<256x128xbf16>
    %cst_753 = arith.constant dense<0.000000e+00> : vector<8x128xf32>
    %796 = tpu.matmul %794, %795, %cst_753 {dimension_numbers = #tpu.dot_dimension_numbers<[1], [0], [0], [1], [0, 0, 1, 1], [], []>} : vector<8x256xbf16>, vector<256x128xbf16>, vector<8x128xf32> -> vector<8x128xf32>
    %797 = vector.broadcast %11 : vector<1x128xf32> to vector<8x128xf32>
    %798 = arith.mulf %796, %797 : vector<8x128xf32>
    %cst_754 = arith.constant dense<0.000000e+00> : vector<8xf32>
    %799 = vector.multi_reduction <add>, %798, %cst_754 [1] : vector<8x128xf32> to vector<8xf32>
    %800 = vector.shape_cast %799 : vector<8xf32> to vector<8x1xf32>
    %cst_755 = arith.constant dense<0.000000e+00> : vector<1xf32>
    %801 = vector.multi_reduction <add>, %800, %cst_755 [0] : vector<8x1xf32> to vector<1xf32>
    %802 = vector.shape_cast %801 : vector<1xf32> to vector<1x1xf32>
    %803 = arith.mulf %798, %798 : vector<8x128xf32>
    %cst_756 = arith.constant dense<0.000000e+00> : vector<8xf32>
    %804 = vector.multi_reduction <add>, %803, %cst_756 [1] : vector<8x128xf32> to vector<8xf32>
    %805 = vector.shape_cast %804 : vector<8xf32> to vector<8x1xf32>
    %cst_757 = arith.constant dense<0.000000e+00> : vector<1xf32>
    %806 = vector.multi_reduction <add>, %805, %cst_757 [0] : vector<8x1xf32> to vector<1xf32>
    %807 = vector.shape_cast %806 : vector<1xf32> to vector<1x1xf32>
    %cst_758 = arith.constant 5.120000e+02 : f32
    %808 = vector.broadcast %cst_758 : f32 to vector<1x1xf32>
    %809 = arith.divf %802, %808 : vector<1x1xf32>
    %cst_759 = arith.constant 5.120000e+02 : f32
    %810 = vector.broadcast %cst_759 : f32 to vector<1x1xf32>
    %811 = arith.divf %807, %810 : vector<1x1xf32>
    %812 = arith.mulf %809, %809 : vector<1x1xf32>
    %813 = arith.subf %811, %812 : vector<1x1xf32>
    %cst_760 = arith.constant 0.000000e+00 : f32
    %814 = vector.broadcast %cst_760 : f32 to vector<1x1xf32>
    %815 = arith.maximumf %813, %814 : vector<1x1xf32>
    %cst_761 = arith.constant 9.99999974E-6 : f32
    %816 = vector.broadcast %cst_761 : f32 to vector<1x1xf32>
    %817 = arith.addf %815, %816 : vector<1x1xf32>
    %818 = math.rsqrt %817 : vector<1x1xf32>
    %819 = vector.broadcast %809 : vector<1x1xf32> to vector<8x128xf32>
    %820 = arith.subf %796, %819 : vector<8x128xf32>
    %821 = vector.broadcast %818 : vector<1x1xf32> to vector<8x128xf32>
    %822 = arith.mulf %820, %821 : vector<8x128xf32>
    %c0_762 = arith.constant 0 : index
    %c0_763 = arith.constant 0 : index
    %823 = vector.load %arg13[%c0_762, %c0_763] : memref<8x1xf32, #tpu.memory_space<vmem>>, vector<8x1xf32>
    %824 = vector.broadcast %823 : vector<8x1xf32> to vector<8x128xf32>
    %825 = arith.mulf %822, %824 : vector<8x128xf32>
    %c0_764 = arith.constant 0 : index
    %c0_765 = arith.constant 0 : index
    %826 = vector.load %arg14[%c0_764, %c0_765] : memref<8x1xf32, #tpu.memory_space<vmem>>, vector<8x1xf32>
    %827 = vector.broadcast %826 : vector<8x1xf32> to vector<8x128xf32>
    %828 = arith.addf %825, %827 : vector<8x128xf32>
    %c0_766 = arith.constant 0 : index
    %c0_767 = arith.constant 0 : index
    %c0_768 = arith.constant 0 : index
    %829 = vector.load %arg15[%c0_766, %c0_767, %c0_768] : memref<1x8x1xf32, #tpu.memory_space<vmem>>, vector<1x8x1xf32>
    %830 = vector.shape_cast %829 : vector<1x8x1xf32> to vector<8x1xf32>
    %831 = vector.broadcast %830 : vector<8x1xf32> to vector<8x128xf32>
    %832 = arith.addf %828, %831 : vector<8x128xf32>
    %c0_769 = arith.constant 0 : index
    %c0_770 = arith.constant 0 : index
    %c0_771 = arith.constant 0 : index
    %833 = vector.load %arg16[%c0_769, %c0_770, %c0_771] : memref<1x8x128xf32, #tpu.memory_space<vmem>>, vector<1x8x128xf32>
    %834 = vector.shape_cast %833 : vector<1x8x128xf32> to vector<8x128xf32>
    %835 = vector.shape_cast %832 : vector<8x128xf32> to vector<1x8x128xf32>
    tpu.vector_store %arg16[%c0_769, %c0_770, %c0_771], %835 {strides = array<i32>} : memref<1x8x128xf32, #tpu.memory_space<vmem>>, vector<1x8x128xf32>,
    return
  }
  func.func @transform_0(%arg0: i32) -> (i32, i32, i32, i32) {
    %c0_i32 = arith.constant 0 : i32
    %c0_i32_0 = arith.constant 0 : i32
    %c0_i32_1 = arith.constant 0 : i32
    %c0_i32_2 = arith.constant 0 : i32
    return %arg0, %c0_i32, %c0_i32_0, %c0_i32_1 : i32, i32, i32, i32
  }
  func.func @transform_1(%arg0: i32) -> (i32, i32, i32) {
    %c0_i32 = arith.constant 0 : i32
    %c0_i32_0 = arith.constant 0 : i32
    %c0_i32_1 = arith.constant 0 : i32
    %c0_i32_2 = arith.constant 0 : i32
    return %c0_i32, %c0_i32_0, %c0_i32_1 : i32, i32, i32
  }
  func.func @transform_2(%arg0: i32) -> (i32, i32) {
    %c0_i32 = arith.constant 0 : i32
    %c0_i32_0 = arith.constant 0 : i32
    %c0_i32_1 = arith.constant 0 : i32
    return %c0_i32, %c0_i32_0 : i32, i32
  }
  func.func @transform_3(%arg0: i32) -> (i32, i32) {
    %c0_i32 = arith.constant 0 : i32
    %c0_i32_0 = arith.constant 0 : i32
    %c0_i32_1 = arith.constant 0 : i32
    return %c0_i32, %c0_i32_0 : i32, i32
  }
  func.func @transform_4(%arg0: i32) -> (i32, i32) {
    %c0_i32 = arith.constant 0 : i32
    %c0_i32_0 = arith.constant 0 : i32
    %c0_i32_1 = arith.constant 0 : i32
    return %c0_i32, %c0_i32_0 : i32, i32
  }
  func.func @transform_5(%arg0: i32) -> (i32, i32) {
    %c0_i32 = arith.constant 0 : i32
    %c0_i32_0 = arith.constant 0 : i32
    %c0_i32_1 = arith.constant 0 : i32
    return %c0_i32, %c0_i32_0 : i32, i32
  }
  func.func @transform_6(%arg0: i32) -> (i32, i32) {
    %c0_i32 = arith.constant 0 : i32
    %c0_i32_0 = arith.constant 0 : i32
    %c0_i32_1 = arith.constant 0 : i32
    return %c0_i32, %c0_i32_0 : i32, i32
  }
  func.func @transform_7(%arg0: i32) -> (i32, i32) {
    %c0_i32 = arith.constant 0 : i32
    %c0_i32_0 = arith.constant 0 : i32
    %c0_i32_1 = arith.constant 0 : i32
    return %c0_i32, %c0_i32_0 : i32, i32
  }
  func.func @transform_8(%arg0: i32) -> (i32, i32) {
    %c0_i32 = arith.constant 0 : i32
    %c0_i32_0 = arith.constant 0 : i32
    %c0_i32_1 = arith.constant 0 : i32
    return %c0_i32, %c0_i32_0 : i32, i32
  }
  func.func @transform_9(%arg0: i32) -> (i32, i32) {
    %c0_i32 = arith.constant 0 : i32
    %c0_i32_0 = arith.constant 0 : i32
    %c0_i32_1 = arith.constant 0 : i32
    return %c0_i32, %c0_i32_0 : i32, i32
  }
  func.func @transform_10(%arg0: i32) -> (i32, i32) {
    %c0_i32 = arith.constant 0 : i32
    %c0_i32_0 = arith.constant 0 : i32
    %c0_i32_1 = arith.constant 0 : i32
    return %c0_i32, %c0_i32_0 : i32, i32
  }
  func.func @transform_11(%arg0: i32) -> (i32, i32) {
    %c0_i32 = arith.constant 0 : i32
    %c0_i32_0 = arith.constant 0 : i32
    %c0_i32_1 = arith.constant 0 : i32
    return %c0_i32, %c0_i32_0 : i32, i32
  }
  func.func @transform_12(%arg0: i32) -> (i32, i32) {
    %c0_i32 = arith.constant 0 : i32
    %c0_i32_0 = arith.constant 0 : i32
    %c0_i32_1 = arith.constant 0 : i32
    return %c0_i32, %c0_i32_0 : i32, i32
  }
  func.func @transform_13(%arg0: i32) -> (i32, i32) {
    %c0_i32 = arith.constant 0 : i32
    %c0_i32_0 = arith.constant 0 : i32
    %c0_i32_1 = arith.constant 0 : i32
    return %c0_i32, %c0_i32_0 : i32, i32
  }
  func.func @transform_14(%arg0: i32) -> (i32, i32, i32) {
    %c0_i32 = arith.constant 0 : i32
    %c0_i32_0 = arith.constant 0 : i32
    %c0_i32_1 = arith.constant 0 : i32
    return %arg0, %c0_i32, %c0_i32_0 : i32, i32, i32
  }
  func.func @transform_15(%arg0: i32) -> (i32, i32, i32) {
    %c0_i32 = arith.constant 0 : i32
    %c0_i32_0 = arith.constant 0 : i32
    %c0_i32_1 = arith.constant 0 : i32
    return %arg0, %c0_i32, %c0_i32_0 : i32, i32, i32
  }
}

</mosaic_0001>

<bundles_post_ra>
// kernel: down_forward.1
= control target key start
LH: loop header
LB: loop body
LE: loop exit
PB: predicated region body
PF: predicated region fallthrough
CT: control target
= control target key end

     0   :  { %s4901_s18 = smov 0   ;;  %s6122_s0 = inlined_call_operand.vmem [shape: bf16[2,8,4,128], index: 0, kind: input, shape index: {}]   ;;  %s6123_s1 = inlined_call_operand.vmem [shape: bf16[27,1,128], index: 1, kind: input, shape index: {}]   ;;  %s6124_s2 = inlined_call_operand.vmem [shape: bf16[4,128], index: 2, kind: input, shape index: {}]   ;;  %s6125_s3 = inlined_call_operand.vmem [shape: f32[4,1], index: 3, kind: input, shape index: {}]   ;;  %s6126_s4 = inlined_call_operand.vmem [shape: f32[4,1], index: 4, kind: input, shape index: {}]   ;;  %s6127_s5 = inlined_call_operand.vmem [shape: bf16[4,128], index: 5, kind: input, shape index: {}]   ;;  %s6128_s6 = inlined_call_operand.vmem [shape: f32[4,1], index: 6, kind: input, shape index: {}]   ;;  %s6129_s7 = inlined_call_operand.vmem [shape: f32[4,1], index: 7, kind: input, shape index: {}]   ;;  %s6130_s8 = inlined_call_operand.vmem [shape: bf16[8,128], index: 8, kind: input, shape index: {}]   ;;  %s6131_s9 = inlined_call_operand.vmem [shape: f32[8,1], index: 9, kind: input, shape index: {}]   ;;  %s6132_s10 = inlined_call_operand.vmem [shape: f32[8,1], index: 10, kind: input, shape index: {}]   ;;  %s6133_s11 = inlined_call_operand.vmem [shape: bf16[8,256], index: 11, kind: input, shape index: {}]   ;;  %s6134_s12 = inlined_call_operand.vmem [shape: f32[8,1], index: 12, kind: input, shape index: {}]   ;;  %s6135_s13 = inlined_call_operand.vmem [shape: f32[8,1], index: 13, kind: input, shape index: {}]   ;;  %s6136_s14 = inlined_call_operand.vmem [shape: f32[2,8,1], index: 14, kind: input, shape index: {}]   ;;  %s6137_s15 = inlined_call_operand.vmem [shape: f32[2,8,128], index: 15, kind: output, shape index: {}]  }
   0x1   :  { %6218 = sst [smem:[#allocation6_spill]] %s6122_s0 }
   0x2   :  { %6219 = sst [smem:[#allocation7_spill]] %s6124_s2 }
   0x3   :  { %6220 = sst [smem:[#allocation8_spill]] %s6125_s3 }
   0x4   :  { %6221 = sst [smem:[#allocation9_spill]] %s6126_s4 }
   0x5   :  { %6222 = sst [smem:[#allocation10_spill]] %s6127_s5 }
   0x6   :  { %6223 = sst [smem:[#allocation11_spill]] %s6128_s6 }
   0x7   :  { %6224 = sst [smem:[#allocation12_spill]] %s6129_s7 }
   0x8   :  { %6225 = sst [smem:[#allocation13_spill]] %s6130_s8 }
   0x9   :  { %6226 = sst [smem:[#allocation14_spill]] %s6131_s9 }
   0xa   :  { %6227 = sst [smem:[#allocation15_spill]] %s6132_s10 }
   0xb   :  { %6228 = sst [smem:[#allocation16_spill]] %s6133_s11 }
   0xc   :  { %6229 = sst [smem:[#allocation17_spill]] %s6134_s12 }
   0xd   :  { %6230 = sst [smem:[#allocation18_spill]] %s6135_s13 }
   0xe   :  { %6231 = sst [smem:[#allocation19_spill]] %s6136_s14 }
   0xf   :  { %6232 = sst [smem:[#allocation20_spill]] %s6137_s15 }
  0x10 LB: > { %6233 = sst [smem:[#allocation4_spill]] %s4790_s18  ;;  %s4175_s19 = sadd.s32 4294967295, %s4790_s18   ;;  %s4790_s18 = sphi %s4901_s18, %s25_s18  }
  0x11   : > { %p4179_p0 = scmp.ge.s32.totalorder %s4790_s18, 1  ;;  %p446_p1 = scmp.lt.s32.totalorder %s4790_s18, 3 }
  0x13   : > { %p447_p2 = pnand %p4179_p0, %p446_p1 }
  0x15   : > { %450 = sbr.rel (%p447_p2) target bundleno = 2786 (0xae2), region = 80 }
  0x1c   : > { %v518_v0 = vlaneseq  ;;  %v4195_v1 = vld [vmem:[%s6123_s1 + $0x1] sm:$0x1]  ;;  %v548_v2 = vld [vmem:[%s6123_s1] sm:$0x1]  ;;  %v4203_v4 = vld [vmem:[%s6123_s1 + $0x3] sm:$0x1] }
  0x1d   : > { %v583_v3 = vpack.i.b16 %v4195_v1, %v4195_v1  ;;  %v4199_v5 = vld [vmem:[%s6123_s1 + $0x2] sm:$0x1]  ;;  %v550_v7 = vpack.i.b16 %v548_v2, %v548_v2  ;;  %v651_v8 = vpack.i.b16 %v4203_v4, %v4203_v4  ;;  %v4209_v10 = vld [vmem:[%s6123_s1 + $0x5] sm:$0x1]  ;;  %v4217_v11 = vld [vmem:[%s6123_s1 + $0x7] sm:$0x1] }
  0x1e   : > { %v553_v6 = vshrl.u32 %v518_v0, 7  ;;  %v618_v9 = vpack.i.b16 %v4199_v5, %v4199_v5  ;;  %v700_v13 = vpack.i.b16 %v4209_v10, %v4209_v10  ;;  %v768_v14 = vpack.i.b16 %v4217_v11, %v4217_v11  ;;  %v4213_v19 = vld [vmem:[%s6123_s1 + $0x6] sm:$0x1]  ;;  %v4225_v20 = vld [vmem:[%s6123_s1 + $0x9] sm:$0x1]  ;;  %s6140_s23 = smov 108  }
  0x1f   : > { %v735_v24 = vpack.i.b16 %v4213_v19, %v4213_v19  ;;  %v836_v25 = vpack.i.b16 %v4225_v20, %v4225_v20  ;;  %s6138_s24 = smov 107   ;;  %v4233_v29 = vld [vmem:[%s6123_s1 + $0xb] sm:$0x1]  ;;  %v4221_v30 = vld [vmem:[%s6123_s1 + $0x8] sm:$0x1]  ;;  %p497_p3 = scmp.lt.s32.totalorder %s4175_s19, 1 }
  0x20   : > { %v4928_v12 = vsub.s32 0, %v553_v6  ;;  %v904_v33 = vpack.i.b16 %v4233_v29, %v4233_v29  ;;  %s6144_s29 = smov 111   ;;  %s6142_s30 = smov 109   ;;  %v803_v36 = vpack.i.b16 %v4221_v30, %v4221_v30  ;;  %v4229_v37 = vld [vmem:[%s6123_s1 + $0xa] sm:$0x1]  ;;  %v4796_v39 = vmov 0  }
  0x21   : > { %s6381_s19 = smov (!%p497_p3, %s4175_s19), 1  ;;  %v4246_v38 = vld [vmem:[%s6123_s1 + $0xf] sm:$0x1]  ;;  %511 = vst [vmem:[#allocation2] sm:$0xf] %v4796_v39  ;;  %514 = vst [vmem:[#allocation3 + $0x38] sm:$0xff] %v4796_v39  ;;  %4744 = vset.pattern.permute.xlu1 %v4796_v39  ;;  %4743 = vset.pattern.permute.xlu0 %v4796_v39  ;;  %v871_v42 = vpack.i.b16 %v4229_v37, %v4229_v37 }
  0x22   : > { %v588_v15 = vrot.slane %v583_v3, %v4928_v12  ;;  %v555_v16 = vrot.slane %v550_v7, %v4928_v12  ;;  %v656_v17 = vrot.slane %v651_v8, %v4928_v12  ;;  %v623_v18 = vrot.slane %v618_v9, %v4928_v12  ;;  %6234 = sst [smem:[#allocation5_spill]] %s6381_s19  ;;  %512 = vst [vmem:[#allocation2 + $0x8] sm:$0xf] %v4796_v39  ;;  %s4596_s22 = sshll.u32 %s6381_s19, 4  ;;  %v4237_v46 = vld [vmem:[%s6123_s1 + $0xc] sm:$0x1] }
  0x23   : > { %v705_v23 = vrot.slane %v700_v13, %v4928_v12  ;;  %v773_v28 = vrot.slane %v768_v14, %v4928_v12  ;;  %v740_v31 = vrot.slane %v735_v24, %v4928_v12  ;;  %v841_v32 = vrot.slane %v836_v25, %v4928_v12  ;;  %513 = vst [vmem:[#allocation3 + $0x30] sm:$0xc0] %v4796_v39  ;;  %s6235_s0 = sld [smem:[#allocation6_spill]]  ;;  %s6146_s28 = smov 113   ;;  %v4242_v47 = vld [vmem:[%s6123_s1 + $0xe] sm:$0x1] }
  0x24   : > { %v4196_v21 = vcombine.low %v588_v15, %v588_v15  ;;  %v4192_v22 = vcombine.low %v555_v16, %v555_v16  ;;  %v4204_v26 = vcombine.low %v656_v17, %v656_v17  ;;  %v4200_v27 = vcombine.low %v623_v18, %v623_v18  ;;  %515 = vst [vmem:[#allocation3 + $0x68] sm:$0xf0] %v4796_v39  ;;  %s6148_s16 = smov 116   ;;  %s6198_s25 = smov 115   ;;  %v4254_v57 = vld [vmem:[%s6123_s1 + $0x11] sm:$0x1] }
  0x25   : > { %v4210_v34 = vcombine.low %v705_v23, %v705_v23  ;;  %v4218_v35 = vcombine.low %v773_v28, %v773_v28  ;;  %v4214_v40 = vcombine.low %v740_v31, %v740_v31  ;;  %v909_v41 = vrot.slane %v904_v33, %v4928_v12  ;;  %s6150_s26 = smov 123   ;;  %v4262_v58 = vld [vmem:[%s6123_s1 + $0x13] sm:$0x1]  ;;  %s6196_s17 = smov 117   ;;  %v4250_v7 = vld [vmem:[%s6123_s1 + $0x10] sm:$0x1] }
  0x26   : > { %592 = vrot.lane.b32.xlu0 %v4196_v21, %s6140_s23  ;;  %559 = vrot.lane.b32.xlu1 %v4192_v22, %s6138_s24  ;;  %v4226_v43 = vcombine.low %v841_v32, %v841_v32  ;;  %v808_v44 = vrot.slane %v803_v36, %v4928_v12  ;;  %v1010_v45 = vpack.i.b16 %v4246_v38, %v4246_v38  ;;  %s6152_s24 = smov 125   ;;  %v4258_v8 = vld [vmem:[%s6123_s1 + $0x12] sm:$0x1]  ;;  %v4270_v19 = vld [vmem:[%s6123_s1 + $0x15] sm:$0x1]  ;;  %s6160_s23 = smov 15  }
  0x27   : > { %v4234_v50 = vcombine.low %v909_v41, %v909_v41  ;;  %v876_v51 = vrot.slane %v871_v42, %v4928_v12  ;;  %v939_v52 = vpack.i.b16 %v4237_v46, %v4237_v46  ;;  %v979_v53 = vpack.i.b16 %v4242_v47, %v4242_v47  ;;  %v4276_v20 = vld [vmem:[%s6123_s1 + $0x17] sm:$0x1]  ;;  %v4266_v30 = vld [vmem:[%s6123_s1 + $0x14] sm:$0x1]  ;;  %v4284_v31 = vld [vmem:[%s6123_s1 + $0x19] sm:$0x1] }
  0x28   : > { %v4222_v55 = vcombine.low %v808_v44, %v808_v44  ;;  %v1015_v56 = vrot.slane %v1010_v45, %v4928_v12  ;;  %v1074_v1 = vpack.i.b16 %v4254_v57, %v4254_v57  ;;  %v1138_v2 = vpack.i.b16 %v4262_v58, %v4262_v58  ;;  %v4280_v39 = vld [vmem:[%s6123_s1 + $0x18] sm:$0x1]  ;;  %s6162_s20 = smov 17   ;;  %s6178_s21 = smov 20  }
  0x29   : > { %s4971_s27 = scalar_lea.vmem %s6235_s0, %s4596_s22  ;;  %v944_v62 = vrot.slane %v939_v52, %v4928_v12  ;;  %v984_v63 = vrot.slane %v979_v53, %v4928_v12  ;;  %v4230_v4 = vcombine.low %v876_v51, %v876_v51  ;;  %v1043_v17 = vpack.i.b16 %v4250_v7, %v4250_v7  ;;  %s6156_s22 = smov 5  }
  0x2a   : > { %660 = vrot.lane.b32.xlu0 %v4204_v26, %s6144_s29  ;;  %627 = vrot.lane.b32.xlu1 %v4200_v27, %s6142_s30  ;;  %v523_v48 = vld [vmem:[%s4971_s27] sm:$0x3]  ;;  %v4185_v49 = vld [vmem:[%s4971_s27 + $0x2] sm:$0x3]  ;;  %v4247_v5 = vcombine.low %v1015_v56, %v1015_v56  ;;  %v1079_v14 = vrot.slane %v1074_v1, %v4928_v12  ;;  %v1143_v15 = vrot.slane %v1138_v2, %v4928_v12  ;;  %s6194_s30 = smov 124   ;;  %s6154_s29 = smov 3  }
  0x2b   : > { %v4186_v54 = vld [vmem:[%s4971_s27 + $0x4] sm:$0x3]  ;;  %v526_v59 = vmax.bf16 %v4185_v49, %v523_v48  ;;  %v4187_v60 = vld [vmem:[%s4971_s27 + $0x6] sm:$0x3]  ;;  %v4188_v3 = vld [vmem:[%s4971_s27 + $0x8] sm:$0x3]  ;;  %v4238_v11 = vcombine.low %v944_v62, %v944_v62  ;;  %v4243_v13 = vcombine.low %v984_v63, %v984_v63  ;;  %v1107_v18 = vpack.i.b16 %v4258_v8, %v4258_v8 }
  0x2c   : > { %v4189_v9 = vld [vmem:[%s4971_s27 + $0xa] sm:$0x3]  ;;  %v4190_v16 = vld [vmem:[%s4971_s27 + $0xc] sm:$0x3]  ;;  %v4191_v22 = vld [vmem:[%s4971_s27 + $0xe] sm:$0x3]  ;;  %v4255_v24 = vcombine.low %v1079_v14, %v1079_v14  ;;  %v4263_v25 = vcombine.low %v1143_v15, %v1143_v15  ;;  %v1202_v26 = vpack.i.b16 %v4270_v19, %v4270_v19  ;;  %v1249_v27 = vpack.i.b16 %v4276_v20, %v4276_v20 }
  0x2d   : > { %v529_v61 = vmax.bf16 %v4186_v54, %v526_v59  ;;  %v1048_v28 = vrot.slane %v1043_v17, %v4928_v12  ;;  %v1112_v29 = vrot.slane %v1107_v18, %v4928_v12  ;;  %v1282_v42 = vpack.i.b16 %v4280_v39, %v4280_v39  ;;  %s6180_s27 = smov 13   ;;  %s6249_s4 = sld [smem:[#allocation9_spill]] }
  0x2e   : > { %709 = vrot.lane.b32.xlu0 %v4210_v34, %s6146_s28  ;;  %777 = vrot.lane.b32.xlu1 %v4218_v35, %s6148_s16  ;;  %s6191_s28 = smov 127   ;;  %s6189_s16 = smov 1   ;;  %v1207_v33 = vrot.slane %v1202_v26, %v4928_v12  ;;  %v1171_v34 = vpack.i.b16 %v4266_v30, %v4266_v30  ;;  %v1313_v35 = vpack.i.b16 %v4284_v31, %v4284_v31  ;;  %vm6164_vm0 = vcmask 875520  }
  0x2f   : > { %v532_v6 = vmax.bf16 %v4187_v60, %v529_v61  ;;  %v4251_v36 = vcombine.low %v1048_v28, %v1048_v28  ;;  %v4259_v37 = vcombine.low %v1112_v29, %v1112_v29  ;;  %v1254_v38 = vrot.slane %v1249_v27, %v4928_v12  ;;  %s6259_s2 = sld [smem:[#allocation7_spill]]  ;;  %s6260_s3 = sld [smem:[#allocation8_spill]] }
  0x30   : > { %v1176_v41 = vrot.slane %v1171_v34, %v4928_v12  ;;  %v4271_v44 = vcombine.low %v1207_v33, %v1207_v33  ;;  %v1287_v47 = vrot.slane %v1282_v42, %v4928_v12  ;;  %vm6174_vm1 = vcmask 891904   ;;  %s6261_s11 = smov 115   ;;  %s6262_s19 = smov 117  }
  0x31   : > { %v535_v10 = vmax.bf16 %v4188_v3, %v532_v6  ;;  %v4277_v45 = vcombine.low %v1254_v38, %v1254_v38  ;;  %vm747_vm2 = vcmask 941056   ;;  %vm815_vm3 = vcmask 957440   ;;  %s6263_s14 = smov 124   ;;  %s6264_s12 = smov 127  }
  0x32   : > { %744 = vrot.lane.b32.xlu0 %v4214_v40, %s6198_s25  ;;  %845 = vrot.lane.b32.xlu1 %v4226_v43, %s6150_s26  ;;  %s6158_s26 = smov 12   ;;  %v4288_v40 = vld [vmem:[%s6123_s1 + $0x1a] sm:$0x1]  ;;  %v1318_v43 = vrot.slane %v1313_v35, %v4928_v12  ;;  %v4267_v48 = vcombine.low %v1176_v41, %v1176_v41  ;;  %v4281_v51 = vcombine.low %v1287_v47, %v1287_v47  ;;  %vm883_vm4 = vcmask 1014784   ;;  %s6265_s13 = smov 1  }
  0x33   : > { %v538_v21 = vmax.bf16 %v4189_v9, %v535_v10  ;;  %v1346_v46 = vpack.i.b16 %v4288_v40, %v4288_v40  ;;  %vm951_vm5 = vcmask 1039360   ;;  %vm964_vm6 = vcmask 7168   ;;  %s6267_s15 = smov 11   ;;  %s6268_s0 = smov 13  }
  0x34   : > { %v4285_v49 = vcombine.low %v1318_v43, %v1318_v43  ;;  %vm896_vm7 = vcmask 31744   ;;  %vm828_vm8 = vcmask 89088   ;;  %vm6171_vm9 = vcmask 883712   ;;  %s6269_s18 = smov 20   ;;  %s6272_s9 = smov 16  }
  0x35   : > { %v541_v23 = vmax.bf16 %v4190_v16, %v538_v21  ;;  %vm6177_vm10 = vcmask 908288   ;;  %vm760_vm11 = vcmask 105472   ;;  %vm6182_vm12 = vcmask 924672   ;;  %s6274_s8 = smov 112   ;;  %s6286_s7 = sld [smem:[#allocation12_spill]] }
  0x36   : > { %913 = vrot.lane.b32.xlu0 %v4234_v50, %s6152_s24  ;;  %812 = vrot.lane.b32.xlu1 %v4222_v55, %s6196_s17  ;;  %s6185_s24 = smov 4   ;;  %v1351_v50 = vrot.slane %v1346_v46, %v4928_v12  ;;  %vm6165_vm13 = vcmask 130048   ;;  %vm6187_vm14 = vcmask 949248   ;;  %vm6168_vm15 = vcmask 916480   ;;  %s6302_s5 = sld [smem:[#allocation10_spill]] }
  0x37   : > { %v5030_v32 = vmax.bf16 %v4191_v22, %v541_v23  ;;  %s6303_s6 = sld [smem:[#allocation11_spill]]  ;;  %s6304_s10 = smov 13  }
  0x38   : > { %v4289_v52 = vcombine.low %v1351_v50, %v1351_v50 }
  0x39   : > { %546 = vst [vmem:[#allocation2 + $0x4] sm:$0x3] %v5030_v32 }
  0x3a   : > { %880 = vrot.lane.b32.xlu0 %v4230_v4, %s6194_s30  ;;  %1019 = vrot.lane.b32.xlu1 %v4247_v5, %s6154_s29  ;;  %s6183_s29 = smov 11  }
  0x3e   : > { %948 = vrot.lane.b32.xlu0 %v4238_v11, %s6191_s28  ;;  %988 = vrot.lane.b32.xlu1 %v4243_v13, %s6189_s16 }
  0x40   : > { %v682_v53 = vld [vmem:[#allocation2] sm:$0x33] }
  0x41   : > { %v4208_v54 = vcombine.high %v682_v53, %v682_v53  ;;  %v4207_v55 = vcombine.low %v682_v53, %v682_v53  ;;  %v1231_v56 = vld [vmem:[#allocation2 + $0x4] sm:$0x33] }
  0x42   : > { %1083 = vrot.lane.b32.xlu0 %v4255_v24, %s6156_s22  ;;  %1147 = vrot.lane.b32.xlu1 %v4263_v25, %s6158_s26  ;;  %s6175_s22 = smov 19   ;;  %s6172_s26 = smov 21   ;;  %v4275_v57 = vcombine.high %v1231_v56, %v1231_v56  ;;  %v4274_v58 = vcombine.low %v1231_v56, %v1231_v56  ;;  %v547_v61 = vld [vmem:[#allocation2] sm:$0x33] }
  0x43   : > { %v614_v4 = vld [vmem:[#allocation2] sm:$0x33] }
  0x44   : > { %v731_v17 = vld [vmem:[#allocation2] sm:$0x33] }
  0x45   : > { %v799_v23 = vld [vmem:[#allocation2] sm:$0x33] }
  0x46   : > { %1052 = vrot.lane.b32.xlu0 %v4251_v36, %s6185_s24  ;;  %1116 = vrot.lane.b32.xlu1 %v4259_v37, %s6183_s29  ;;  %v867_v31 = vld [vmem:[#allocation2] sm:$0x33] }
  0x47   : > { %v935_v40 = vld [vmem:[#allocation2] sm:$0x33] }
  0x48   : > { %v975_v46 = vld [vmem:[#allocation2 + $0x4] sm:$0x33] }
  0x4a   : > { %1211 = vrot.lane.b32.xlu0 %v4271_v44, %s6160_s23  ;;  %1258 = vrot.lane.b32.xlu1 %v4277_v45, %s6162_s20  ;;  %s6169_s23 = smov 16   ;;  %s6166_s20 = smov 112  }
  0x4e   : > { %1180 = vrot.lane.b32.xlu0 %v4267_v48, %s6180_s27  ;;  %1322 = vrot.lane.b32.xlu1 %v4285_v49, %s6178_s21 }
  0x52   : > { %1291 = vrot.lane.b32.xlu0 %v4281_v51, %s6175_s22  ;;  %1355 = vrot.lane.b32.xlu1 %v4289_v52, %s6172_s26 }
  0x56   : > { %690 = vrot.lane.b32.xlu1 %v4208_v54, %s6169_s23  ;;  %688 = vrot.lane.b32.xlu0 %v4207_v55, %s6169_s23  ;;  %s6237_s23 = smov 15  }
  0x5a   : > { %1239 = vrot.lane.b32.xlu1 %v4275_v57, %s6166_s20  ;;  %1237 = vrot.lane.b32.xlu0 %v4274_v58, %s6166_s20  ;;  %v1039_v57 = vld [vmem:[#allocation2 + $0x4] sm:$0x33]  ;;  %s6236_s20 = smov 17  }
  0x98   : > { %v5059_v59 = vpop.permute.xlu0 %592  ;;  %v560_v60 = vpop.permute.xlu1 %559 }
  0x99   : > { %v561_v62 = vrot.slane %v560_v60, 4  ;;  %v594_v56 = vrot.slane %v5059_v59, 4 }
  0x9b   : > { %v563_v63 = vsel %vm6164_vm0, %v561_v62, %v560_v60  ;;  %vm6188_vm0 = vcmask 1006592  }
  0x9c   : > { %v565_v1 = vmul.bf16 %v563_v63, %v547_v61  ;;  %v5062_v2 = vpop.permute.xlu0 %660  ;;  %v628_v3 = vpop.permute.xlu1 %627 }
  0x9d   : > { %v629_v5 = vrot.slane %v628_v3, 4 }
  0x9e   : > { %v4194_v6 = vcombine.high %v565_v1, %v565_v1  ;;  %v4193_v7 = vcombine.low %v565_v1, %v565_v1  ;;  %v1103_v1 = vld [vmem:[#allocation2 + $0x4] sm:$0x33] }
  0x9f   : > { %v631_v8 = vsel %vm6174_vm1, %v629_v5, %v628_v3  ;;  %vm795_vm1 = vcmask 97280  }
  0xa0   : > { %v633_v9 = vmul.bf16 %v631_v8, %v614_v4  ;;  %v5065_v10 = vpop.permute.xlu0 %709  ;;  %v5067_v11 = vpop.permute.xlu1 %777  ;;  %573 = vrot.lane.b32.xlu1 %v4194_v6, %s6172_s26  ;;  %571 = vrot.lane.b32.xlu0 %v4193_v7, %s6172_s26  ;;  %v596_v7 = vsel %vm6171_vm9, %v594_v56, %v5059_v59  ;;  %v579_v8 = vld [vmem:[#allocation2] sm:$0x33]  ;;  %vm863_vm9 = vcmask 39936   ;;  %s6238_s26 = smov 12  }
  0xa2   : > { %v4202_v13 = vcombine.high %v633_v9, %v633_v9  ;;  %v4201_v14 = vcombine.low %v633_v9, %v633_v9  ;;  %v662_v9 = vrot.slane %v5062_v2, 4 }
  0xa4   : > { %v745_v15 = vpop.permute.xlu0 %744  ;;  %v5071_v16 = vpop.permute.xlu1 %845  ;;  %641 = vrot.lane.b32.xlu1 %v4202_v13, %s6175_s22  ;;  %639 = vrot.lane.b32.xlu0 %v4201_v14, %s6175_s22  ;;  %v664_v59 = vsel %vm6177_vm10, %v662_v9, %v5062_v2  ;;  %v779_v2 = vrot.slane %v5067_v11, 4  ;;  %s6239_s22 = smov 5   ;;  %vm6207_vm10 = vcmask 121856  }
  0xa5   : > { %v746_v18 = vrot.slane %v745_v15, 4 }
  0xa7   : > { %v748_v19 = vsel %vm747_vm2, %v746_v18, %v745_v15 }
  0xa8   : > { %v750_v20 = vmul.bf16 %v748_v19, %v731_v17  ;;  %v5076_v21 = vpop.permute.xlu0 %913  ;;  %v813_v22 = vpop.permute.xlu1 %812  ;;  %v598_v19 = vmul.bf16 %v596_v7, %v579_v8  ;;  %v900_v7 = vld [vmem:[#allocation2] sm:$0x33] }
  0xa9   : > { %v814_v24 = vrot.slane %v813_v22, 4 }
  0xaa   : > { %v4216_v25 = vcombine.high %v750_v20, %v750_v20  ;;  %v4215_v26 = vcombine.low %v750_v20, %v750_v20  ;;  %v1167_v20 = vld [vmem:[#allocation2 + $0x4] sm:$0x33] }
  0xab   : > { %v816_v27 = vsel %vm815_vm3, %v814_v24, %v813_v22 }
  0xac   : > { %v818_v28 = vmul.bf16 %v816_v27, %v799_v23  ;;  %v881_v29 = vpop.permute.xlu0 %880  ;;  %758 = vrot.lane.b32.xlu1 %v4216_v25, %s6180_s27  ;;  %756 = vrot.lane.b32.xlu0 %v4215_v26, %s6180_s27  ;;  %v5081_v30 = vpop.permute.xlu1 %1019  ;;  %v647_v23 = vld [vmem:[#allocation2] sm:$0x33]  ;;  %v711_v26 = vrot.slane %v5065_v10, 4  ;;  %s6241_s27 = smov 125  }
  0xad   : > { %v882_v33 = vrot.slane %v881_v29, 4 }
  0xae   : > { %v4224_v34 = vcombine.high %v818_v28, %v818_v28  ;;  %v4223_v35 = vcombine.low %v818_v28, %v818_v28 }
  0xaf   : > { %v884_v36 = vsel %vm883_vm4, %v882_v33, %v881_v29  ;;  %v666_v33 = vmul.bf16 %v664_v59, %v647_v23  ;;  %v1006_v23 = vld [vmem:[#allocation2 + $0x4] sm:$0x33] }
  0xb0   : > { %v886_v37 = vmul.bf16 %v884_v36, %v867_v31  ;;  %v949_v38 = vpop.permute.xlu0 %948  ;;  %826 = vrot.lane.b32.xlu1 %v4224_v34, %s6183_s29  ;;  %824 = vrot.lane.b32.xlu0 %v4223_v35, %s6183_s29  ;;  %v989_v39 = vpop.permute.xlu1 %988  ;;  %v4198_v34 = vcombine.high %v598_v19, %v598_v19  ;;  %s6242_s29 = smov 123  }
  0xb1   : > { %v950_v41 = vrot.slane %v949_v38, 4  ;;  %v990_v42 = vrot.slane %v989_v39, 4 }
  0xb2   : > { %v4232_v43 = vcombine.high %v886_v37, %v886_v37  ;;  %v4231_v44 = vcombine.low %v886_v37, %v886_v37  ;;  %v4197_v37 = vcombine.low %v598_v19, %v598_v19 }
  0xb3   : > { %v952_v45 = vsel %vm951_vm5, %v950_v41, %v949_v38  ;;  %v991_v47 = vsel %vm964_vm6, %v990_v42, %v989_v39  ;;  %v696_v38 = vld [vmem:[#allocation2] sm:$0x33]  ;;  %v713_v39 = vsel %vm6182_vm12, %v711_v26, %v5065_v10  ;;  %v605_v42 = vrot.slane %v4198_v34, 6 }
  0xb4   : > { %v954_v48 = vmul.bf16 %v952_v45, %v935_v40  ;;  %v5088_v49 = vpop.permute.xlu0 %1083  ;;  %894 = vrot.lane.b32.xlu1 %v4232_v43, %s6185_s24  ;;  %892 = vrot.lane.b32.xlu0 %v4231_v44, %s6185_s24  ;;  %v5092_v50 = vpop.permute.xlu1 %1147  ;;  %v993_v51 = vmul.bf16 %v991_v47, %v975_v46  ;;  %v4206_v43 = vcombine.high %v666_v33, %v666_v33  ;;  %v764_v46 = vld [vmem:[#allocation2] sm:$0x33]  ;;  %v847_v10 = vrot.slane %v5071_v16, 4  ;;  %s6243_s24 = smov 116  }
  0xb5   : > { %v715_v45 = vmul.bf16 %v713_v39, %v696_v38  ;;  %v781_v47 = vsel %vm6187_vm14, %v779_v2, %v5067_v11  ;;  %v915_v11 = vrot.slane %v5076_v21, 4  ;;  %v1070_v2 = vld [vmem:[#allocation2 + $0x4] sm:$0x33]  ;;  %vm6206_vm12 = vcmask 138240  }
  0xb6   : > { %v4240_v52 = vcombine.high %v954_v48, %v954_v48  ;;  %v4239_v53 = vcombine.low %v954_v48, %v954_v48  ;;  %v4245_v61 = vcombine.high %v993_v51, %v993_v51  ;;  %v4244_v62 = vcombine.low %v993_v51, %v993_v51  ;;  %v1134_v38 = vld [vmem:[#allocation2 + $0x4] sm:$0x33] }
  0xb7   : > { %v604_v48 = vrot.slane %v4197_v37, 6  ;;  %v4205_v51 = vcombine.low %v666_v33, %v666_v33  ;;  %vm643_vm14 = vcmask 154624  }
  0xb8   : > { %v1053_v54 = vpop.permute.xlu0 %1052  ;;  %962 = vrot.lane.b32.xlu1 %v4240_v52, %s6189_s16  ;;  %960 = vrot.lane.b32.xlu0 %v4239_v53, %s6189_s16  ;;  %v1117_v55 = vpop.permute.xlu1 %1116  ;;  %s6244_s16 = smov 113  }
  0xb9   : > { %v1054_v58 = vrot.slane %v1053_v54, 4  ;;  %v1118_v60 = vrot.slane %v1117_v55, 4 }
  0xbb   : > { %v1055_v63 = vsel %vm896_vm7, %v1054_v58, %v1053_v54  ;;  %v1119_v3 = vsel %vm828_vm8, %v1118_v60, %v1117_v55  ;;  %v783_v54 = vmul.bf16 %v781_v47, %v764_v46  ;;  %v673_v55 = vrot.slane %v4206_v43, 2  ;;  %v1198_v47 = vld [vmem:[#allocation2 + $0x4] sm:$0x33] }
  0xbc   : > { %v1057_v4 = vmul.bf16 %v1055_v63, %v1039_v57  ;;  %v5099_v5 = vpop.permute.xlu0 %1211  ;;  %1001 = vrot.lane.b32.xlu1 %v4245_v61, %s6191_s28  ;;  %999 = vrot.lane.b32.xlu0 %v4244_v62, %s6191_s28  ;;  %v5103_v6 = vpop.permute.xlu1 %1258  ;;  %v1121_v13 = vmul.bf16 %v1119_v3, %v1103_v1  ;;  %v4819_v57 = vmov 0.0   ;;  %v672_v58 = vrot.slane %v4205_v51, 2  ;;  %v832_v62 = vld [vmem:[#allocation2] sm:$0x33]  ;;  %s6245_s28 = smov 111  }
  0xbd   : > { %4646 = vmatprep.subr.bf16.mxu0 %v4819_v57  ;;  %4666 = vmatprep.subr.bf16.mxu1 %v4819_v57  ;;  %v4212_v60 = vcombine.high %v715_v45, %v715_v45  ;;  %v4211_v61 = vcombine.low %v715_v45, %v715_v45  ;;  %v849_v63 = vsel %vm6188_vm0, %v847_v10, %v5071_v16  ;;  %vm6205_vm0 = vcmask 162816  }
  0xbe   : > { %v4253_v14 = vcombine.high %v1057_v4, %v1057_v4  ;;  %v4252_v15 = vcombine.low %v1057_v4, %v1057_v4  ;;  %v4261_v24 = vcombine.high %v1121_v13, %v1121_v13  ;;  %v4260_v25 = vcombine.low %v1121_v13, %v1121_v13 }
  0xbf   : > { %v4220_v1 = vcombine.high %v783_v54, %v783_v54  ;;  %v4219_v3 = vcombine.low %v783_v54, %v783_v54  ;;  %v851_v4 = vmul.bf16 %v849_v63, %v832_v62  ;;  %v722_v9 = vrot.slane %v4212_v60, 6 }
  0xc0   : > { %v1181_v17 = vpop.permute.xlu0 %1180  ;;  %1065 = vrot.lane.b32.xlu1 %v4253_v14, %s6194_s30  ;;  %1063 = vrot.lane.b32.xlu0 %v4252_v15, %s6194_s30  ;;  %v5110_v18 = vpop.permute.xlu1 %1322  ;;  %v721_v13 = vrot.slane %v4211_v61, 6  ;;  %v1021_v14 = vrot.slane %v5081_v30, 4  ;;  %v4749_v15 = vld [vmem:[#allocation2 + $0x4] ss:$0 sps:$4 sm:$0x33]   ;;  %s6246_s30 = smov 109  }
  0xc1   : > { %v1182_v22 = vrot.slane %v1181_v17, 4  ;;  %v789_v19 = vrot.slane %v4219_v3, 2  ;;  %v1324_v63 = vrot.slane %v5110_v18, 4 }
  0xc3   : > { %v1183_v27 = vsel %vm760_vm11, %v1182_v22, %v1181_v17  ;;  %v790_v17 = vrot.slane %v4220_v1, 2  ;;  %v4227_v22 = vcombine.low %v851_v4, %v851_v4 }
  0xc4   : > { %v1185_v28 = vmul.bf16 %v1183_v27, %v1167_v20  ;;  %1129 = vrot.lane.b32.xlu1 %v4261_v24, %s6196_s17  ;;  %1127 = vrot.lane.b32.xlu0 %v4260_v25, %s6196_s17  ;;  %v5118_v29 = vpop.permute.xlu0 %1291  ;;  %v5120_v31 = vpop.permute.xlu1 %1355  ;;  %v4228_v20 = vcombine.high %v851_v4, %v851_v4  ;;  %v972_v24 = vrot.slane %v4749_v15, 6  ;;  %s6247_s17 = smov 108  }
  0xc5   : > { %v857_v34 = vrot.slane %v4227_v22, 6  ;;  %v1293_v62 = vrot.slane %v5118_v29, 4 }
  0xc6   : > { %v4269_v35 = vcombine.high %v1185_v28, %v1185_v28  ;;  %v4268_v36 = vcombine.low %v1185_v28, %v1185_v28  ;;  %974 = vst [vmem:[#allocation3 + $0x18] sm:$0xc] %v972_v24  ;;  %v1149_v28 = vrot.slane %v5092_v50, 4  ;;  %v858_v33 = vrot.slane %v4228_v20, 6 }
  0xc8   : > { %1193 = vrot.lane.b32.xlu1 %v4269_v35, %s6198_s25  ;;  %1191 = vrot.lane.b32.xlu0 %v4268_v36, %s6198_s25  ;;  %v691_v40 = vpop.permute.xlu1 %690  ;;  %v689_v41 = vpop.permute.xlu0 %688  ;;  %v1150_v39 = vsel %vm795_vm1, %v1149_v28, %v5092_v50  ;;  %v1260_v50 = vrot.slane %v5103_v6, 4  ;;  %s6248_s25 = smov 107   ;;  %v4295_v28 = vld [vmem:[%s6123_s1 + $0x1] sm:$0x1] }
  0xc9   : > { %v693_v44 = vsel %vm6165_vm13, %v689_v41, %v691_v40  ;;  %vm6193_vm13 = vcmask 1022976  }
  0xca   : > { %695 = vst [vmem:[#allocation3 + $0x8] sm:$0x3] %v693_v44  ;;  %v917_v8 = vsel %vm6193_vm13, %v915_v11, %v5076_v21  ;;  %v1085_v21 = vrot.slane %v5088_v49, 4  ;;  %vm6204_vm13 = vcmask 171008  }
  0xcb   : > { %v919_v16 = vmul.bf16 %v917_v8, %v900_v7  ;;  %v1278_v7 = vld [vmem:[#allocation2 + $0x4] sm:$0x33]  ;;  %v1294_v8 = vsel %vm643_vm14, %v1293_v62, %v5118_v29 }
  0xcc   : > { %608 = vrot.lane.b32.xlu1 %v605_v42, %s6178_s21  ;;  %606 = vrot.lane.b32.xlu0 %v604_v48, %s6178_s21  ;;  %v1240_v52 = vpop.permute.xlu1 %1239  ;;  %v1238_v53 = vpop.permute.xlu0 %1237  ;;  %v1213_v42 = vrot.slane %v5099_v5, 4  ;;  %s6240_s21 = smov 3  }
  0xcd   : > { %v1242_v56 = vsel %vm6168_vm15, %v1238_v53, %v1240_v52  ;;  %vm6200_vm15 = vcmask 23552   ;;  %v4236_v25 = vcombine.high %v919_v16, %v919_v16  ;;  %v4235_v26 = vcombine.low %v919_v16, %v919_v16 }
  0xce   : > { %1244 = vst [vmem:[#allocation3 + $0x28] sm:$0x30] %v1242_v56  ;;  %v1022_v59 = vsel %vm6200_vm15, %v1021_v14, %v5081_v30  ;;  %v1086_v30 = vsel %vm863_vm9, %v1085_v21, %v5088_v49  ;;  %v1152_v49 = vmul.bf16 %v1150_v39, %v1134_v38  ;;  %v1214_v48 = vsel %vm6207_vm10, %v1213_v42, %v5099_v5  ;;  %v4299_v38 = vld [vmem:[%s6123_s1 + $0x2] sm:$0x1] }
  0xcf   : > { %v1024_v27 = vmul.bf16 %v1022_v59, %v1006_v23  ;;  %v926_v35 = vrot.slane %v4236_v25, 2  ;;  %v925_v36 = vrot.slane %v4235_v26, 2  ;;  %v1088_v37 = vmul.bf16 %v1086_v30, %v1070_v2  ;;  %v1482_v30 = vld [vmem:[%s6123_s1] sm:$0x1] }
  0xd0   : > { %676 = vrot.lane.b32.xlu1 %v673_v55, %s6236_s20  ;;  %674 = vrot.lane.b32.xlu0 %v672_v58, %s6236_s20  ;;  %v4265_v51 = vcombine.high %v1152_v49, %v1152_v49  ;;  %v1216_v10 = vmul.bf16 %v1214_v48, %v1198_v47  ;;  %v4264_v54 = vcombine.low %v1152_v49, %v1152_v49  ;;  %v1245_v55 = vld [vmem:[#allocation2 + $0x4] sm:$0x33]  ;;  %vm4820_vm15 = vmmov 0  }
  0xd1   : > { %v4249_v40 = vcombine.high %v1024_v27, %v1024_v27  ;;  %v4248_v41 = vcombine.low %v1024_v27, %v1024_v27  ;;  %v4257_v45 = vcombine.high %v1088_v37, %v1088_v37  ;;  %v4256_v46 = vcombine.low %v1088_v37, %v1088_v37  ;;  %4662 = vmatprep.mubr.msk.bf16.mxu0 %vm4820_vm15, %v4819_v57 }
  0xd2   : > { %v1261_v56 = vsel %vm6206_vm12, %v1260_v50, %v5103_v6  ;;  %v1159_v5 = vrot.slane %v4265_v51, 2  ;;  %v1158_v58 = vrot.slane %v4264_v54, 2  ;;  %v4273_v60 = vcombine.high %v1216_v10, %v1216_v10  ;;  %4682 = vmatprep.mubr.msk.bf16.mxu1 %vm4820_vm15, %v4819_v57 }
  0xd3   : > { %v1031_v43 = vrot.slane %v4249_v40, 2  ;;  %v1030_v44 = vrot.slane %v4248_v41, 2  ;;  %v1095_v52 = vrot.slane %v4257_v45, 6  ;;  %v1094_v53 = vrot.slane %v4256_v46, 6 }
  0xd4   : > { %725 = vrot.lane.b32.xlu1 %v722_v9, %s6237_s23  ;;  %723 = vrot.lane.b32.xlu0 %v721_v13, %s6237_s23  ;;  %v1263_v11 = vmul.bf16 %v1261_v56, %v1245_v55  ;;  %v4272_v61 = vcombine.low %v1216_v10, %v1216_v10  ;;  %v1223_v6 = vrot.slane %v4273_v60, 6  ;;  %v1309_v9 = vld [vmem:[#allocation2 + $0x4] sm:$0x33]  ;;  %v1325_v13 = vsel %vm6205_vm0, %v1324_v63, %v5110_v18 }
  0xd5   : > { %v1296_v14 = vmul.bf16 %v1294_v8, %v1278_v7  ;;  %v1327_v16 = vmul.bf16 %v1325_v13, %v1309_v9  ;;  %v1342_v18 = vld [vmem:[#allocation2 + $0x4] sm:$0x33]  ;;  %v1484_v37 = vpack.i.b16 %v1482_v30, %v1482_v30  ;;  %v1546_v42 = vpack.i.b16 %v4299_v38, %v4299_v38 }
  0xd6   : > { %v1222_v1 = vrot.slane %v4272_v61, 6  ;;  %v4279_v3 = vcombine.high %v1263_v11, %v1263_v11  ;;  %v4278_v4 = vcombine.low %v1263_v11, %v1263_v11 }
  0xd7   : > { %v4283_v29 = vcombine.high %v1296_v14, %v1296_v14  ;;  %v4282_v20 = vcombine.low %v1296_v14, %v1296_v14  ;;  %v4287_v22 = vcombine.high %v1327_v16, %v1327_v16  ;;  %v4286_v23 = vcombine.low %v1327_v16, %v1327_v16 }
  0xd8   : > { %793 = vrot.lane.b32.xlu1 %v790_v17, %s6238_s26  ;;  %791 = vrot.lane.b32.xlu0 %v789_v19, %s6238_s26  ;;  %v1270_v15 = vrot.slane %v4279_v3, 2  ;;  %v1269_v17 = vrot.slane %v4278_v4, 2  ;;  %v1357_v19 = vrot.slane %v5120_v31, 4  ;;  %v1489_v41 = vrot.slane %v1484_v37, %v4928_v12 }
  0xd9   : > { %v1334_v24 = vrot.slane %v4287_v22, 6  ;;  %v1333_v25 = vrot.slane %v4286_v23, 6 }
  0xda   : > { %v1358_v59 = vsel %vm6204_vm13, %v1357_v19, %v5120_v31  ;;  %v1462_v31 = vld [vmem:[%s6249_s4] sm:$0xf]  ;;  %v4292_v49 = vcombine.low %v1489_v41, %v1489_v41  ;;  %s6271_s4 = smov 21  }
  0xdb   : > { %v1360_v21 = vmul.bf16 %v1358_v59, %v1342_v18 }
  0xdc   : > { %861 = vrot.lane.b32.xlu1 %v858_v33, %s6239_s22  ;;  %859 = vrot.lane.b32.xlu0 %v857_v34, %s6239_s22  ;;  %v4303_v33 = vld [vmem:[%s6123_s1 + $0x3] sm:$0x1]  ;;  %v1514_v34 = vpack.i.b16 %v4295_v28, %v4295_v28 }
  0xdd   : > { %v4291_v26 = vcombine.high %v1360_v21, %v1360_v21  ;;  %v4290_v27 = vcombine.low %v1360_v21, %v1360_v21  ;;  %v1576_v2 = vpack.i.b16 %v4303_v33, %v4303_v33 }
  0xe0   : > { %929 = vrot.lane.b32.xlu1 %v926_v35, %s6240_s21  ;;  %927 = vrot.lane.b32.xlu0 %v925_v36, %s6240_s21  ;;  %v1519_v35 = vrot.slane %v1514_v34, %v4928_v12  ;;  %v1581_v36 = vrot.slane %v1576_v2, %v4928_v12 }
  0xe2   : > { %v4296_v39 = vcombine.low %v1519_v35, %v1519_v35  ;;  %v4304_v40 = vcombine.low %v1581_v36, %v1581_v36 }
  0xe4   : > { %1034 = vrot.lane.b32.xlu1 %v1031_v43, %s6241_s27  ;;  %1032 = vrot.lane.b32.xlu0 %v1030_v44, %s6241_s27  ;;  %v1551_v43 = vrot.slane %v1546_v42, %v4928_v12 }
  0xe6   : > { %v4300_v46 = vcombine.low %v1551_v43, %v1551_v43 }
  0xe8   : > { %1098 = vrot.lane.b32.xlu1 %v1095_v52, %s6242_s29  ;;  %1096 = vrot.lane.b32.xlu0 %v1094_v53, %s6242_s29 }
  0xec   : > { %1162 = vrot.lane.b32.xlu1 %v1159_v5, %s6243_s24  ;;  %1160 = vrot.lane.b32.xlu0 %v1158_v58, %s6243_s24 }
  0xf0   : > { %1226 = vrot.lane.b32.xlu1 %v1223_v6, %s6244_s16  ;;  %1224 = vrot.lane.b32.xlu0 %v1222_v1, %s6244_s16 }
  0xf4   : > { %1273 = vrot.lane.b32.xlu1 %v1270_v15, %s6245_s28  ;;  %1271 = vrot.lane.b32.xlu0 %v1269_v17, %s6245_s28 }
  0xf8   : > { %1304 = vrot.lane.b32.xlu1 %v4283_v29, %s6246_s30  ;;  %1302 = vrot.lane.b32.xlu0 %v4282_v20, %s6246_s30 }
  0xfc   : > { %1337 = vrot.lane.b32.xlu1 %v1334_v24, %s6247_s17  ;;  %1335 = vrot.lane.b32.xlu0 %v1333_v25, %s6247_s17 }
 0x100   : > { %1368 = vrot.lane.b32.xlu1 %v4291_v26, %s6248_s25  ;;  %1366 = vrot.lane.b32.xlu0 %v4290_v27, %s6248_s25 }
 0x104   : > { %1465 = vperm.xlu1 %4744, %v1462_v31  }
 0x108   : > { %1523 = vrot.lane.b32.xlu1 %v4296_v39, %s6247_s17 }
 0x10c   : > { %1585 = vrot.lane.b32.xlu1 %v4304_v40, %s6245_s28 }
 0x110   : > { %1493 = vrot.lane.b32.xlu1 %v4292_v49, %s6248_s25 }
 0x112   : > { %v574_v44 = vpop.permute.xlu1 %573  ;;  %v572_v45 = vpop.permute.xlu0 %571 }
 0x113   : > { %v576_v47 = vsel %vm6204_vm13, %v572_v45, %v574_v44  ;;  %vm6250_vm13 = vcmask 23552  }
 0x114   : > { %578 = vst [vmem:[#allocation3] sm:$0x3] %v576_v47  ;;  %1555 = vrot.lane.b32.xlu1 %v4300_v46, %s6246_s30 }
 0x116   : > { %v642_v48 = vpop.permute.xlu1 %641  ;;  %v640_v50 = vpop.permute.xlu0 %639 }
 0x117   : > { %v644_v51 = vsel %vm643_vm14, %v640_v50, %v642_v48 }
 0x118   : > { %646 = vst [vmem:[#allocation3] sm:$0x30] %v644_v51 }
 0x11e   : > { %v759_v10 = vpop.permute.xlu1 %758  ;;  %v757_v52 = vpop.permute.xlu0 %756 }
 0x11f   : > { %v761_v53 = vsel %vm760_vm11, %v757_v52, %v759_v10 }
 0x120   : > { %763 = vst [vmem:[#allocation3 + $0x8] sm:$0x30] %v761_v53 }
 0x122   : > { %v827_v54 = vpop.permute.xlu1 %826  ;;  %v825_v55 = vpop.permute.xlu0 %824 }
 0x123   : > { %v829_v56 = vsel %vm828_vm8, %v825_v55, %v827_v54 }
 0x124   : > { %831 = vst [vmem:[#allocation3 + $0x10] sm:$0x3] %v829_v56 }
 0x126   : > { %v895_v5 = vpop.permute.xlu1 %894  ;;  %v893_v11 = vpop.permute.xlu0 %892 }
 0x127   : > { %v897_v58 = vsel %vm896_vm7, %v893_v11, %v895_v5 }
 0x128   : > { %899 = vst [vmem:[#allocation3 + $0x10] sm:$0x30] %v897_v58 }
 0x12a   : > { %v963_v60 = vpop.permute.xlu1 %962  ;;  %v961_v61 = vpop.permute.xlu0 %960 }
 0x12b   : > { %v965_v62 = vsel %vm964_vm6, %v961_v61, %v963_v60 }
 0x12c   : > { %967 = vst [vmem:[#allocation3 + $0x18] sm:$0x3] %v965_v62 }
 0x12e   : > { %v1002_v63 = vpop.permute.xlu1 %1001  ;;  %v1000_v6 = vpop.permute.xlu0 %999 }
 0x12f   : > { %v1003_v1 = vsel %vm951_vm5, %v1000_v6, %v1002_v63  ;;  %v4781_v6 = vld [vmem:[#allocation3 + $0x38] sm:$0xff] }
 0x130   : > { %1005 = vst [vmem:[#allocation3 + $0x18] sm:$0x30] %v1003_v1  ;;  %v1373_v1 = vld [vmem:[%s6259_s2] sm:$0x3]  ;;  %s6266_s2 = smov 4  }
 0x132   : > { %v1066_v3 = vpop.permute.xlu1 %1065  ;;  %v1064_v4 = vpop.permute.xlu0 %1063 }
 0x133   : > { %v1067_v7 = vsel %vm883_vm4, %v1064_v4, %v1066_v3  ;;  %v519_v3 = vand.u32 127, %v518_v0  ;;  %v4309_v0 = vld [vmem:[%s6123_s1 + $0x5] sm:$0x1] }
 0x134   : > { %1069 = vst [vmem:[#allocation3 + $0x20] sm:$0x3] %v1067_v7 }
 0x136   : > { %v1130_v8 = vpop.permute.xlu1 %1129  ;;  %v1128_v9 = vpop.permute.xlu0 %1127 }
 0x137   : > { %v1131_v13 = vsel %vm815_vm3, %v1128_v9, %v1130_v8 }
 0x138   : > { %1133 = vst [vmem:[#allocation3 + $0x20] sm:$0x30] %v1131_v13 }
 0x13a   : > { %v1194_v14 = vpop.permute.xlu1 %1193  ;;  %v1192_v16 = vpop.permute.xlu0 %1191 }
 0x13b   : > { %v1195_v15 = vsel %vm747_vm2, %v1192_v16, %v1194_v14 }
 0x13c   : > { %1197 = vst [vmem:[#allocation3 + $0x28] sm:$0x3] %v1195_v15 }
 0x13e   : > { %v609_v17 = vpop.permute.xlu1 %608  ;;  %v607_v19 = vpop.permute.xlu0 %606 }
 0x13f   : > { %v611_v29 = vsel %vm6205_vm0, %v607_v19, %v609_v17  ;;  %vm6251_vm0 = vcmask 1022976   ;;  %v1621_v19 = vpack.i.b16 %v4309_v0, %v4309_v0  ;;  %v4366_v0 = vld [vmem:[%s6123_s1 + $0x14] sm:$0x1] }
 0x140   : > { %613 = vst [vmem:[#allocation3] sm:$0xc] %v611_v29  ;;  %v4317_v29 = vld [vmem:[%s6123_s1 + $0x7] sm:$0x1] }
 0x142   : > { %v677_v20 = vpop.permute.xlu1 %676  ;;  %v675_v22 = vpop.permute.xlu0 %674 }
 0x143   : > { %v679_v23 = vsel %vm6206_vm12, %v675_v22, %v677_v20  ;;  %vm6252_vm12 = vcmask 1006592   ;;  %v1626_v20 = vrot.slane %v1621_v19, %v4928_v12  ;;  %v1683_v22 = vpack.i.b16 %v4317_v29, %v4317_v29  ;;  %v4384_v19 = vld [vmem:[%s6123_s1 + $0x19] sm:$0x1] }
 0x144   : > { %681 = vst [vmem:[#allocation3] sm:$0xc0] %v679_v23  ;;  %v4313_v23 = vld [vmem:[%s6123_s1 + $0x6] sm:$0x1] }
 0x146   : > { %v726_v18 = vpop.permute.xlu1 %725  ;;  %v724_v59 = vpop.permute.xlu0 %723 }
 0x147   : > { %v728_v21 = vsel %vm6207_vm10, %v724_v59, %v726_v18  ;;  %vm6257_vm10 = vcmask 883712   ;;  %v4325_v18 = vld [vmem:[%s6123_s1 + $0x9] sm:$0x1]  ;;  %v1653_v59 = vpack.i.b16 %v4313_v23, %v4313_v23 }
 0x148   : > { %730 = vst [vmem:[#allocation3 + $0x8] sm:$0xc] %v728_v21  ;;  %v4310_v21 = vcombine.low %v1626_v20, %v1626_v20 }
 0x14a   : > { %v794_v24 = vpop.permute.xlu1 %793  ;;  %v792_v25 = vpop.permute.xlu0 %791 }
 0x14b   : > { %v796_v26 = vsel %vm795_vm1, %v792_v25, %v794_v24  ;;  %v1374_v27 = vld [vmem:[#allocation3] sm:$0xff]  ;;  %v1688_v24 = vrot.slane %v1683_v22, %v4928_v12  ;;  %v1745_v25 = vpack.i.b16 %v4325_v18, %v4325_v18  ;;  %v2062_v22 = vpack.i.b16 %v4366_v0, %v4366_v0 }
 0x14c   : > { %798 = vst [vmem:[#allocation3 + $0x8] sm:$0xc0] %v796_v26  ;;  %4647 = vmatpush3.bf16.msra.mxu0 %v1374_v27  ;;  %v4333_v26 = vld [vmem:[%s6123_s1 + $0xb] sm:$0x1]  ;;  %v4321_v27 = vld [vmem:[%s6123_s1 + $0x8] sm:$0x1] }
 0x14d   : > { %4648 = vmatprep.subr.bf16.mxu0 %v4819_v57 }
 0x14e   : > { %v862_v31 = vpop.permute.xlu1 %861  ;;  %v860_v28 = vpop.permute.xlu0 %859 }
 0x14f   : > { %v864_v33 = vsel %vm863_vm9, %v860_v28, %v862_v31  ;;  %v1658_v31 = vrot.slane %v1653_v59, %v4928_v12  ;;  %v1807_v28 = vpack.i.b16 %v4333_v26, %v4333_v26  ;;  %v2199_v59 = vpack.i.b16 %v4384_v19, %v4384_v19 }
 0x150   : > { %866 = vst [vmem:[#allocation3 + $0x10] sm:$0xc] %v864_v33  ;;  %v1455_v33 = vld [vmem:[%s6260_s3] sm:$0xf]  ;;  %v2067_v26 = vrot.slane %v2062_v22, %v4928_v12  ;;  %s6270_s3 = smov 19  }
 0x152   : > { %v930_v34 = vpop.permute.xlu1 %929  ;;  %v928_v2 = vpop.permute.xlu0 %927 }
 0x153   : > { %v932_v30 = vsel %vm6250_vm13, %v928_v2, %v930_v34  ;;  %v1375_v35 = vld [vmem:[#allocation3 + $0x8] sm:$0xff]  ;;  %vm6253_vm13 = vcmask 949248   ;;  %v4318_v34 = vcombine.low %v1688_v24, %v1688_v24  ;;  %v1750_v2 = vrot.slane %v1745_v25, %v4928_v12 }
 0x154   : > { %934 = vst [vmem:[#allocation3 + $0x10] sm:$0xc0] %v932_v30  ;;  %4649 = vmatpush3.bf16.msra.mxu0 %v1375_v35  ;;  %v1715_v30 = vpack.i.b16 %v4321_v27, %v4321_v27  ;;  %v4329_v35 = vld [vmem:[%s6123_s1 + $0xa] sm:$0x1]  ;;  %v4388_v24 = vld [vmem:[%s6123_s1 + $0x1a] sm:$0x1] }
 0x155   : > { %4650 = vmatprep.subr.bf16.mxu0 %v4819_v57 }
 0x156   : > { %v1035_v36 = vpop.permute.xlu1 %1034  ;;  %v1033_v37 = vpop.permute.xlu0 %1032 }
 0x157   : > { %v1036_v38 = vsel %vm6251_vm0, %v1033_v37, %v1035_v36  ;;  %vm6254_vm0 = vcmask 924672   ;;  %v4346_v36 = vld [vmem:[%s6123_s1 + $0xf] sm:$0x1]  ;;  %v4314_v37 = vcombine.low %v1658_v31, %v1658_v31 }
 0x158   : > { %1038 = vst [vmem:[#allocation3 + $0x18] sm:$0xc0] %v1036_v38  ;;  %v1812_v38 = vrot.slane %v1807_v28, %v4928_v12  ;;  %v2204_v28 = vrot.slane %v2199_v59, %v4928_v12 }
 0x15a   : > { %v1099_v39 = vpop.permute.xlu1 %1098  ;;  %v1097_v40 = vpop.permute.xlu0 %1096 }
 0x15b   : > { %v1100_v41 = vsel %vm6252_vm12, %v1097_v40, %v1099_v39  ;;  %v1376_v42 = vld [vmem:[#allocation3 + $0x10] sm:$0xff]  ;;  %vm6255_vm12 = vcmask 908288   ;;  %v1777_v39 = vpack.i.b16 %v4329_v35, %v4329_v35  ;;  %v4326_v40 = vcombine.low %v1750_v2, %v1750_v2 }
 0x15c   : > { %1102 = vst [vmem:[#allocation3 + $0x20] sm:$0xc] %v1100_v41  ;;  %4651 = vmatpush3.bf16.msra.mxu0 %v1376_v42  ;;  %v1720_v41 = vrot.slane %v1715_v30, %v4928_v12  ;;  %v1906_v42 = vpack.i.b16 %v4346_v36, %v4346_v36  ;;  %v4385_v30 = vcombine.low %v2204_v28, %v2204_v28 }
 0x15d   : > { %4652 = vmatprep.subr.bf16.mxu0 %v4819_v57 }
 0x15e   : > { %v1163_v49 = vpop.permute.xlu1 %1162  ;;  %v1161_v43 = vpop.permute.xlu0 %1160 }
 0x15f   : > { %v1164_v44 = vsel %vm6253_vm13, %v1161_v43, %v1163_v49  ;;  %v1377_v45 = vld [vmem:[#allocation3 + $0x18] sm:$0xff]  ;;  %vm6256_vm13 = vcmask 891904   ;;  %v4337_v49 = vld [vmem:[%s6123_s1 + $0xc] sm:$0x1]  ;;  %v4342_v43 = vld [vmem:[%s6123_s1 + $0xe] sm:$0x1] }
 0x160   : > { %1166 = vst [vmem:[#allocation3 + $0x20] sm:$0xc0] %v1164_v44  ;;  %4653 = vmatpush3.bf16.msra.mxu0 %v1377_v45  ;;  %v4334_v44 = vcombine.low %v1812_v38, %v1812_v38  ;;  %v1782_v45 = vrot.slane %v1777_v39, %v4928_v12 }
 0x161   : > { %4654 = vmatprep.subr.bf16.mxu0 %v4819_v57 }
 0x162   : > { %v1227_v46 = vpop.permute.xlu1 %1226  ;;  %v1225_v47 = vpop.permute.xlu0 %1224 }
 0x163   : > { %v1228_v48 = vsel %vm6254_vm0, %v1225_v47, %v1227_v46  ;;  %vm6258_vm0 = vcmask 875520   ;;  %v1839_v46 = vpack.i.b16 %v4337_v49, %v4337_v49  ;;  %v4322_v47 = vcombine.low %v1720_v41, %v1720_v41 }
 0x164   : > { %1230 = vst [vmem:[#allocation3 + $0x28] sm:$0xc] %v1228_v48  ;;  %v1911_v48 = vrot.slane %v1906_v42, %v4928_v12 }
 0x166   : > { %v1274_v50 = vpop.permute.xlu1 %1273  ;;  %v1272_v51 = vpop.permute.xlu0 %1271 }
 0x167   : > { %v1275_v10 = vsel %vm6255_vm12, %v1272_v51, %v1274_v50  ;;  %v1378_v52 = vld [vmem:[#allocation3 + $0x20] sm:$0xff]  ;;  %vm1423_vm12 = vcmask 1043456   ;;  %v1876_v50 = vpack.i.b16 %v4342_v43, %v4342_v43 }
 0x168   : > { %1277 = vst [vmem:[#allocation3 + $0x28] sm:$0xc0] %v1275_v10  ;;  %4655 = vmatpush3.bf16.msra.mxu0 %v1378_v52  ;;  %v4354_v51 = vld [vmem:[%s6123_s1 + $0x11] sm:$0x1]  ;;  %v4362_v10 = vld [vmem:[%s6123_s1 + $0x13] sm:$0x1]  ;;  %v4330_v52 = vcombine.low %v1782_v45, %v1782_v45 }
 0x169   : > { %4656 = vmatprep.subr.bf16.mxu0 %v4819_v57 }
 0x16a   : > { %v1305_v53 = vpop.permute.xlu1 %1304  ;;  %v1303_v54 = vpop.permute.xlu0 %1302 }
 0x16b   : > { %v1306_v55 = vsel %vm6256_vm13, %v1303_v54, %v1305_v53  ;;  %v1844_v53 = vrot.slane %v1839_v46, %v4928_v12  ;;  %v1968_v54 = vpack.i.b16 %v4354_v51, %v4354_v51 }
 0x16c   : > { %1308 = vst [vmem:[#allocation3 + $0x30] sm:$0x3] %v1306_v55  ;;  %v4347_v55 = vcombine.low %v1911_v48, %v1911_v48 }
 0x16e   : > { %v1338_v56 = vpop.permute.xlu1 %1337  ;;  %v1336_v5 = vpop.permute.xlu0 %1335 }
 0x16f   : > { %v1339_v11 = vsel %vm6257_vm10, %v1336_v5, %v1338_v56  ;;  %v1379_v58 = vld [vmem:[#allocation3 + $0x28] sm:$0xff]  ;;  %vm520_vm10 = vcmp.lt.s32.totalorder %v519_v3, 64  ;;  %v1881_v56 = vrot.slane %v1876_v50, %v4928_v12  ;;  %v2030_v5 = vpack.i.b16 %v4362_v10, %v4362_v10 }
 0x170   : > { %1341 = vst [vmem:[#allocation3 + $0x30] sm:$0xc] %v1339_v11  ;;  %4657 = vmatpush3.bf16.msra.mxu0 %v1379_v58  ;;  %v5257_v4 = vsel %vm520_vm10, 1.0, %v4819_v57  ;;  %v4350_v11 = vld [vmem:[%s6123_s1 + $0x10] sm:$0x1]  ;;  %vm6276_vm10 = vcmask 908288  }
 0x171   : > { %4658 = vmatprep.subr.bf16.mxu0 %v4819_v57  ;;  %v4358_v58 = vld [vmem:[%s6123_s1 + $0x12] sm:$0x1]  ;;  %v4370_v3 = vld [vmem:[%s6123_s1 + $0x15] sm:$0x1] }
 0x172   : > { %v1369_v60 = vpop.permute.xlu1 %1368  ;;  %v1367_v61 = vpop.permute.xlu0 %1366 }
 0x173   : > { %v1370_v62 = vsel %vm6258_vm0, %v1367_v61, %v1369_v60  ;;  %v4338_v60 = vcombine.low %v1844_v53, %v1844_v53  ;;  %v1973_v61 = vrot.slane %v1968_v54, %v4928_v12 }
 0x174   : > { %1372 = vst [vmem:[#allocation3 + $0x30] sm:$0x30] %v1370_v62  ;;  %v1938_v62 = vpack.i.b16 %v4350_v11, %v4350_v11 }
 0x17b   : > { %v1380_v63 = vld [vmem:[#allocation3 + $0x30] sm:$0xff] }
 0x17c   : > { %4659 = vmatpush3.bf16.msra.mxu0 %v1380_v63  ;;  %v4343_v63 = vcombine.low %v1881_v56, %v1881_v56 }
 0x17d   : > { %4660 = vmatprep.subr.bf16.mxu0 %v4819_v57 }
 0x180   : > { %4661 = vmatpush3.bf16.msra.mxu0 %v4781_v6  ;;  %v2035_v6 = vrot.slane %v2030_v5, %v4928_v12 }
 0x181   : > { %4686 = vmatprep.subr.bf16.mxu0 %v4819_v57 }
 0x183   : > { %4663 = vmatmul.mubr.bf16.vlgmr.msra.gmra.mrb[0].mxu0 %v1373_v1  ;;  %v2000_v1 = vpack.i.b16 %v4358_v58, %v4358_v58  ;;  %v1466_v38 = vpop.permute.xlu1 %1465 }
 0x184   : > { %4702 = vmatprep.mubr.msk.bf16.mxu0 %vm4820_vm15, %v4819_v57  ;;  %vm6273_vm15 = vmmov %vm6258_vm0  ;;  %vm6275_vm0 = vcmask 883712  }
 0x187   : > { %v5368_v39 = vpop.permute.xlu1 %1523 }
 0x256   : > { %v5259_v7 = vpop.f32.mrb[0].mxu0 }
 0x257   : > { %v1422_v8 = vmul.f32 %v5257_v4, %v5259_v7  ;;  %v4664_v9 = vpop.f32.mrb[1].mxu0 }
 0x258   : > { %v1419_v13 = vpop.f32.mrb[2].mxu0  ;;  %v4355_v9 = vcombine.low %v1973_v61, %v1973_v61 }
 0x259   : > { %v4665_v14 = vpop.f32.mrb[3].mxu0  ;;  %v1424_v16 = vsel %vm1423_vm12, %v1422_v8, 0.0  ;;  %v1434_v15 = vmul.f32 %v1422_v8, %v1422_v8  ;;  %v4376_v8 = vld [vmem:[%s6123_s1 + $0x17] sm:$0x1]  ;;  %v1943_v13 = vrot.slane %v1938_v62, %v4928_v12 }
 0x25a   : > { %1425 = vadd.xlane.f32.xlu0 %v1424_v16  ;;  %v2092_v14 = vpack.i.b16 %v4370_v3, %v4370_v3  ;;  %v4363_v16 = vcombine.low %v2035_v6, %v2035_v6 }
 0x25b   : > { %v1435_v17 = vsel %vm1423_vm12, %v1434_v15, 0.0  ;;  %v2005_v15 = vrot.slane %v2000_v1, %v4928_v12  ;;  %v4351_v29 = vcombine.low %v1943_v13, %v1943_v13 }
 0x25c   : > { %1436 = vadd.xlane.f32.xlu1 %v1435_v17  ;;  %v2137_v17 = vpack.i.b16 %v4376_v8, %v4376_v8  ;;  %v2097_v20 = vrot.slane %v2092_v14, %v4928_v12 }
 0x25d   : > { %v4359_v23 = vcombine.low %v2005_v15, %v2005_v15 }
 0x25e   : > { %v2142_v18 = vrot.slane %v2137_v17, %v4928_v12  ;;  %v4371_v25 = vcombine.low %v2097_v20, %v2097_v20 }
 0x260   : > { %v4377_v31 = vcombine.low %v2142_v18, %v2142_v18 }
 0x26d   : > { %1630 = vrot.lane.b32.xlu1 %v4310_v21, %s6244_s16  ;;  %v4380_v21 = vld [vmem:[%s6123_s1 + $0x18] sm:$0x1] }
 0x26e   : > { %v2169_v27 = vpack.i.b16 %v4380_v21, %v4380_v21 }
 0x270   : > { %1458 = vperm.xlu0 %4743, %v1455_v33   ;;  %v2231_v33 = vpack.i.b16 %v4388_v24, %v4388_v24  ;;  %v2174_v2 = vrot.slane %v2169_v27, %v4928_v12 }
 0x271   : > { %1692 = vrot.lane.b32.xlu1 %v4318_v34, %s6243_s24  ;;  %v4367_v34 = vcombine.low %v2067_v26, %v2067_v26 }
 0x272   : > { %v2236_v35 = vrot.slane %v2231_v33, %v4928_v12  ;;  %v4381_v36 = vcombine.low %v2174_v2, %v2174_v2 }
 0x274   : > { %1662 = vrot.lane.b32.xlu0 %v4314_v37, %s6261_s11  ;;  %v4389_v37 = vcombine.low %v2236_v35, %v2236_v35 }
 0x275   : > { %1754 = vrot.lane.b32.xlu1 %v4326_v40, %s6242_s29  ;;  %v5370_v40 = vpop.permute.xlu1 %1585 }
 0x278   : > { %1816 = vrot.lane.b32.xlu0 %v4334_v44, %s6241_s27 }
 0x279   : > { %1724 = vrot.lane.b32.xlu1 %v4322_v47, %s6262_s19  ;;  %v1494_v41 = vpop.permute.xlu1 %1493 }
 0x27c   : > { %1786 = vrot.lane.b32.xlu0 %v4330_v52, %s6263_s14 }
 0x27d   : > { %1915 = vrot.lane.b32.xlu1 %v4347_v55, %s6240_s21  ;;  %v5372_v42 = vpop.permute.xlu1 %1555 }
 0x280   : > { %1848 = vrot.lane.b32.xlu0 %v4338_v60, %s6264_s12 }
 0x281   : > { %1885 = vrot.lane.b32.xlu1 %v4343_v63, %s6265_s13 }
 0x284   : > { %1977 = vrot.lane.b32.xlu0 %v4355_v9, %s6239_s22 }
 0x285   : > { %2039 = vrot.lane.b32.xlu1 %v4363_v16, %s6238_s26 }
 0x288   : > { %1947 = vrot.lane.b32.xlu0 %v4351_v29, %s6266_s2 }
 0x289   : > { %2009 = vrot.lane.b32.xlu1 %v4359_v23, %s6267_s15 }
 0x28c   : > { %2101 = vrot.lane.b32.xlu0 %v4371_v25, %s6237_s23 }
 0x28d   : > { %2146 = vrot.lane.b32.xlu1 %v4377_v31, %s6236_s20  ;;  %v1495_v31 = vrot.slane %v1494_v41, 4 }
 0x28f   : > { %v1496_v35 = vsel %vm6273_vm15, %v1495_v31, %v1494_v41  ;;  %vm6277_vm15 = vcmask 924672  }
 0x290   : > { %2071 = vrot.lane.b32.xlu0 %v4367_v34, %s6268_s0 }
 0x291   : > { %2208 = vrot.lane.b32.xlu1 %v4385_v30, %s6269_s18 }
 0x294   : > { %2178 = vrot.lane.b32.xlu0 %v4381_v36, %s6270_s3  ;;  %v1557_v36 = vrot.slane %v5372_v42, 4 }
 0x295   : > { %2240 = vrot.lane.b32.xlu1 %v4389_v37, %s6271_s4 }
 0x2e7   : > { %v1426_v49 = vpop.xlane.xlu0 %1425 }
 0x2e8   : > { %v1427_v43 = vsel %vm1423_vm12, %v1426_v49, 0.0 }
 0x2e9   : > { %v1428_v44 = vrot.slane %v1427_v43, 4  ;;  %v1437_v45 = vpop.xlane.xlu1 %1436 }
 0x2ea   : > { %v1438_v46 = vsel %vm1423_vm12, %v1437_v45, 0.0 }
 0x2eb   : > { %v1429_v47 = vadd.f32 %v1428_v44, %v1427_v43  ;;  %v1439_v48 = vrot.slane %v1438_v46, 4 }
 0x2ed   : > { %v1430_v50 = vrot.slane %v1429_v47, 2  ;;  %v1440_v51 = vadd.f32 %v1439_v48, %v1438_v46  ;;  %v1558_v48 = vsel %vm6256_vm13, %v1557_v36, %v5372_v42  ;;  %vm6278_vm13 = vcmask 949248  }
 0x2ef   : > { %v1431_v10 = vadd.f32 %v1430_v50, %v1429_v47  ;;  %v1441_v52 = vrot.slane %v1440_v51, 2  ;;  %v1459_v3 = vpop.permute.xlu0 %1458 }
 0x2f1   : > { %v1432_v53 = vrot.slane %v1431_v10, 1  ;;  %v1442_v54 = vadd.f32 %v1441_v52, %v1440_v51 }
 0x2f3   : > { %v1433_v55 = vadd.f32 %v1432_v53, %v1431_v10  ;;  %v1443_v56 = vrot.slane %v1442_v54, 1  ;;  %v1663_v59 = vpop.permute.xlu0 %1662 }
 0x2f4   : > { %v1664_v45 = vrot.slane %v1663_v59, 4 }
 0x2f5   : > { %v1446_v5 = vmul.f32 0.00390625, %v1433_v55  ;;  %v1444_v11 = vadd.f32 %v1443_v56, %v1442_v54 }
 0x2f6   : > { %v1665_v10 = vsel %vm747_vm2, %v1664_v45, %v1663_v59 }
 0x2f7   : > { %v1448_v58 = vmul.f32 %v1446_v5, %v1446_v5  ;;  %v1447_v60 = vmul.f32 0.00390625, %v1444_v11  ;;  %v1453_v6 = vsub.f32 %v5259_v7, %v1446_v5  ;;  %v5378_v7 = vpop.permute.xlu1 %1630  ;;  %v5382_v24 = vpop.permute.xlu0 %1816 }
 0x2f9   : > { %v1449_v61 = vsub.f32 %v1447_v60, %v1448_v58 }
 0x2fb   : > { %v1450_v62 = vmax.f32 %v1449_v61, 0.0  ;;  %v5380_v21 = vpop.permute.xlu1 %1692  ;;  %v1787_v27 = vpop.permute.xlu0 %1786 }
 0x2fc   : > { %v1788_v58 = vrot.slane %v1787_v27, 4 }
 0x2fd   : > { %v1451_v63 = vadd.f32 1e-05, %v1450_v62 }
 0x2ff   : > { %4767 = vrsqrt.f32 %v1451_v63  ;;  %v5384_v26 = vpop.permute.xlu1 %1754 }
 0x303   : > { %v1725_v37 = vpop.permute.xlu1 %1724 }
 0x304   : > { %v1726_v52 = vrot.slane %v1725_v37, 4 }
 0x306   : > { %v1727_v11 = vsel %vm815_vm3, %v1726_v52, %v1725_v37 }
 0x307   : > { %v5395_v53 = vpop.permute.xlu1 %1915 }
 0x309   : > { %v4768_v1 = vpop.eup %4767 }
 0x30a   : > { %v1454_v8 = vmul.f32 %v4768_v1, %v1453_v6 }
 0x30b   : > { %v1886_v63 = vpop.permute.xlu1 %1885 }
 0x30c   : > { %v1461_v9 = vmul.f32 %v1459_v3, %v1454_v8  ;;  %v1789_v3 = vsel %vm883_vm4, %v1788_v58, %v1787_v27 }
 0x30e   : > { %v1468_v13 = vadd.f32 %v1466_v38, %v1461_v9  ;;  %v1849_v38 = vpop.permute.xlu0 %1848 }
 0x30f   : > { %v1850_v8 = vrot.slane %v1849_v38, 4 }
 0x310   : > { %v1470_v14 = vmul.f32 0.044715, %v1468_v13  ;;  %v1469_v29 = vmul.f32 0.5, %v1468_v13 }
 0x312   : > { %v1471_v16 = vmul.f32 %v1470_v14, %v1468_v13  ;;  %v5397_v54 = vpop.permute.xlu0 %1977 }
 0x314   : > { %v1472_v15 = vmul.f32 %v1471_v16, %v1468_v13  ;;  %v1887_v16 = vrot.slane %v1886_v63, 4 }
 0x316   : > { %v1473_v17 = vadd.f32 %v1472_v15, %v1468_v13  ;;  %v1948_v6 = vpop.permute.xlu0 %1947 }
 0x317   : > { %v1949_v59 = vrot.slane %v1948_v6, 4 }
 0x318   : > { %v1474_v0 = vmul.f32 0.7978846, %v1473_v17  ;;  %v1851_v17 = vsel %vm951_vm5, %v1850_v8, %v1849_v38 }
 0x31a   : > { %4769 = vtanh.f32 %v1474_v0 }
 0x324   : > { %v4770_v19 = vpop.eup %4769 }
 0x325   : > { %v1476_v20 = vadd.f32 1.0, %v4770_v19  ;;  %v5408_v19 = vpop.permute.xlu1 %2039 }
 0x327   : > { %v1477_v22 = vmul.f32 %v1476_v20, %v1469_v29  ;;  %v5410_v29 = vpop.permute.xlu0 %2101 }
 0x329   : > { %v1478_v23 = vmul.f32 %v5257_v4, %v1477_v22 }
 0x32b   : > { %v1479_v18 = vpack.c.bf16 %v1478_v23, %v1478_v23 }
 0x32d   : > { %1480 = vst [vmem:[#allocation2 + $0x4] sm:$0x3] %v1479_v18  ;;  %v1888_v18 = vsel %vm964_vm6, %v1887_v16, %v1886_v63  ;;  %v1694_v16 = vrot.slane %v5380_v21, 4 }
 0x334   : > { %v1605_v25 = vld [vmem:[#allocation2] sm:$0x33] }
 0x335   : > { %v4308_v28 = vcombine.high %v1605_v25, %v1605_v25  ;;  %v4754_v33 = vld [vmem:[#allocation2 + $0x4] ss:$0 sps:$4 sm:$0x33]   ;;  %v4307_v30 = vcombine.low %v1605_v25, %v1605_v25 }
 0x336   : > { %v2121_v34 = vld [vmem:[#allocation2 + $0x4] sm:$0x33]  ;;  %v1870_v44 = vrot.slane %v4754_v33, 6  ;;  %v2072_v33 = vpop.permute.xlu0 %2071 }
 0x337   : > { %v1481_v2 = vld [vmem:[#allocation2] sm:$0x33]  ;;  %1613 = vrot.lane.b32.xlu1 %v4308_v28, %s6272_s9  ;;  %1611 = vrot.lane.b32.xlu0 %v4307_v30, %s6272_s9  ;;  %v4375_v49 = vcombine.high %v2121_v34, %v2121_v34  ;;  %v4374_v47 = vcombine.low %v2121_v34, %v2121_v34  ;;  %v2010_v28 = vpop.permute.xlu1 %2009  ;;  %v1950_v30 = vsel %vm896_vm7, %v1949_v59, %v1948_v6  ;;  %v1632_v6 = vrot.slane %v5378_v7, 4  ;;  %s6309_s9 = smov 112  }
 0x338   : > { %v1498_v43 = vmul.bf16 %v1496_v35, %v1481_v2  ;;  %v1543_v46 = vld [vmem:[#allocation2] sm:$0x33]  ;;  %1872 = vst [vmem:[#allocation3 + $0x18] sm:$0xc] %v1870_v44  ;;  %v2011_v34 = vrot.slane %v2010_v28, 4  ;;  %v1756_v59 = vrot.slane %v5384_v26, 4 }
 0x339   : > { %v1560_v50 = vmul.bf16 %v1558_v48, %v1543_v46  ;;  %v1650_v51 = vld [vmem:[#allocation2] sm:$0x33] }
 0x33a   : > { %v4294_v41 = vcombine.high %v1498_v43, %v1498_v43  ;;  %v4293_v55 = vcombine.low %v1498_v43, %v1498_v43  ;;  %v1667_v56 = vmul.bf16 %v1665_v10, %v1650_v51  ;;  %v1712_v42 = vld [vmem:[#allocation2] sm:$0x33]  ;;  %v2073_v43 = vrot.slane %v2072_v33, 4  ;;  %v2179_v45 = vpop.permute.xlu0 %2178 }
 0x33b   : > { %2129 = vrot.lane.b32.xlu1 %v4375_v49, %s6274_s8  ;;  %2127 = vrot.lane.b32.xlu0 %v4374_v47, %s6274_s8  ;;  %v4302_v5 = vcombine.high %v1560_v50, %v1560_v50  ;;  %v4301_v60 = vcombine.low %v1560_v50, %v1560_v50  ;;  %v1729_v62 = vmul.bf16 %v1727_v11, %v1712_v42  ;;  %v1774_v1 = vld [vmem:[#allocation2] sm:$0x33]  ;;  %v2180_v50 = vrot.slane %v2179_v45, 4  ;;  %s6307_s8 = smov 16  }
 0x33c   : > { %v4316_v61 = vcombine.high %v1667_v56, %v1667_v56  ;;  %v4315_v9 = vcombine.low %v1667_v56, %v1667_v56  ;;  %v1791_v14 = vmul.bf16 %v1789_v3, %v1774_v1  ;;  %v1836_v15 = vld [vmem:[#allocation2] sm:$0x33]  ;;  %v2012_v49 = vsel %vm828_vm8, %v2011_v34, %v2010_v28 }
 0x33d   : > { %v4324_v13 = vcombine.high %v1729_v62, %v1729_v62  ;;  %v4323_v0 = vcombine.low %v1729_v62, %v1729_v62  ;;  %v1853_v22 = vmul.bf16 %v1851_v17, %v1836_v15  ;;  %v1873_v23 = vld [vmem:[#allocation2 + $0x4] sm:$0x33]  ;;  %v1525_v10 = vrot.slane %v5368_v39, 4 }
 0x33e   : > { %v4332_v20 = vcombine.high %v1791_v14, %v1791_v14  ;;  %v4331_v25 = vcombine.low %v1791_v14, %v1791_v14  ;;  %v1890_v27 = vmul.bf16 %v1888_v18, %v1873_v23  ;;  %v1935_v2 = vld [vmem:[#allocation2 + $0x4] sm:$0x33]  ;;  %v1633_v14 = vsel %vm6277_vm15, %v1632_v6, %v5378_v7 }
 0x33f   : > { %1506 = vrot.lane.b32.xlu1 %v4294_v41, %s6271_s4  ;;  %1504 = vrot.lane.b32.xlu0 %v4293_v55, %s6271_s4  ;;  %v4340_v31 = vcombine.high %v1853_v22, %v1853_v22  ;;  %v4339_v35 = vcombine.low %v1853_v22, %v1853_v22  ;;  %v1952_v37 = vmul.bf16 %v1950_v30, %v1935_v2  ;;  %v1997_v38 = vld [vmem:[#allocation2 + $0x4] sm:$0x33]  ;;  %v1818_v2 = vrot.slane %v5382_v24, 4 }
 0x340   : > { %v4345_v36 = vcombine.high %v1890_v27, %v1890_v27  ;;  %v4344_v44 = vcombine.low %v1890_v27, %v1890_v27  ;;  %v2014_v46 = vmul.bf16 %v2012_v49, %v1997_v38  ;;  %v2059_v48 = vld [vmem:[#allocation2 + $0x4] sm:$0x33]  ;;  %v2074_v41 = vsel %vm760_vm11, %v2073_v43, %v2072_v33 }
 0x341   : > { %v4353_v47 = vcombine.high %v1952_v37, %v1952_v37  ;;  %v4352_v51 = vcombine.low %v1952_v37, %v1952_v37  ;;  %v2076_v55 = vmul.bf16 %v2074_v41, %v2059_v48  ;;  %v2166_v56 = vld [vmem:[#allocation2 + $0x4] sm:$0x33]  ;;  %v1526_v58 = vsel %vm6275_vm0, %v1525_v10, %v5368_v39 }
 0x342   : > { %v4361_v52 = vcombine.high %v2014_v46, %v2014_v46  ;;  %v1511_v42 = vld [vmem:[#allocation2] sm:$0x33]  ;;  %v4360_v11 = vcombine.low %v2014_v46, %v2014_v46  ;;  %v1695_v18 = vsel %vm6278_vm13, %v1694_v16, %v5380_v21  ;;  %vm6279_vm0 = vcmask 1006592  }
 0x343   : > { %1568 = vrot.lane.b32.xlu1 %v4302_v5, %s6270_s3  ;;  %1566 = vrot.lane.b32.xlu0 %v4301_v60, %s6270_s3  ;;  %v2181_v5 = vsel %vm643_vm14, %v2180_v50, %v2179_v45  ;;  %v1587_v60 = vrot.slane %v5370_v40, 4  ;;  %v1528_v63 = vmul.bf16 %v1526_v58, %v1511_v42  ;;  %v1573_v1 = vld [vmem:[#allocation2] sm:$0x33]  ;;  %v4368_v3 = vcombine.low %v2076_v55, %v2076_v55  ;;  %s6305_s3 = smov 19  }
 0x344   : > { %v2183_v62 = vmul.bf16 %v2181_v5, %v2166_v56  ;;  %v1618_v15 = vld [vmem:[#allocation2] sm:$0x33]  ;;  %v1757_v34 = vsel %vm6279_vm0, %v1756_v59, %v5384_v26  ;;  %v1917_v43 = vrot.slane %v5395_v53, 4  ;;  %vm6281_vm15 = vcmask 23552  }
 0x345   : > { %v1588_v8 = vsel %vm6276_vm10, %v1587_v60, %v5370_v40  ;;  %v4298_v39 = vcombine.high %v1528_v63, %v1528_v63  ;;  %v1635_v40 = vmul.bf16 %v1633_v14, %v1618_v15  ;;  %v1680_v23 = vld [vmem:[#allocation2] sm:$0x33]  ;;  %vm6280_vm10 = vcmask 1022976  }
 0x346   : > { %v4382_v17 = vcombine.low %v2183_v62, %v2183_v62  ;;  %v1697_v27 = vmul.bf16 %v1695_v18, %v1680_v23  ;;  %v1742_v33 = vld [vmem:[#allocation2] sm:$0x33]  ;;  %v1819_v49 = vsel %vm6280_vm10, %v1818_v2, %v5382_v24  ;;  %v1918_v41 = vsel %vm6281_vm15, %v1917_v43, %v5395_v53 }
 0x347   : > { %1675 = vrot.lane.b32.xlu1 %v4316_v61, %s6268_s0  ;;  %1673 = vrot.lane.b32.xlu0 %v4315_v9, %s6268_s0  ;;  %v4369_v61 = vcombine.high %v2076_v55, %v2076_v55  ;;  %v4383_v9 = vcombine.high %v2183_v62, %v2183_v62  ;;  %v4312_v28 = vcombine.high %v1635_v40, %v1635_v40  ;;  %v1804_v38 = vld [vmem:[#allocation2] sm:$0x33]  ;;  %v1979_v50 = vrot.slane %v5397_v54, 4  ;;  %s6322_s0 = sld [smem:[#allocation15_spill]] }
 0x348   : > { %v4311_v30 = vcombine.low %v1635_v40, %v1635_v40  ;;  %v1903_v48 = vld [vmem:[#allocation2 + $0x4] sm:$0x33]  ;;  %v2041_v56 = vrot.slane %v5408_v19, 4  ;;  %v2103_v6 = vrot.slane %v5410_v29, 4  ;;  %vm6282_vm13 = vcmask 121856  }
 0x349   : > { %v1642_v37 = vrot.slane %v4312_v28, 6  ;;  %v1920_v55 = vmul.bf16 %v1918_v41, %v1903_v48  ;;  %v1965_v5 = vld [vmem:[#allocation2 + $0x4] sm:$0x33]  ;;  %v1980_v42 = vsel %vm863_vm9, %v1979_v50, %v5397_v54  ;;  %vm6283_vm0 = vcmask 138240  }
 0x34a   : > { %v1641_v26 = vrot.slane %v4311_v30, 6  ;;  %v2027_v62 = vld [vmem:[#allocation2 + $0x4] sm:$0x33]  ;;  %v2104_v16 = vsel %vm6282_vm13, %v2103_v6, %v5410_v29  ;;  %vm6284_vm10 = vcmask 162816   ;;  %vm6285_vm15 = vcmask 171008  }
 0x34b   : > { %1737 = vrot.lane.b32.xlu1 %v4324_v13, %s6267_s15  ;;  %1735 = vrot.lane.b32.xlu0 %v4323_v0, %s6267_s15  ;;  %v1590_v13 = vmul.bf16 %v1588_v8, %v1573_v1  ;;  %v4297_v0 = vcombine.low %v1528_v63, %v1528_v63  ;;  %v4349_v60 = vcombine.high %v1920_v55, %v1920_v55  ;;  %v2147_v8 = vpop.permute.xlu1 %2146  ;;  %v2089_v14 = vld [vmem:[#allocation2 + $0x4] sm:$0x33]  ;;  %vm6287_vm13 = vcmask 130048  }
 0x34c   : > { %v2042_v63 = vsel %vm795_vm1, %v2041_v56, %v5408_v19  ;;  %v2134_v40 = vld [vmem:[#allocation2 + $0x4] sm:$0x33] }
 0x34d   : > { %v4306_v22 = vcombine.high %v1590_v13, %v1590_v13  ;;  %v1534_v7 = vrot.slane %v4297_v0, 6  ;;  %v1927_v54 = vrot.slane %v4349_v60, 2 }
 0x34f   : > { %1799 = vrot.lane.b32.xlu1 %v4332_v20, %s6266_s2  ;;  %1797 = vrot.lane.b32.xlu0 %v4331_v25, %s6266_s2  ;;  %v1535_v20 = vrot.slane %v4298_v39, 6  ;;  %v4305_v25 = vcombine.low %v1590_v13, %v1590_v13  ;;  %v2148_v13 = vrot.slane %v2147_v8, 4 }
 0x351   : > { %v1596_v21 = vrot.slane %v4305_v25, 2  ;;  %v2149_v23 = vsel %vm6283_vm0, %v2148_v13, %v2147_v8  ;;  %vm6288_vm0 = vcmask 916480  }
 0x352   : > { %v2151_v29 = vmul.bf16 %v2149_v23, %v2134_v40 }
 0x353   : > { %1861 = vrot.lane.b32.xlu1 %v4340_v31, %s6265_s13  ;;  %1859 = vrot.lane.b32.xlu0 %v4339_v35, %s6265_s13  ;;  %v1597_v31 = vrot.slane %v4306_v22, 2  ;;  %v4320_v35 = vcombine.high %v1697_v27, %v1697_v27  ;;  %v2209_v22 = vpop.permute.xlu1 %2208 }
 0x354   : > { %v2210_v18 = vrot.slane %v2209_v22, 4 }
 0x355   : > { %v1704_v45 = vrot.slane %v4320_v35, 2 }
 0x356   : > { %v2211_v28 = vsel %vm6284_vm10, %v2210_v18, %v2209_v22  ;;  %vm6289_vm10 = vmmov %vm6285_vm15 }
 0x357   : > { %1898 = vrot.lane.b32.xlu1 %v4345_v36, %s6264_s12  ;;  %1896 = vrot.lane.b32.xlu0 %v4344_v44, %s6264_s12  ;;  %v1759_v36 = vmul.bf16 %v1757_v34, %v1742_v33  ;;  %v4319_v44 = vcombine.low %v1697_v27, %v1697_v27  ;;  %v2241_v2 = vpop.permute.xlu1 %2240 }
 0x359   : > { %v4328_v46 = vcombine.high %v1759_v36, %v1759_v36  ;;  %v4327_v10 = vcombine.low %v1759_v36, %v1759_v36  ;;  %v2242_v36 = vrot.slane %v2241_v2, 4 }
 0x35b   : > { %1960 = vrot.lane.b32.xlu1 %v4353_v47, %s6263_s14  ;;  %1958 = vrot.lane.b32.xlu0 %v4352_v51, %s6263_s14  ;;  %v1821_v47 = vmul.bf16 %v1819_v49, %v1804_v38  ;;  %v1703_v51 = vrot.slane %v4319_v44, 2  ;;  %v1766_v24 = vrot.slane %v4328_v46, 6  ;;  %v2228_v44 = vld [vmem:[#allocation2 + $0x4] sm:$0x33] }
 0x35d   : > { %v4335_v58 = vcombine.low %v1821_v47, %v1821_v47 }
 0x35f   : > { %2022 = vrot.lane.b32.xlu1 %v4361_v52, %s6262_s19  ;;  %2020 = vrot.lane.b32.xlu0 %v4360_v11, %s6262_s19  ;;  %v4336_v52 = vcombine.high %v1821_v47, %v1821_v47  ;;  %v1765_v11 = vrot.slane %v4327_v10, 6  ;;  %v1827_v1 = vrot.slane %v4335_v58, 2  ;;  %v2345_v10 = vld [vmem:[%s6286_s7] sm:$0xf]  ;;  %s6338_s7 = sld [smem:[#allocation13_spill]] }
 0x361   : > { %v1828_v53 = vrot.slane %v4336_v52, 2 }
 0x363   : > { %2084 = vrot.lane.b32.xlu1 %v4369_v61, %s6261_s11  ;;  %2082 = vrot.lane.b32.xlu0 %v4368_v3, %s6261_s11  ;;  %v1982_v61 = vmul.bf16 %v1980_v42, %v1965_v5  ;;  %v4348_v3 = vcombine.low %v1920_v55, %v1920_v55 }
 0x365   : > { %v4357_v39 = vcombine.high %v1982_v61, %v1982_v61  ;;  %v1926_v15 = vrot.slane %v4348_v3, 2 }
 0x367   : > { %2191 = vrot.lane.b32.xlu1 %v4383_v9, %s6246_s30  ;;  %2189 = vrot.lane.b32.xlu0 %v4382_v17, %s6246_s30  ;;  %v2044_v9 = vmul.bf16 %v2042_v63, %v2027_v62  ;;  %v4356_v17 = vcombine.low %v1982_v61, %v1982_v61  ;;  %v1989_v0 = vrot.slane %v4357_v39, 6 }
 0x369   : > { %v4365_v19 = vcombine.high %v2044_v9, %v2044_v9  ;;  %v4364_v59 = vcombine.low %v2044_v9, %v2044_v9 }
 0x36b   : > { %1538 = vrot.lane.b32.xlu1 %v1535_v20, %s6269_s18  ;;  %1536 = vrot.lane.b32.xlu0 %v1534_v7, %s6269_s18  ;;  %v2106_v20 = vmul.bf16 %v2104_v16, %v2089_v14  ;;  %v1988_v7 = vrot.slane %v4356_v17, 6  ;;  %v2051_v25 = vrot.slane %v4365_v19, 2  ;;  %v2050_v33 = vrot.slane %v4364_v59, 2 }
 0x36d   : > { %v4373_v27 = vcombine.high %v2106_v20, %v2106_v20  ;;  %v4372_v34 = vcombine.low %v2106_v20, %v2106_v20 }
 0x36f   : > { %1600 = vrot.lane.b32.xlu1 %v1597_v31, %s6236_s20  ;;  %1598 = vrot.lane.b32.xlu0 %v1596_v21, %s6236_s20  ;;  %v2196_v31 = vld [vmem:[#allocation2 + $0x4] sm:$0x33]  ;;  %v4379_v21 = vcombine.high %v2151_v29, %v2151_v29  ;;  %v2113_v30 = vrot.slane %v4373_v27, 6  ;;  %v2112_v38 = vrot.slane %v4372_v34, 6 }
 0x370   : > { %v2213_v35 = vmul.bf16 %v2211_v28, %v2196_v31 }
 0x371   : > { %v2158_v49 = vrot.slane %v4379_v21, 2 }
 0x372   : > { %v4387_v43 = vcombine.high %v2213_v35, %v2213_v35  ;;  %v4386_v46 = vcombine.low %v2213_v35, %v2213_v35 }
 0x373   : > { %1645 = vrot.lane.b32.xlu1 %v1642_v37, %s6237_s23  ;;  %1643 = vrot.lane.b32.xlu0 %v1641_v26, %s6237_s23  ;;  %v4378_v37 = vcombine.low %v2151_v29, %v2151_v29  ;;  %v2243_v26 = vsel %vm6285_vm15, %v2242_v36, %v2241_v2  ;;  %vm6290_vm15 = vcmask 891904  }
 0x374   : > { %v2220_v47 = vrot.slane %v4387_v43, 6  ;;  %v2245_v48 = vmul.bf16 %v2243_v26, %v2228_v44  ;;  %v2219_v41 = vrot.slane %v4386_v46, 6 }
 0x376   : > { %v4391_v50 = vcombine.high %v2245_v48, %v2245_v48 }
 0x377   : > { %1707 = vrot.lane.b32.xlu1 %v1704_v45, %s6238_s26  ;;  %1705 = vrot.lane.b32.xlu0 %v1703_v51, %s6238_s26  ;;  %v2157_v45 = vrot.slane %v4378_v37, 2  ;;  %v4390_v51 = vcombine.low %v2245_v48, %v2245_v48 }
 0x37b   : > { %1769 = vrot.lane.b32.xlu1 %v1766_v24, %s6239_s22  ;;  %1767 = vrot.lane.b32.xlu0 %v1765_v11, %s6239_s22  ;;  %v4403_v24 = vld [vmem:[%s6123_s1 + $0x3] sm:$0x1] }
 0x37c   : > { %v2460_v52 = vpack.i.b16 %v4403_v24, %v4403_v24 }
 0x37e   : > { %v2465_v55 = vrot.slane %v2460_v52, %v4928_v12 }
 0x37f   : > { %1831 = vrot.lane.b32.xlu1 %v1828_v53, %s6240_s21  ;;  %1829 = vrot.lane.b32.xlu0 %v1827_v1, %s6240_s21 }
 0x380   : > { %v4404_v56 = vcombine.low %v2465_v55, %v2465_v55 }
 0x383   : > { %1930 = vrot.lane.b32.xlu1 %v1927_v54, %s6241_s27  ;;  %1928 = vrot.lane.b32.xlu0 %v1926_v15, %s6241_s27 }
 0x387   : > { %1992 = vrot.lane.b32.xlu1 %v1989_v0, %s6242_s29  ;;  %1990 = vrot.lane.b32.xlu0 %v1988_v7, %s6242_s29 }
 0x38b   : > { %2054 = vrot.lane.b32.xlu1 %v2051_v25, %s6243_s24  ;;  %2052 = vrot.lane.b32.xlu0 %v2050_v33, %s6243_s24 }
 0x38f   : > { %2116 = vrot.lane.b32.xlu1 %v2113_v30, %s6244_s16  ;;  %2114 = vrot.lane.b32.xlu0 %v2112_v38, %s6244_s16 }
 0x393   : > { %2161 = vrot.lane.b32.xlu1 %v2158_v49, %s6245_s28  ;;  %2159 = vrot.lane.b32.xlu0 %v2157_v45, %s6245_s28 }
 0x397   : > { %2223 = vrot.lane.b32.xlu1 %v2220_v47, %s6247_s17  ;;  %2221 = vrot.lane.b32.xlu0 %v2219_v41, %s6247_s17 }
 0x39b   : > { %2253 = vrot.lane.b32.xlu1 %v4391_v50, %s6248_s25  ;;  %2251 = vrot.lane.b32.xlu0 %v4390_v51, %s6248_s25 }
 0x39f   : > { %2348 = vperm.xlu1 %4744, %v2345_v10  }
 0x3a3   : > { %2469 = vrot.lane.b32.xlu1 %v4404_v56, %s6245_s28 }
 0x3a9   : > { %v1614_v5 = vpop.permute.xlu1 %1613  ;;  %v1612_v42 = vpop.permute.xlu0 %1611 }
 0x3aa   : > { %v1615_v11 = vsel %vm6287_vm13, %v1612_v42, %v1614_v5  ;;  %vm6291_vm13 = vcmask 162816  }
 0x3ab   : > { %1617 = vst [vmem:[#allocation3 + $0x8] sm:$0x3] %v1615_v11 }
 0x3ad   : > { %v2130_v58 = vpop.permute.xlu1 %2129  ;;  %v2128_v53 = vpop.permute.xlu0 %2127 }
 0x3ae   : > { %v2131_v60 = vsel %vm6288_vm0, %v2128_v53, %v2130_v58  ;;  %vm6292_vm0 = vcmask 138240  }
 0x3af   : > { %2133 = vst [vmem:[#allocation3 + $0x28] sm:$0x30] %v2131_v60 }
 0x3b1   : > { %v1507_v61 = vpop.permute.xlu1 %1506  ;;  %v1505_v62 = vpop.permute.xlu0 %1504 }
 0x3b2   : > { %v1508_v63 = vsel %vm6289_vm10, %v1505_v62, %v1507_v61  ;;  %vm6293_vm10 = vcmask 121856  }
 0x3b3   : > { %1510 = vst [vmem:[#allocation3] sm:$0x3] %v1508_v63 }
 0x3b5   : > { %v1569_v6 = vpop.permute.xlu1 %1568  ;;  %v1567_v1 = vpop.permute.xlu0 %1566 }
 0x3b6   : > { %v1570_v3 = vsel %vm643_vm14, %v1567_v1, %v1569_v6 }
 0x3b7   : > { %1572 = vst [vmem:[#allocation3] sm:$0x30] %v1570_v3 }
 0x3b9   : > { %v1676_v8 = vpop.permute.xlu1 %1675  ;;  %v1674_v54 = vpop.permute.xlu0 %1673 }
 0x3ba   : > { %v1677_v9 = vsel %vm760_vm11, %v1674_v54, %v1676_v8 }
 0x3bb   : > { %1679 = vst [vmem:[#allocation3 + $0x8] sm:$0x30] %v1677_v9 }
 0x3bd   : > { %v1738_v39 = vpop.permute.xlu1 %1737  ;;  %v1736_v13 = vpop.permute.xlu0 %1735 }
 0x3be   : > { %v1739_v14 = vsel %vm828_vm8, %v1736_v13, %v1738_v39 }
 0x3bf   : > { %1741 = vst [vmem:[#allocation3 + $0x10] sm:$0x3] %v1739_v14 }
 0x3c1   : > { %v1800_v16 = vpop.permute.xlu1 %1799  ;;  %v1798_v15 = vpop.permute.xlu0 %1797 }
 0x3c2   : > { %v1801_v17 = vsel %vm896_vm7, %v1798_v15, %v1800_v16 }
 0x3c3   : > { %1803 = vst [vmem:[#allocation3 + $0x10] sm:$0x30] %v1801_v17 }
 0x3c5   : > { %v1862_v19 = vpop.permute.xlu1 %1861  ;;  %v1860_v0 = vpop.permute.xlu0 %1859 }
 0x3c6   : > { %v1863_v20 = vsel %vm964_vm6, %v1860_v0, %v1862_v19 }
 0x3c7   : > { %1865 = vst [vmem:[#allocation3 + $0x18] sm:$0x3] %v1863_v20 }
 0x3c9   : > { %v1899_v22 = vpop.permute.xlu1 %1898  ;;  %v1897_v40 = vpop.permute.xlu0 %1896 }
 0x3ca   : > { %v1900_v23 = vsel %vm951_vm5, %v1897_v40, %v1899_v22  ;;  %v4782_v40 = vld [vmem:[#allocation3 + $0x38] sm:$0xff] }
 0x3cb   : > { %1902 = vst [vmem:[#allocation3 + $0x18] sm:$0x30] %v1900_v23  ;;  %v2258_v23 = vld [vmem:[%s6302_s5] sm:$0x3]  ;;  %s6321_s5 = smov 111  }
 0x3cd   : > { %v1961_v18 = vpop.permute.xlu1 %1960  ;;  %v1959_v59 = vpop.permute.xlu0 %1958 }
 0x3ce   : > { %v1962_v7 = vsel %vm883_vm4, %v1959_v59, %v1961_v18 }
 0x3cf   : > { %1964 = vst [vmem:[#allocation3 + $0x20] sm:$0x3] %v1962_v7 }
 0x3d1   : > { %v2023_v25 = vpop.permute.xlu1 %2022  ;;  %v2021_v29 = vpop.permute.xlu0 %2020 }
 0x3d2   : > { %v2024_v27 = vsel %vm815_vm3, %v2021_v29, %v2023_v25 }
 0x3d3   : > { %2026 = vst [vmem:[#allocation3 + $0x20] sm:$0x30] %v2024_v27 }
 0x3d5   : > { %v2085_v31 = vpop.permute.xlu1 %2084  ;;  %v2083_v28 = vpop.permute.xlu0 %2082 }
 0x3d6   : > { %v2086_v33 = vsel %vm747_vm2, %v2083_v28, %v2085_v31 }
 0x3d7   : > { %2088 = vst [vmem:[#allocation3 + $0x28] sm:$0x3] %v2086_v33  ;;  %v4399_v33 = vld [vmem:[%s6123_s1 + $0x2] sm:$0x1] }
 0x3d9   : > { %v2192_v34 = vpop.permute.xlu1 %2191  ;;  %v2190_v2 = vpop.permute.xlu0 %2189 }
 0x3da   : > { %v2193_v21 = vsel %vm6290_vm15, %v2190_v2, %v2192_v34  ;;  %vm6294_vm15 = vcmask 23552   ;;  %v2430_v34 = vpack.i.b16 %v4399_v33, %v4399_v33  ;;  %v4417_v2 = vld [vmem:[%s6123_s1 + $0x7] sm:$0x1] }
 0x3db   : > { %2195 = vst [vmem:[#allocation3 + $0x30] sm:$0x3] %v2193_v21  ;;  %v4395_v21 = vld [vmem:[%s6123_s1 + $0x1] sm:$0x1] }
 0x3dd   : > { %v1539_v30 = vpop.permute.xlu1 %1538  ;;  %v1537_v35 = vpop.permute.xlu0 %1536 }
 0x3de   : > { %v1540_v36 = vsel %vm6291_vm13, %v1537_v35, %v1539_v30  ;;  %vm6295_vm13 = vcmask 1022976   ;;  %v2435_v30 = vrot.slane %v2430_v34, %v4928_v12  ;;  %v2567_v35 = vpack.i.b16 %v4417_v2, %v4417_v2  ;;  %v4484_v34 = vld [vmem:[%s6123_s1 + $0x19] sm:$0x1] }
 0x3df   : > { %1542 = vst [vmem:[#allocation3] sm:$0xc] %v1540_v36  ;;  %v4425_v36 = vld [vmem:[%s6123_s1 + $0x9] sm:$0x1] }
 0x3e1   : > { %v1601_v37 = vpop.permute.xlu1 %1600  ;;  %v1599_v38 = vpop.permute.xlu0 %1598 }
 0x3e2   : > { %v1602_v49 = vsel %vm6292_vm0, %v1599_v38, %v1601_v37  ;;  %vm6296_vm0 = vcmask 1006592   ;;  %v2398_v37 = vpack.i.b16 %v4395_v21, %v4395_v21  ;;  %v4400_v38 = vcombine.low %v2435_v30, %v2435_v30 }
 0x3e3   : > { %1604 = vst [vmem:[#allocation3] sm:$0xc0] %v1602_v49  ;;  %v2366_v49 = vld [vmem:[%s6123_s1] sm:$0x1] }
 0x3e5   : > { %v1646_v43 = vpop.permute.xlu1 %1645  ;;  %v1644_v44 = vpop.permute.xlu0 %1643 }
 0x3e6   : > { %v1647_v26 = vsel %vm6293_vm10, %v1644_v44, %v1646_v43  ;;  %vm6297_vm10 = vcmask 949248   ;;  %v2572_v43 = vrot.slane %v2567_v35, %v4928_v12  ;;  %v2629_v44 = vpack.i.b16 %v4425_v36, %v4425_v36  ;;  %v4450_v36 = vld [vmem:[%s6123_s1 + $0x10] sm:$0x1] }
 0x3e7   : > { %1649 = vst [vmem:[#allocation3 + $0x8] sm:$0xc] %v1647_v26  ;;  %v4421_v26 = vld [vmem:[%s6123_s1 + $0x8] sm:$0x1] }
 0x3e9   : > { %v1708_v45 = vpop.permute.xlu1 %1707  ;;  %v1706_v46 = vpop.permute.xlu0 %1705 }
 0x3ea   : > { %v1709_v47 = vsel %vm795_vm1, %v1706_v46, %v1708_v45  ;;  %v2259_v48 = vld [vmem:[#allocation3] sm:$0xff]  ;;  %v2403_v45 = vrot.slane %v2398_v37, %v4928_v12  ;;  %v2368_v46 = vpack.i.b16 %v2366_v49, %v2366_v49  ;;  %v4488_v49 = vld [vmem:[%s6123_s1 + $0x1a] sm:$0x1] }
 0x3eb   : > { %1711 = vst [vmem:[#allocation3 + $0x8] sm:$0xc0] %v1709_v47  ;;  %4667 = vmatpush3.bf16.msra.mxu1 %v2259_v48  ;;  %v2338_v47 = vld [vmem:[%s6303_s6] sm:$0xf]  ;;  %v4418_v48 = vcombine.low %v2572_v43, %v2572_v43 }
 0x3ec   : > { %4668 = vmatprep.subr.bf16.mxu1 %v4819_v57 }
 0x3ed   : > { %v1770_v41 = vpop.permute.xlu1 %1769  ;;  %v1768_v50 = vpop.permute.xlu0 %1767 }
 0x3ee   : > { %v1771_v51 = vsel %vm863_vm9, %v1768_v50, %v1770_v41  ;;  %v4409_v41 = vld [vmem:[%s6123_s1 + $0x5] sm:$0x1]  ;;  %v2634_v50 = vrot.slane %v2629_v44, %v4928_v12 }
 0x3ef   : > { %1773 = vst [vmem:[#allocation3 + $0x10] sm:$0xc] %v1771_v51  ;;  %v2599_v51 = vpack.i.b16 %v4421_v26, %v4421_v26  ;;  %v2822_v26 = vpack.i.b16 %v4450_v36, %v4450_v36 }
 0x3f1   : > { %v1832_v10 = vpop.permute.xlu1 %1831  ;;  %v1830_v24 = vpop.permute.xlu0 %1829 }
 0x3f2   : > { %v1833_v52 = vsel %vm6294_vm15, %v1830_v24, %v1832_v10  ;;  %v2260_v55 = vld [vmem:[#allocation3 + $0x8] sm:$0xff]  ;;  %vm6298_vm15 = vcmask 924672   ;;  %v4446_v10 = vld [vmem:[%s6123_s1 + $0xf] sm:$0x1]  ;;  %v4396_v24 = vcombine.low %v2403_v45, %v2403_v45 }
 0x3f3   : > { %1835 = vst [vmem:[#allocation3 + $0x10] sm:$0xc0] %v1833_v52  ;;  %4669 = vmatpush3.bf16.msra.mxu1 %v2260_v55  ;;  %v2373_v52 = vrot.slane %v2368_v46, %v4928_v12  ;;  %v2505_v55 = vpack.i.b16 %v4409_v41, %v4409_v41  ;;  %v4470_v46 = vld [vmem:[%s6123_s1 + $0x15] sm:$0x1] }
 0x3f4   : > { %4670 = vmatprep.subr.bf16.mxu1 %v4819_v57 }
 0x3f5   : > { %v1931_v56 = vpop.permute.xlu1 %1930  ;;  %v1929_v5 = vpop.permute.xlu0 %1928 }
 0x3f6   : > { %v1932_v42 = vsel %vm6295_vm13, %v1929_v5, %v1931_v56  ;;  %vm6299_vm13 = vcmask 908288   ;;  %v4426_v56 = vcombine.low %v2634_v50, %v2634_v50  ;;  %v4413_v5 = vld [vmem:[%s6123_s1 + $0x6] sm:$0x1]  ;;  %v2827_v50 = vrot.slane %v2822_v26, %v4928_v12 }
 0x3f7   : > { %1934 = vst [vmem:[#allocation3 + $0x18] sm:$0xc0] %v1932_v42  ;;  %v2604_v42 = vrot.slane %v2599_v51, %v4928_v12  ;;  %v2976_v51 = vpack.i.b16 %v4470_v46, %v4470_v46 }
 0x3f9   : > { %v1993_v11 = vpop.permute.xlu1 %1992  ;;  %v1991_v58 = vpop.permute.xlu0 %1990 }
 0x3fa   : > { %v1994_v53 = vsel %vm6296_vm0, %v1991_v58, %v1993_v11  ;;  %v2261_v60 = vld [vmem:[#allocation3 + $0x10] sm:$0xff]  ;;  %vm6300_vm0 = vcmask 883712   ;;  %v2790_v11 = vpack.i.b16 %v4446_v10, %v4446_v10  ;;  %v4442_v58 = vld [vmem:[%s6123_s1 + $0xe] sm:$0x1] }
 0x3fb   : > { %1996 = vst [vmem:[#allocation3 + $0x20] sm:$0xc] %v1994_v53  ;;  %4671 = vmatpush3.bf16.msra.mxu1 %v2261_v60  ;;  %v4392_v53 = vcombine.low %v2373_v52, %v2373_v52  ;;  %v2510_v60 = vrot.slane %v2505_v55, %v4928_v12  ;;  %v4451_v55 = vcombine.low %v2827_v50, %v2827_v50 }
 0x3fc   : > { %4672 = vmatprep.subr.bf16.mxu1 %v4819_v57 }
 0x3fd   : > { %v2055_v61 = vpop.permute.xlu1 %2054  ;;  %v2053_v62 = vpop.permute.xlu0 %2052 }
 0x3fe   : > { %v2056_v63 = vsel %vm6297_vm10, %v2053_v62, %v2055_v61  ;;  %v2262_v6 = vld [vmem:[#allocation3 + $0x18] sm:$0xff]  ;;  %vm6301_vm10 = vcmask 875520   ;;  %v2537_v61 = vpack.i.b16 %v4413_v5, %v4413_v5  ;;  %v4422_v62 = vcombine.low %v2604_v42, %v2604_v42 }
 0x3ff   : > { %2058 = vst [vmem:[#allocation3 + $0x20] sm:$0xc0] %v2056_v63  ;;  %4673 = vmatpush3.bf16.msra.mxu1 %v2262_v6  ;;  %v4433_v63 = vld [vmem:[%s6123_s1 + $0xb] sm:$0x1]  ;;  %v2795_v6 = vrot.slane %v2790_v11, %v4928_v12  ;;  %v4480_v11 = vld [vmem:[%s6123_s1 + $0x18] sm:$0x1] }
 0x400   : > { %4674 = vmatprep.subr.bf16.mxu1 %v4819_v57 }
 0x401   : > { %v2117_v1 = vpop.permute.xlu1 %2116  ;;  %v2115_v3 = vpop.permute.xlu0 %2114 }
 0x402   : > { %v2118_v8 = vsel %vm6298_vm15, %v2115_v3, %v2117_v1  ;;  %v2760_v1 = vpack.i.b16 %v4442_v58, %v4442_v58  ;;  %v4462_v3 = vld [vmem:[%s6123_s1 + $0x13] sm:$0x1]  ;;  %vm6308_vm15 = vcmask 891904  }
 0x403   : > { %2120 = vst [vmem:[#allocation3 + $0x28] sm:$0xc] %v2118_v8  ;;  %v4410_v8 = vcombine.low %v2510_v60, %v2510_v60  ;;  %v3053_v60 = vpack.i.b16 %v4480_v11, %v4480_v11 }
 0x405   : > { %v2162_v54 = vpop.permute.xlu1 %2161  ;;  %v2160_v9 = vpop.permute.xlu0 %2159 }
 0x406   : > { %v2163_v39 = vsel %vm6299_vm13, %v2160_v9, %v2162_v54  ;;  %v2263_v13 = vld [vmem:[#allocation3 + $0x20] sm:$0xff]  ;;  %v2542_v54 = vrot.slane %v2537_v61, %v4928_v12  ;;  %v2691_v9 = vpack.i.b16 %v4433_v63, %v4433_v63  ;;  %vm6310_vm13 = vmmov %vm6300_vm0 }
 0x407   : > { %2165 = vst [vmem:[#allocation3 + $0x28] sm:$0xc0] %v2163_v39  ;;  %4675 = vmatpush3.bf16.msra.mxu1 %v2263_v13  ;;  %v4447_v39 = vcombine.low %v2795_v6, %v2795_v6  ;;  %v4429_v13 = vld [vmem:[%s6123_s1 + $0xa] sm:$0x1] }
 0x408   : > { %4676 = vmatprep.subr.bf16.mxu1 %v4819_v57 }
 0x409   : > { %v2224_v14 = vpop.permute.xlu1 %2223  ;;  %v2222_v16 = vpop.permute.xlu0 %2221 }
 0x40a   : > { %v2225_v15 = vsel %vm6300_vm0, %v2222_v16, %v2224_v14  ;;  %v2765_v14 = vrot.slane %v2760_v1, %v4928_v12  ;;  %v2914_v16 = vpack.i.b16 %v4462_v3, %v4462_v3  ;;  %vm6311_vm0 = vcmask 908288  }
 0x40b   : > { %2227 = vst [vmem:[#allocation3 + $0x30] sm:$0xc] %v2225_v15  ;;  %v4458_v15 = vld [vmem:[%s6123_s1 + $0x12] sm:$0x1] }
 0x40d   : > { %v2254_v17 = vpop.permute.xlu1 %2253  ;;  %v2252_v19 = vpop.permute.xlu0 %2251 }
 0x40e   : > { %v2255_v0 = vsel %vm6301_vm10, %v2252_v19, %v2254_v17  ;;  %v2264_v20 = vld [vmem:[#allocation3 + $0x28] sm:$0xff]  ;;  %v4414_v17 = vcombine.low %v2542_v54, %v2542_v54  ;;  %v2696_v19 = vrot.slane %v2691_v9, %v4928_v12 }
 0x40f   : > { %2257 = vst [vmem:[#allocation3 + $0x30] sm:$0x30] %v2255_v0  ;;  %4677 = vmatpush3.bf16.msra.mxu1 %v2264_v20  ;;  %v2661_v0 = vpack.i.b16 %v4429_v13, %v4429_v13  ;;  %v4443_v20 = vcombine.low %v2765_v14, %v2765_v14 }
 0x410   : > { %4678 = vmatprep.subr.bf16.mxu1 %v4819_v57 }
 0x416   : > { %v2265_v22 = vld [vmem:[#allocation3 + $0x30] sm:$0xff] }
 0x417   : > { %4679 = vmatpush3.bf16.msra.mxu1 %v2265_v22  ;;  %v4437_v22 = vld [vmem:[%s6123_s1 + $0xc] sm:$0x1] }
 0x418   : > { %4680 = vmatprep.subr.bf16.mxu1 %v4819_v57 }
 0x41b   : > { %4681 = vmatpush3.bf16.msra.mxu1 %v4782_v40  ;;  %v2919_v40 = vrot.slane %v2914_v16, %v4928_v12 }
 0x41e   : > { %4683 = vmatmul.mubr.bf16.vlgmr.msra.gmra.mrb[0].mxu1 %v2258_v23  ;;  %v2884_v23 = vpack.i.b16 %v4458_v15, %v4458_v15  ;;  %v2349_v6 = vpop.permute.xlu1 %2348 }
 0x422   : > { %v5660_v1 = vpop.permute.xlu1 %2469 }
 0x4f1   : > { %v5536_v18 = vpop.f32.mrb[0].mxu1 }
 0x4f2   : > { %v2307_v59 = vmul.f32 %v5257_v4, %v5536_v18  ;;  %v4684_v7 = vpop.f32.mrb[1].mxu1 }
 0x4f3   : > { %v2304_v25 = vpop.f32.mrb[2].mxu1  ;;  %v4434_v7 = vcombine.low %v2696_v19, %v2696_v19 }
 0x4f4   : > { %v4685_v29 = vpop.f32.mrb[3].mxu1  ;;  %v2308_v27 = vsel %vm1423_vm12, %v2307_v59, 0.0  ;;  %v2318_v31 = vmul.f32 %v2307_v59, %v2307_v59  ;;  %v4476_v59 = vld [vmem:[%s6123_s1 + $0x17] sm:$0x1]  ;;  %v2666_v25 = vrot.slane %v2661_v0, %v4928_v12 }
 0x4f5   : > { %2309 = vadd.xlane.f32.xlu0 %v2308_v27  ;;  %v2723_v29 = vpack.i.b16 %v4437_v22, %v4437_v22  ;;  %v4463_v27 = vcombine.low %v2919_v40, %v2919_v40  ;;  %v3021_v33 = vpack.i.b16 %v4476_v59, %v4476_v59 }
 0x4f6   : > { %v2319_v28 = vsel %vm1423_vm12, %v2318_v31, 0.0  ;;  %v4454_v31 = vld [vmem:[%s6123_s1 + $0x11] sm:$0x1]  ;;  %v4430_v2 = vcombine.low %v2666_v25, %v2666_v25 }
 0x4f7   : > { %2320 = vadd.xlane.f32.xlu1 %v2319_v28  ;;  %v2889_v28 = vrot.slane %v2884_v23, %v4928_v12  ;;  %v2728_v21 = vrot.slane %v2723_v29, %v4928_v12  ;;  %v2852_v30 = vpack.i.b16 %v4454_v31, %v4454_v31  ;;  %v3026_v37 = vrot.slane %v3021_v33, %v4928_v12 }
 0x4f9   : > { %v4459_v35 = vcombine.low %v2889_v28, %v2889_v28  ;;  %v4438_v43 = vcombine.low %v2728_v21, %v2728_v21  ;;  %v2857_v44 = vrot.slane %v2852_v30, %v4928_v12  ;;  %v4477_v45 = vcombine.low %v3026_v37, %v3026_v37 }
 0x4fa   : > { %v545_v21 = vunpack.c.l.bf16 %v5030_v32 }
 0x4fb   : > { %v4455_v41 = vcombine.low %v2857_v44, %v2857_v44 }
 0x508   : > { %2439 = vrot.lane.b32.xlu1 %v4400_v38, %s6246_s30  ;;  %v3083_v38 = vpack.i.b16 %v4484_v34, %v4484_v34 }
 0x50b   : > { %2341 = vperm.xlu0 %4743, %v2338_v47   ;;  %v3088_v47 = vrot.slane %v3083_v38, %v4928_v12 }
 0x50c   : > { %2576 = vrot.lane.b32.xlu1 %v4418_v48, %s6243_s24  ;;  %v3115_v48 = vpack.i.b16 %v4488_v49, %v4488_v49 }
 0x50d   : > { %v4485_v10 = vcombine.low %v3088_v47, %v3088_v47 }
 0x50e   : > { %v3120_v52 = vrot.slane %v3115_v48, %v4928_v12 }
 0x50f   : > { %2407 = vrot.lane.b32.xlu0 %v4396_v24, %s6247_s17  ;;  %v4466_v24 = vld [vmem:[%s6123_s1 + $0x14] sm:$0x1] }
 0x510   : > { %2638 = vrot.lane.b32.xlu1 %v4426_v56, %s6242_s29  ;;  %v2981_v56 = vrot.slane %v2976_v51, %v4928_v12  ;;  %v2946_v5 = vpack.i.b16 %v4466_v24, %v4466_v24  ;;  %v4489_v42 = vcombine.low %v3120_v52, %v3120_v52 }
 0x512   : > { %v4471_v58 = vcombine.low %v2981_v56, %v2981_v56 }
 0x513   : > { %2377 = vrot.lane.b32.xlu0 %v4392_v53, %s6248_s25  ;;  %v2951_v53 = vrot.slane %v2946_v5, %v4928_v12 }
 0x514   : > { %2608 = vrot.lane.b32.xlu1 %v4422_v62, %s6262_s19  ;;  %v3058_v62 = vrot.slane %v3053_v60, %v4928_v12 }
 0x515   : > { %v4467_v61 = vcombine.low %v2951_v53, %v2951_v53 }
 0x516   : > { %v4481_v63 = vcombine.low %v3058_v62, %v3058_v62 }
 0x517   : > { %2514 = vrot.lane.b32.xlu0 %v4410_v8, %s6244_s16 }
 0x518   : > { %2799 = vrot.lane.b32.xlu1 %v4447_v39, %s6240_s21 }
 0x51b   : > { %2546 = vrot.lane.b32.xlu0 %v4414_v17, %s6261_s11 }
 0x51c   : > { %2769 = vrot.lane.b32.xlu1 %v4443_v20, %s6265_s13 }
 0x51f   : > { %2700 = vrot.lane.b32.xlu0 %v4434_v7, %s6241_s27 }
 0x520   : > { %2923 = vrot.lane.b32.xlu1 %v4463_v27, %s6238_s26 }
 0x523   : > { %2670 = vrot.lane.b32.xlu0 %v4430_v2, %s6263_s14 }
 0x524   : > { %2893 = vrot.lane.b32.xlu1 %v4459_v35, %s6267_s15 }
 0x527   : > { %2732 = vrot.lane.b32.xlu0 %v4438_v43, %s6264_s12 }
 0x528   : > { %3030 = vrot.lane.b32.xlu1 %v4477_v45, %s6236_s20 }
 0x52b   : > { %2861 = vrot.lane.b32.xlu0 %v4455_v41, %s6239_s22 }
 0x52c   : > { %3092 = vrot.lane.b32.xlu1 %v4485_v10, %s6269_s18 }
 0x52f   : > { %2831 = vrot.lane.b32.xlu0 %v4451_v55, %s6266_s2 }
 0x530   : > { %3124 = vrot.lane.b32.xlu1 %v4489_v42, %s6271_s4 }
 0x533   : > { %2985 = vrot.lane.b32.xlu0 %v4471_v58, %s6237_s23 }
 0x537   : > { %2955 = vrot.lane.b32.xlu0 %v4467_v61, %s6304_s10 }
 0x53b   : > { %3062 = vrot.lane.b32.xlu0 %v4481_v63, %s6305_s3 }
 0x582   : > { %v2310_v3 = vpop.xlane.xlu0 %2309 }
 0x583   : > { %v2311_v8 = vsel %vm1423_vm12, %v2310_v3, 0.0 }
 0x584   : > { %v2312_v54 = vrot.slane %v2311_v8, 4  ;;  %v2321_v9 = vpop.xlane.xlu1 %2320 }
 0x585   : > { %v2322_v39 = vsel %vm1423_vm12, %v2321_v9, 0.0  ;;  %vm6306_vm12 = vmmov %vm6301_vm10  ;;  %vm6312_vm10 = vcmask 924672  }
 0x586   : > { %v2313_v13 = vadd.f32 %v2312_v54, %v2311_v8  ;;  %v2323_v14 = vrot.slane %v2322_v39, 4 }
 0x588   : > { %v2314_v16 = vrot.slane %v2313_v13, 2  ;;  %v2324_v15 = vadd.f32 %v2323_v14, %v2322_v39  ;;  %v2440_v51 = vpop.permute.xlu1 %2439 }
 0x589   : > { %v2441_v53 = vrot.slane %v2440_v51, 4 }
 0x58a   : > { %v2315_v17 = vadd.f32 %v2314_v16, %v2313_v13  ;;  %v2325_v19 = vrot.slane %v2324_v15, 2  ;;  %v2342_v2 = vpop.permute.xlu0 %2341 }
 0x58b   : > { %v2442_v13 = vsel %vm6308_vm15, %v2441_v53, %v2440_v51  ;;  %vm6314_vm15 = vcmask 1006592  }
 0x58c   : > { %v2316_v0 = vrot.slane %v2315_v17, 1  ;;  %v2326_v20 = vadd.f32 %v2325_v19, %v2324_v15  ;;  %v5671_v24 = vpop.permute.xlu1 %2576 }
 0x58e   : > { %v2317_v22 = vadd.f32 %v2316_v0, %v2315_v17  ;;  %v2327_v40 = vrot.slane %v2326_v20, 1  ;;  %v5667_v48 = vpop.permute.xlu0 %2407 }
 0x590   : > { %v2329_v23 = vmul.f32 0.00390625, %v2317_v22  ;;  %v2328_v59 = vadd.f32 %v2327_v40, %v2326_v20  ;;  %v5675_v5 = vpop.permute.xlu1 %2638 }
 0x592   : > { %v2331_v7 = vmul.f32 %v2329_v23, %v2329_v23  ;;  %v2330_v25 = vmul.f32 0.00390625, %v2328_v59  ;;  %v2336_v28 = vsub.f32 %v5536_v18, %v2329_v23  ;;  %v2378_v32 = vpop.permute.xlu0 %2377 }
 0x593   : > { %v2379_v55 = vrot.slane %v2378_v32, 4 }
 0x594   : > { %v2332_v29 = vsub.f32 %v2330_v25, %v2331_v7  ;;  %v2609_v8 = vpop.permute.xlu1 %2608 }
 0x595   : > { %v2380_v61 = vsel %vm6306_vm12, %v2379_v55, %v2378_v32  ;;  %v2610_v20 = vrot.slane %v2609_v8, 4  ;;  %vm6313_vm12 = vcmask 949248  }
 0x596   : > { %v2333_v27 = vmax.f32 %v2332_v29, 0.0  ;;  %v5669_v50 = vpop.permute.xlu0 %2514 }
 0x597   : > { %v2611_v29 = vsel %vm815_vm3, %v2610_v20, %v2609_v8 }
 0x598   : > { %v2334_v31 = vadd.f32 1e-05, %v2333_v27  ;;  %v5684_v40 = vpop.permute.xlu1 %2799 }
 0x59a   : > { %4771 = vrsqrt.f32 %v2334_v31  ;;  %v2547_v10 = vpop.permute.xlu0 %2546 }
 0x59b   : > { %v2548_v14 = vrot.slane %v2547_v10, 4 }
 0x59d   : > { %v2549_v0 = vsel %vm747_vm2, %v2548_v14, %v2547_v10  ;;  %v2409_v14 = vrot.slane %v5667_v48, 4 }
 0x59e   : > { %v5673_v52 = vpop.permute.xlu0 %2700 }
 0x5a2   : > { %v2671_v42 = vpop.permute.xlu0 %2670 }
 0x5a3   : > { %v2672_v27 = vrot.slane %v2671_v42, 4 }
 0x5a4   : > { %v4772_v33 = vpop.eup %4771 }
 0x5a5   : > { %v2337_v34 = vmul.f32 %v4772_v33, %v2336_v28 }
 0x5a6   : > { %v2733_v54 = vpop.permute.xlu0 %2732 }
 0x5a7   : > { %v2344_v30 = vmul.f32 %v2342_v2, %v2337_v34  ;;  %v2770_v34 = vpop.permute.xlu1 %2769 }
 0x5a9   : > { %v2351_v35 = vadd.f32 %v2349_v6, %v2344_v30  ;;  %v2673_v30 = vsel %vm883_vm4, %v2672_v27, %v2671_v42  ;;  %v2471_v27 = vrot.slane %v5660_v1, 4 }
 0x5aa   : > { %v5686_v23 = vpop.permute.xlu0 %2861 }
 0x5ab   : > { %v2352_v36 = vadd.f32 %v2351_v35, %v545_v21  ;;  %v2734_v35 = vrot.slane %v2733_v54, 4 }
 0x5ad   : > { %v2354_v37 = vmul.f32 0.044715, %v2352_v36  ;;  %v2353_v45 = vmul.f32 0.5, %v2352_v36 }
 0x5ae   : > { %v2832_v2 = vpop.permute.xlu0 %2831 }
 0x5af   : > { %v2355_v38 = vmul.f32 %v2354_v37, %v2352_v36  ;;  %v2833_v51 = vrot.slane %v2832_v2, 4 }
 0x5b1   : > { %v2356_v49 = vmul.f32 %v2355_v38, %v2352_v36 }
 0x5b3   : > { %v2357_v43 = vadd.f32 %v2356_v49, %v2352_v36  ;;  %v2771_v49 = vrot.slane %v2770_v34, 4 }
 0x5b5   : > { %v2358_v44 = vmul.f32 0.7978846, %v2357_v43  ;;  %v2772_v32 = vsel %vm964_vm6, %v2771_v49, %v2770_v34  ;;  %v2516_v34 = vrot.slane %v5669_v50, 4 }
 0x5b7   : > { %4773 = vtanh.f32 %v2358_v44  ;;  %v2735_v44 = vsel %vm951_vm5, %v2734_v35, %v2733_v54  ;;  %v2517_v49 = vsel %vm6312_vm10, %v2516_v34, %v5669_v50  ;;  %vm6317_vm10 = vcmask 121856  }
 0x5c1   : > { %v4774_v26 = vpop.eup %4773 }
 0x5c2   : > { %v2360_v46 = vadd.f32 1.0, %v4774_v26 }
 0x5c4   : > { %v2361_v47 = vmul.f32 %v2360_v46, %v2353_v45  ;;  %v5697_v45 = vpop.permute.xlu1 %2923  ;;  %v5699_v46 = vpop.permute.xlu0 %2985 }
 0x5c6   : > { %v2362_v18 = vmul.f32 %v5257_v4, %v2361_v47 }
 0x5c8   : > { %v2363_v41 = vpack.c.bf16 %v2362_v18, %v2362_v18  ;;  %v2894_v42 = vpop.permute.xlu1 %2893 }
 0x5ca   : > { %2364 = vst [vmem:[#allocation2 + $0x4] sm:$0x3] %v2363_v41 }
 0x5d1   : > { %v2489_v56 = vld [vmem:[#allocation2] sm:$0x33] }
 0x5d2   : > { %v4759_v11 = vld [vmem:[#allocation2 + $0x4] ss:$0 sps:$4 sm:$0x33]   ;;  %v4408_v58 = vcombine.high %v2489_v56, %v2489_v56  ;;  %v4407_v63 = vcombine.low %v2489_v56, %v2489_v56 }
 0x5d3   : > { %v2365_v60 = vld [vmem:[#allocation2] sm:$0x33]  ;;  %v2754_v6 = vrot.slane %v4759_v11, 6  ;;  %v2956_v11 = vpop.permute.xlu0 %2955 }
 0x5d4   : > { %v3005_v62 = vld [vmem:[#allocation2 + $0x4] sm:$0x33]  ;;  %2497 = vrot.lane.b32.xlu1 %v4408_v58, %s6307_s8  ;;  %v2382_v3 = vmul.bf16 %v2380_v61, %v2365_v60  ;;  %2495 = vrot.lane.b32.xlu0 %v4407_v63, %s6307_s8  ;;  %v2895_v58 = vrot.slane %v2894_v42, 4  ;;  %v2834_v60 = vsel %vm896_vm7, %v2833_v51, %v2832_v2  ;;  %v2957_v8 = vrot.slane %v2956_v11, 4  ;;  %s6342_s8 = smov 16  }
 0x5d5   : > { %v4475_v9 = vcombine.high %v3005_v62, %v3005_v62  ;;  %v2427_v39 = vld [vmem:[#allocation2] sm:$0x33]  ;;  %2756 = vst [vmem:[#allocation3 + $0x18] sm:$0xc] %v2754_v6  ;;  %v4474_v16 = vcombine.low %v3005_v62, %v3005_v62 }
 0x5d6   : > { %v2444_v15 = vmul.bf16 %v2442_v13, %v2427_v39  ;;  %v4394_v17 = vcombine.high %v2382_v3, %v2382_v3  ;;  %v2534_v19 = vld [vmem:[#allocation2] sm:$0x33]  ;;  %v4393_v22 = vcombine.low %v2382_v3, %v2382_v3  ;;  %v2896_v3 = vsel %vm828_vm8, %v2895_v58, %v2894_v42 }
 0x5d7   : > { %v2551_v7 = vmul.bf16 %v2549_v0, %v2534_v19  ;;  %v2596_v25 = vld [vmem:[#allocation2] sm:$0x33]  ;;  %v2702_v58 = vrot.slane %v5673_v52, 4 }
 0x5d8   : > { %3013 = vrot.lane.b32.xlu1 %v4475_v9, %s6309_s9  ;;  %3011 = vrot.lane.b32.xlu0 %v4474_v16, %s6309_s9  ;;  %v4402_v59 = vcombine.high %v2444_v15, %v2444_v15  ;;  %v4401_v31 = vcombine.low %v2444_v15, %v2444_v15  ;;  %v2613_v33 = vmul.bf16 %v2611_v29, %v2596_v25  ;;  %v2658_v21 = vld [vmem:[#allocation2] sm:$0x33]  ;;  %v3063_v9 = vpop.permute.xlu0 %3062  ;;  %s6340_s9 = smov 125  }
 0x5d9   : > { %v4416_v28 = vcombine.high %v2551_v7, %v2551_v7  ;;  %v4415_v36 = vcombine.low %v2551_v7, %v2551_v7  ;;  %v2675_v38 = vmul.bf16 %v2673_v30, %v2658_v21  ;;  %v2720_v43 = vld [vmem:[#allocation2] sm:$0x33]  ;;  %v2958_v15 = vsel %vm760_vm11, %v2957_v8, %v2956_v11 }
 0x5da   : > { %v4424_v37 = vcombine.high %v2613_v33, %v2613_v33  ;;  %v4423_v26 = vcombine.low %v2613_v33, %v2613_v33  ;;  %v2737_v18 = vmul.bf16 %v2735_v44, %v2720_v43  ;;  %v2757_v41 = vld [vmem:[#allocation2 + $0x4] sm:$0x33] }
 0x5db   : > { %v4432_v47 = vcombine.high %v2675_v38, %v2675_v38  ;;  %v4431_v10 = vcombine.low %v2675_v38, %v2675_v38  ;;  %v2774_v55 = vmul.bf16 %v2772_v32, %v2757_v41  ;;  %v2819_v53 = vld [vmem:[#allocation2 + $0x4] sm:$0x33]  ;;  %v2640_v32 = vrot.slane %v5675_v5, 4 }
 0x5dc   : > { %2390 = vrot.lane.b32.xlu1 %v4394_v17, %s6271_s4  ;;  %2388 = vrot.lane.b32.xlu0 %v4393_v22, %s6271_s4  ;;  %v4440_v56 = vcombine.high %v2737_v18, %v2737_v18  ;;  %v4439_v61 = vcombine.low %v2737_v18, %v2737_v18  ;;  %v2836_v63 = vmul.bf16 %v2834_v60, %v2819_v53  ;;  %v2881_v6 = vld [vmem:[#allocation2 + $0x4] sm:$0x33]  ;;  %v3064_v17 = vrot.slane %v3063_v9, 4 }
 0x5dd   : > { %v4445_v62 = vcombine.high %v2774_v55, %v2774_v55  ;;  %v4444_v54 = vcombine.low %v2774_v55, %v2774_v55  ;;  %v2898_v39 = vmul.bf16 %v2896_v3, %v2881_v6  ;;  %v2943_v16 = vld [vmem:[#allocation2 + $0x4] sm:$0x33]  ;;  %v2641_v11 = vsel %vm6314_vm15, %v2640_v32, %v5675_v5 }
 0x5de   : > { %v4453_v13 = vcombine.high %v2836_v63, %v2836_v63  ;;  %v4452_v19 = vcombine.low %v2836_v63, %v2836_v63  ;;  %v2960_v20 = vmul.bf16 %v2958_v15, %v2943_v16  ;;  %v2395_v22 = vld [vmem:[#allocation2] sm:$0x33]  ;;  %v3065_v25 = vsel %vm643_vm14, %v3064_v17, %v3063_v9 }
 0x5df   : > { %v4461_v0 = vcombine.high %v2898_v39, %v2898_v39  ;;  %v3050_v7 = vld [vmem:[#allocation2 + $0x4] sm:$0x33]  ;;  %v4460_v29 = vcombine.low %v2898_v39, %v2898_v39  ;;  %v2801_v3 = vrot.slane %v5684_v40, 4  ;;  %v2863_v16 = vrot.slane %v5686_v23, 4 }
 0x5e0   : > { %2452 = vrot.lane.b32.xlu1 %v4402_v59, %s6305_s3  ;;  %2450 = vrot.lane.b32.xlu0 %v4401_v31, %s6305_s3  ;;  %v2410_v59 = vsel %vm6310_vm13, %v2409_v14, %v5667_v48  ;;  %v3067_v33 = vmul.bf16 %v3065_v25, %v3050_v7  ;;  %v2457_v2 = vld [vmem:[#allocation2] sm:$0x33]  ;;  %v4468_v21 = vcombine.low %v2960_v20, %v2960_v20  ;;  %vm6315_vm13 = vcmask 1022976  }
 0x5e1   : > { %v2412_v31 = vmul.bf16 %v2410_v59, %v2395_v22  ;;  %v2472_v48 = vsel %vm6311_vm0, %v2471_v27, %v5660_v1  ;;  %v2502_v38 = vld [vmem:[#allocation2] sm:$0x33]  ;;  %v2703_v6 = vsel %vm6315_vm13, %v2702_v58, %v5673_v52  ;;  %vm6316_vm0 = vcmask 23552  }
 0x5e2   : > { %v4483_v35 = vcombine.high %v3067_v33, %v3067_v33  ;;  %v4482_v44 = vcombine.low %v3067_v33, %v3067_v33  ;;  %v2564_v18 = vld [vmem:[#allocation2] sm:$0x33]  ;;  %v2802_v14 = vsel %vm6316_vm0, %v2801_v3, %v5684_v40  ;;  %v2864_v59 = vsel %vm863_vm9, %v2863_v16, %v5686_v23 }
 0x5e3   : > { %v4398_v30 = vcombine.high %v2412_v31, %v2412_v31  ;;  %v4397_v43 = vcombine.low %v2412_v31, %v2412_v31  ;;  %v2626_v42 = vld [vmem:[#allocation2] sm:$0x33]  ;;  %v2987_v33 = vrot.slane %v5699_v46, 4  ;;  %vm6319_vm15 = vcmask 162816  }
 0x5e4   : > { %2559 = vrot.lane.b32.xlu1 %v4416_v28, %s6304_s10  ;;  %2557 = vrot.lane.b32.xlu0 %v4415_v36, %s6304_s10  ;;  %v4469_v28 = vcombine.high %v2960_v20, %v2960_v20  ;;  %v2474_v36 = vmul.bf16 %v2472_v48, %v2457_v2  ;;  %v2688_v63 = vld [vmem:[#allocation2] sm:$0x33]  ;;  %v2925_v20 = vrot.slane %v5697_v45, 4  ;;  %vm6320_vm13 = vcmask 171008  }
 0x5e5   : > { %v2418_v51 = vrot.slane %v4397_v43, 6  ;;  %v2705_v39 = vmul.bf16 %v2703_v6, %v2688_v63  ;;  %v2849_v22 = vld [vmem:[#allocation2 + $0x4] sm:$0x33]  ;;  %vm6323_vm0 = vcmask 130048  }
 0x5e6   : > { %v4406_v1 = vcombine.high %v2474_v36, %v2474_v36  ;;  %v2866_v27 = vmul.bf16 %v2864_v59, %v2849_v22  ;;  %v2911_v31 = vld [vmem:[#allocation2 + $0x4] sm:$0x33] }
 0x5e7   : > { %v4435_v25 = vcombine.low %v2705_v39, %v2705_v39  ;;  %v3112_v3 = vld [vmem:[#allocation2 + $0x4] sm:$0x33] }
 0x5e8   : > { %2621 = vrot.lane.b32.xlu1 %v4424_v37, %s6267_s15  ;;  %2619 = vrot.lane.b32.xlu0 %v4423_v26, %s6267_s15  ;;  %v2578_v37 = vrot.slane %v5671_v24, 4  ;;  %v2419_v26 = vrot.slane %v4398_v30, 6  ;;  %v4457_v30 = vcombine.high %v2866_v27, %v2866_v27 }
 0x5e9   : > { %v2711_v34 = vrot.slane %v4435_v25, 2 }
 0x5ea   : > { %v2579_v41 = vsel %vm6313_vm12, %v2578_v37, %v5671_v24  ;;  %v2988_v37 = vsel %vm6317_vm10, %v2987_v33, %v5699_v46  ;;  %v2873_v43 = vrot.slane %v4457_v30, 6  ;;  %vm6318_vm12 = vcmask 138240  }
 0x5eb   : > { %v2581_v50 = vmul.bf16 %v2579_v41, %v2564_v18  ;;  %vm6324_vm10 = vcmask 916480  }
 0x5ec   : > { %2683 = vrot.lane.b32.xlu1 %v4432_v47, %s6266_s2  ;;  %2681 = vrot.lane.b32.xlu0 %v4431_v10, %s6266_s2  ;;  %v2519_v47 = vmul.bf16 %v2517_v49, %v2502_v38  ;;  %v4405_v10 = vcombine.low %v2474_v36, %v2474_v36  ;;  %v2973_v36 = vld [vmem:[#allocation2 + $0x4] sm:$0x33]  ;;  %v4456_v49 = vcombine.low %v2866_v27, %v2866_v27 }
 0x5ed   : > { %v4420_v60 = vcombine.high %v2581_v50, %v2581_v50  ;;  %v4419_v8 = vcombine.low %v2581_v50, %v2581_v50  ;;  %v3080_v50 = vld [vmem:[#allocation2 + $0x4] sm:$0x33] }
 0x5ee   : > { %v4412_v55 = vcombine.high %v2519_v47, %v2519_v47  ;;  %v4411_v53 = vcombine.low %v2519_v47, %v2519_v47  ;;  %v2480_v24 = vrot.slane %v4405_v10, 2  ;;  %v3018_v47 = vld [vmem:[#allocation2 + $0x4] sm:$0x33]  ;;  %v2872_v32 = vrot.slane %v4456_v49, 6 }
 0x5ef   : > { %v2588_v5 = vrot.slane %v4420_v60, 2  ;;  %v2587_v15 = vrot.slane %v4419_v8, 2 }
 0x5f0   : > { %2745 = vrot.lane.b32.xlu1 %v4440_v56, %s6265_s13  ;;  %2743 = vrot.lane.b32.xlu0 %v4439_v61, %s6265_s13  ;;  %v2481_v56 = vrot.slane %v4406_v1, 2  ;;  %v2526_v61 = vrot.slane %v4412_v55, 6  ;;  %s6339_s13 = sld [smem:[#allocation14_spill]] }
 0x5f4   : > { %2782 = vrot.lane.b32.xlu1 %v4445_v62, %s6264_s12  ;;  %2780 = vrot.lane.b32.xlu0 %v4444_v54, %s6264_s12  ;;  %v2643_v62 = vmul.bf16 %v2641_v11, %v2626_v42  ;;  %v2525_v54 = vrot.slane %v4411_v53, 6 }
 0x5f6   : > { %v4428_v9 = vcombine.high %v2643_v62, %v2643_v62  ;;  %v4427_v17 = vcombine.low %v2643_v62, %v2643_v62 }
 0x5f8   : > { %2844 = vrot.lane.b32.xlu1 %v4453_v13, %s6263_s14  ;;  %2842 = vrot.lane.b32.xlu0 %v4452_v19, %s6263_s14  ;;  %v2787_v13 = vld [vmem:[#allocation2 + $0x4] sm:$0x33]  ;;  %v2650_v52 = vrot.slane %v4428_v9, 6  ;;  %v4436_v19 = vcombine.high %v2705_v39, %v2705_v39  ;;  %v2649_v7 = vrot.slane %v4427_v17, 6  ;;  %v4554_v17 = vld [vmem:[%s6123_s1 + $0x11] sm:$0x1] }
 0x5fa   : > { %v2712_v40 = vrot.slane %v4436_v19, 2 }
 0x5fc   : > { %2906 = vrot.lane.b32.xlu1 %v4461_v0, %s6262_s19  ;;  %2904 = vrot.lane.b32.xlu0 %v4460_v29, %s6262_s19  ;;  %v2804_v0 = vmul.bf16 %v2802_v14, %v2787_v13 }
 0x5fe   : > { %v4449_v29 = vcombine.high %v2804_v0, %v2804_v0  ;;  %v4448_v2 = vcombine.low %v2804_v0, %v2804_v0 }
 0x600   : > { %2968 = vrot.lane.b32.xlu1 %v4469_v28, %s6261_s11  ;;  %2966 = vrot.lane.b32.xlu0 %v4468_v21, %s6261_s11  ;;  %v2926_v28 = vsel %vm795_vm1, %v2925_v20, %v5697_v45  ;;  %v3031_v21 = vpop.permute.xlu1 %3030  ;;  %v2811_v23 = vrot.slane %v4449_v29, 2  ;;  %v2810_v38 = vrot.slane %v4448_v2, 2 }
 0x601   : > { %v2928_v48 = vmul.bf16 %v2926_v28, %v2911_v31 }
 0x603   : > { %v4465_v45 = vcombine.high %v2928_v48, %v2928_v48  ;;  %v4464_v41 = vcombine.low %v2928_v48, %v2928_v48 }
 0x604   : > { %3075 = vrot.lane.b32.xlu1 %v4483_v35, %s6246_s30  ;;  %3073 = vrot.lane.b32.xlu0 %v4482_v44, %s6246_s30  ;;  %v3032_v35 = vrot.slane %v3031_v21, 4  ;;  %v2990_v44 = vmul.bf16 %v2988_v37, %v2973_v36 }
 0x606   : > { %v3033_v1 = vsel %vm6318_vm12, %v3032_v35, %v3031_v21  ;;  %v4473_v10 = vcombine.high %v2990_v44, %v2990_v44  ;;  %v4472_v42 = vcombine.low %v2990_v44, %v2990_v44  ;;  %vm6325_vm12 = vmmov %vm6320_vm13 }
 0x607   : > { %v3035_v46 = vmul.bf16 %v3033_v1, %v3018_v47 }
 0x608   : > { %2422 = vrot.lane.b32.xlu1 %v2419_v26, %s6269_s18  ;;  %2420 = vrot.lane.b32.xlu0 %v2418_v51, %s6269_s18  ;;  %v3093_v26 = vpop.permute.xlu1 %3092  ;;  %v2935_v51 = vrot.slane %v4465_v45, 2  ;;  %v2997_v53 = vrot.slane %v4473_v10, 6  ;;  %v2996_v62 = vrot.slane %v4472_v42, 6 }
 0x609   : > { %v3094_v18 = vrot.slane %v3093_v26, 4  ;;  %v4479_v58 = vcombine.high %v3035_v46, %v3035_v46 }
 0x60b   : > { %v3095_v55 = vsel %vm6319_vm15, %v3094_v18, %v3093_v26  ;;  %v3042_v63 = vrot.slane %v4479_v58, 2  ;;  %vm6326_vm15 = vcmask 891904  }
 0x60c   : > { %2484 = vrot.lane.b32.xlu1 %v2481_v56, %s6236_s20  ;;  %2482 = vrot.lane.b32.xlu0 %v2480_v24, %s6236_s20  ;;  %v2934_v56 = vrot.slane %v4464_v41, 2  ;;  %v3125_v11 = vpop.permute.xlu1 %3124  ;;  %v3097_v24 = vmul.bf16 %v3095_v55, %v3080_v50 }
 0x60d   : > { %v3126_v60 = vrot.slane %v3125_v11, 4 }
 0x60e   : > { %v4487_v6 = vcombine.high %v3097_v24, %v3097_v24 }
 0x60f   : > { %v3127_v8 = vsel %vm6320_vm13, %v3126_v60, %v3125_v11  ;;  %vm6327_vm13 = vcmask 162816  }
 0x610   : > { %2529 = vrot.lane.b32.xlu1 %v2526_v61, %s6237_s23  ;;  %2527 = vrot.lane.b32.xlu0 %v2525_v54, %s6237_s23  ;;  %v4478_v61 = vcombine.low %v3035_v46, %v3035_v46  ;;  %v3104_v9 = vrot.slane %v4487_v6, 6  ;;  %v3129_v39 = vmul.bf16 %v3127_v8, %v3112_v3 }
 0x612   : > { %v3041_v54 = vrot.slane %v4478_v61, 2  ;;  %v4491_v14 = vcombine.high %v3129_v39, %v3129_v39  ;;  %v4490_v16 = vcombine.low %v3129_v39, %v3129_v39 }
 0x614   : > { %2591 = vrot.lane.b32.xlu1 %v2588_v5, %s6238_s26  ;;  %2589 = vrot.lane.b32.xlu0 %v2587_v15, %s6238_s26  ;;  %v4486_v5 = vcombine.low %v3097_v24, %v3097_v24  ;;  %v3226_v15 = vld [vmem:[%s6322_s0] sm:$0xff] }
 0x616   : > { %v3103_v13 = vrot.slane %v4486_v5, 6 }
 0x618   : > { %2653 = vrot.lane.b32.xlu1 %v2650_v52, %s6239_s22  ;;  %2651 = vrot.lane.b32.xlu0 %v2649_v7, %s6239_s22  ;;  %v3717_v52 = vpack.i.b16 %v4554_v17, %v4554_v17 }
 0x61a   : > { %v3722_v19 = vrot.slane %v3717_v52, %v4928_v12 }
 0x61c   : > { %2715 = vrot.lane.b32.xlu1 %v2712_v40, %s6240_s21  ;;  %2713 = vrot.lane.b32.xlu0 %v2711_v34, %s6240_s21  ;;  %v4555_v0 = vcombine.low %v3722_v19, %v3722_v19 }
 0x620   : > { %2814 = vrot.lane.b32.xlu1 %v2811_v23, %s6241_s27  ;;  %2812 = vrot.lane.b32.xlu0 %v2810_v38, %s6241_s27  ;;  %s6343_s27 = smov 112  }
 0x624   : > { %2876 = vrot.lane.b32.xlu1 %v2873_v43, %s6242_s29  ;;  %2874 = vrot.lane.b32.xlu0 %v2872_v32, %s6242_s29 }
 0x628   : > { %2938 = vrot.lane.b32.xlu1 %v2935_v51, %s6243_s24  ;;  %2936 = vrot.lane.b32.xlu0 %v2934_v56, %s6243_s24 }
 0x62c   : > { %3000 = vrot.lane.b32.xlu1 %v2997_v53, %s6244_s16  ;;  %2998 = vrot.lane.b32.xlu0 %v2996_v62, %s6244_s16 }
 0x630   : > { %3045 = vrot.lane.b32.xlu1 %v3042_v63, %s6321_s5  ;;  %3043 = vrot.lane.b32.xlu0 %v3041_v54, %s6321_s5 }
 0x634   : > { %3107 = vrot.lane.b32.xlu1 %v3104_v9, %s6247_s17  ;;  %3105 = vrot.lane.b32.xlu0 %v3103_v13, %s6247_s17 }
 0x638   : > { %3137 = vrot.lane.b32.xlu1 %v4491_v14, %s6248_s25  ;;  %3135 = vrot.lane.b32.xlu0 %v4490_v16, %s6248_s25 }
 0x63c   : > { %3229 = vperm.xlu1 %4744, %v3226_v15  }
 0x640   : > { %3726 = vrot.lane.b32.xlu1 %v4555_v0, %s6239_s22 }
 0x646   : > { %v2498_v20 = vpop.permute.xlu1 %2497  ;;  %v2496_v22 = vpop.permute.xlu0 %2495 }
 0x647   : > { %v2499_v59 = vsel %vm6323_vm0, %v2496_v22, %v2498_v20  ;;  %vm6328_vm0 = vcmask 138240  }
 0x648   : > { %2501 = vst [vmem:[#allocation3 + $0x8] sm:$0x3] %v2499_v59 }
 0x64a   : > { %v3014_v7 = vpop.permute.xlu1 %3013  ;;  %v3012_v25 = vpop.permute.xlu0 %3011 }
 0x64b   : > { %v3015_v40 = vsel %vm6324_vm10, %v3012_v25, %v3014_v7  ;;  %vm6329_vm10 = vcmask 121856  }
 0x64c   : > { %3017 = vst [vmem:[#allocation3 + $0x28] sm:$0x30] %v3015_v40 }
 0x64e   : > { %v2391_v29 = vpop.permute.xlu1 %2390  ;;  %v2389_v27 = vpop.permute.xlu0 %2388 }
 0x64f   : > { %v2392_v31 = vsel %vm6325_vm12, %v2389_v27, %v2391_v29  ;;  %vm6330_vm12 = vcmask 23552  }
 0x650   : > { %2394 = vst [vmem:[#allocation3] sm:$0x3] %v2392_v31 }
 0x652   : > { %v2453_v28 = vpop.permute.xlu1 %2452  ;;  %v2451_v33 = vpop.permute.xlu0 %2450 }
 0x653   : > { %v2454_v34 = vsel %vm643_vm14, %v2451_v33, %v2453_v28 }
 0x654   : > { %2456 = vst [vmem:[#allocation3] sm:$0x30] %v2454_v34 }
 0x656   : > { %v2560_v2 = vpop.permute.xlu1 %2559  ;;  %v2558_v21 = vpop.permute.xlu0 %2557 }
 0x657   : > { %v2561_v23 = vsel %vm760_vm11, %v2558_v21, %v2560_v2 }
 0x658   : > { %2563 = vst [vmem:[#allocation3 + $0x8] sm:$0x30] %v2561_v23 }
 0x65a   : > { %v2622_v48 = vpop.permute.xlu1 %2621  ;;  %v2620_v30 = vpop.permute.xlu0 %2619 }
 0x65b   : > { %v2623_v35 = vsel %vm828_vm8, %v2620_v30, %v2622_v48 }
 0x65c   : > { %2625 = vst [vmem:[#allocation3 + $0x10] sm:$0x3] %v2623_v35 }
 0x65e   : > { %v2684_v36 = vpop.permute.xlu1 %2683  ;;  %v2682_v37 = vpop.permute.xlu0 %2681 }
 0x65f   : > { %v2685_v38 = vsel %vm896_vm7, %v2682_v37, %v2684_v36 }
 0x660   : > { %2687 = vst [vmem:[#allocation3 + $0x10] sm:$0x30] %v2685_v38 }
 0x662   : > { %v2746_v49 = vpop.permute.xlu1 %2745  ;;  %v2744_v45 = vpop.permute.xlu0 %2743 }
 0x663   : > { %v2747_v43 = vsel %vm964_vm6, %v2744_v45, %v2746_v49 }
 0x664   : > { %2749 = vst [vmem:[#allocation3 + $0x18] sm:$0x3] %v2747_v43 }
 0x666   : > { %v2783_v44 = vpop.permute.xlu1 %2782  ;;  %v2781_v26 = vpop.permute.xlu0 %2780 }
 0x667   : > { %v2784_v47 = vsel %vm951_vm5, %v2781_v26, %v2783_v44  ;;  %v5822_v44 = vld [vmem:[#allocation3 + $0x38] sm:$0xff]  ;;  %v3142_v26 = vld [vmem:[%s6338_s7] sm:$0xf] }
 0x668   : > { %2786 = vst [vmem:[#allocation3 + $0x18] sm:$0x30] %v2784_v47 }
 0x66a   : > { %v2845_v1 = vpop.permute.xlu1 %2844  ;;  %v2843_v18 = vpop.permute.xlu0 %2842 }
 0x66b   : > { %v2846_v41 = vsel %vm883_vm4, %v2843_v18, %v2845_v1 }
 0x66c   : > { %2848 = vst [vmem:[#allocation3 + $0x20] sm:$0x3] %v2846_v41 }
 0x66e   : > { %v2907_v32 = vpop.permute.xlu1 %2906  ;;  %v2905_v51 = vpop.permute.xlu0 %2904 }
 0x66f   : > { %v2908_v46 = vsel %vm815_vm3, %v2905_v51, %v2907_v32 }
 0x670   : > { %2910 = vst [vmem:[#allocation3 + $0x20] sm:$0x30] %v2908_v46 }
 0x672   : > { %v2969_v10 = vpop.permute.xlu1 %2968  ;;  %v2967_v50 = vpop.permute.xlu0 %2966 }
 0x673   : > { %v2970_v55 = vsel %vm747_vm2, %v2967_v50, %v2969_v10  ;;  %v4562_v10 = vld [vmem:[%s6123_s1 + $0x13] sm:$0x1]  ;;  %v4550_v50 = vld [vmem:[%s6123_s1 + $0x10] sm:$0x1] }
 0x674   : > { %2972 = vst [vmem:[#allocation3 + $0x28] sm:$0x3] %v2970_v55 }
 0x676   : > { %v3076_v56 = vpop.permute.xlu1 %3075  ;;  %v3074_v42 = vpop.permute.xlu0 %3073 }
 0x677   : > { %v3077_v11 = vsel %vm6326_vm15, %v3074_v42, %v3076_v56  ;;  %vm6331_vm15 = vcmask 1022976   ;;  %v3777_v56 = vpack.i.b16 %v4562_v10, %v4562_v10  ;;  %v4503_v42 = vld [vmem:[%s6123_s1 + $0x3] sm:$0x1] }
 0x678   : > { %3079 = vst [vmem:[#allocation3 + $0x30] sm:$0x3] %v3077_v11  ;;  %v3687_v11 = vpack.i.b16 %v4550_v50, %v4550_v50 }
 0x67a   : > { %v2423_v58 = vpop.permute.xlu1 %2422  ;;  %v2421_v53 = vpop.permute.xlu0 %2420 }
 0x67b   : > { %v2424_v24 = vsel %vm6327_vm13, %v2421_v53, %v2423_v58  ;;  %vm6332_vm13 = vcmask 1006592   ;;  %v3246_v58 = vld [vmem:[%s6123_s1] sm:$0x1] }
 0x67c   : > { %2426 = vst [vmem:[#allocation3] sm:$0xc] %v2424_v24  ;;  %v3782_v24 = vrot.slane %v3777_v56, %v4928_v12 }
 0x67e   : > { %v2485_v60 = vpop.permute.xlu1 %2484  ;;  %v2483_v61 = vpop.permute.xlu0 %2482 }
 0x67f   : > { %v2486_v62 = vsel %vm6328_vm0, %v2483_v61, %v2485_v60  ;;  %vm6333_vm0 = vcmask 949248   ;;  %v3338_v60 = vpack.i.b16 %v4503_v42, %v4503_v42  ;;  %v4570_v61 = vld [vmem:[%s6123_s1 + $0x15] sm:$0x1] }
 0x680   : > { %2488 = vst [vmem:[#allocation3] sm:$0xc0] %v2486_v62  ;;  %v3692_v62 = vrot.slane %v3687_v11, %v4928_v12 }
 0x682   : > { %v2530_v63 = vpop.permute.xlu1 %2529  ;;  %v2528_v6 = vpop.permute.xlu0 %2527 }
 0x683   : > { %v2531_v3 = vsel %vm6329_vm10, %v2528_v6, %v2530_v63  ;;  %vm6334_vm10 = vcmask 924672   ;;  %v3248_v63 = vpack.i.b16 %v3246_v58, %v3246_v58  ;;  %v3219_v6 = vld [vmem:[%s6339_s13] sm:$0xff]  ;;  %v4546_v58 = vld [vmem:[%s6123_s1 + $0xf] sm:$0x1]  ;;  %s6341_s13 = smov 1  }
 0x684   : > { %2533 = vst [vmem:[#allocation3 + $0x8] sm:$0xc] %v2531_v3  ;;  %v4558_v3 = vld [vmem:[%s6123_s1 + $0x12] sm:$0x1] }
 0x686   : > { %v2592_v8 = vpop.permute.xlu1 %2591  ;;  %v2590_v54 = vpop.permute.xlu0 %2589 }
 0x687   : > { %v2593_v5 = vsel %vm795_vm1, %v2590_v54, %v2592_v8  ;;  %v3143_v9 = vld [vmem:[#allocation3] sm:$0xff]  ;;  %v4563_v8 = vcombine.low %v3782_v24, %v3782_v24  ;;  %v3343_v54 = vrot.slane %v3338_v60, %v4928_v12 }
 0x688   : > { %2595 = vst [vmem:[#allocation3 + $0x8] sm:$0xc0] %v2593_v5  ;;  %4687 = vmatpush3.bf16.msra.mxu0 %v3143_v9  ;;  %v3837_v5 = vpack.i.b16 %v4570_v61, %v4570_v61  ;;  %v4576_v9 = vld [vmem:[%s6123_s1 + $0x17] sm:$0x1]  ;;  %v4588_v61 = vld [vmem:[%s6123_s1 + $0x1a] sm:$0x1] }
 0x689   : > { %4688 = vmatprep.subr.bf16.mxu0 %v4819_v57 }
 0x68a   : > { %v2654_v39 = vpop.permute.xlu1 %2653  ;;  %v2652_v13 = vpop.permute.xlu0 %2651 }
 0x68b   : > { %v2655_v14 = vsel %vm863_vm9, %v2652_v13, %v2654_v39  ;;  %v4551_v39 = vcombine.low %v3692_v62, %v3692_v62  ;;  %v3253_v13 = vrot.slane %v3248_v63, %v4928_v12 }
 0x68c   : > { %2657 = vst [vmem:[#allocation3 + $0x10] sm:$0xc] %v2655_v14  ;;  %v3747_v14 = vpack.i.b16 %v4558_v3, %v4558_v3 }
 0x68e   : > { %v2716_v16 = vpop.permute.xlu1 %2715  ;;  %v2714_v15 = vpop.permute.xlu0 %2713 }
 0x68f   : > { %v2717_v17 = vsel %vm6330_vm12, %v2714_v15, %v2716_v16  ;;  %v3144_v52 = vld [vmem:[#allocation3 + $0x8] sm:$0xff]  ;;  %vm6335_vm12 = vcmask 908288   ;;  %v4499_v16 = vld [vmem:[%s6123_s1 + $0x2] sm:$0x1]  ;;  %v4504_v15 = vcombine.low %v3343_v54, %v3343_v54  ;;  %v3970_v54 = vpack.i.b16 %v4588_v61, %v4588_v61 }
 0x690   : > { %2719 = vst [vmem:[#allocation3 + $0x10] sm:$0xc0] %v2717_v17  ;;  %4689 = vmatpush3.bf16.msra.mxu0 %v3144_v52  ;;  %v3842_v17 = vrot.slane %v3837_v5, %v4928_v12  ;;  %v3880_v52 = vpack.i.b16 %v4576_v9, %v4576_v9  ;;  %v4533_v5 = vld [vmem:[%s6123_s1 + $0xb] sm:$0x1] }
 0x691   : > { %4690 = vmatprep.subr.bf16.mxu0 %v4819_v57 }
 0x692   : > { %v2815_v19 = vpop.permute.xlu1 %2814  ;;  %v2813_v0 = vpop.permute.xlu0 %2812 }
 0x693   : > { %v2816_v20 = vsel %vm6331_vm15, %v2813_v0, %v2815_v19  ;;  %vm6336_vm15 = vcmask 883712   ;;  %v4517_v19 = vld [vmem:[%s6123_s1 + $0x7] sm:$0x1]  ;;  %v4492_v0 = vcombine.low %v3253_v13, %v3253_v13 }
 0x694   : > { %2818 = vst [vmem:[#allocation3 + $0x18] sm:$0xc0] %v2816_v20  ;;  %v3752_v20 = vrot.slane %v3747_v14, %v4928_v12  ;;  %v3975_v14 = vrot.slane %v3970_v54, %v4928_v12 }
 0x696   : > { %v2877_v22 = vpop.permute.xlu1 %2876  ;;  %v2875_v59 = vpop.permute.xlu0 %2874 }
 0x697   : > { %v2878_v7 = vsel %vm6332_vm13, %v2875_v59, %v2877_v22  ;;  %v3145_v25 = vld [vmem:[#allocation3 + $0x10] sm:$0xff]  ;;  %vm6337_vm13 = vcmask 875520   ;;  %v3308_v22 = vpack.i.b16 %v4499_v16, %v4499_v16  ;;  %v4566_v59 = vld [vmem:[%s6123_s1 + $0x14] sm:$0x1]  ;;  %v3561_v16 = vpack.i.b16 %v4533_v5, %v4533_v5 }
 0x698   : > { %2880 = vst [vmem:[#allocation3 + $0x20] sm:$0xc] %v2878_v7  ;;  %4691 = vmatpush3.bf16.msra.mxu0 %v3145_v25  ;;  %v4571_v7 = vcombine.low %v3842_v17, %v3842_v17  ;;  %v3885_v25 = vrot.slane %v3880_v52, %v4928_v12  ;;  %v4589_v52 = vcombine.low %v3975_v14, %v3975_v14 }
 0x699   : > { %4692 = vmatprep.subr.bf16.mxu0 %v4819_v57 }
 0x69a   : > { %v2939_v40 = vpop.permute.xlu1 %2938  ;;  %v2937_v29 = vpop.permute.xlu0 %2936 }
 0x69b   : > { %v2940_v27 = vsel %vm6333_vm0, %v2937_v29, %v2939_v40  ;;  %v3146_v31 = vld [vmem:[#allocation3 + $0x18] sm:$0xff]  ;;  %v3441_v40 = vpack.i.b16 %v4517_v19, %v4517_v19  ;;  %v4584_v29 = vld [vmem:[%s6123_s1 + $0x19] sm:$0x1]  ;;  %v3566_v19 = vrot.slane %v3561_v16, %v4928_v12  ;;  %vm6344_vm0 = vmmov %vm6337_vm13 }
 0x69c   : > { %2942 = vst [vmem:[#allocation3 + $0x20] sm:$0xc0] %v2940_v27  ;;  %4693 = vmatpush3.bf16.msra.mxu0 %v3146_v31  ;;  %v4559_v27 = vcombine.low %v3752_v20, %v3752_v20  ;;  %v3313_v31 = vrot.slane %v3308_v22, %v4928_v12 }
 0x69d   : > { %4694 = vmatprep.subr.bf16.mxu0 %v4819_v57  ;;  %v4534_v20 = vcombine.low %v3566_v19, %v3566_v19 }
 0x69e   : > { %v3001_v28 = vpop.permute.xlu1 %3000  ;;  %v2999_v33 = vpop.permute.xlu0 %2998 }
 0x69f   : > { %v3002_v34 = vsel %vm6334_vm10, %v2999_v33, %v3001_v28  ;;  %v3807_v28 = vpack.i.b16 %v4566_v59, %v4566_v59  ;;  %v4509_v33 = vld [vmem:[%s6123_s1 + $0x5] sm:$0x1]  ;;  %vm6345_vm10 = vmmov %vm6336_vm15 }
 0x6a0   : > { %3004 = vst [vmem:[#allocation3 + $0x28] sm:$0xc] %v3002_v34  ;;  %v4577_v34 = vcombine.low %v3885_v25, %v3885_v25 }
 0x6a2   : > { %v3046_v2 = vpop.permute.xlu1 %3045  ;;  %v3044_v21 = vpop.permute.xlu0 %3043 }
 0x6a3   : > { %v3047_v23 = vsel %vm6335_vm12, %v3044_v21, %v3046_v2  ;;  %v3147_v48 = vld [vmem:[#allocation3 + $0x20] sm:$0xff]  ;;  %v3446_v2 = vrot.slane %v3441_v40, %v4928_v12  ;;  %v3940_v21 = vpack.i.b16 %v4584_v29, %v4584_v29  ;;  %vm6346_vm12 = vcmask 891904  }
 0x6a4   : > { %3049 = vst [vmem:[#allocation3 + $0x28] sm:$0xc0] %v3047_v23  ;;  %4695 = vmatpush3.bf16.msra.mxu0 %v3147_v48  ;;  %v4525_v23 = vld [vmem:[%s6123_s1 + $0x9] sm:$0x1]  ;;  %v4500_v48 = vcombine.low %v3313_v31, %v3313_v31 }
 0x6a5   : > { %4696 = vmatprep.subr.bf16.mxu0 %v4819_v57 }
 0x6a6   : > { %v3108_v30 = vpop.permute.xlu1 %3107  ;;  %v3106_v35 = vpop.permute.xlu0 %3105 }
 0x6a7   : > { %v3109_v36 = vsel %vm6336_vm15, %v3106_v35, %v3108_v30  ;;  %v3812_v30 = vrot.slane %v3807_v28, %v4928_v12  ;;  %v3381_v35 = vpack.i.b16 %v4509_v33, %v4509_v33  ;;  %vm6347_vm15 = vcmask 908288  }
 0x6a8   : > { %3111 = vst [vmem:[#allocation3 + $0x30] sm:$0xc] %v3109_v36  ;;  %v4513_v36 = vld [vmem:[%s6123_s1 + $0x6] sm:$0x1] }
 0x6aa   : > { %v3138_v37 = vpop.permute.xlu1 %3137  ;;  %v3136_v38 = vpop.permute.xlu0 %3135 }
 0x6ab   : > { %v3139_v49 = vsel %vm6337_vm13, %v3136_v38, %v3138_v37  ;;  %v3148_v45 = vld [vmem:[#allocation3 + $0x28] sm:$0xff]  ;;  %v4518_v37 = vcombine.low %v3446_v2, %v3446_v2  ;;  %v3945_v38 = vrot.slane %v3940_v21, %v4928_v12  ;;  %vm6348_vm13 = vcmask 121856  }
 0x6ac   : > { %3141 = vst [vmem:[#allocation3 + $0x30] sm:$0x30] %v3139_v49  ;;  %4697 = vmatpush3.bf16.msra.mxu0 %v3148_v45  ;;  %v3501_v49 = vpack.i.b16 %v4525_v23, %v4525_v23  ;;  %v4529_v45 = vld [vmem:[%s6123_s1 + $0xa] sm:$0x1] }
 0x6ad   : > { %4698 = vmatprep.subr.bf16.mxu0 %v4819_v57 }
 0x6b3   : > { %v3149_v43 = vld [vmem:[#allocation3 + $0x30] sm:$0xff] }
 0x6b4   : > { %4699 = vmatpush3.bf16.msra.mxu0 %v3149_v43  ;;  %v4567_v43 = vcombine.low %v3812_v30, %v3812_v30 }
 0x6b5   : > { %4700 = vmatprep.subr.bf16.mxu0 %v4819_v57  ;;  %v4495_v57 = vld [vmem:[%s6123_s1 + $0x1] sm:$0x1] }
 0x6b6   : > { %v3278_v46 = vpack.i.b16 %v4495_v57, %v4495_v57  ;;  %v4537_v57 = vld [vmem:[%s6123_s1 + $0xc] sm:$0x1] }
 0x6b7   : > { %v3591_v11 = vpack.i.b16 %v4537_v57, %v4537_v57 }
 0x6b8   : > { %4701 = vmatpush3.bf16.msra.mxu0 %v5822_v44  ;;  %v3283_v55 = vrot.slane %v3278_v46, %v4928_v12 }
 0x6b9   : > { %v3596_v63 = vrot.slane %v3591_v11, %v4928_v12 }
 0x6ba   : > { %v4496_v53 = vcombine.low %v3283_v55, %v3283_v55  ;;  %v4521_v55 = vld [vmem:[%s6123_s1 + $0x8] sm:$0x1] }
 0x6bb   : > { %4703 = vmatmul.mubr.bf16.vlgmr.msra.gmra.mrb[4].mxu0 %v3142_v26  ;;  %v3386_v26 = vrot.slane %v3381_v35, %v4928_v12  ;;  %v3471_v60 = vpack.i.b16 %v4521_v55, %v4521_v55  ;;  %v4538_v9 = vcombine.low %v3596_v63, %v3596_v63 }
 0x6bd   : > { %v4510_v46 = vcombine.low %v3386_v26, %v3386_v26 }
 0x78e   : > { %v5828_v47 = vpop.f32.mrb[4].mxu0 }
 0x78f   : > { %v3191_v1 = vmul.f32 %v5257_v4, %v5828_v47  ;;  %v4704_v18 = vpop.f32.mrb[5].mxu0 }
 0x790   : > { %v3188_v41 = vpop.f32.mrb[6].mxu0  ;;  %v4580_v18 = vld [vmem:[%s6123_s1 + $0x18] sm:$0x1] }
 0x791   : > { %v3200_v32 = vmul.f32 %v3191_v1, %v3191_v1  ;;  %3192 = vadd.xlane.f32.xlu0 %v3191_v1  ;;  %v4705_v51 = vpop.f32.mrb[7].mxu0  ;;  %v3411_v1 = vpack.i.b16 %v4513_v36, %v4513_v36  ;;  %v4585_v41 = vcombine.low %v3945_v38, %v3945_v38  ;;  %v3910_v50 = vpack.i.b16 %v4580_v18, %v4580_v18 }
 0x792   : > { %v3531_v51 = vpack.i.b16 %v4529_v45, %v4529_v45 }
 0x793   : > { %3201 = vadd.xlane.f32.xlu1 %v3200_v32  ;;  %v3506_v32 = vrot.slane %v3501_v49, %v4928_v12  ;;  %v3416_v10 = vrot.slane %v3411_v1, %v4928_v12  ;;  %v3915_v24 = vrot.slane %v3910_v50, %v4928_v12 }
 0x794   : > { %v3536_v42 = vrot.slane %v3531_v51, %v4928_v12 }
 0x795   : > { %v4526_v56 = vcombine.low %v3506_v32, %v3506_v32  ;;  %v4581_v3 = vcombine.low %v3915_v24, %v3915_v24 }
 0x796   : > { %v4530_v62 = vcombine.low %v3536_v42, %v3536_v42 }
 0x7a4   : > { %3287 = vrot.lane.b32.xlu1 %v4496_v53, %s6247_s17  ;;  %v4514_v53 = vcombine.low %v3416_v10, %v3416_v10 }
 0x7a7   : > { %3222 = vperm.xlu0 %4743, %v3219_v6   ;;  %v3657_v6 = vpack.i.b16 %v4546_v58, %v4546_v58 }
 0x7a8   : > { %3786 = vrot.lane.b32.xlu1 %v4563_v8, %s6238_s26  ;;  %v3476_v8 = vrot.slane %v3471_v60, %v4928_v12 }
 0x7aa   : > { %v4522_v13 = vcombine.low %v3476_v8, %v3476_v8 }
 0x7ab   : > { %3696 = vrot.lane.b32.xlu0 %v4551_v39, %s6266_s2  ;;  %v3662_v39 = vrot.slane %v3657_v6, %v4928_v12 }
 0x7ac   : > { %3347 = vrot.lane.b32.xlu1 %v4504_v15, %s6321_s5  ;;  %v4542_v15 = vld [vmem:[%s6123_s1 + $0xe] sm:$0x1] }
 0x7ad   : > { %v4547_v17 = vcombine.low %v3662_v39, %v3662_v39 }
 0x7af   : > { %3257 = vrot.lane.b32.xlu0 %v4492_v0, %s6248_s25  ;;  %v3627_v0 = vpack.i.b16 %v4542_v15, %v4542_v15 }
 0x7b0   : > { %3846 = vrot.lane.b32.xlu1 %v4571_v7, %s6237_s23  ;;  %v3230_v7 = vpop.permute.xlu1 %3229 }
 0x7b1   : > { %v3632_v22 = vrot.slane %v3627_v0, %v4928_v12 }
 0x7b3   : > { %3756 = vrot.lane.b32.xlu0 %v4559_v27, %s6267_s15  ;;  %v4543_v59 = vcombine.low %v3632_v22, %v3632_v22 }
 0x7b4   : > { %3889 = vrot.lane.b32.xlu1 %v4577_v34, %s6236_s20  ;;  %v3727_v25 = vpop.permute.xlu1 %3726 }
 0x7b5   : > { %v3728_v8 = vrot.slane %v3727_v25, 4 }
 0x7b7   : > { %3317 = vrot.lane.b32.xlu0 %v4500_v48, %s6246_s30  ;;  %v3729_v14 = vsel %vm863_vm9, %v3728_v8, %v3727_v25 }
 0x7b8   : > { %3450 = vrot.lane.b32.xlu1 %v4518_v37, %s6243_s24 }
 0x7bb   : > { %3816 = vrot.lane.b32.xlu0 %v4567_v43, %s6304_s10 }
 0x7bc   : > { %3949 = vrot.lane.b32.xlu1 %v4585_v41, %s6269_s18 }
 0x7bf   : > { %3390 = vrot.lane.b32.xlu0 %v4510_v46, %s6244_s16 }
 0x7c0   : > { %3510 = vrot.lane.b32.xlu1 %v4526_v56, %s6242_s29 }
 0x7c3   : > { %3420 = vrot.lane.b32.xlu0 %v4514_v53, %s6261_s11 }
 0x7c4   : > { %3540 = vrot.lane.b32.xlu1 %v4530_v62, %s6263_s14 }
 0x7c7   : > { %3919 = vrot.lane.b32.xlu0 %v4581_v3, %s6305_s3 }
 0x7c8   : > { %3600 = vrot.lane.b32.xlu1 %v4538_v9, %s6264_s12 }
 0x7cb   : > { %3480 = vrot.lane.b32.xlu0 %v4522_v13, %s6262_s19 }
 0x7cc   : > { %3666 = vrot.lane.b32.xlu1 %v4547_v17, %s6240_s21 }
 0x7cf   : > { %3979 = vrot.lane.b32.xlu0 %v4589_v52, %s6271_s4 }
 0x7d3   : > { %3570 = vrot.lane.b32.xlu0 %v4534_v20, %s6340_s9 }
 0x7d7   : > { %3636 = vrot.lane.b32.xlu0 %v4543_v59, %s6341_s13 }
 0x81e   : > { %v3193_v40 = vpop.xlane.xlu0 %3192 }
 0x81f   : > { %v3194_v29 = vrot.slane %v3193_v40, 4 }
 0x820   : > { %v3202_v27 = vpop.xlane.xlu1 %3201 }
 0x821   : > { %v3195_v31 = vadd.f32 %v3194_v29, %v3193_v40  ;;  %v3203_v28 = vrot.slane %v3202_v27, 4 }
 0x823   : > { %v3196_v33 = vrot.slane %v3195_v31, 2  ;;  %v3204_v34 = vadd.f32 %v3203_v28, %v3202_v27 }
 0x824   : > { %v3288_v15 = vpop.permute.xlu1 %3287 }
 0x825   : > { %v3197_v2 = vadd.f32 %v3196_v33, %v3195_v31  ;;  %v3205_v21 = vrot.slane %v3204_v34, 2  ;;  %v3289_v0 = vrot.slane %v3288_v15, 4 }
 0x826   : > { %v3223_v41 = vpop.permute.xlu0 %3222 }
 0x827   : > { %v3198_v23 = vrot.slane %v3197_v2, 1  ;;  %v3206_v48 = vadd.f32 %v3205_v21, %v3204_v34  ;;  %v3290_v25 = vsel %vm6345_vm10, %v3289_v0, %v3288_v15  ;;  %vm6350_vm10 = vcmask 138240  }
 0x828   : > { %v3787_v31 = vpop.permute.xlu1 %3786 }
 0x829   : > { %v3199_v30 = vadd.f32 %v3198_v23, %v3197_v2  ;;  %v3207_v12 = vrot.slane %v3206_v48, 1  ;;  %v3788_v34 = vrot.slane %v3787_v31, 4 }
 0x82a   : > { %v3697_v60 = vpop.permute.xlu0 %3696 }
 0x82b   : > { %v3210_v35 = vmul.f32 0.001953125, %v3199_v30  ;;  %v3208_v36 = vadd.f32 %v3207_v12, %v3206_v48  ;;  %v3698_v61 = vrot.slane %v3697_v60, 4  ;;  %v3789_v30 = vsel %vm795_vm1, %v3788_v34, %v3787_v31 }
 0x82d   : > { %v3212_v37 = vmul.f32 %v3210_v35, %v3210_v35  ;;  %v3211_v38 = vmul.f32 0.001953125, %v3208_v36  ;;  %v3217_v26 = vsub.f32 %v5828_v47, %v3210_v35  ;;  %v3699_v3 = vsel %vm896_vm7, %v3698_v61, %v3697_v60 }
 0x82e   : > { %v3258_v5 = vpop.permute.xlu0 %3257 }
 0x82f   : > { %v3213_v49 = vsub.f32 %v3211_v38, %v3212_v37  ;;  %v3259_v13 = vrot.slane %v3258_v5, 4  ;;  %v3348_v38 = vpop.permute.xlu1 %3347 }
 0x831   : > { %v3214_v45 = vmax.f32 %v3213_v49, 0.0  ;;  %v3260_v19 = vsel %vm6344_vm0, %v3259_v13, %v3258_v5  ;;  %vm6349_vm0 = vcmask 924672  }
 0x832   : > { %v3757_v59 = vpop.permute.xlu0 %3756 }
 0x833   : > { %v3215_v43 = vadd.f32 1e-05, %v3214_v45  ;;  %v3758_v40 = vrot.slane %v3757_v59, 4  ;;  %v3349_v45 = vrot.slane %v3348_v38, 4 }
 0x835   : > { %4775 = vrsqrt.f32 %v3215_v43  ;;  %v3759_v33 = vsel %vm828_vm8, %v3758_v40, %v3757_v59 }
 0x836   : > { %v3318_v48 = vpop.permute.xlu0 %3317 }
 0x837   : > { %v3319_v12 = vrot.slane %v3318_v48, 4 }
 0x839   : > { %v3320_v49 = vsel %vm6346_vm12, %v3319_v12, %v3318_v48  ;;  %vm6351_vm12 = vcmask 949248  }
 0x83f   : > { %v4776_v1 = vpop.eup %4775 }
 0x840   : > { %v3218_v18 = vmul.f32 %v4776_v1, %v3217_v26 }
 0x842   : > { %v3225_v32 = vmul.f32 %v3223_v41, %v3218_v18  ;;  %v3817_v18 = vpop.permute.xlu0 %3816  ;;  %v3350_v41 = vsel %vm6347_vm15, %v3349_v45, %v3348_v38  ;;  %vm6352_vm15 = vcmask 162816  }
 0x844   : > { %v3232_v51 = vadd.f32 %v3230_v7, %v3225_v32  ;;  %v3818_v32 = vrot.slane %v3817_v18, 4 }
 0x846   : > { %v3234_v57 = vmul.f32 0.044715, %v3232_v51  ;;  %v3233_v42 = vmul.f32 0.5, %v3232_v51 }
 0x848   : > { %v3235_v46 = vmul.f32 %v3234_v57, %v3232_v51 }
 0x84a   : > { %v3236_v10 = vmul.f32 %v3235_v46, %v3232_v51 }
 0x84c   : > { %v3237_v50 = vadd.f32 %v3236_v10, %v3232_v51  ;;  %v3847_v10 = vpop.permute.xlu1 %3846 }
 0x84e   : > { %v3238_v55 = vmul.f32 0.7978846, %v3237_v50  ;;  %v3819_v50 = vsel %vm760_vm11, %v3818_v32, %v3817_v18 }
 0x850   : > { %4777 = vtanh.f32 %v3238_v55  ;;  %v3848_v55 = vrot.slane %v3847_v10, 4 }
 0x85a   : > { %v4778_v56 = vpop.eup %4777 }
 0x85b   : > { %v3240_v11 = vadd.f32 1.0, %v4778_v56 }
 0x85d   : > { %v3241_v58 = vmul.f32 %v3240_v11, %v3233_v42 }
 0x85f   : > { %v3242_v53 = vmul.f32 %v5257_v4, %v3241_v58  ;;  %v3391_v58 = vpop.permute.xlu0 %3390 }
 0x861   : > { %v3243_v24 = vpack.c.bf16 %v3242_v53, %v3242_v53  ;;  %v3849_v53 = vsel %vm6348_vm13, %v3848_v55, %v3847_v10  ;;  %vm6353_vm13 = vcmask 1006592  }
 0x863   : > { %3244 = vst [vmem:[#allocation2 + $0x4] sm:$0xf] %v3243_v24  ;;  %v3392_v24 = vrot.slane %v3391_v58, 4 }
 0x86a   : > { %v4764_v47 = vld [vmem:[#allocation2 + $0x4] ss:$0 sps:$4 sm:$0xff]  }
 0x86b   : > { %3623 = vst [vmem:[#allocation3 + $0x30] sm:$0xf0] %v4764_v47  ;;  %v5952_v62 = vld [vmem:[#allocation2] sm:$0xff] }
 0x86c   : > { %v4508_v63 = vcombine.high %v5952_v62, %v5952_v62  ;;  %v5956_v6 = vld [vmem:[#allocation2 + $0x4] sm:$0xff]  ;;  %v4507_v9 = vcombine.low %v5952_v62, %v5952_v62  ;;  %v3262_v22 = vmul.bf16 %v3260_v19, %v5952_v62  ;;  %v3292_v27 = vmul.bf16 %v3290_v25, %v5952_v62 }
 0x86d   : > { %v3701_v54 = vmul.bf16 %v3699_v3, %v5956_v6  ;;  %v4575_v39 = vcombine.high %v5956_v6, %v5956_v6  ;;  %v4574_v17 = vcombine.low %v5956_v6, %v5956_v6  ;;  %v3731_v52 = vmul.bf16 %v3729_v14, %v5956_v6 }
 0x86e   : > { %3373 = vrot.lane.b32.xlu1 %v4508_v63, %s6342_s8  ;;  %3371 = vrot.lane.b32.xlu0 %v4507_v9, %s6342_s8  ;;  %v4494_v29 = vcombine.high %v3262_v22, %v3262_v22  ;;  %v4493_v2 = vcombine.low %v3262_v22, %v3262_v22  ;;  %v4498_v21 = vcombine.high %v3292_v27, %v3292_v27  ;;  %v3890_v63 = vpop.permute.xlu1 %3889 }
 0x86f   : > { %v4553_v16 = vcombine.high %v3701_v54, %v3701_v54  ;;  %v4552_v20 = vcombine.low %v3701_v54, %v3701_v54  ;;  %v4557_v7 = vcombine.high %v3731_v52, %v3731_v52  ;;  %v4556_v28 = vcombine.low %v3731_v52, %v3731_v52 }
 0x870   : > { %v3761_v23 = vmul.bf16 %v3759_v33, %v5956_v6  ;;  %v4497_v35 = vcombine.low %v3292_v27, %v3292_v27  ;;  %v3791_v37 = vmul.bf16 %v3789_v30, %v5956_v6  ;;  %v3322_v1 = vmul.bf16 %v3320_v49, %v5952_v62 }
 0x871   : > { %v3352_v46 = vmul.bf16 %v3350_v41, %v5952_v62  ;;  %v3821_v11 = vmul.bf16 %v3819_v50, %v5956_v6  ;;  %v3851_v61 = vmul.bf16 %v3849_v53, %v5956_v6  ;;  %v3393_v3 = vsel %vm6349_vm0, %v3392_v24, %v3391_v58 }
 0x872   : > { %3872 = vrot.lane.b32.xlu1 %v4575_v39, %s6343_s27  ;;  %3870 = vrot.lane.b32.xlu0 %v4574_v17, %s6343_s27  ;;  %v4561_v36 = vcombine.high %v3761_v23, %v3761_v23  ;;  %v4560_v43 = vcombine.low %v3761_v23, %v3761_v23  ;;  %v4565_v26 = vcombine.high %v3791_v37, %v3791_v37  ;;  %v3891_v8 = vrot.slane %v3890_v63, 4  ;;  %v3421_v39 = vpop.permute.xlu0 %3420  ;;  %v3451_v52 = vpop.permute.xlu1 %3450 }
 0x873   : > { %v4564_v51 = vcombine.low %v3791_v37, %v3791_v37  ;;  %v4502_v57 = vcombine.high %v3322_v1, %v3322_v1  ;;  %v4501_v56 = vcombine.low %v3322_v1, %v3322_v1  ;;  %v4506_v42 = vcombine.high %v3352_v46, %v3352_v46 }
 0x874   : > { %v4505_v47 = vcombine.low %v3352_v46, %v3352_v46  ;;  %v4569_v60 = vcombine.high %v3821_v11, %v3821_v11  ;;  %v4568_v54 = vcombine.low %v3821_v11, %v3821_v11  ;;  %v4573_v5 = vcombine.high %v3851_v61, %v3851_v61 }
 0x875   : > { %v3395_v9 = vmul.bf16 %v3393_v3, %v5952_v62  ;;  %v3892_v13 = vsel %vm6350_vm10, %v3891_v8, %v3890_v63  ;;  %v3422_v14 = vrot.slane %v3421_v39, 4  ;;  %v3452_v0 = vrot.slane %v3451_v52, 4 }
 0x876   : > { %3709 = vrot.lane.b32.xlu1 %v4553_v16, %s6263_s14  ;;  %3707 = vrot.lane.b32.xlu0 %v4552_v20, %s6263_s14  ;;  %v4572_v16 = vcombine.low %v3851_v61, %v3851_v61  ;;  %v3894_v17 = vmul.bf16 %v3892_v13, %v5956_v6  ;;  %vm6354_vm0 = vcmask 171008   ;;  %vm6356_vm10 = vcmask 1022976  }
 0x877   : > { %v4512_v15 = vcombine.high %v3395_v9, %v3395_v9  ;;  %v3423_v19 = vsel %vm747_vm2, %v3422_v14, %v3421_v39  ;;  %v4511_v20 = vcombine.low %v3395_v9, %v3395_v9  ;;  %v3453_v25 = vsel %vm6351_vm12, %v3452_v0, %v3451_v52 }
 0x878   : > { %v4579_v22 = vcombine.high %v3894_v17, %v3894_v17  ;;  %v3425_v59 = vmul.bf16 %v3423_v19, %v5952_v62  ;;  %v3455_v31 = vmul.bf16 %v3453_v25, %v5952_v62  ;;  %vm6357_vm12 = vcmask 23552  }
 0x87a   : > { %3739 = vrot.lane.b32.xlu1 %v4557_v7, %s6242_s29  ;;  %3737 = vrot.lane.b32.xlu0 %v4556_v28, %s6242_s29  ;;  %v3920_v7 = vpop.permute.xlu0 %3919  ;;  %v4516_v27 = vcombine.high %v3425_v59, %v3425_v59  ;;  %v3950_v28 = vpop.permute.xlu1 %3949 }
 0x87b   : > { %v3921_v40 = vrot.slane %v3920_v7, 4  ;;  %v3951_v34 = vrot.slane %v3950_v28, 4 }
 0x87d   : > { %v3922_v33 = vsel %vm643_vm14, %v3921_v40, %v3920_v7  ;;  %v3952_v30 = vsel %vm6352_vm15, %v3951_v34, %v3950_v28  ;;  %vm6359_vm15 = vcmask 130048  }
 0x87e   : > { %3270 = vrot.lane.b32.xlu1 %v4494_v29, %s6271_s4  ;;  %3268 = vrot.lane.b32.xlu0 %v4493_v2, %s6271_s4  ;;  %v4578_v29 = vcombine.low %v3894_v17, %v3894_v17  ;;  %v4515_v2 = vcombine.low %v3425_v59, %v3425_v59  ;;  %v3924_v23 = vmul.bf16 %v3922_v33, %v5956_v6  ;;  %v3481_v48 = vpop.permute.xlu0 %3480  ;;  %v3511_v38 = vpop.permute.xlu1 %3510 }
 0x87f   : > { %v3482_v12 = vrot.slane %v3481_v48, 4  ;;  %v3954_v37 = vmul.bf16 %v3952_v30, %v5956_v6  ;;  %v3512_v45 = vrot.slane %v3511_v38, 4 }
 0x881   : > { %v3483_v49 = vsel %vm815_vm3, %v3482_v12, %v3481_v48  ;;  %v3513_v41 = vsel %vm6353_vm13, %v3512_v45, %v3511_v38  ;;  %vm6360_vm13 = vcmask 916480  }
 0x882   : > { %3300 = vrot.lane.b32.xlu1 %v4498_v21, %s6269_s18  ;;  %3298 = vrot.lane.b32.xlu0 %v4497_v35, %s6269_s18  ;;  %v4520_v21 = vcombine.high %v3455_v31, %v3455_v31  ;;  %v4519_v35 = vcombine.low %v3455_v31, %v3455_v31  ;;  %v3485_v1 = vmul.bf16 %v3483_v49, %v5952_v62  ;;  %v3980_v18 = vpop.permute.xlu0 %3979  ;;  %v3541_v10 = vpop.permute.xlu1 %3540 }
 0x883   : > { %v3981_v32 = vrot.slane %v3980_v18, 4  ;;  %v3515_v46 = vmul.bf16 %v3513_v41, %v5952_v62  ;;  %v3542_v55 = vrot.slane %v3541_v10, 4 }
 0x885   : > { %v3982_v50 = vsel %vm6354_vm0, %v3981_v32, %v3980_v18  ;;  %v3543_v53 = vsel %vm883_vm4, %v3542_v55, %v3541_v10  ;;  %vm6361_vm0 = vcmask 1006592  }
 0x886   : > { %3769 = vrot.lane.b32.xlu1 %v4561_v36, %s6262_s19  ;;  %3767 = vrot.lane.b32.xlu0 %v4560_v43, %s6262_s19  ;;  %v4583_v36 = vcombine.high %v3924_v23, %v3924_v23  ;;  %v4582_v43 = vcombine.low %v3924_v23, %v3924_v23  ;;  %v3984_v11 = vmul.bf16 %v3982_v50, %v5956_v6  ;;  %v3571_v58 = vpop.permute.xlu0 %3570  ;;  %v3601_v63 = vpop.permute.xlu1 %3600  ;;  %s6376_s19 = sld [smem:[#allocation17_spill]] }
 0x887   : > { %v3572_v24 = vrot.slane %v3571_v58, 4  ;;  %v3545_v61 = vmul.bf16 %v3543_v53, %v5952_v62  ;;  %v3602_v8 = vrot.slane %v3601_v63, 4 }
 0x889   : > { %v3573_v3 = vsel %vm6356_vm10, %v3572_v24, %v3571_v58  ;;  %v4532_v9 = vcombine.high %v3545_v61, %v3545_v61  ;;  %v3603_v13 = vsel %vm951_vm5, %v3602_v8, %v3601_v63  ;;  %vm6362_vm10 = vcmask 171008  }
 0x88a   : > { %3799 = vrot.lane.b32.xlu1 %v4565_v26, %s6243_s24  ;;  %3797 = vrot.lane.b32.xlu0 %v4564_v51, %s6243_s24  ;;  %v4587_v26 = vcombine.high %v3954_v37, %v3954_v37  ;;  %v4586_v51 = vcombine.low %v3954_v37, %v3954_v37  ;;  %s6355_s24 = smov 5   ;;  %v3575_v39 = vmul.bf16 %v3573_v3, %v5952_v62 }
 0x88b   : > { %v3605_v52 = vmul.bf16 %v3603_v13, %v5952_v62 }
 0x88c   : > { %v4536_v17 = vcombine.high %v3575_v39, %v3575_v39 }
 0x88d   : > { %v4539_v25 = vcombine.low %v3605_v52, %v3605_v52 }
 0x88e   : > { %3330 = vrot.lane.b32.xlu1 %v4502_v57, %s6305_s3  ;;  %3328 = vrot.lane.b32.xlu0 %v4501_v56, %s6305_s3  ;;  %v4524_v57 = vcombine.high %v3485_v1, %v3485_v1  ;;  %v4523_v56 = vcombine.low %v3485_v1, %v3485_v1 }
 0x892   : > { %3360 = vrot.lane.b32.xlu1 %v4506_v42, %s6236_s20  ;;  %3358 = vrot.lane.b32.xlu0 %v4505_v47, %s6236_s20  ;;  %v4528_v42 = vcombine.high %v3515_v46, %v3515_v46  ;;  %v4527_v47 = vcombine.low %v3515_v46, %v3515_v46 }
 0x896   : > { %3829 = vrot.lane.b32.xlu1 %v4569_v60, %s6261_s11  ;;  %3827 = vrot.lane.b32.xlu0 %v4568_v54, %s6261_s11  ;;  %v4591_v60 = vcombine.high %v3984_v11, %v3984_v11  ;;  %v3637_v54 = vpop.permute.xlu0 %3636 }
 0x897   : > { %v3638_v14 = vrot.slane %v3637_v54, 4 }
 0x899   : > { %v3639_v19 = vsel %vm964_vm6, %v3638_v14, %v3637_v54 }
 0x89a   : > { %3859 = vrot.lane.b32.xlu1 %v4573_v5, %s6244_s16  ;;  %3857 = vrot.lane.b32.xlu0 %v4572_v16, %s6244_s16  ;;  %v4590_v5 = vcombine.low %v3984_v11, %v3984_v11  ;;  %v3667_v16 = vpop.permute.xlu1 %3666  ;;  %v3641_v59 = vmul.bf16 %v5956_v6, %v3639_v19  ;;  %s6358_s16 = sld [smem:[#allocation16_spill]] }
 0x89b   : > { %v3668_v0 = vrot.slane %v3667_v16, 4 }
 0x89c   : > { %v4545_v40 = vcombine.high %v3641_v59, %v3641_v59 }
 0x89d   : > { %v3669_v7 = vsel %vm6357_vm12, %v3668_v0, %v3667_v16  ;;  %vm6363_vm12 = vcmask 162816  }
 0x89e   : > { %3403 = vrot.lane.b32.xlu1 %v4512_v15, %s6237_s23  ;;  %3401 = vrot.lane.b32.xlu0 %v4511_v20, %s6237_s23  ;;  %v4531_v15 = vcombine.low %v3545_v61, %v3545_v61  ;;  %v4535_v20 = vcombine.low %v3575_v39, %v3575_v39  ;;  %v3671_v62 = vmul.bf16 %v5956_v6, %v3669_v7  ;;  %s6375_s23 = sld [smem:[#allocation18_spill]] }
 0x8a0   : > { %v6066_v31 = vld [vmem:[%s6358_s16] sm:$0xff]  ;;  %v4548_v33 = vcombine.low %v3671_v62, %v3671_v62 }
 0x8a1   : > { %v4593_v28 = vcombine.high %v6066_v31, %v6066_v31 }
 0x8a2   : > { %3902 = vrot.lane.b32.xlu1 %v4579_v22, %s6321_s5  ;;  %3900 = vrot.lane.b32.xlu0 %v4578_v29, %s6321_s5  ;;  %v4540_v22 = vcombine.high %v3605_v52, %v3605_v52  ;;  %v4544_v29 = vcombine.low %v3641_v59, %v3641_v59 }
 0x8a3   : > { %4053 = vmatprep.mubr.bf16.mxu1 %v4593_v28 }
 0x8a6   : > { %3433 = vrot.lane.b32.xlu1 %v4516_v27, %s6304_s10  ;;  %3431 = vrot.lane.b32.xlu0 %v4515_v2, %s6304_s10  ;;  %v4549_v27 = vcombine.high %v3671_v62, %v3671_v62  ;;  %s6378_s10 = sld [smem:[#allocation20_spill]] }
 0x8aa   : > { %3463 = vrot.lane.b32.xlu1 %v4520_v21, %s6238_s26  ;;  %3461 = vrot.lane.b32.xlu0 %v4519_v35, %s6238_s26 }
 0x8ae   : > { %3932 = vrot.lane.b32.xlu1 %v4583_v36, %s6246_s30  ;;  %3930 = vrot.lane.b32.xlu0 %v4582_v43, %s6246_s30 }
 0x8b2   : > { %3962 = vrot.lane.b32.xlu1 %v4587_v26, %s6247_s17  ;;  %3960 = vrot.lane.b32.xlu0 %v4586_v51, %s6247_s17 }
 0x8b6   : > { %3493 = vrot.lane.b32.xlu1 %v4524_v57, %s6267_s15  ;;  %3491 = vrot.lane.b32.xlu0 %v4523_v56, %s6267_s15 }
 0x8ba   : > { %3523 = vrot.lane.b32.xlu1 %v4528_v42, %s6355_s24  ;;  %3521 = vrot.lane.b32.xlu0 %v4527_v47, %s6355_s24 }
 0x8be   : > { %3992 = vrot.lane.b32.xlu1 %v4591_v60, %s6248_s25  ;;  %3990 = vrot.lane.b32.xlu0 %v4590_v5, %s6248_s25  ;;  %s6374_s25 = sld [smem:[#allocation5_spill]] }
 0x8c2   : > { %3553 = vrot.lane.b32.xlu1 %v4532_v9, %s6266_s2  ;;  %3551 = vrot.lane.b32.xlu0 %v4531_v15, %s6266_s2  ;;  %s6377_s2 = sld [smem:[#allocation19_spill]] }
 0x8c4   : > { %s4182_s20 = sshll.u32 %s6374_s25, 3 }
 0x8c5   : > { %s509_s3 = scalar_lea.vmem %s6378_s10, %s4182_s20 }
 0x8c6   : > { %3583 = vrot.lane.b32.xlu1 %v4536_v17, %s6240_s21  ;;  %3581 = vrot.lane.b32.xlu0 %v4535_v20, %s6240_s21 }
 0x8c8   : > { %s505_s15 = scalar_lea.vmem %s6377_s2, %s4182_s20 }
 0x8ca   : > { %3613 = vrot.lane.b32.xlu1 %v4540_v22, %s6341_s13  ;;  %3611 = vrot.lane.b32.xlu0 %v4539_v25, %s6341_s13 }
 0x8ce   : > { %3649 = vrot.lane.b32.xlu1 %v4545_v40, %s6264_s12  ;;  %3647 = vrot.lane.b32.xlu0 %v4544_v29, %s6264_s12 }
 0x8d2   : > { %3679 = vrot.lane.b32.xlu1 %v4549_v27, %s6340_s9  ;;  %3677 = vrot.lane.b32.xlu0 %v4548_v33, %s6340_s9 }
 0x8e0   : > { %v3374_v6 = vpop.permute.xlu1 %3373  ;;  %v3372_v34 = vpop.permute.xlu0 %3371 }
 0x8e1   : > { %v3375_v21 = vsel %vm6359_vm15, %v3372_v34, %v3374_v6  ;;  %vm6365_vm15 = vcmask 138240  }
 0x8e2   : > { %3377 = vst [vmem:[#allocation3 + $0x10] sm:$0xf] %v3375_v21 }
 0x8e4   : > { %v3873_v2 = vpop.permute.xlu1 %3872  ;;  %v3871_v23 = vpop.permute.xlu0 %3870 }
 0x8e5   : > { %v3874_v30 = vsel %vm6360_vm13, %v3871_v23, %v3873_v2  ;;  %vm6368_vm13 = vcmask 908288  }
 0x8e6   : > { %3876 = vst [vmem:[#allocation3 + $0x58] sm:$0xf] %v3874_v30 }
 0x8e8   : > { %v3710_v48 = vpop.permute.xlu1 %3709  ;;  %v3708_v12 = vpop.permute.xlu0 %3707 }
 0x8e9   : > { %v3711_v36 = vsel %vm883_vm4, %v3708_v12, %v3710_v48  ;;  %vm6364_vm4 = vcmask 949248  }
 0x8ea   : > { %3713 = vst [vmem:[#allocation3 + $0x40] sm:$0xf] %v3711_v36 }
 0x8ec   : > { %v3740_v35 = vpop.permute.xlu1 %3739  ;;  %v3738_v37 = vpop.permute.xlu0 %3737 }
 0x8ed   : > { %v3741_v49 = vsel %vm6361_vm0, %v3738_v37, %v3740_v35  ;;  %vm6370_vm0 = vcmask 883712  }
 0x8ee   : > { %3743 = vst [vmem:[#allocation3 + $0x40] sm:$0xf0] %v3741_v49 }
 0x8f0   : > { %v3271_v38 = vpop.permute.xlu1 %3270  ;;  %v3269_v45 = vpop.permute.xlu0 %3268 }
 0x8f1   : > { %v3272_v26 = vsel %vm6362_vm10, %v3269_v45, %v3271_v38 }
 0x8f2   : > { %3274 = vst [vmem:[#allocation3] sm:$0xf] %v3272_v26 }
 0x8f4   : > { %v3301_v43 = vpop.permute.xlu1 %3300  ;;  %v3299_v1 = vpop.permute.xlu0 %3298 }
 0x8f5   : > { %v3302_v41 = vsel %vm6363_vm12, %v3299_v1, %v3301_v43  ;;  %v4006_v32 = vld [vmem:[#allocation3 + $0x40] sm:$0xff] }
 0x8f6   : > { %3304 = vst [vmem:[#allocation3] sm:$0xf0] %v3302_v41  ;;  %4624 = vmatprep.subr.bf16.mxu1 %v4006_v32 }
 0x8f8   : > { %v3770_v18 = vpop.permute.xlu1 %3769  ;;  %v3768_v51 = vpop.permute.xlu0 %3767 }
 0x8f9   : > { %v3771_v46 = vsel %vm815_vm3, %v3768_v51, %v3770_v18  ;;  %vm6366_vm3 = vcmask 924672  }
 0x8fa   : > { %3773 = vst [vmem:[#allocation3 + $0x48] sm:$0xf] %v3771_v46 }
 0x8fc   : > { %v3800_v57 = vpop.permute.xlu1 %3799  ;;  %v3798_v10 = vpop.permute.xlu0 %3797 }
 0x8fd   : > { %v3801_v55 = vsel %vm6364_vm4, %v3798_v10, %v3800_v57  ;;  %v3998_v56 = vld [vmem:[#allocation3] sm:$0xff] }
 0x8fe   : > { %3803 = vst [vmem:[#allocation3 + $0x48] sm:$0xf0] %v3801_v55  ;;  %4625 = vmatpush3.bf16.msra.mxu1 %v3998_v56 }
 0x900   : > { %v3331_v50 = vpop.permute.xlu1 %3330  ;;  %v3329_v42 = vpop.permute.xlu0 %3328 }
 0x901   : > { %v3332_v58 = vsel %vm643_vm14, %v3329_v42, %v3331_v50  ;;  %vm6367_vm14 = vcmask 121856  }
 0x902   : > { %3334 = vst [vmem:[#allocation3 + $0x8] sm:$0xf] %v3332_v58 }
 0x904   : > { %v3361_v11 = vpop.permute.xlu1 %3360  ;;  %v3359_v53 = vpop.permute.xlu0 %3358 }
 0x905   : > { %v3362_v47 = vsel %vm6365_vm15, %v3359_v53, %v3361_v11  ;;  %v4007_v60 = vld [vmem:[#allocation3 + $0x48] sm:$0xff] }
 0x906   : > { %3364 = vst [vmem:[#allocation3 + $0x8] sm:$0xf0] %v3362_v47  ;;  %4626 = vmatprep.subr.bf16.mxu1 %v4007_v60 }
 0x908   : > { %v3830_v24 = vpop.permute.xlu1 %3829  ;;  %v3828_v61 = vpop.permute.xlu0 %3827 }
 0x909   : > { %v3831_v3 = vsel %vm747_vm2, %v3828_v61, %v3830_v24  ;;  %vm6369_vm2 = vcmask 891904   ;;  %v4592_v24 = vcombine.low %v6066_v31, %v6066_v31  ;;  %v4088_v31 = vld [vmem:[%s6376_s19] sm:$0xff] }
 0x90a   : > { %3833 = vst [vmem:[#allocation3 + $0x50] sm:$0xf] %v3831_v3 }
 0x90c   : > { %v3860_v63 = vpop.permute.xlu1 %3859  ;;  %v3858_v8 = vpop.permute.xlu0 %3857 }
 0x90d   : > { %v3861_v5 = vsel %vm6366_vm3, %v3858_v8, %v3860_v63  ;;  %v3999_v9 = vld [vmem:[#allocation3 + $0x8] sm:$0xff] }
 0x90e   : > { %3863 = vst [vmem:[#allocation3 + $0x50] sm:$0xf0] %v3861_v5  ;;  %4627 = vmatpush3.bf16.msra.mxu1 %v3999_v9 }
 0x910   : > { %v3404_v54 = vpop.permute.xlu1 %3403  ;;  %v3402_v39 = vpop.permute.xlu0 %3401 }
 0x911   : > { %v3405_v14 = vsel %vm6367_vm14, %v3402_v39, %v3404_v54 }
 0x912   : > { %3407 = vst [vmem:[#allocation3 + $0x10] sm:$0xf0] %v3405_v14 }
 0x914   : > { %v3903_v13 = vpop.permute.xlu1 %3902  ;;  %v3901_v16 = vpop.permute.xlu0 %3900 }
 0x915   : > { %v3904_v17 = vsel %vm6368_vm13, %v3901_v16, %v3903_v13  ;;  %v4008_v52 = vld [vmem:[#allocation3 + $0x50] sm:$0xff] }
 0x916   : > { %3906 = vst [vmem:[#allocation3 + $0x58] sm:$0xf0] %v3904_v17  ;;  %4628 = vmatprep.subr.bf16.mxu1 %v4008_v52 }
 0x918   : > { %v3434_v15 = vpop.permute.xlu1 %3433  ;;  %v3432_v19 = vpop.permute.xlu0 %3431 }
 0x919   : > { %v3435_v20 = vsel %vm760_vm11, %v3432_v19, %v3434_v15  ;;  %v4000_v22 = vld [vmem:[#allocation3 + $0x10] sm:$0xff] }
 0x91a   : > { %3437 = vst [vmem:[#allocation3 + $0x18] sm:$0xf] %v3435_v20  ;;  %4629 = vmatpush3.bf16.msra.mxu1 %v4000_v22 }
 0x91c   : > { %v3464_v0 = vpop.permute.xlu1 %3463  ;;  %v3462_v59 = vpop.permute.xlu0 %3461 }
 0x91d   : > { %v3465_v25 = vsel %vm795_vm1, %v3462_v59, %v3464_v0  ;;  %v4009_v40 = vld [vmem:[#allocation3 + $0x58] sm:$0xff]  ;;  %vm6371_vm1 = vcmask 875520  }
 0x91e   : > { %3467 = vst [vmem:[#allocation3 + $0x18] sm:$0xf0] %v3465_v25  ;;  %4630 = vmatprep.subr.bf16.mxu1 %v4009_v40 }
 0x920   : > { %v3933_v7 = vpop.permute.xlu1 %3932  ;;  %v3931_v62 = vpop.permute.xlu0 %3930 }
 0x921   : > { %v3934_v27 = vsel %vm6369_vm2, %v3931_v62, %v3933_v7 }
 0x922   : > { %3936 = vst [vmem:[#allocation3 + $0x60] sm:$0xf] %v3934_v27 }
 0x924   : > { %v3963_v29 = vpop.permute.xlu1 %3962  ;;  %v3961_v28 = vpop.permute.xlu0 %3960 }
 0x925   : > { %v3964_v6 = vsel %vm6370_vm0, %v3961_v28, %v3963_v29  ;;  %v4001_v34 = vld [vmem:[#allocation3 + $0x18] sm:$0xff] }
 0x926   : > { %3966 = vst [vmem:[#allocation3 + $0x60] sm:$0xf0] %v3964_v6  ;;  %4631 = vmatpush3.bf16.msra.mxu1 %v4001_v34 }
 0x928   : > { %v3494_v33 = vpop.permute.xlu1 %3493  ;;  %v3492_v2 = vpop.permute.xlu0 %3491 }
 0x929   : > { %v3495_v23 = vsel %vm828_vm8, %v3492_v2, %v3494_v33  ;;  %vm6372_vm8 = vcmask 23552  }
 0x92a   : > { %3497 = vst [vmem:[#allocation3 + $0x20] sm:$0xf] %v3495_v23 }
 0x92c   : > { %v3524_v21 = vpop.permute.xlu1 %3523  ;;  %v3522_v48 = vpop.permute.xlu0 %3521 }
 0x92d   : > { %v3525_v12 = vsel %vm863_vm9, %v3522_v48, %v3524_v21  ;;  %v4010_v35 = vld [vmem:[#allocation3 + $0x60] sm:$0xff] }
 0x92e   : > { %3527 = vst [vmem:[#allocation3 + $0x20] sm:$0xf0] %v3525_v12  ;;  %4632 = vmatprep.subr.bf16.mxu1 %v4010_v35 }
 0x930   : > { %v3993_v30 = vpop.permute.xlu1 %3992  ;;  %v3991_v36 = vpop.permute.xlu0 %3990 }
 0x931   : > { %v3994_v38 = vsel %vm6371_vm1, %v3991_v36, %v3993_v30 }
 0x932   : > { %3996 = vst [vmem:[#allocation3 + $0x68] sm:$0xf] %v3994_v38 }
 0x934   : > { %v3554_v37 = vpop.permute.xlu1 %3553  ;;  %v3552_v49 = vpop.permute.xlu0 %3551 }
 0x935   : > { %v3555_v43 = vsel %vm896_vm7, %v3552_v49, %v3554_v37  ;;  %v4002_v26 = vld [vmem:[#allocation3 + $0x20] sm:$0xff]  ;;  %vm6373_vm7 = vcmask 1022976  }
 0x936   : > { %3557 = vst [vmem:[#allocation3 + $0x28] sm:$0xf] %v3555_v43  ;;  %4633 = vmatpush3.bf16.msra.mxu1 %v4002_v26 }
 0x938   : > { %v3584_v45 = vpop.permute.xlu1 %3583  ;;  %v3582_v1 = vpop.permute.xlu0 %3581 }
 0x939   : > { %v3585_v41 = vsel %vm6372_vm8, %v3582_v1, %v3584_v45  ;;  %v4011_v32 = vld [vmem:[#allocation3 + $0x68] sm:$0xff] }
 0x93a   : > { %3587 = vst [vmem:[#allocation3 + $0x28] sm:$0xf0] %v3585_v41  ;;  %4634 = vmatprep.subr.bf16.mxu1 %v4011_v32 }
 0x93c   : > { %v3614_v18 = vpop.permute.xlu1 %3613  ;;  %v3612_v51 = vpop.permute.xlu0 %3611 }
 0x93d   : > { %v3615_v46 = vsel %vm964_vm6, %v3612_v51, %v3614_v18 }
 0x93e   : > { %3617 = vst [vmem:[#allocation3 + $0x30] sm:$0xf] %v3615_v46 }
 0x940   : > { %v3650_v57 = vpop.permute.xlu1 %3649  ;;  %v3648_v10 = vpop.permute.xlu0 %3647 }
 0x941   : > { %v3651_v50 = vsel %vm951_vm5, %v3648_v10, %v3650_v57  ;;  %v4003_v55 = vld [vmem:[#allocation3 + $0x28] sm:$0xff] }
 0x942   : > { %3653 = vst [vmem:[#allocation3 + $0x38] sm:$0xf] %v3651_v50  ;;  %4635 = vmatpush3.bf16.msra.mxu1 %v4003_v55 }
 0x943   : > { %4636 = vmatprep.subr.bf16.mxu1 %v5822_v44 }
 0x944   : > { %v3680_v56 = vpop.permute.xlu1 %3679  ;;  %v3678_v42 = vpop.permute.xlu0 %3677 }
 0x945   : > { %v3681_v11 = vsel %vm6373_vm7, %v3678_v42, %v3680_v56  ;;  %v4004_v58 = vld [vmem:[#allocation3 + $0x30] sm:$0xff] }
 0x946   : > { %3683 = vst [vmem:[#allocation3 + $0x38] sm:$0xf0] %v3681_v11  ;;  %4637 = vmatpush3.bf16.msra.mxu1 %v4004_v58 }
 0x947   : > { %4638 = vmatprep.subr.bf16.mxu1 %v5822_v44  ;;  %v4095_v44 = vld [vmem:[%s6375_s23] sm:$0xff] }
 0x94d   : > { %v4005_v53 = vld [vmem:[#allocation3 + $0x38] sm:$0xff] }
 0x94e   : > { %4639 = vmatpush3.bf16.msra.mxu1 %v4005_v53 }
 0x951   : > { %4054 = vmatmul.mubr.bf16.vlgmr.msra.gmra.mrb[4].mxu1 %v4592_v24 }
 0xa24   : > { %v4640_v47 = vpop.f32.mrb[4].mxu1 }
 0xa25   : > { %v4641_v60 = vpop.f32.mrb[5].mxu1 }
 0xa26   : > { %v4642_v61 = vadd.f32 %v4641_v60, %v4640_v47  ;;  %v4643_v63 = vpop.f32.mrb[6].mxu1 }
 0xa27   : > { %v4644_v3 = vpop.f32.mrb[7].mxu1 }
 0xa28   : > { %v4061_v8 = vmul.f32 %v4642_v61, %v5257_v4  ;;  %v4102_v4 = vld [vmem:[%s505_s15] sm:$0xff] }
 0xa2a   : > { %4062 = vadd.xlane.f32.xlu0 %v4061_v8  ;;  %v4070_v54 = vmul.f32 %v4061_v8, %v4061_v8 }
 0xa2c   : > { %4071 = vadd.xlane.f32.xlu1 %v4070_v54 }
 0xa3d   : > { %4098 = vperm.xlu1 %4744, %v4095_v44  }
 0xa40   : > { %4091 = vperm.xlu0 %4743, %v4088_v31  }
 0xa44   : > { %4105 = vperm.xlu0 %4743, %v4102_v4  }
 0xab7   : > { %v4063_v5 = vpop.xlane.xlu0 %4062 }
 0xab8   : > { %v4064_v9 = vrot.slane %v4063_v5, 4 }
 0xab9   : > { %v4072_v39 = vpop.xlane.xlu1 %4071 }
 0xaba   : > { %v4065_v13 = vadd.f32 %v4064_v9, %v4063_v5  ;;  %v4073_v14 = vrot.slane %v4072_v39, 4 }
 0xabc   : > { %v4066_v16 = vrot.slane %v4065_v13, 2  ;;  %v4074_v15 = vadd.f32 %v4073_v14, %v4072_v39 }
 0xabd   : > { %v4099_v21 = vpop.permute.xlu1 %4098 }
 0xabe   : > { %v4067_v17 = vadd.f32 %v4066_v16, %v4065_v13  ;;  %v4075_v52 = vrot.slane %v4074_v15, 2 }
 0xabf   : > { %v4092_v6 = vpop.permute.xlu0 %4091 }
 0xac0   : > { %v4068_v19 = vrot.slane %v4067_v17, 1  ;;  %v4076_v0 = vadd.f32 %v4075_v52, %v4074_v15 }
 0xac2   : > { %v4069_v20 = vadd.f32 %v4068_v19, %v4067_v17  ;;  %v4077_v22 = vrot.slane %v4076_v0, 1 }
 0xac3   : > { %v4106_v48 = vpop.permute.xlu0 %4105 }
 0xac4   : > { %v4079_v59 = vmul.f32 0.001953125, %v4069_v20  ;;  %v4078_v7 = vadd.f32 %v4077_v22, %v4076_v0 }
 0xac6   : > { %v4081_v25 = vmul.f32 %v4079_v59, %v4079_v59  ;;  %v4080_v40 = vmul.f32 0.001953125, %v4078_v7  ;;  %v4086_v28 = vsub.f32 %v4642_v61, %v4079_v59 }
 0xac8   : > { %v4082_v62 = vsub.f32 %v4080_v40, %v4081_v25 }
 0xaca   : > { %v4083_v29 = vmax.f32 %v4082_v62, 0.0 }
 0xacc   : > { %v4084_v27 = vadd.f32 1e-05, %v4083_v29 }
 0xace   : > { %4779 = vrsqrt.f32 %v4084_v27 }
 0xad8   : > { %v4780_v33 = vpop.eup %4779 }
 0xad9   : > { %v4087_v34 = vmul.f32 %v4780_v33, %v4086_v28 }
 0xadb   : > { %v4094_v2 = vmul.f32 %v4092_v6, %v4087_v34 }
 0xadd   : > { %v4101_v23 = vadd.f32 %v4099_v21, %v4094_v2 }
 0xadf   : > { %v4108_v30 = vadd.f32 %v4106_v48, %v4101_v23 }
 0xae1   : > { %4109 = vst [vmem:[%s509_s3] sm:$0xff] %v4108_v30 }
 0xae2 PF: > { %s6379_s5 = sld [smem:[#allocation4_spill]] }
 0xae8   : > { %s25_s18 = sadd.s32 1, %s6379_s5  }
 0xae9   : > { %p22_p4 = scmp.ge.s32.totalorder %s25_s18, 4  }
 0xaeb   :  { %24 = sbr.rel (!%p22_p4) target bundleno = 16 (0x10), region = 143 }

</bundles_post_ra>
